<compile_context>
chip_gen: v7x
topology: tpu7x:2x2x1
jax: 0.10.0
libtpu: 0.0.40
codegen_flags: <defaults>
</compile_context>

<pallas_src>
import functools

import jax
import jax.numpy as jnp
from jax.experimental import pallas as pl
from jax.experimental.pallas import tpu as pltpu


# ---------------------------------------------------------------------------
# Helpers
# ---------------------------------------------------------------------------

def _layernorm(x, w, b, eps=1e-5):
    # fp32 LayerNorm over the last axis (matches the fp16-safe LayerNorm subclass).
    mu = jnp.mean(x, axis=-1, keepdims=True)
    var = jnp.mean((x - mu) ** 2, axis=-1, keepdims=True)
    return (x - mu) * jax.lax.rsqrt(var + eps) * w + b


def _ff_chunk(ff):
    """Chunk width for the MLP hidden dim (lane-friendly, <=512 when possible)."""
    if ff <= 512:
        return ff
    for c in (512, 448, 384, 320, 256, 192, 128):
        if ff % c == 0:
            return c
    return ff


def _device_kind():
    try:
        return jax.devices()[0].device_kind.lower()
    except Exception:
        return ""


def _vmem_capacity_bytes(kind):
    """Physical VMEM per TensorCore, generation-aware with safe fallbacks."""
    try:
        cap = int(pltpu.get_tpu_info().vmem_capacity_bytes)
        if cap > 0:
            return min(max(cap, 32 * 2**20), 128 * 2**20)
    except Exception:
        pass
    if "v7" in kind:
        return 64 * 2**20
    if "v5" in kind or "v6" in kind:
        return 128 * 2**20
    return 64 * 2**20          # unknown generation: stay conservative


def _stacked_layer_bytes(sp):
    """Bytes of one layer's stacked weights (what gets DMA'd per grid point)."""
    total = 0
    for a in sp.values():
        total += (a.size // a.shape[0]) * a.dtype.itemsize
    return total


def _pick_batch_tile(B, S, W, H, ck, layer_weight_bytes, budget_bytes, min_tiles=1):
    """Largest divisor of B whose working set fits the VMEM budget."""
    # Per-bt activation / intermediate estimate (f32-dominant): in+out blocks
    # (double-buffered), q/k/v, residual, layernorm outputs, per-head scores,
    # MLP chunk intermediates.
    act_per_bt = (12 * S * W + 2 * H * S * S + 4 * S * ck) * 4
    avail = budget_bytes - 2 * layer_weight_bytes      # double-buffered weights
    cap = max(1, avail // act_per_bt) if avail > 0 else 1
    cap = min(cap, max(1, 4096 // S))                  # keep matmul M <= ~4K rows
    if min_tiles > 1:                                  # keep both v7x TCs busy
        cap = min(cap, max(1, B // min_tiles))
    cap = min(cap, B)
    # TODO(synk): for prime/awkward batch sizes this falls back to bt=1
    # (perf cliff only); padding B to a friendlier size would avoid it.
    for bt in range(cap, 0, -1):
        if B % bt == 0:
            return bt
    return 1


# ---------------------------------------------------------------------------
# Kernels
# ---------------------------------------------------------------------------

def transformer_kernel(x_in_ref,
                       ln1w_ref, ln1b_ref,
                       wq_ref, bq_ref, wk_ref, bk_ref, wv_ref, bv_ref,
                       wo_ref, bo_ref,
                       ln2w_ref, ln2b_ref,
                       wfc_ref, bfc_ref, wpr_ref, bpr_ref,
                       o_ref, *, n_head):
    """One transformer layer (grid axis 1) on one batch tile (grid axis 0).

    The output block index depends only on the batch tile, so o_ref stays
    resident in VMEM across the layer axis and acts as the carried activation;
    layer l+1 weights are prefetched (double-buffered) under layer l compute.
    """
    layer = pl.program_id(1)

    @pl.when(layer == 0)
    def _():
        # TODO(synk): pass x in bf16 (or alias it to the output) to halve the
        # VMEM held by this layer-0-only input block.
        o_ref[...] = x_in_ref[...]

    x = o_ref[...].astype(jnp.float32)              # (Bt, S, W)
    Bt, S, W = x.shape
    H = n_head
    Dh = W // H
    x2 = x.reshape(Bt * S, W)                       # fold batch into matmul M

    # Causal additive mask generated in-kernel (no (S,S) HBM operand); it also
    # keeps padded key columns away from all real query rows.
    rows = jax.lax.broadcasted_iota(jnp.int32, (S, S), 0)
    cols = jax.lax.broadcasted_iota(jnp.int32, (S, S), 1)
    mask = jnp.where(cols <= rows, jnp.float32(0.0), jnp.float32(-1e30))

    # ---- attention sub-block ----------------------------------------------
    h1 = _layernorm(x2, ln1w_ref[0], ln1b_ref[0]).astype(jnp.bfloat16)
    # Full-width (W, W) projections (MXU-filling); 1/sqrt(Dh) is pre-folded
    # into wq / bq on the host, so no per-head scale multiply here.
    q3 = (jnp.dot(h1, wq_ref[0], preferred_element_type=jnp.float32)
          + bq_ref[0]).reshape(Bt, S, W)
    k3 = (jnp.dot(h1, wk_ref[0], preferred_element_type=jnp.float32)
          + bk_ref[0]).reshape(Bt, S, W)
    v3 = (jnp.dot(h1, wv_ref[0], preferred_element_type=jnp.float32)
          + bv_ref[0]).reshape(Bt, S, W)

    head_out = []
    for h in range(H):                              # static, small head count
        sl = slice(h * Dh, (h + 1) * Dh)
        qh = q3[:, :, sl].astype(jnp.bfloat16)      # (Bt, S, Dh)
        kh = k3[:, :, sl].astype(jnp.bfloat16)
        vh = v3[:, :, sl].astype(jnp.bfloat16)
        s = jnp.einsum('bqd,bkd->bqk', qh, kh,
                       preferred_element_type=jnp.float32) + mask
        s_max = jnp.max(s, axis=-1, keepdims=True)
        e = jnp.exp(s - s_max)                      # f32 (v5e-safe)
        p = e * pl.reciprocal(jnp.sum(e, axis=-1, keepdims=True), approx=True)
        o_h = jnp.einsum('bqk,bkd->bqd', p.astype(jnp.bfloat16), vh,
                         preferred_element_type=jnp.float32)     # (Bt, S, Dh)
        head_out.append(o_h.reshape(Bt * S, Dh))
    # Re-assemble heads along the lane dim, then ONE full (W, W) out-projection.
    o2 = jnp.concatenate(head_out, axis=-1).astype(jnp.bfloat16)  # (Bt*S, W)
    x2 = x2 + jnp.dot(o2, wo_ref[0], preferred_element_type=jnp.float32) + bo_ref[0]

    # ---- MLP sub-block (QuickGELU), chunked over the hidden dim -------------
    h2 = _layernorm(x2, ln2w_ref[0], ln2b_ref[0]).astype(jnp.bfloat16)
    FF = wfc_ref.shape[2]
    ck = _ff_chunk(FF)
    m = jnp.zeros((Bt * S, W), jnp.float32)
    for c in range(FF // ck):                       # static chunk loop
        csl = slice(c * ck, (c + 1) * ck)
        f = (jnp.dot(h2, wfc_ref[0, :, csl], preferred_element_type=jnp.float32)
             + bfc_ref[0, :, csl])
        # TODO(synk): compute the sigmoid in bf16 on v6e/v7x (bf16 EUP);
        # kept in f32 so the same kernel also runs on v5e.
        g = f * jax.nn.sigmoid(1.702 * f)
        m = m + jnp.dot(g.astype(jnp.bfloat16), wpr_ref[0, csl, :],
                        preferred_element_type=jnp.float32)
    x2 = x2 + m + bpr_ref[0]

    o_ref[...] = x2.reshape(Bt, S, W).astype(o_ref.dtype)


def final_proj_kernel(x_ref, lnw_ref, lnb_ref, proj_ref, o_ref):
    """ln_final + text_projection on the gathered eot tokens. x_ref: (B, W)."""
    x = x_ref[...].astype(jnp.float32)
    h = _layernorm(x, lnw_ref[...], lnb_ref[...])
    o_ref[...] = jnp.dot(h.astype(jnp.bfloat16), proj_ref[...],
                         preferred_element_type=jnp.float32).astype(o_ref.dtype)


# ---------------------------------------------------------------------------
# Wrappers around pallas_call
# ---------------------------------------------------------------------------

def run_transformer(x, sp, *, n_head):
    B, S, W = x.shape
    L = sp["wq"].shape[0]
    FF = sp["wfc"].shape[2]
    ck = _ff_chunk(FF)

    kind = _device_kind()
    vmem_cap = _vmem_capacity_bytes(kind)
    # v7x: ~51 MiB of its 64 MiB/TC; v5e/v6e: 100 MiB of 128 MiB physical.
    vmem_limit = min(int(vmem_cap * 0.8), 100 * 2**20)
    budget = int(vmem_limit * 0.85)
    min_tiles = 2 if "v7" in kind else 1            # shard across v7x's two TCs
    bt = _pick_batch_tile(B, S, W, n_head, ck,
                          _stacked_layer_bytes(sp), budget, min_tiles)

    x_map = lambda b, l: (b, 0, 0)

    def layer_spec(arr):
        return pl.BlockSpec((1,) + arr.shape[1:], lambda b, l: (l, 0, 0))

    in_specs = [
        pl.BlockSpec((bt, S, W), x_map),
        layer_spec(sp["ln1_w"]), layer_spec(sp["ln1_b"]),
        layer_spec(sp["wq"]), layer_spec(sp["bq"]),
        layer_spec(sp["wk"]), layer_spec(sp["bk"]),
        layer_spec(sp["wv"]), layer_spec(sp["bv"]),
        layer_spec(sp["wo"]), layer_spec(sp["bo"]),
        layer_spec(sp["ln2_w"]), layer_spec(sp["ln2_b"]),
        layer_spec(sp["wfc"]), layer_spec(sp["bfc"]),
        layer_spec(sp["wpr"]), layer_spec(sp["bpr"]),
    ]
    return pl.pallas_call(
        functools.partial(transformer_kernel, n_head=n_head),
        out_shape=jax.ShapeDtypeStruct((B, S, W), x.dtype),
        grid=(B // bt, L),
        in_specs=in_specs,
        out_specs=pl.BlockSpec((bt, S, W), x_map),
        compiler_params=pltpu.CompilerParams(
            dimension_semantics=("parallel", "arbitrary"),
            vmem_limit_bytes=vmem_limit,
        ),
    )(x,
      sp["ln1_w"], sp["ln1_b"],
      sp["wq"], sp["bq"], sp["wk"], sp["bk"], sp["wv"], sp["bv"],
      sp["wo"], sp["bo"],
      sp["ln2_w"], sp["ln2_b"],
      sp["wfc"], sp["bfc"], sp["wpr"], sp["bpr"])


def run_final_proj(x_eot, ln_w, ln_b, text_proj):
    B, W = x_eot.shape
    E = text_proj.shape[1]
    full = lambda arr: pl.BlockSpec(arr.shape, lambda i: (0, 0))
    return pl.pallas_call(
        final_proj_kernel,
        out_shape=jax.ShapeDtypeStruct((B, E), x_eot.dtype),
        grid=(1,),
        in_specs=[full(x_eot), full(ln_w), full(ln_b), full(text_proj)],
        out_specs=pl.BlockSpec((B, E), lambda i: (0, 0)),
    )(x_eot, ln_w, ln_b, text_proj)


def text_encoder_forward(prompts, tokenized_prompts, params, *, n_head):
    B, S, W = prompts.shape
    # x = prompts + positional_embedding (glue); PyTorch's LND permute is a no-op
    # mathematically — we stay batch-major.
    x = prompts + params["pos_emb"][None, :, :]
    # Pad the sequence to a multiple of 128 so scores / softmax / p·v are fully
    # lane-dense; causality keeps padded key columns away from real query rows.
    s_pad = -(-S // 128) * 128
    if s_pad != S:
        x = jnp.pad(x, ((0, 0), (0, s_pad - S), (0, 0)))
    x = run_transformer(x, params["stacked"], n_head=n_head)
    x = x[:, :S, :]
    # gather eot token per batch element (glue), then ln_final + projection in kernel
    eot = jnp.argmax(tokenized_prompts, axis=-1)
    x_eot = x[jnp.arange(B), eot]                  # (B, W)
    return run_final_proj(x_eot, params["ln_final_w"], params["ln_final_b"],
                          params["text_proj"])


# ---------------------------------------------------------------------------
# Deterministic parameter construction (mirrors TextEncoder.__init__ shapes)
# ---------------------------------------------------------------------------

def make_params(key, *, context_length, width, embed_dim, layers, heads):
    dh = width // heads
    scale = float(dh) ** -0.5
    kq, kk, kv, ko, kf, kp, kpos, kproj = jax.random.split(key, 8)
    std_attn = width ** -0.5
    std_fc = (2 * width) ** -0.5

    def nrm(k, shape, std, mult=1.0, dtype=jnp.bfloat16):
        return (mult * std * jax.random.normal(k, shape, jnp.float32)).astype(dtype)

    # Per-layer weights stacked along a leading L axis; full-width (W, W) QKV /
    # out-proj layout (head h occupies output/input columns [h*Dh, (h+1)*Dh)).
    # NOTE: the 1/sqrt(Dh) attention scale is pre-folded into wq / bq — the
    # kernel does not apply it again.
    stacked = {
        "ln1_w": jnp.ones((layers, 1, width), jnp.float32),
        "ln1_b": jnp.zeros((layers, 1, width), jnp.float32),
        "wq": nrm(kq, (layers, width, width), std_attn, mult=scale),
        "bq": scale * jnp.zeros((layers, 1, width), jnp.float32),
        "wk": nrm(kk, (layers, width, width), std_attn),
        "bk": jnp.zeros((layers, 1, width), jnp.float32),
        "wv": nrm(kv, (layers, width, width), std_attn),
        "bv": jnp.zeros((layers, 1, width), jnp.float32),
        "wo": nrm(ko, (layers, width, width), std_attn),
        "bo": jnp.zeros((layers, 1, width), jnp.float32),
        "ln2_w": jnp.ones((layers, 1, width), jnp.float32),
        "ln2_b": jnp.zeros((layers, 1, width), jnp.float32),
        "wfc": nrm(kf, (layers, width, 4 * width), std_fc),
        "bfc": jnp.zeros((layers, 1, 4 * width), jnp.float32),
        "wpr": nrm(kp, (layers, 4 * width, width), std_fc),
        "bpr": jnp.zeros((layers, 1, width), jnp.float32),
    }
    # logit_scale / token_embedding exist in __init__ but are unused by forward().
    return {
        "pos_emb": 0.01 * jax.random.normal(kpos, (context_length, width), jnp.float32),
        "text_proj": nrm(kproj, (width, embed_dim), width ** -0.5),
        "ln_final_w": jnp.ones((1, width), jnp.float32),
        "ln_final_b": jnp.zeros((1, width), jnp.float32),
        "stacked": stacked,
    }


# ---------------------------------------------------------------------------
if __name__ == "__main__":
    # Small shapes consistent with the module's forward signature.
    batch = 2
    context_length = 8
    transformer_width = 32
    embed_dim = 16
    transformer_layers = 2
    transformer_heads = 4

    key = jax.random.PRNGKey(0)
    k_par, k_prompt, k_tok = jax.random.split(key, 3)

    params = make_params(k_par,
                         context_length=context_length,
                         width=transformer_width,
                         embed_dim=embed_dim,
                         layers=transformer_layers,
                         heads=transformer_heads)

    # prompts: already-embedded tokens (B, L, W); tokenized_prompts: ids (B, L)
    prompts = jax.random.normal(k_prompt, (batch, context_length, transformer_width),
                                jnp.float32)
    tokenized_prompts = jax.random.randint(k_tok, (batch, context_length), 1, 10,
                                           dtype=jnp.int32)
    # put a clear eot (argmax) token at distinct positions
    tokenized_prompts = tokenized_prompts.at[0, 5].set(100).at[1, 7].set(100)

    out = text_encoder_forward(prompts, tokenized_prompts, params,
                               n_head=transformer_heads)
    out = jax.block_until_ready(out)
    assert out.shape == (batch, embed_dim), out.shape
    print("KERNEL_OK")
</pallas_src>

<mosaic_0001>
module attributes {stable_mosaic.version = 11 : i64} {
  func.func @transformer_kernel(%arg0: i32, %arg1: i32, %arg2: memref<2x128x32xf32, #tpu.memory_space<vmem>>, %arg3: memref<1x1x32xf32, #tpu.memory_space<vmem>>, %arg4: memref<1x1x32xf32, #tpu.memory_space<vmem>>, %arg5: memref<1x32x32xbf16, #tpu.memory_space<vmem>>, %arg6: memref<1x1x32xf32, #tpu.memory_space<vmem>>, %arg7: memref<1x32x32xbf16, #tpu.memory_space<vmem>>, %arg8: memref<1x1x32xf32, #tpu.memory_space<vmem>>, %arg9: memref<1x32x32xbf16, #tpu.memory_space<vmem>>, %arg10: memref<1x1x32xf32, #tpu.memory_space<vmem>>, %arg11: memref<1x32x32xbf16, #tpu.memory_space<vmem>>, %arg12: memref<1x1x32xf32, #tpu.memory_space<vmem>>, %arg13: memref<1x1x32xf32, #tpu.memory_space<vmem>>, %arg14: memref<1x1x32xf32, #tpu.memory_space<vmem>>, %arg15: memref<1x32x128xbf16, #tpu.memory_space<vmem>>, %arg16: memref<1x1x128xf32, #tpu.memory_space<vmem>>, %arg17: memref<1x128x32xbf16, #tpu.memory_space<vmem>>, %arg18: memref<1x1x32xf32, #tpu.memory_space<vmem>>, %arg19: memref<2x128x32xf32, #tpu.memory_space<vmem>>) attributes {dimension_semantics = [#tpu.dimension_semantics<parallel>, #tpu.dimension_semantics<arbitrary>], iteration_bounds = array<i64: 1, 2>, scalar_prefetch = 0 : i64, scratch_operands = 0 : i64, tpu.core_type = #tpu.core_type<tc>, window_params = [{transform_indices = @transform_0, window_bounds = array<i64: 2, 128, 32>}, {transform_indices = @transform_1, window_bounds = array<i64: 1, 1, 32>}, {transform_indices = @transform_2, window_bounds = array<i64: 1, 1, 32>}, {transform_indices = @transform_3, window_bounds = array<i64: 1, 32, 32>}, {transform_indices = @transform_4, window_bounds = array<i64: 1, 1, 32>}, {transform_indices = @transform_5, window_bounds = array<i64: 1, 32, 32>}, {transform_indices = @transform_6, window_bounds = array<i64: 1, 1, 32>}, {transform_indices = @transform_7, window_bounds = array<i64: 1, 32, 32>}, {transform_indices = @transform_8, window_bounds = array<i64: 1, 1, 32>}, {transform_indices = @transform_9, window_bounds = array<i64: 1, 32, 32>}, {transform_indices = @transform_10, window_bounds = array<i64: 1, 1, 32>}, {transform_indices = @transform_11, window_bounds = array<i64: 1, 1, 32>}, {transform_indices = @transform_12, window_bounds = array<i64: 1, 1, 32>}, {transform_indices = @transform_13, window_bounds = array<i64: 1, 32, 128>}, {transform_indices = @transform_14, window_bounds = array<i64: 1, 1, 128>}, {transform_indices = @transform_15, window_bounds = array<i64: 1, 128, 32>}, {transform_indices = @transform_16, window_bounds = array<i64: 1, 1, 32>}, {transform_indices = @transform_17, window_bounds = array<i64: 2, 128, 32>}]} {
    %c0_i32 = arith.constant 0 : i32
    %0 = arith.cmpi eq, %arg1, %c0_i32 : i32
    %1 = arith.extui %0 : i1 to i32
    %c0_i32_0 = arith.constant 0 : i32
    %2 = arith.cmpi ne, %1, %c0_i32_0 : i32
    scf.if %2 {
      %c0_90 = arith.constant 0 : index
      %c0_91 = arith.constant 0 : index
      %c0_92 = arith.constant 0 : index
      %219 = vector.load %arg2[%c0_90, %c0_91, %c0_92] : memref<2x128x32xf32, #tpu.memory_space<vmem>>, vector<2x128x32xf32>
      %c0_93 = arith.constant 0 : index
      %c0_94 = arith.constant 0 : index
      %c0_95 = arith.constant 0 : index
      %220 = vector.load %arg19[%c0_93, %c0_94, %c0_95] : memref<2x128x32xf32, #tpu.memory_space<vmem>>, vector<2x128x32xf32>
      tpu.vector_store %arg19[%c0_93, %c0_94, %c0_95], %219 {strides = array<i32>} : memref<2x128x32xf32, #tpu.memory_space<vmem>>, vector<2x128x32xf32>,
    } else {
    }
    %c0 = arith.constant 0 : index
    %c0_1 = arith.constant 0 : index
    %c0_2 = arith.constant 0 : index
    %3 = vector.load %arg19[%c0, %c0_1, %c0_2] : memref<2x128x32xf32, #tpu.memory_space<vmem>>, vector<2x128x32xf32>
    %4 = vector.shape_cast %3 : vector<2x128x32xf32> to vector<256x32xf32>
    %5 = tpu.iota {dimensions = array<i32: 0>} : vector<128x128xi32>
    %6 = tpu.iota {dimensions = array<i32: 1>} : vector<128x128xi32>
    %7 = arith.cmpi sle, %6, %5 : vector<128x128xi32>
    %cst = arith.constant 0.000000e+00 : f32
    %cst_3 = arith.constant -1.000000e+30 : f32
    %8 = vector.broadcast %cst : f32 to vector<128x128xf32>
    %9 = vector.broadcast %cst_3 : f32 to vector<128x128xf32>
    %10 = arith.select %7, %8, %9 : vector<128x128xi1>, vector<128x128xf32>
    %c0_4 = arith.constant 0 : index
    %c0_5 = arith.constant 0 : index
    %c0_6 = arith.constant 0 : index
    %11 = vector.load %arg3[%c0_4, %c0_5, %c0_6] : memref<1x1x32xf32, #tpu.memory_space<vmem>>, vector<1x1x32xf32>
    %12 = vector.shape_cast %11 : vector<1x1x32xf32> to vector<1x32xf32>
    %c0_7 = arith.constant 0 : index
    %c0_8 = arith.constant 0 : index
    %c0_9 = arith.constant 0 : index
    %13 = vector.load %arg4[%c0_7, %c0_8, %c0_9] : memref<1x1x32xf32, #tpu.memory_space<vmem>>, vector<1x1x32xf32>
    %14 = vector.shape_cast %13 : vector<1x1x32xf32> to vector<1x32xf32>
    %cst_10 = arith.constant dense<0.000000e+00> : vector<256xf32>
    %15 = vector.multi_reduction <add>, %4, %cst_10 [1] : vector<256x32xf32> to vector<256xf32>
    %16 = vector.shape_cast %15 : vector<256xf32> to vector<256x1xf32>
    %cst_11 = arith.constant 3.200000e+01 : f32
    %17 = vector.broadcast %cst_11 : f32 to vector<256x1xf32>
    %18 = arith.divf %16, %17 : vector<256x1xf32>
    %19 = vector.broadcast %18 : vector<256x1xf32> to vector<256x32xf32>
    %20 = arith.subf %4, %19 : vector<256x32xf32>
    %21 = arith.mulf %20, %20 : vector<256x32xf32>
    %cst_12 = arith.constant dense<0.000000e+00> : vector<256xf32>
    %22 = vector.multi_reduction <add>, %21, %cst_12 [1] : vector<256x32xf32> to vector<256xf32>
    %23 = vector.shape_cast %22 : vector<256xf32> to vector<256x1xf32>
    %cst_13 = arith.constant 3.200000e+01 : f32
    %24 = vector.broadcast %cst_13 : f32 to vector<256x1xf32>
    %25 = arith.divf %23, %24 : vector<256x1xf32>
    %26 = vector.broadcast %18 : vector<256x1xf32> to vector<256x32xf32>
    %27 = arith.subf %4, %26 : vector<256x32xf32>
    %cst_14 = arith.constant 9.99999974E-6 : f32
    %28 = vector.broadcast %cst_14 : f32 to vector<256x1xf32>
    %29 = arith.addf %25, %28 : vector<256x1xf32>
    %30 = math.rsqrt %29 : vector<256x1xf32>
    %31 = vector.broadcast %30 : vector<256x1xf32> to vector<256x32xf32>
    %32 = arith.mulf %27, %31 : vector<256x32xf32>
    %33 = vector.broadcast %12 : vector<1x32xf32> to vector<256x32xf32>
    %34 = arith.mulf %32, %33 : vector<256x32xf32>
    %35 = vector.broadcast %14 : vector<1x32xf32> to vector<256x32xf32>
    %36 = arith.addf %34, %35 : vector<256x32xf32>
    %37 = arith.truncf %36 : vector<256x32xf32> to vector<256x32xbf16>
    %c0_15 = arith.constant 0 : index
    %c0_16 = arith.constant 0 : index
    %c0_17 = arith.constant 0 : index
    %38 = vector.load %arg5[%c0_15, %c0_16, %c0_17] : memref<1x32x32xbf16, #tpu.memory_space<vmem>>, vector<1x32x32xbf16>
    %39 = vector.shape_cast %38 : vector<1x32x32xbf16> to vector<32x32xbf16>
    %cst_18 = arith.constant dense<0.000000e+00> : vector<256x32xf32>
    %40 = tpu.matmul %37, %39, %cst_18 {dimension_numbers = #tpu.dot_dimension_numbers<[1], [0], [0], [1], [0, 0, 1, 1], [], []>} : vector<256x32xbf16>, vector<32x32xbf16>, vector<256x32xf32> -> vector<256x32xf32>
    %c0_19 = arith.constant 0 : index
    %c0_20 = arith.constant 0 : index
    %c0_21 = arith.constant 0 : index
    %41 = vector.load %arg6[%c0_19, %c0_20, %c0_21] : memref<1x1x32xf32, #tpu.memory_space<vmem>>, vector<1x1x32xf32>
    %42 = vector.shape_cast %41 : vector<1x1x32xf32> to vector<1x32xf32>
    %43 = vector.broadcast %42 : vector<1x32xf32> to vector<256x32xf32>
    %44 = arith.addf %40, %43 : vector<256x32xf32>
    %45 = vector.shape_cast %44 : vector<256x32xf32> to vector<2x128x32xf32>
    %c0_22 = arith.constant 0 : index
    %c0_23 = arith.constant 0 : index
    %c0_24 = arith.constant 0 : index
    %46 = vector.load %arg7[%c0_22, %c0_23, %c0_24] : memref<1x32x32xbf16, #tpu.memory_space<vmem>>, vector<1x32x32xbf16>
    %47 = vector.shape_cast %46 : vector<1x32x32xbf16> to vector<32x32xbf16>
    %cst_25 = arith.constant dense<0.000000e+00> : vector<256x32xf32>
    %48 = tpu.matmul %37, %47, %cst_25 {dimension_numbers = #tpu.dot_dimension_numbers<[1], [0], [0], [1], [0, 0, 1, 1], [], []>} : vector<256x32xbf16>, vector<32x32xbf16>, vector<256x32xf32> -> vector<256x32xf32>
    %c0_26 = arith.constant 0 : index
    %c0_27 = arith.constant 0 : index
    %c0_28 = arith.constant 0 : index
    %49 = vector.load %arg8[%c0_26, %c0_27, %c0_28] : memref<1x1x32xf32, #tpu.memory_space<vmem>>, vector<1x1x32xf32>
    %50 = vector.shape_cast %49 : vector<1x1x32xf32> to vector<1x32xf32>
    %51 = vector.broadcast %50 : vector<1x32xf32> to vector<256x32xf32>
    %52 = arith.addf %48, %51 : vector<256x32xf32>
    %53 = vector.shape_cast %52 : vector<256x32xf32> to vector<2x128x32xf32>
    %c0_29 = arith.constant 0 : index
    %c0_30 = arith.constant 0 : index
    %c0_31 = arith.constant 0 : index
    %54 = vector.load %arg9[%c0_29, %c0_30, %c0_31] : memref<1x32x32xbf16, #tpu.memory_space<vmem>>, vector<1x32x32xbf16>
    %55 = vector.shape_cast %54 : vector<1x32x32xbf16> to vector<32x32xbf16>
    %cst_32 = arith.constant dense<0.000000e+00> : vector<256x32xf32>
    %56 = tpu.matmul %37, %55, %cst_32 {dimension_numbers = #tpu.dot_dimension_numbers<[1], [0], [0], [1], [0, 0, 1, 1], [], []>} : vector<256x32xbf16>, vector<32x32xbf16>, vector<256x32xf32> -> vector<256x32xf32>
    %c0_33 = arith.constant 0 : index
    %c0_34 = arith.constant 0 : index
    %c0_35 = arith.constant 0 : index
    %57 = vector.load %arg10[%c0_33, %c0_34, %c0_35] : memref<1x1x32xf32, #tpu.memory_space<vmem>>, vector<1x1x32xf32>
    %58 = vector.shape_cast %57 : vector<1x1x32xf32> to vector<1x32xf32>
    %59 = vector.broadcast %58 : vector<1x32xf32> to vector<256x32xf32>
    %60 = arith.addf %56, %59 : vector<256x32xf32>
    %61 = vector.shape_cast %60 : vector<256x32xf32> to vector<2x128x32xf32>
    %62 = vector.extract_strided_slice %45 {offsets = [0, 0, 0], sizes = [2, 128, 8], strides = [1, 1, 1]} : vector<2x128x32xf32> to vector<2x128x8xf32>
    %63 = arith.truncf %62 : vector<2x128x8xf32> to vector<2x128x8xbf16>
    %64 = vector.extract_strided_slice %53 {offsets = [0, 0, 0], sizes = [2, 128, 8], strides = [1, 1, 1]} : vector<2x128x32xf32> to vector<2x128x8xf32>
    %65 = arith.truncf %64 : vector<2x128x8xf32> to vector<2x128x8xbf16>
    %66 = vector.extract_strided_slice %61 {offsets = [0, 0, 0], sizes = [2, 128, 8], strides = [1, 1, 1]} : vector<2x128x32xf32> to vector<2x128x8xf32>
    %67 = arith.truncf %66 : vector<2x128x8xf32> to vector<2x128x8xbf16>
    "tpu.trace_start"() <{level = 10 : i32, message = "bqd,bkd->bqk"}> : () -> ()
    %cst_36 = arith.constant dense<0.000000e+00> : vector<2x128x128xf32>
    %68 = tpu.matmul %63, %65, %cst_36 {dimension_numbers = #tpu.dot_dimension_numbers<[2], [2], [1], [1], [0, 0, 0, 1, 1, 1], [0], [0]>} : vector<2x128x8xbf16>, vector<2x128x8xbf16>, vector<2x128x128xf32> -> vector<2x128x128xf32>
    "tpu.trace_stop"() : () -> ()
    %69 = vector.shape_cast %10 : vector<128x128xf32> to vector<1x128x128xf32>
    %70 = vector.broadcast %69 : vector<1x128x128xf32> to vector<2x128x128xf32>
    %71 = arith.addf %68, %70 : vector<2x128x128xf32>
    %cst_37 = arith.constant dense<0xFF800000> : vector<2x128xf32>
    %72 = vector.multi_reduction <maximumf>, %71, %cst_37 [2] : vector<2x128x128xf32> to vector<2x128xf32>
    %73 = vector.shape_cast %72 : vector<2x128xf32> to vector<2x128x1xf32>
    %74 = vector.broadcast %73 : vector<2x128x1xf32> to vector<2x128x128xf32>
    %75 = arith.subf %71, %74 : vector<2x128x128xf32>
    %76 = math.exp %75 : vector<2x128x128xf32>
    %cst_38 = arith.constant dense<0.000000e+00> : vector<2x128xf32>
    %77 = vector.multi_reduction <add>, %76, %cst_38 [2] : vector<2x128x128xf32> to vector<2x128xf32>
    %78 = vector.shape_cast %77 : vector<2x128xf32> to vector<2x128x1xf32>
    %79 = tpu.reciprocal %78 {approx = true} : vector<2x128x1xf32> -> vector<2x128x1xf32>
    %80 = vector.broadcast %79 : vector<2x128x1xf32> to vector<2x128x128xf32>
    %81 = arith.mulf %76, %80 : vector<2x128x128xf32>
    %82 = arith.truncf %81 : vector<2x128x128xf32> to vector<2x128x128xbf16>
    "tpu.trace_start"() <{level = 10 : i32, message = "bqk,bkd->bqd"}> : () -> ()
    %cst_39 = arith.constant dense<0.000000e+00> : vector<2x128x8xf32>
    %83 = tpu.matmul %82, %67, %cst_39 {dimension_numbers = #tpu.dot_dimension_numbers<[2], [1], [1], [2], [0, 0, 0, 1, 1, 2], [0], [0]>} : vector<2x128x128xbf16>, vector<2x128x8xbf16>, vector<2x128x8xf32> -> vector<2x128x8xf32>
    "tpu.trace_stop"() : () -> ()
    %84 = vector.shape_cast %83 : vector<2x128x8xf32> to vector<256x8xf32>
    %85 = vector.extract_strided_slice %45 {offsets = [0, 0, 8], sizes = [2, 128, 8], strides = [1, 1, 1]} : vector<2x128x32xf32> to vector<2x128x8xf32>
    %86 = arith.truncf %85 : vector<2x128x8xf32> to vector<2x128x8xbf16>
    %87 = vector.extract_strided_slice %53 {offsets = [0, 0, 8], sizes = [2, 128, 8], strides = [1, 1, 1]} : vector<2x128x32xf32> to vector<2x128x8xf32>
    %88 = arith.truncf %87 : vector<2x128x8xf32> to vector<2x128x8xbf16>
    %89 = vector.extract_strided_slice %61 {offsets = [0, 0, 8], sizes = [2, 128, 8], strides = [1, 1, 1]} : vector<2x128x32xf32> to vector<2x128x8xf32>
    %90 = arith.truncf %89 : vector<2x128x8xf32> to vector<2x128x8xbf16>
    "tpu.trace_start"() <{level = 10 : i32, message = "bqd,bkd->bqk"}> : () -> ()
    %cst_40 = arith.constant dense<0.000000e+00> : vector<2x128x128xf32>
    %91 = tpu.matmul %86, %88, %cst_40 {dimension_numbers = #tpu.dot_dimension_numbers<[2], [2], [1], [1], [0, 0, 0, 1, 1, 1], [0], [0]>} : vector<2x128x8xbf16>, vector<2x128x8xbf16>, vector<2x128x128xf32> -> vector<2x128x128xf32>
    "tpu.trace_stop"() : () -> ()
    %92 = vector.shape_cast %10 : vector<128x128xf32> to vector<1x128x128xf32>
    %93 = vector.broadcast %92 : vector<1x128x128xf32> to vector<2x128x128xf32>
    %94 = arith.addf %91, %93 : vector<2x128x128xf32>
    %cst_41 = arith.constant dense<0xFF800000> : vector<2x128xf32>
    %95 = vector.multi_reduction <maximumf>, %94, %cst_41 [2] : vector<2x128x128xf32> to vector<2x128xf32>
    %96 = vector.shape_cast %95 : vector<2x128xf32> to vector<2x128x1xf32>
    %97 = vector.broadcast %96 : vector<2x128x1xf32> to vector<2x128x128xf32>
    %98 = arith.subf %94, %97 : vector<2x128x128xf32>
    %99 = math.exp %98 : vector<2x128x128xf32>
    %cst_42 = arith.constant dense<0.000000e+00> : vector<2x128xf32>
    %100 = vector.multi_reduction <add>, %99, %cst_42 [2] : vector<2x128x128xf32> to vector<2x128xf32>
    %101 = vector.shape_cast %100 : vector<2x128xf32> to vector<2x128x1xf32>
    %102 = tpu.reciprocal %101 {approx = true} : vector<2x128x1xf32> -> vector<2x128x1xf32>
    %103 = vector.broadcast %102 : vector<2x128x1xf32> to vector<2x128x128xf32>
    %104 = arith.mulf %99, %103 : vector<2x128x128xf32>
    %105 = arith.truncf %104 : vector<2x128x128xf32> to vector<2x128x128xbf16>
    "tpu.trace_start"() <{level = 10 : i32, message = "bqk,bkd->bqd"}> : () -> ()
    %cst_43 = arith.constant dense<0.000000e+00> : vector<2x128x8xf32>
    %106 = tpu.matmul %105, %90, %cst_43 {dimension_numbers = #tpu.dot_dimension_numbers<[2], [1], [1], [2], [0, 0, 0, 1, 1, 2], [0], [0]>} : vector<2x128x128xbf16>, vector<2x128x8xbf16>, vector<2x128x8xf32> -> vector<2x128x8xf32>
    "tpu.trace_stop"() : () -> ()
    %107 = vector.shape_cast %106 : vector<2x128x8xf32> to vector<256x8xf32>
    %108 = vector.extract_strided_slice %45 {offsets = [0, 0, 16], sizes = [2, 128, 8], strides = [1, 1, 1]} : vector<2x128x32xf32> to vector<2x128x8xf32>
    %109 = arith.truncf %108 : vector<2x128x8xf32> to vector<2x128x8xbf16>
    %110 = vector.extract_strided_slice %53 {offsets = [0, 0, 16], sizes = [2, 128, 8], strides = [1, 1, 1]} : vector<2x128x32xf32> to vector<2x128x8xf32>
    %111 = arith.truncf %110 : vector<2x128x8xf32> to vector<2x128x8xbf16>
    %112 = vector.extract_strided_slice %61 {offsets = [0, 0, 16], sizes = [2, 128, 8], strides = [1, 1, 1]} : vector<2x128x32xf32> to vector<2x128x8xf32>
    %113 = arith.truncf %112 : vector<2x128x8xf32> to vector<2x128x8xbf16>
    "tpu.trace_start"() <{level = 10 : i32, message = "bqd,bkd->bqk"}> : () -> ()
    %cst_44 = arith.constant dense<0.000000e+00> : vector<2x128x128xf32>
    %114 = tpu.matmul %109, %111, %cst_44 {dimension_numbers = #tpu.dot_dimension_numbers<[2], [2], [1], [1], [0, 0, 0, 1, 1, 1], [0], [0]>} : vector<2x128x8xbf16>, vector<2x128x8xbf16>, vector<2x128x128xf32> -> vector<2x128x128xf32>
    "tpu.trace_stop"() : () -> ()
    %115 = vector.shape_cast %10 : vector<128x128xf32> to vector<1x128x128xf32>
    %116 = vector.broadcast %115 : vector<1x128x128xf32> to vector<2x128x128xf32>
    %117 = arith.addf %114, %116 : vector<2x128x128xf32>
    %cst_45 = arith.constant dense<0xFF800000> : vector<2x128xf32>
    %118 = vector.multi_reduction <maximumf>, %117, %cst_45 [2] : vector<2x128x128xf32> to vector<2x128xf32>
    %119 = vector.shape_cast %118 : vector<2x128xf32> to vector<2x128x1xf32>
    %120 = vector.broadcast %119 : vector<2x128x1xf32> to vector<2x128x128xf32>
    %121 = arith.subf %117, %120 : vector<2x128x128xf32>
    %122 = math.exp %121 : vector<2x128x128xf32>
    %cst_46 = arith.constant dense<0.000000e+00> : vector<2x128xf32>
    %123 = vector.multi_reduction <add>, %122, %cst_46 [2] : vector<2x128x128xf32> to vector<2x128xf32>
    %124 = vector.shape_cast %123 : vector<2x128xf32> to vector<2x128x1xf32>
    %125 = tpu.reciprocal %124 {approx = true} : vector<2x128x1xf32> -> vector<2x128x1xf32>
    %126 = vector.broadcast %125 : vector<2x128x1xf32> to vector<2x128x128xf32>
    %127 = arith.mulf %122, %126 : vector<2x128x128xf32>
    %128 = arith.truncf %127 : vector<2x128x128xf32> to vector<2x128x128xbf16>
    "tpu.trace_start"() <{level = 10 : i32, message = "bqk,bkd->bqd"}> : () -> ()
    %cst_47 = arith.constant dense<0.000000e+00> : vector<2x128x8xf32>
    %129 = tpu.matmul %128, %113, %cst_47 {dimension_numbers = #tpu.dot_dimension_numbers<[2], [1], [1], [2], [0, 0, 0, 1, 1, 2], [0], [0]>} : vector<2x128x128xbf16>, vector<2x128x8xbf16>, vector<2x128x8xf32> -> vector<2x128x8xf32>
    "tpu.trace_stop"() : () -> ()
    %130 = vector.shape_cast %129 : vector<2x128x8xf32> to vector<256x8xf32>
    %131 = vector.extract_strided_slice %45 {offsets = [0, 0, 24], sizes = [2, 128, 8], strides = [1, 1, 1]} : vector<2x128x32xf32> to vector<2x128x8xf32>
    %132 = arith.truncf %131 : vector<2x128x8xf32> to vector<2x128x8xbf16>
    %133 = vector.extract_strided_slice %53 {offsets = [0, 0, 24], sizes = [2, 128, 8], strides = [1, 1, 1]} : vector<2x128x32xf32> to vector<2x128x8xf32>
    %134 = arith.truncf %133 : vector<2x128x8xf32> to vector<2x128x8xbf16>
    %135 = vector.extract_strided_slice %61 {offsets = [0, 0, 24], sizes = [2, 128, 8], strides = [1, 1, 1]} : vector<2x128x32xf32> to vector<2x128x8xf32>
    %136 = arith.truncf %135 : vector<2x128x8xf32> to vector<2x128x8xbf16>
    "tpu.trace_start"() <{level = 10 : i32, message = "bqd,bkd->bqk"}> : () -> ()
    %cst_48 = arith.constant dense<0.000000e+00> : vector<2x128x128xf32>
    %137 = tpu.matmul %132, %134, %cst_48 {dimension_numbers = #tpu.dot_dimension_numbers<[2], [2], [1], [1], [0, 0, 0, 1, 1, 1], [0], [0]>} : vector<2x128x8xbf16>, vector<2x128x8xbf16>, vector<2x128x128xf32> -> vector<2x128x128xf32>
    "tpu.trace_stop"() : () -> ()
    %138 = vector.shape_cast %10 : vector<128x128xf32> to vector<1x128x128xf32>
    %139 = vector.broadcast %138 : vector<1x128x128xf32> to vector<2x128x128xf32>
    %140 = arith.addf %137, %139 : vector<2x128x128xf32>
    %cst_49 = arith.constant dense<0xFF800000> : vector<2x128xf32>
    %141 = vector.multi_reduction <maximumf>, %140, %cst_49 [2] : vector<2x128x128xf32> to vector<2x128xf32>
    %142 = vector.shape_cast %141 : vector<2x128xf32> to vector<2x128x1xf32>
    %143 = vector.broadcast %142 : vector<2x128x1xf32> to vector<2x128x128xf32>
    %144 = arith.subf %140, %143 : vector<2x128x128xf32>
    %145 = math.exp %144 : vector<2x128x128xf32>
    %cst_50 = arith.constant dense<0.000000e+00> : vector<2x128xf32>
    %146 = vector.multi_reduction <add>, %145, %cst_50 [2] : vector<2x128x128xf32> to vector<2x128xf32>
    %147 = vector.shape_cast %146 : vector<2x128xf32> to vector<2x128x1xf32>
    %148 = tpu.reciprocal %147 {approx = true} : vector<2x128x1xf32> -> vector<2x128x1xf32>
    %149 = vector.broadcast %148 : vector<2x128x1xf32> to vector<2x128x128xf32>
    %150 = arith.mulf %145, %149 : vector<2x128x128xf32>
    %151 = arith.truncf %150 : vector<2x128x128xf32> to vector<2x128x128xbf16>
    "tpu.trace_start"() <{level = 10 : i32, message = "bqk,bkd->bqd"}> : () -> ()
    %cst_51 = arith.constant dense<0.000000e+00> : vector<2x128x8xf32>
    %152 = tpu.matmul %151, %136, %cst_51 {dimension_numbers = #tpu.dot_dimension_numbers<[2], [1], [1], [2], [0, 0, 0, 1, 1, 2], [0], [0]>} : vector<2x128x128xbf16>, vector<2x128x8xbf16>, vector<2x128x8xf32> -> vector<2x128x8xf32>
    "tpu.trace_stop"() : () -> ()
    %153 = vector.shape_cast %152 : vector<2x128x8xf32> to vector<256x8xf32>
    %154 = tpu.concatenate %84, %107, %130, %153 in 1 : vector<256x8xf32>, vector<256x8xf32>, vector<256x8xf32>, vector<256x8xf32> -> vector<256x32xf32>
    %155 = arith.truncf %154 : vector<256x32xf32> to vector<256x32xbf16>
    %c0_52 = arith.constant 0 : index
    %c0_53 = arith.constant 0 : index
    %c0_54 = arith.constant 0 : index
    %156 = vector.load %arg11[%c0_52, %c0_53, %c0_54] : memref<1x32x32xbf16, #tpu.memory_space<vmem>>, vector<1x32x32xbf16>
    %157 = vector.shape_cast %156 : vector<1x32x32xbf16> to vector<32x32xbf16>
    %cst_55 = arith.constant dense<0.000000e+00> : vector<256x32xf32>
    %158 = tpu.matmul %155, %157, %cst_55 {dimension_numbers = #tpu.dot_dimension_numbers<[1], [0], [0], [1], [0, 0, 1, 1], [], []>} : vector<256x32xbf16>, vector<32x32xbf16>, vector<256x32xf32> -> vector<256x32xf32>
    %159 = arith.addf %4, %158 : vector<256x32xf32>
    %c0_56 = arith.constant 0 : index
    %c0_57 = arith.constant 0 : index
    %c0_58 = arith.constant 0 : index
    %160 = vector.load %arg12[%c0_56, %c0_57, %c0_58] : memref<1x1x32xf32, #tpu.memory_space<vmem>>, vector<1x1x32xf32>
    %161 = vector.shape_cast %160 : vector<1x1x32xf32> to vector<1x32xf32>
    %162 = vector.broadcast %161 : vector<1x32xf32> to vector<256x32xf32>
    %163 = arith.addf %159, %162 : vector<256x32xf32>
    %c0_59 = arith.constant 0 : index
    %c0_60 = arith.constant 0 : index
    %c0_61 = arith.constant 0 : index
    %164 = vector.load %arg13[%c0_59, %c0_60, %c0_61] : memref<1x1x32xf32, #tpu.memory_space<vmem>>, vector<1x1x32xf32>
    %165 = vector.shape_cast %164 : vector<1x1x32xf32> to vector<1x32xf32>
    %c0_62 = arith.constant 0 : index
    %c0_63 = arith.constant 0 : index
    %c0_64 = arith.constant 0 : index
    %166 = vector.load %arg14[%c0_62, %c0_63, %c0_64] : memref<1x1x32xf32, #tpu.memory_space<vmem>>, vector<1x1x32xf32>
    %167 = vector.shape_cast %166 : vector<1x1x32xf32> to vector<1x32xf32>
    %cst_65 = arith.constant dense<0.000000e+00> : vector<256xf32>
    %168 = vector.multi_reduction <add>, %163, %cst_65 [1] : vector<256x32xf32> to vector<256xf32>
    %169 = vector.shape_cast %168 : vector<256xf32> to vector<256x1xf32>
    %cst_66 = arith.constant 3.200000e+01 : f32
    %170 = vector.broadcast %cst_66 : f32 to vector<256x1xf32>
    %171 = arith.divf %169, %170 : vector<256x1xf32>
    %172 = vector.broadcast %171 : vector<256x1xf32> to vector<256x32xf32>
    %173 = arith.subf %163, %172 : vector<256x32xf32>
    %174 = arith.mulf %173, %173 : vector<256x32xf32>
    %cst_67 = arith.constant dense<0.000000e+00> : vector<256xf32>
    %175 = vector.multi_reduction <add>, %174, %cst_67 [1] : vector<256x32xf32> to vector<256xf32>
    %176 = vector.shape_cast %175 : vector<256xf32> to vector<256x1xf32>
    %cst_68 = arith.constant 3.200000e+01 : f32
    %177 = vector.broadcast %cst_68 : f32 to vector<256x1xf32>
    %178 = arith.divf %176, %177 : vector<256x1xf32>
    %179 = vector.broadcast %171 : vector<256x1xf32> to vector<256x32xf32>
    %180 = arith.subf %163, %179 : vector<256x32xf32>
    %cst_69 = arith.constant 9.99999974E-6 : f32
    %181 = vector.broadcast %cst_69 : f32 to vector<256x1xf32>
    %182 = arith.addf %178, %181 : vector<256x1xf32>
    %183 = math.rsqrt %182 : vector<256x1xf32>
    %184 = vector.broadcast %183 : vector<256x1xf32> to vector<256x32xf32>
    %185 = arith.mulf %180, %184 : vector<256x32xf32>
    %186 = vector.broadcast %165 : vector<1x32xf32> to vector<256x32xf32>
    %187 = arith.mulf %185, %186 : vector<256x32xf32>
    %188 = vector.broadcast %167 : vector<1x32xf32> to vector<256x32xf32>
    %189 = arith.addf %187, %188 : vector<256x32xf32>
    %190 = arith.truncf %189 : vector<256x32xf32> to vector<256x32xbf16>
    %cst_70 = arith.constant 0.000000e+00 : f32
    %191 = vector.broadcast %cst_70 : f32 to vector<256x32xf32>
    %c0_71 = arith.constant 0 : index
    %c0_72 = arith.constant 0 : index
    %c0_73 = arith.constant 0 : index
    %192 = vector.load %arg15[%c0_71, %c0_72, %c0_73] : memref<1x32x128xbf16, #tpu.memory_space<vmem>>, vector<1x32x128xbf16>
    %193 = vector.shape_cast %192 : vector<1x32x128xbf16> to vector<32x128xbf16>
    %cst_74 = arith.constant dense<0.000000e+00> : vector<256x128xf32>
    %194 = tpu.matmul %190, %193, %cst_74 {dimension_numbers = #tpu.dot_dimension_numbers<[1], [0], [0], [1], [0, 0, 1, 1], [], []>} : vector<256x32xbf16>, vector<32x128xbf16>, vector<256x128xf32> -> vector<256x128xf32>
    %c0_75 = arith.constant 0 : index
    %c0_76 = arith.constant 0 : index
    %c0_77 = arith.constant 0 : index
    %195 = vector.load %arg16[%c0_75, %c0_76, %c0_77] : memref<1x1x128xf32, #tpu.memory_space<vmem>>, vector<1x1x128xf32>
    %196 = vector.shape_cast %195 : vector<1x1x128xf32> to vector<1x128xf32>
    %197 = vector.broadcast %196 : vector<1x128xf32> to vector<256x128xf32>
    %198 = arith.addf %194, %197 : vector<256x128xf32>
    %cst_78 = arith.constant 1.702000e+00 : f32
    %199 = vector.broadcast %cst_78 : f32 to vector<256x128xf32>
    %200 = arith.mulf %199, %198 : vector<256x128xf32>
    %201 = arith.negf %200 : vector<256x128xf32>
    %202 = math.exp %201 : vector<256x128xf32>
    %cst_79 = arith.constant 1.000000e+00 : f32
    %203 = vector.broadcast %cst_79 : f32 to vector<256x128xf32>
    %204 = arith.addf %203, %202 : vector<256x128xf32>
    %205 = arith.divf %203, %204 : vector<256x128xf32>
    %206 = arith.mulf %198, %205 : vector<256x128xf32>
    %207 = arith.truncf %206 : vector<256x128xf32> to vector<256x128xbf16>
    %c0_80 = arith.constant 0 : index
    %c0_81 = arith.constant 0 : index
    %c0_82 = arith.constant 0 : index
    %208 = vector.load %arg17[%c0_80, %c0_81, %c0_82] : memref<1x128x32xbf16, #tpu.memory_space<vmem>>, vector<1x128x32xbf16>
    %209 = vector.shape_cast %208 : vector<1x128x32xbf16> to vector<128x32xbf16>
    %cst_83 = arith.constant dense<0.000000e+00> : vector<256x32xf32>
    %210 = tpu.matmul %207, %209, %cst_83 {dimension_numbers = #tpu.dot_dimension_numbers<[1], [0], [0], [1], [0, 0, 1, 1], [], []>} : vector<256x128xbf16>, vector<128x32xbf16>, vector<256x32xf32> -> vector<256x32xf32>
    %211 = arith.addf %191, %210 : vector<256x32xf32>
    %212 = arith.addf %163, %211 : vector<256x32xf32>
    %c0_84 = arith.constant 0 : index
    %c0_85 = arith.constant 0 : index
    %c0_86 = arith.constant 0 : index
    %213 = vector.load %arg18[%c0_84, %c0_85, %c0_86] : memref<1x1x32xf32, #tpu.memory_space<vmem>>, vector<1x1x32xf32>
    %214 = vector.shape_cast %213 : vector<1x1x32xf32> to vector<1x32xf32>
    %215 = vector.broadcast %214 : vector<1x32xf32> to vector<256x32xf32>
    %216 = arith.addf %212, %215 : vector<256x32xf32>
    %217 = vector.shape_cast %216 : vector<256x32xf32> to vector<2x128x32xf32>
    %c0_87 = arith.constant 0 : index
    %c0_88 = arith.constant 0 : index
    %c0_89 = arith.constant 0 : index
    %218 = vector.load %arg19[%c0_87, %c0_88, %c0_89] : memref<2x128x32xf32, #tpu.memory_space<vmem>>, vector<2x128x32xf32>
    tpu.vector_store %arg19[%c0_87, %c0_88, %c0_89], %217 {strides = array<i32>} : memref<2x128x32xf32, #tpu.memory_space<vmem>>, vector<2x128x32xf32>,
    return
  }
  func.func @transform_0(%arg0: i32, %arg1: i32) -> (i32, i32, i32) {
    %c0_i32 = arith.constant 0 : i32
    %c0_i32_0 = arith.constant 0 : i32
    %c0_i32_1 = arith.constant 0 : i32
    return %arg0, %c0_i32, %c0_i32_0 : i32, i32, i32
  }
  func.func @transform_1(%arg0: i32, %arg1: i32) -> (i32, i32, i32) {
    %c0_i32 = arith.constant 0 : i32
    %c0_i32_0 = arith.constant 0 : i32
    %c0_i32_1 = arith.constant 0 : i32
    return %arg1, %c0_i32, %c0_i32_0 : i32, i32, i32
  }
  func.func @transform_2(%arg0: i32, %arg1: i32) -> (i32, i32, i32) {
    %c0_i32 = arith.constant 0 : i32
    %c0_i32_0 = arith.constant 0 : i32
    %c0_i32_1 = arith.constant 0 : i32
    return %arg1, %c0_i32, %c0_i32_0 : i32, i32, i32
  }
  func.func @transform_3(%arg0: i32, %arg1: i32) -> (i32, i32, i32) {
    %c0_i32 = arith.constant 0 : i32
    %c0_i32_0 = arith.constant 0 : i32
    %c0_i32_1 = arith.constant 0 : i32
    return %arg1, %c0_i32, %c0_i32_0 : i32, i32, i32
  }
  func.func @transform_4(%arg0: i32, %arg1: i32) -> (i32, i32, i32) {
    %c0_i32 = arith.constant 0 : i32
    %c0_i32_0 = arith.constant 0 : i32
    %c0_i32_1 = arith.constant 0 : i32
    return %arg1, %c0_i32, %c0_i32_0 : i32, i32, i32
  }
  func.func @transform_5(%arg0: i32, %arg1: i32) -> (i32, i32, i32) {
    %c0_i32 = arith.constant 0 : i32
    %c0_i32_0 = arith.constant 0 : i32
    %c0_i32_1 = arith.constant 0 : i32
    return %arg1, %c0_i32, %c0_i32_0 : i32, i32, i32
  }
  func.func @transform_6(%arg0: i32, %arg1: i32) -> (i32, i32, i32) {
    %c0_i32 = arith.constant 0 : i32
    %c0_i32_0 = arith.constant 0 : i32
    %c0_i32_1 = arith.constant 0 : i32
    return %arg1, %c0_i32, %c0_i32_0 : i32, i32, i32
  }
  func.func @transform_7(%arg0: i32, %arg1: i32) -> (i32, i32, i32) {
    %c0_i32 = arith.constant 0 : i32
    %c0_i32_0 = arith.constant 0 : i32
    %c0_i32_1 = arith.constant 0 : i32
    return %arg1, %c0_i32, %c0_i32_0 : i32, i32, i32
  }
  func.func @transform_8(%arg0: i32, %arg1: i32) -> (i32, i32, i32) {
    %c0_i32 = arith.constant 0 : i32
    %c0_i32_0 = arith.constant 0 : i32
    %c0_i32_1 = arith.constant 0 : i32
    return %arg1, %c0_i32, %c0_i32_0 : i32, i32, i32
  }
  func.func @transform_9(%arg0: i32, %arg1: i32) -> (i32, i32, i32) {
    %c0_i32 = arith.constant 0 : i32
    %c0_i32_0 = arith.constant 0 : i32
    %c0_i32_1 = arith.constant 0 : i32
    return %arg1, %c0_i32, %c0_i32_0 : i32, i32, i32
  }
  func.func @transform_10(%arg0: i32, %arg1: i32) -> (i32, i32, i32) {
    %c0_i32 = arith.constant 0 : i32
    %c0_i32_0 = arith.constant 0 : i32
    %c0_i32_1 = arith.constant 0 : i32
    return %arg1, %c0_i32, %c0_i32_0 : i32, i32, i32
  }
  func.func @transform_11(%arg0: i32, %arg1: i32) -> (i32, i32, i32) {
    %c0_i32 = arith.constant 0 : i32
    %c0_i32_0 = arith.constant 0 : i32
    %c0_i32_1 = arith.constant 0 : i32
    return %arg1, %c0_i32, %c0_i32_0 : i32, i32, i32
  }
  func.func @transform_12(%arg0: i32, %arg1: i32) -> (i32, i32, i32) {
    %c0_i32 = arith.constant 0 : i32
    %c0_i32_0 = arith.constant 0 : i32
    %c0_i32_1 = arith.constant 0 : i32
    return %arg1, %c0_i32, %c0_i32_0 : i32, i32, i32
  }
  func.func @transform_13(%arg0: i32, %arg1: i32) -> (i32, i32, i32) {
    %c0_i32 = arith.constant 0 : i32
    %c0_i32_0 = arith.constant 0 : i32
    %c0_i32_1 = arith.constant 0 : i32
    return %arg1, %c0_i32, %c0_i32_0 : i32, i32, i32
  }
  func.func @transform_14(%arg0: i32, %arg1: i32) -> (i32, i32, i32) {
    %c0_i32 = arith.constant 0 : i32
    %c0_i32_0 = arith.constant 0 : i32
    %c0_i32_1 = arith.constant 0 : i32
    return %arg1, %c0_i32, %c0_i32_0 : i32, i32, i32
  }
  func.func @transform_15(%arg0: i32, %arg1: i32) -> (i32, i32, i32) {
    %c0_i32 = arith.constant 0 : i32
    %c0_i32_0 = arith.constant 0 : i32
    %c0_i32_1 = arith.constant 0 : i32
    return %arg1, %c0_i32, %c0_i32_0 : i32, i32, i32
  }
  func.func @transform_16(%arg0: i32, %arg1: i32) -> (i32, i32, i32) {
    %c0_i32 = arith.constant 0 : i32
    %c0_i32_0 = arith.constant 0 : i32
    %c0_i32_1 = arith.constant 0 : i32
    return %arg1, %c0_i32, %c0_i32_0 : i32, i32, i32
  }
  func.func @transform_17(%arg0: i32, %arg1: i32) -> (i32, i32, i32) {
    %c0_i32 = arith.constant 0 : i32
    %c0_i32_0 = arith.constant 0 : i32
    %c0_i32_1 = arith.constant 0 : i32
    return %arg0, %c0_i32, %c0_i32_0 : i32, i32, i32
  }
}

</mosaic_0001>

<bundles_post_ra>
// kernel: tpu_custom_call.1
= control target key start
LH: loop header
LB: loop body
LE: loop exit
PB: predicated region body
PF: predicated region fallthrough
CT: control target
= control target key end

     0   :  { %s10664_s24 = smov 0   ;;  %s10666_s25 = smov 0   ;;  %s15468_s0 = inlined_call_operand.vmem [shape: f32[2,128,32], index: 0, kind: input, shape index: {}]   ;;  %s15469_s1 = inlined_call_operand.vmem [shape: f32[2,1,32], index: 1, kind: input, shape index: {}]   ;;  %s15470_s2 = inlined_call_operand.vmem [shape: f32[2,1,32], index: 2, kind: input, shape index: {}]   ;;  %s15471_s3 = inlined_call_operand.vmem [shape: bf16[2,32,32], index: 3, kind: input, shape index: {}]   ;;  %s15472_s4 = inlined_call_operand.vmem [shape: f32[2,1,32], index: 4, kind: input, shape index: {}]   ;;  %s15473_s5 = inlined_call_operand.vmem [shape: bf16[2,32,32], index: 5, kind: input, shape index: {}]   ;;  %s15474_s6 = inlined_call_operand.vmem [shape: f32[2,1,32], index: 6, kind: input, shape index: {}]   ;;  %s15475_s7 = inlined_call_operand.vmem [shape: bf16[2,32,32], index: 7, kind: input, shape index: {}]   ;;  %s15476_s8 = inlined_call_operand.vmem [shape: f32[2,1,32], index: 8, kind: input, shape index: {}]   ;;  %s15477_s9 = inlined_call_operand.vmem [shape: bf16[2,32,32], index: 9, kind: input, shape index: {}]   ;;  %s15478_s10 = inlined_call_operand.vmem [shape: f32[2,1,32], index: 10, kind: input, shape index: {}]   ;;  %s15479_s11 = inlined_call_operand.vmem [shape: f32[2,1,32], index: 11, kind: input, shape index: {}]   ;;  %s15480_s12 = inlined_call_operand.vmem [shape: f32[2,1,32], index: 12, kind: input, shape index: {}]   ;;  %s15481_s13 = inlined_call_operand.vmem [shape: bf16[2,32,128], index: 13, kind: input, shape index: {}]   ;;  %s15482_s14 = inlined_call_operand.vmem [shape: f32[2,1,128], index: 14, kind: input, shape index: {}]   ;;  %s15483_s15 = inlined_call_operand.vmem [shape: bf16[2,128,32], index: 15, kind: input, shape index: {}]   ;;  %s15484_s16 = inlined_call_operand.vmem [shape: f32[2,1,32], index: 16, kind: input, shape index: {}]   ;;  %s15485_s17 = inlined_call_operand.vmem [shape: f32[2,128,32], index: 17, kind: output, shape index: {}]  }
   0x1   :  { %15728 = sst [smem:[#allocation126_spill]] %s15468_s0  ;;  %s10668_s26 = smov 0  }
   0x2   :  { %15729 = sst [smem:[#allocation127_spill]] %s15469_s1 }
   0x3   :  { %15730 = sst [smem:[#allocation128_spill]] %s15470_s2 }
   0x4   :  { %15731 = sst [smem:[#allocation129_spill]] %s15471_s3 }
   0x5   :  { %15732 = sst [smem:[#allocation130_spill]] %s15473_s5 }
   0x6   :  { %15733 = sst [smem:[#allocation131_spill]] %s15474_s6 }
   0x7   :  { %15734 = sst [smem:[#allocation132_spill]] %s15475_s7 }
   0x8   :  { %15735 = sst [smem:[#allocation133_spill]] %s15477_s9 }
   0x9   :  { %15736 = sst [smem:[#allocation134_spill]] %s15485_s17 }
   0xa LB: > { %15737 = sst [smem:[#allocation2_spill]] %s10557_s24  ;;  %s36_s27 = sadd.s32 1, %s10561_s25  ;;  %s10565_s26 = sphi %s10668_s26, %s27_s26   ;;  %s10561_s25 = sphi %s10666_s25, %s16246_s25   ;;  %s10557_s24 = sphi %s10664_s24, %s16245_s24  }
   0xb   : > { %15738 = sst [smem:[#allocation3_spill]] %s10561_s25  ;;  %p8048_p0 = scmp.ge.s32.totalorder %s10565_s26, 1 }
   0xc   : > { %15739 = sst [smem:[#allocation4_spill]] %s10565_s26  ;;  %p37_p1 = scmp.ge.s32.totalorder %s36_s27, 2 }
   0xd   : > { %p641_p2 = scmp.lt.s32.totalorder %s10565_s26, 3 }
   0xe   : > { %s16248_s27 = smov (%p37_p1, %s36_s27), 0 }
   0xf   : > { %15740 = sst [smem:[#allocation5_spill]] %s16248_s27  ;;  %p642_p3 = pnand %p8048_p0, %p641_p2 }
  0x11   : > { %645 = sbr.rel (%p642_p3) target bundleno = 5107 (0x13f3), region = 88 }
  0x18   : > { %p762_p4 = scmp.lt.s32.totalorder %s10557_s24, 1  ;;  %s15743_s3 = sld [smem:[#allocation129_spill]] }
  0x19   : > { %s15744_s5 = sld [smem:[#allocation130_spill]]  ;;  %s15746_s7 = sld [smem:[#allocation132_spill]] }
  0x1a   : > { %s10686_s28 = scalar_select %p762_p4, %s10557_s24, 1 }
  0x1b   : > { %s15747_s9 = sld [smem:[#allocation133_spill]]  ;;  %s15748_s1 = sld [smem:[#allocation2_spill]] }
  0x1c   : > { %s8270_s21 = sshll.u32 %s10686_s28, 4  ;;  %s802_s19 = scalar_lea.vmem %s15479_s11, %s10686_s28 }
  0x1d   : > { %s10744_s23 = scalar_lea.vmem %s15481_s13, %s8270_s21 }
  0x1e   : > { %s10704_s25 = scalar_lea.vmem %s15743_s3, %s8270_s21 }
  0x1f   : > { %s10709_s24 = scalar_lea.vmem %s15744_s5, %s8270_s21  ;;  %s10718_s2 = scalar_lea.vmem %s15746_s7, %s8270_s21 }
  0x20   : > { %s805_s7 = scalar_lea.vmem %s15480_s12, %s10686_s28 }
  0x21   : > { %s10727_s3 = scalar_lea.vmem %s15747_s9, %s8270_s21  ;;  %s8275_s9 = sshll.u32 %s10686_s28, 6 }
  0x22   : > { %s10754_s5 = scalar_lea.vmem %s15483_s15, %s8275_s9  ;;  %p8061_p5 = scmp.ne.s32.totalorder %s15748_s1, 0 }
  0x23   : > { %s15749_s22 = sld [smem:[#allocation126_spill]] (!%p8061_p5)  ;;  %vm866_vm0 = vcmask (!%p8061_p5), 261120  }
  0x24   : > { %833 = sbr.rel (%p8061_p5) target bundleno = 58 (0x3a), region = 92  ;;  %s15750_s18 = sld [smem:[#allocation134_spill]] (!%p8061_p5) }
  0x29   : > { %v834_v0 = vld [vmem:[%s15749_s22] sm:$0xff] (!%p8061_p5)  ;;  %v835_v1 = vld [vmem:[%s15749_s22 + $0x8] sm:$0xff] (!%p8061_p5)  ;;  %v836_v2 = vld [vmem:[%s15749_s22 + $0x10] sm:$0xff] (!%p8061_p5) }
  0x2a   : > { %867 = vst.msk [vmem:[%s15750_s18] sm:$0xff] (!%p8061_p5), %vm866_vm0, %v834_v0  ;;  %868 = vst.msk [vmem:[%s15750_s18 + $0x8] sm:$0xff] (!%p8061_p5), %vm866_vm0, %v835_v1  ;;  %v837_v3 = vld [vmem:[%s15749_s22 + $0x18] sm:$0xff] (!%p8061_p5)  ;;  %v838_v4 = vld [vmem:[%s15749_s22 + $0x20] sm:$0xff] (!%p8061_p5) }
  0x2b   : > { %869 = vst.msk [vmem:[%s15750_s18 + $0x10] sm:$0xff] %vm866_vm0, %v836_v2  ;;  %v839_v5 = vld [vmem:[%s15749_s22 + $0x28] sm:$0xff]  ;;  %870 = vst.msk [vmem:[%s15750_s18 + $0x18] sm:$0xff] %vm866_vm0, %v837_v3  ;;  %v840_v6 = vld [vmem:[%s15749_s22 + $0x30] sm:$0xff] }
  0x2c   : > { %871 = vst.msk [vmem:[%s15750_s18 + $0x20] sm:$0xff] %vm866_vm0, %v838_v4  ;;  %872 = vst.msk [vmem:[%s15750_s18 + $0x28] sm:$0xff] %vm866_vm0, %v839_v5  ;;  %v841_v7 = vld [vmem:[%s15749_s22 + $0x38] sm:$0xff]  ;;  %v842_v8 = vld [vmem:[%s15749_s22 + $0x40] sm:$0xff] }
  0x2d   : > { %873 = vst.msk [vmem:[%s15750_s18 + $0x30] sm:$0xff] %vm866_vm0, %v840_v6  ;;  %874 = vst.msk [vmem:[%s15750_s18 + $0x38] sm:$0xff] %vm866_vm0, %v841_v7  ;;  %v843_v9 = vld [vmem:[%s15749_s22 + $0x48] sm:$0xff]  ;;  %v844_v10 = vld [vmem:[%s15749_s22 + $0x50] sm:$0xff] }
  0x2e   : > { %875 = vst.msk [vmem:[%s15750_s18 + $0x40] sm:$0xff] %vm866_vm0, %v842_v8  ;;  %v845_v11 = vld [vmem:[%s15749_s22 + $0x58] sm:$0xff]  ;;  %876 = vst.msk [vmem:[%s15750_s18 + $0x48] sm:$0xff] %vm866_vm0, %v843_v9  ;;  %v846_v12 = vld [vmem:[%s15749_s22 + $0x60] sm:$0xff] }
  0x2f   : > { %877 = vst.msk [vmem:[%s15750_s18 + $0x50] sm:$0xff] %vm866_vm0, %v844_v10  ;;  %878 = vst.msk [vmem:[%s15750_s18 + $0x58] sm:$0xff] %vm866_vm0, %v845_v11  ;;  %v847_v13 = vld [vmem:[%s15749_s22 + $0x68] sm:$0xff]  ;;  %v848_v14 = vld [vmem:[%s15749_s22 + $0x70] sm:$0xff] }
  0x30   : > { %879 = vst.msk [vmem:[%s15750_s18 + $0x60] sm:$0xff] %vm866_vm0, %v846_v12  ;;  %880 = vst.msk [vmem:[%s15750_s18 + $0x68] sm:$0xff] %vm866_vm0, %v847_v13  ;;  %v849_v15 = vld [vmem:[%s15749_s22 + $0x78] sm:$0xff]  ;;  %v850_v16 = vld [vmem:[%s15749_s22 + $0x80] sm:$0xff] }
  0x31   : > { %881 = vst.msk [vmem:[%s15750_s18 + $0x70] sm:$0xff] %vm866_vm0, %v848_v14  ;;  %v851_v17 = vld [vmem:[%s15749_s22 + $0x88] sm:$0xff]  ;;  %882 = vst.msk [vmem:[%s15750_s18 + $0x78] sm:$0xff] %vm866_vm0, %v849_v15  ;;  %v852_v18 = vld [vmem:[%s15749_s22 + $0x90] sm:$0xff] }
  0x32   : > { %883 = vst.msk [vmem:[%s15750_s18 + $0x80] sm:$0xff] %vm866_vm0, %v850_v16  ;;  %884 = vst.msk [vmem:[%s15750_s18 + $0x88] sm:$0xff] %vm866_vm0, %v851_v17  ;;  %v853_v19 = vld [vmem:[%s15749_s22 + $0x98] sm:$0xff]  ;;  %v854_v20 = vld [vmem:[%s15749_s22 + $0xa0] sm:$0xff] }
  0x33   : > { %885 = vst.msk [vmem:[%s15750_s18 + $0x90] sm:$0xff] %vm866_vm0, %v852_v18  ;;  %886 = vst.msk [vmem:[%s15750_s18 + $0x98] sm:$0xff] %vm866_vm0, %v853_v19  ;;  %v855_v21 = vld [vmem:[%s15749_s22 + $0xa8] sm:$0xff]  ;;  %v856_v22 = vld [vmem:[%s15749_s22 + $0xb0] sm:$0xff] }
  0x34   : > { %887 = vst.msk [vmem:[%s15750_s18 + $0xa0] sm:$0xff] %vm866_vm0, %v854_v20  ;;  %v857_v23 = vld [vmem:[%s15749_s22 + $0xb8] sm:$0xff]  ;;  %888 = vst.msk [vmem:[%s15750_s18 + $0xa8] sm:$0xff] %vm866_vm0, %v855_v21  ;;  %v858_v24 = vld [vmem:[%s15749_s22 + $0xc0] sm:$0xff] }
  0x35   : > { %889 = vst.msk [vmem:[%s15750_s18 + $0xb0] sm:$0xff] %vm866_vm0, %v856_v22  ;;  %890 = vst.msk [vmem:[%s15750_s18 + $0xb8] sm:$0xff] %vm866_vm0, %v857_v23  ;;  %v859_v25 = vld [vmem:[%s15749_s22 + $0xc8] sm:$0xff]  ;;  %v860_v26 = vld [vmem:[%s15749_s22 + $0xd0] sm:$0xff] }
  0x36   : > { %891 = vst.msk [vmem:[%s15750_s18 + $0xc0] sm:$0xff] %vm866_vm0, %v858_v24  ;;  %892 = vst.msk [vmem:[%s15750_s18 + $0xc8] sm:$0xff] %vm866_vm0, %v859_v25  ;;  %v861_v27 = vld [vmem:[%s15749_s22 + $0xd8] sm:$0xff]  ;;  %v862_v28 = vld [vmem:[%s15749_s22 + $0xe0] sm:$0xff] }
  0x37   : > { %893 = vst.msk [vmem:[%s15750_s18 + $0xd0] sm:$0xff] %vm866_vm0, %v860_v26  ;;  %v863_v29 = vld [vmem:[%s15749_s22 + $0xe8] sm:$0xff]  ;;  %894 = vst.msk [vmem:[%s15750_s18 + $0xd8] sm:$0xff] %vm866_vm0, %v861_v27  ;;  %v864_v30 = vld [vmem:[%s15749_s22 + $0xf0] sm:$0xff] }
  0x38   : > { %895 = vst.msk [vmem:[%s15750_s18 + $0xe0] sm:$0xff] %vm866_vm0, %v862_v28  ;;  %896 = vst.msk [vmem:[%s15750_s18 + $0xe8] sm:$0xff] %vm866_vm0, %v863_v29  ;;  %v865_v31 = vld [vmem:[%s15749_s22 + $0xf8] sm:$0xff] }
  0x39   : > { %897 = vst.msk [vmem:[%s15750_s18 + $0xf0] sm:$0xff] %vm866_vm0, %v864_v30  ;;  %898 = vst.msk [vmem:[%s15750_s18 + $0xf8] sm:$0xff] %vm866_vm0, %v865_v31 }
  0x3a PF: > { %s15751_s20 = sld [smem:[#allocation134_spill]]  ;;  %vm984_vm1 = vcmask 261120   ;;  %s15752_s26 = sld [smem:[#allocation127_spill]]  ;;  %vm2142_vm2 = vcmask 64512  }
  0x3b   : > { %s15754_s21 = sld [smem:[#allocation128_spill]]  ;;  %s15756_s0 = scalar_lea.vmem %s15472_s4, %s10686_s28 }
  0x3c   : > { %s15765_s17 = sld [smem:[#allocation131_spill]]  ;;  %s10567_s9 = smov 120  }
  0x3d   : > { %s15783_s1 = scalar_lea.vmem %s15476_s8, %s10686_s28  ;;  %s10569_s6 = smov 112  }
  0x3e   : > { %s16187_s18 = scalar_lea.vmem %s15478_s10, %s10686_s28 }
  0x40   : > { %v10988_v32 = vld [vmem:[%s15751_s20 + $0x80] sm:$0xff]  ;;  %v10993_v33 = vld [vmem:[%s15751_s20 + $0x90] sm:$0xff]  ;;  %v10998_v34 = vld [vmem:[%s15751_s20 + $0x88] sm:$0xff]  ;;  %s15753_s30 = scalar_lea.vmem %s15752_s26, %s10686_s28 }
  0x41   : > { %v1033_v35 = vsel %vm984_vm1, %v10988_v32, 0.0  ;;  %v1039_v36 = vsel %vm984_vm1, %v10993_v33, 0.0  ;;  %v11007_v37 = vld [vmem:[%s15751_s20 + $0x98] sm:$0xff]  ;;  %v1036_v38 = vsel %vm984_vm1, %v10998_v34, 0.0  ;;  %v11016_v40 = vld [vmem:[%s15751_s20 + $0xa0] sm:$0xff]  ;;  %v11021_v41 = vld [vmem:[%s15751_s20 + $0xa8] sm:$0xff]  ;;  %s15755_s29 = scalar_lea.vmem %s15754_s21, %s10686_s28 }
  0x42   : > { %1034 = vadd.xlane.f32.xlu0 %v1033_v35  ;;  %1040 = vadd.xlane.f32.xlu1 %v1039_v36  ;;  %v1042_v39 = vsel %vm984_vm1, %v11007_v37, 0.0  ;;  %v11026_v42 = vld [vmem:[%s15751_s20 + $0xb0] sm:$0xff]  ;;  %v1045_v43 = vsel %vm984_vm1, %v11016_v40, 0.0  ;;  %v1048_v44 = vsel %vm984_vm1, %v11021_v41, 0.0  ;;  %v11035_v45 = vld [vmem:[%s15751_s20 + $0xb8] sm:$0xff]  ;;  %v11040_v46 = vld [vmem:[%s15751_s20 + $0xc0] sm:$0xff] }
  0x43   : > { %v11045_v47 = vld [vmem:[%s15751_s20 + $0xc8] sm:$0xff]  ;;  %v11050_v48 = vld [vmem:[%s15751_s20 + $0xd0] sm:$0xff]  ;;  %v11055_v49 = vld [vmem:[%s15751_s20 + $0xd8] sm:$0xff]  ;;  %v1051_v50 = vsel %vm984_vm1, %v11026_v42, 0.0  ;;  %v1054_v51 = vsel %vm984_vm1, %v11035_v45, 0.0  ;;  %v1057_v52 = vsel %vm984_vm1, %v11040_v46, 0.0 }
  0x44   : > { %v1060_v53 = vsel %vm984_vm1, %v11045_v47, 0.0  ;;  %v1063_v54 = vsel %vm984_vm1, %v11050_v48, 0.0  ;;  %v1066_v55 = vsel %vm984_vm1, %v11055_v49, 0.0  ;;  %v11072_v56 = vld [vmem:[%s15751_s20 + $0xe0] sm:$0xff]  ;;  %v11077_v57 = vld [vmem:[%s15751_s20 + $0xe8] sm:$0xff]  ;;  %v11086_v60 = vld [vmem:[%s15751_s20 + $0xf0] sm:$0xff] }
  0x45   : > { %v1069_v58 = vsel %vm984_vm1, %v11072_v56, 0.0  ;;  %v1072_v59 = vsel %vm984_vm1, %v11077_v57, 0.0  ;;  %v11091_v61 = vld [vmem:[%s15751_s20 + $0xf8] sm:$0xff]  ;;  %v1075_v62 = vsel %vm984_vm1, %v11086_v60, 0.0  ;;  %v11100_v0 = vld [vmem:[%s15751_s20] sm:$0xff]  ;;  %v11105_v1 = vld [vmem:[%s15751_s20 + $0x8] sm:$0xff] }
  0x46   : > { %1037 = vadd.xlane.f32.xlu0 %v1036_v38  ;;  %1043 = vadd.xlane.f32.xlu1 %v1042_v39  ;;  %v1078_v63 = vsel %vm984_vm1, %v11091_v61, 0.0  ;;  %v985_v2 = vsel %vm984_vm1, %v11100_v0, 0.0  ;;  %v988_v3 = vsel %vm984_vm1, %v11105_v1, 0.0  ;;  %v11114_v4 = vld [vmem:[%s15751_s20 + $0x10] sm:$0xff]  ;;  %v11119_v5 = vld [vmem:[%s15751_s20 + $0x18] sm:$0xff]  ;;  %v11128_v8 = vld [vmem:[%s15751_s20 + $0x20] sm:$0xff] }
  0x47   : > { %v991_v6 = vsel %vm984_vm1, %v11114_v4, 0.0  ;;  %v994_v7 = vsel %vm984_vm1, %v11119_v5, 0.0  ;;  %v11133_v9 = vld [vmem:[%s15751_s20 + $0x28] sm:$0xff]  ;;  %v997_v10 = vsel %vm984_vm1, %v11128_v8, 0.0  ;;  %v11142_v12 = vld [vmem:[%s15751_s20 + $0x30] sm:$0xff]  ;;  %v11147_v13 = vld [vmem:[%s15751_s20 + $0x38] sm:$0xff] }
  0x48   : > { %v1000_v11 = vsel %vm984_vm1, %v11133_v9, 0.0  ;;  %v1003_v14 = vsel %vm984_vm1, %v11142_v12, 0.0  ;;  %v1006_v15 = vsel %vm984_vm1, %v11147_v13, 0.0  ;;  %v11156_v16 = vld [vmem:[%s15751_s20 + $0x40] sm:$0xff]  ;;  %v11161_v17 = vld [vmem:[%s15751_s20 + $0x48] sm:$0xff]  ;;  %v11170_v20 = vld [vmem:[%s15751_s20 + $0x50] sm:$0xff] }
  0x49   : > { %v1009_v18 = vsel %vm984_vm1, %v11156_v16, 0.0  ;;  %v1012_v19 = vsel %vm984_vm1, %v11161_v17, 0.0  ;;  %v11175_v21 = vld [vmem:[%s15751_s20 + $0x58] sm:$0xff]  ;;  %v1015_v22 = vsel %vm984_vm1, %v11170_v20, 0.0  ;;  %v11184_v24 = vld [vmem:[%s15751_s20 + $0x60] sm:$0xff]  ;;  %v11189_v25 = vld [vmem:[%s15751_s20 + $0x68] sm:$0xff] }
  0x4a   : > { %1046 = vadd.xlane.f32.xlu0 %v1045_v43  ;;  %1049 = vadd.xlane.f32.xlu1 %v1048_v44  ;;  %v1018_v23 = vsel %vm984_vm1, %v11175_v21, 0.0  ;;  %v1021_v26 = vsel %vm984_vm1, %v11184_v24, 0.0  ;;  %v1024_v27 = vsel %vm984_vm1, %v11189_v25, 0.0  ;;  %v11198_v28 = vld [vmem:[%s15751_s20 + $0x70] sm:$0xff]  ;;  %v11203_v29 = vld [vmem:[%s15751_s20 + $0x78] sm:$0xff]  ;;  %s10570_s21 = smov 104  }
  0x4b   : > { %v1027_v30 = vsel %vm984_vm1, %v11198_v28, 0.0  ;;  %v1030_v31 = vsel %vm984_vm1, %v11203_v29, 0.0 }
  0x4e   : > { %1052 = vadd.xlane.f32.xlu0 %v1051_v50  ;;  %1055 = vadd.xlane.f32.xlu1 %v1054_v51 }
  0x52   : > { %1058 = vadd.xlane.f32.xlu0 %v1057_v52  ;;  %1061 = vadd.xlane.f32.xlu1 %v1060_v53 }
  0x56   : > { %1064 = vadd.xlane.f32.xlu0 %v1063_v54  ;;  %1067 = vadd.xlane.f32.xlu1 %v1066_v55 }
  0x5a   : > { %1070 = vadd.xlane.f32.xlu0 %v1069_v58  ;;  %1073 = vadd.xlane.f32.xlu1 %v1072_v59 }
  0x5e   : > { %1076 = vadd.xlane.f32.xlu0 %v1075_v62  ;;  %1079 = vadd.xlane.f32.xlu1 %v1078_v63 }
  0x62   : > { %986 = vadd.xlane.f32.xlu0 %v985_v2  ;;  %989 = vadd.xlane.f32.xlu1 %v988_v3 }
  0x66   : > { %992 = vadd.xlane.f32.xlu0 %v991_v6  ;;  %995 = vadd.xlane.f32.xlu1 %v994_v7 }
  0x6a   : > { %998 = vadd.xlane.f32.xlu0 %v997_v10  ;;  %1001 = vadd.xlane.f32.xlu1 %v1000_v11 }
  0x6e   : > { %1004 = vadd.xlane.f32.xlu0 %v1003_v14  ;;  %1007 = vadd.xlane.f32.xlu1 %v1006_v15 }
  0x72   : > { %1010 = vadd.xlane.f32.xlu0 %v1009_v18  ;;  %1013 = vadd.xlane.f32.xlu1 %v1012_v19 }
  0x76   : > { %1016 = vadd.xlane.f32.xlu0 %v1015_v22  ;;  %1019 = vadd.xlane.f32.xlu1 %v1018_v23 }
  0x7a   : > { %1022 = vadd.xlane.f32.xlu0 %v1021_v26  ;;  %1025 = vadd.xlane.f32.xlu1 %v1024_v27 }
  0x7e   : > { %1028 = vadd.xlane.f32.xlu0 %v1027_v30  ;;  %1031 = vadd.xlane.f32.xlu1 %v1030_v31 }
  0xcf   : > { %v1035_v35 = vpop.xlane.xlu0 %1034  ;;  %v1041_v36 = vpop.xlane.xlu1 %1040 }
  0xd0   : > { %v1098_v38 = vmul.f32 0.03125, %v1035_v35  ;;  %v1100_v39 = vmul.f32 0.03125, %v1041_v36 }
  0xd2   : > { %v11210_v43 = vsub.f32 %v10988_v32, %v1098_v38  ;;  %v11213_v44 = vsub.f32 %v10993_v33, %v1100_v39 }
  0xd3   : > { %v1038_v50 = vpop.xlane.xlu0 %1037  ;;  %v1044_v51 = vpop.xlane.xlu1 %1043 }
  0xd4   : > { %v1099_v52 = vmul.f32 0.03125, %v1038_v50  ;;  %v1101_v53 = vmul.f32 0.03125, %v1044_v51  ;;  %v1162_v54 = vmul.f32 %v11210_v43, %v11210_v43  ;;  %v1164_v55 = vmul.f32 %v11213_v44, %v11213_v44 }
  0xd6   : > { %v11220_v58 = vsub.f32 %v10998_v34, %v1099_v52  ;;  %v11223_v59 = vsub.f32 %v11007_v37, %v1101_v53  ;;  %v1226_v32 = vsel %vm984_vm1, %v1162_v54, 0.0  ;;  %v1232_v63 = vsel %vm984_vm1, %v1164_v55, 0.0 }
  0xd7   : > { %v1047_v33 = vpop.xlane.xlu0 %1046  ;;  %1227 = vadd.xlane.f32.xlu0 %v1226_v32  ;;  %v1050_v62 = vpop.xlane.xlu1 %1049 }
  0xd8   : > { %v1102_v2 = vmul.f32 0.03125, %v1047_v33  ;;  %v1103_v3 = vmul.f32 0.03125, %v1050_v62  ;;  %v1163_v6 = vmul.f32 %v11220_v58, %v11220_v58  ;;  %v1165_v7 = vmul.f32 %v11223_v59, %v11223_v59 }
  0xda   : > { %v11232_v34 = vsub.f32 %v11016_v40, %v1102_v2  ;;  %v11235_v37 = vsub.f32 %v11021_v41, %v1103_v3  ;;  %v1229_v10 = vsel %vm984_vm1, %v1163_v6, 0.0  ;;  %v1235_v15 = vsel %vm984_vm1, %v1165_v7, 0.0 }
  0xdb   : > { %v1053_v11 = vpop.xlane.xlu0 %1052  ;;  %1230 = vadd.xlane.f32.xlu1 %v1229_v10  ;;  %1233 = vadd.xlane.f32.xlu0 %v1232_v63  ;;  %v1056_v14 = vpop.xlane.xlu1 %1055 }
  0xdc   : > { %v1104_v18 = vmul.f32 0.03125, %v1053_v11  ;;  %v1105_v19 = vmul.f32 0.03125, %v1056_v14  ;;  %v1166_v22 = vmul.f32 %v11232_v34, %v11232_v34  ;;  %v1167_v40 = vmul.f32 %v11235_v37, %v11235_v37 }
  0xde   : > { %v11244_v23 = vsub.f32 %v11026_v42, %v1104_v18  ;;  %v11247_v41 = vsub.f32 %v11035_v45, %v1105_v19  ;;  %v1238_v26 = vsel %vm984_vm1, %v1166_v22, 0.0  ;;  %v1241_v31 = vsel %vm984_vm1, %v1167_v40, 0.0 }
  0xdf   : > { %v1059_v27 = vpop.xlane.xlu0 %1058  ;;  %1236 = vadd.xlane.f32.xlu1 %v1235_v15  ;;  %1239 = vadd.xlane.f32.xlu0 %v1238_v26  ;;  %v1062_v30 = vpop.xlane.xlu1 %1061 }
  0xe0   : > { %v1106_v35 = vmul.f32 0.03125, %v1059_v27  ;;  %v1107_v36 = vmul.f32 0.03125, %v1062_v30  ;;  %v1168_v38 = vmul.f32 %v11244_v23, %v11244_v23  ;;  %v1169_v42 = vmul.f32 %v11247_v41, %v11247_v41 }
  0xe2   : > { %v11256_v39 = vsub.f32 %v11040_v46, %v1106_v35  ;;  %v11259_v45 = vsub.f32 %v11045_v47, %v1107_v36  ;;  %v1244_v50 = vsel %vm984_vm1, %v1168_v38, 0.0  ;;  %v1247_v53 = vsel %vm984_vm1, %v1169_v42, 0.0 }
  0xe3   : > { %v1065_v51 = vpop.xlane.xlu0 %1064  ;;  %1242 = vadd.xlane.f32.xlu1 %v1241_v31  ;;  %1245 = vadd.xlane.f32.xlu0 %v1244_v50  ;;  %v1068_v52 = vpop.xlane.xlu1 %1067 }
  0xe4   : > { %v1108_v54 = vmul.f32 0.03125, %v1065_v51  ;;  %v1109_v55 = vmul.f32 0.03125, %v1068_v52  ;;  %v1170_v32 = vmul.f32 %v11256_v39, %v11256_v39  ;;  %v1171_v46 = vmul.f32 %v11259_v45, %v11259_v45 }
  0xe6   : > { %v11268_v33 = vsub.f32 %v11050_v48, %v1108_v54  ;;  %v11271_v47 = vsub.f32 %v11055_v49, %v1109_v55  ;;  %v1250_v62 = vsel %vm984_vm1, %v1170_v32, 0.0  ;;  %v1253_v3 = vsel %vm984_vm1, %v1171_v46, 0.0 }
  0xe7   : > { %v1071_v63 = vpop.xlane.xlu0 %1070  ;;  %1248 = vadd.xlane.f32.xlu1 %v1247_v53  ;;  %1251 = vadd.xlane.f32.xlu0 %v1250_v62  ;;  %v1074_v2 = vpop.xlane.xlu1 %1073 }
  0xe8   : > { %v1110_v6 = vmul.f32 0.03125, %v1071_v63  ;;  %v1111_v7 = vmul.f32 0.03125, %v1074_v2  ;;  %v1172_v10 = vmul.f32 %v11268_v33, %v11268_v33  ;;  %v1173_v48 = vmul.f32 %v11271_v47, %v11271_v47 }
  0xea   : > { %v11280_v11 = vsub.f32 %v11072_v56, %v1110_v6  ;;  %v11283_v49 = vsub.f32 %v11077_v57, %v1111_v7  ;;  %v1256_v14 = vsel %vm984_vm1, %v1172_v10, 0.0  ;;  %v1259_v19 = vsel %vm984_vm1, %v1173_v48, 0.0 }
  0xeb   : > { %v1077_v15 = vpop.xlane.xlu0 %1076  ;;  %1254 = vadd.xlane.f32.xlu1 %v1253_v3  ;;  %1257 = vadd.xlane.f32.xlu0 %v1256_v14  ;;  %v1080_v18 = vpop.xlane.xlu1 %1079 }
  0xec   : > { %v1112_v22 = vmul.f32 0.03125, %v1077_v15  ;;  %v1113_v40 = vmul.f32 0.03125, %v1080_v18  ;;  %v1174_v26 = vmul.f32 %v11280_v11, %v11280_v11  ;;  %v1175_v56 = vmul.f32 %v11283_v49, %v11283_v49 }
  0xee   : > { %v11292_v27 = vsub.f32 %v11086_v60, %v1112_v22  ;;  %v11295_v57 = vsub.f32 %v11091_v61, %v1113_v40  ;;  %v1262_v30 = vsel %vm984_vm1, %v1174_v26, 0.0  ;;  %v1265_v35 = vsel %vm984_vm1, %v1175_v56, 0.0  ;;  %v9725_v26 = vld [vmem:[%s10704_s25] sm:$0xff]  }
  0xef   : > { %1260 = vadd.xlane.f32.xlu1 %v1259_v19  ;;  %1263 = vadd.xlane.f32.xlu0 %v1262_v30  ;;  %v987_v31 = vpop.xlane.xlu0 %986  ;;  %v990_v36 = vpop.xlane.xlu1 %989 }
  0xf0   : > { %v1082_v38 = vmul.f32 0.03125, %v987_v31  ;;  %v1083_v42 = vmul.f32 0.03125, %v990_v36  ;;  %v1176_v50 = vmul.f32 %v11292_v27, %v11292_v27  ;;  %v1177_v60 = vmul.f32 %v11295_v57, %v11295_v57  ;;  %9386 = vmatprep.subr.bf16.mxu1 %v9725_v26  ;;  %8646 = vmatprep.subr.bf16.mxu0 %v9725_v26 }
  0xf1   : > { %9388 = vmatpush3.bf16.msra.mxu1 %v9725_v26  ;;  %8647 = vmatpush3.bf16.msra.mxu0 %v9725_v26 }
  0xf2   : > { %v11304_v51 = vsub.f32 %v11100_v0, %v1082_v38  ;;  %v11307_v61 = vsub.f32 %v11105_v1, %v1083_v42  ;;  %v1268_v52 = vsel %vm984_vm1, %v1176_v50, 0.0  ;;  %v1271_v54 = vsel %vm984_vm1, %v1177_v60, 0.0  ;;  %v9726_v60 = vld [vmem:[%s10704_s25 + $0x8] sm:$0xff]   ;;  %s15766_s25 = scalar_lea.vmem %s15765_s17, %s10686_s28 }
  0xf3   : > { %1266 = vadd.xlane.f32.xlu1 %v1265_v35  ;;  %1269 = vadd.xlane.f32.xlu0 %v1268_v52  ;;  %v993_v53 = vpop.xlane.xlu0 %992  ;;  %v996_v55 = vpop.xlane.xlu1 %995 }
  0xf4   : > { %v1084_v32 = vmul.f32 0.03125, %v993_v53  ;;  %v1085_v46 = vmul.f32 0.03125, %v996_v55  ;;  %v1146_v62 = vmul.f32 %v11304_v51, %v11304_v51  ;;  %v1147_v0 = vmul.f32 %v11307_v61, %v11307_v61  ;;  %9387 = vmatprep.subr.bf16.mxu1 %v9726_v60  ;;  %8648 = vmatprep.subr.bf16.mxu0 %v9726_v60 }
  0xf5   : > { %9389 = vmatpush3.bf16.msra.mxu1 %v9726_v60  ;;  %8649 = vmatpush3.bf16.msra.mxu0 %v9726_v60 }
  0xf6   : > { %v11316_v63 = vsub.f32 %v11114_v4, %v1084_v32  ;;  %v11319_v1 = vsub.f32 %v11119_v5, %v1085_v46  ;;  %v1178_v2 = vsel %vm984_vm1, %v1146_v62, 0.0  ;;  %v1181_v6 = vsel %vm984_vm1, %v1147_v0, 0.0 }
  0xf7   : > { %1272 = vadd.xlane.f32.xlu1 %v1271_v54  ;;  %1179 = vadd.xlane.f32.xlu0 %v1178_v2  ;;  %v999_v3 = vpop.xlane.xlu0 %998  ;;  %v1002_v7 = vpop.xlane.xlu1 %1001 }
  0xf8   : > { %v1086_v10 = vmul.f32 0.03125, %v999_v3  ;;  %v1087_v48 = vmul.f32 0.03125, %v1002_v7  ;;  %v1148_v14 = vmul.f32 %v11316_v63, %v11316_v63  ;;  %v1149_v4 = vmul.f32 %v11319_v1, %v11319_v1 }
  0xfa   : > { %v11328_v5 = vsub.f32 %v11128_v8, %v1086_v10  ;;  %v11331_v15 = vsub.f32 %v11133_v9, %v1087_v48  ;;  %v1184_v18 = vsel %vm984_vm1, %v1148_v14, 0.0  ;;  %v1187_v22 = vsel %vm984_vm1, %v1149_v4, 0.0  ;;  %v11373_v48 = vld [vmem:[%s10709_s24] sm:$0xff]  }
  0xfb   : > { %1182 = vadd.xlane.f32.xlu1 %v1181_v6  ;;  %1185 = vadd.xlane.f32.xlu0 %v1184_v18  ;;  %v1005_v19 = vpop.xlane.xlu0 %1004  ;;  %v1008_v40 = vpop.xlane.xlu1 %1007 }
  0xfc   : > { %v1088_v56 = vmul.f32 0.03125, %v1005_v19  ;;  %v1089_v30 = vmul.f32 0.03125, %v1008_v40  ;;  %v1150_v31 = vmul.f32 %v11328_v5, %v11328_v5  ;;  %v1151_v8 = vmul.f32 %v11331_v15, %v11331_v15  ;;  %8682 = vmatprep.subr.bf16.mxu1 %v11373_v48 }
  0xfe   : > { %v11341_v9 = vsub.f32 %v11142_v12, %v1088_v56  ;;  %v11344_v35 = vsub.f32 %v11147_v13, %v1089_v30  ;;  %v1190_v36 = vsel %vm984_vm1, %v1150_v31, 0.0  ;;  %v1193_v42 = vsel %vm984_vm1, %v1151_v8, 0.0 }
  0xff   : > { %1188 = vadd.xlane.f32.xlu1 %v1187_v22  ;;  %1191 = vadd.xlane.f32.xlu0 %v1190_v36  ;;  %v1011_v38 = vpop.xlane.xlu0 %1010  ;;  %v1014_v50 = vpop.xlane.xlu1 %1013 }
 0x100   : > { %v1090_v52 = vmul.f32 0.03125, %v1011_v38  ;;  %v1091_v53 = vmul.f32 0.03125, %v1014_v50  ;;  %v1152_v12 = vmul.f32 %v11341_v9, %v11341_v9  ;;  %v1153_v13 = vmul.f32 %v11344_v35, %v11344_v35 }
 0x102   : > { %v11354_v54 = vsub.f32 %v11156_v16, %v1090_v52  ;;  %v11357_v55 = vsub.f32 %v11161_v17, %v1091_v53  ;;  %v1196_v32 = vsel %vm984_vm1, %v1152_v12, 0.0  ;;  %v1199_v62 = vsel %vm984_vm1, %v1153_v13, 0.0 }
 0x103   : > { %1194 = vadd.xlane.f32.xlu1 %v1193_v42  ;;  %1197 = vadd.xlane.f32.xlu0 %v1196_v32  ;;  %v1017_v46 = vpop.xlane.xlu0 %1016  ;;  %v1020_v0 = vpop.xlane.xlu1 %1019 }
 0x104   : > { %v1092_v2 = vmul.f32 0.03125, %v1017_v46  ;;  %v1093_v3 = vmul.f32 0.03125, %v1020_v0  ;;  %v1154_v16 = vmul.f32 %v11354_v54, %v11354_v54  ;;  %v1155_v17 = vmul.f32 %v11357_v55, %v11357_v55 }
 0x106   : > { %v11366_v6 = vsub.f32 %v11170_v20, %v1092_v2  ;;  %v11369_v7 = vsub.f32 %v11175_v21, %v1093_v3  ;;  %v1202_v10 = vsel %vm984_vm1, %v1154_v16, 0.0  ;;  %v1205_v4 = vsel %vm984_vm1, %v1155_v17, 0.0 }
 0x107   : > { %1200 = vadd.xlane.f32.xlu1 %v1199_v62  ;;  %1203 = vadd.xlane.f32.xlu0 %v1202_v10  ;;  %v1023_v14 = vpop.xlane.xlu0 %1022  ;;  %v1026_v18 = vpop.xlane.xlu1 %1025 }
 0x108   : > { %v1094_v19 = vmul.f32 0.03125, %v1023_v14  ;;  %v1095_v22 = vmul.f32 0.03125, %v1026_v18  ;;  %v1156_v40 = vmul.f32 %v11366_v6, %v11366_v6  ;;  %v1157_v20 = vmul.f32 %v11369_v7, %v11369_v7 }
 0x10a   : > { %v11382_v21 = vsub.f32 %v11184_v24, %v1094_v19  ;;  %v11385_v26 = vsub.f32 %v11189_v25, %v1095_v22  ;;  %v1208_v56 = vsel %vm984_vm1, %v1156_v40, 0.0  ;;  %v1211_v31 = vsel %vm984_vm1, %v1157_v20, 0.0 }
 0x10b   : > { %1206 = vadd.xlane.f32.xlu1 %v1205_v4  ;;  %1209 = vadd.xlane.f32.xlu0 %v1208_v56  ;;  %v1029_v30 = vpop.xlane.xlu0 %1028  ;;  %v1032_v8 = vpop.xlane.xlu1 %1031 }
 0x10c   : > { %v1096_v36 = vmul.f32 0.03125, %v1029_v30  ;;  %v1097_v38 = vmul.f32 0.03125, %v1032_v8  ;;  %v1158_v42 = vmul.f32 %v11382_v21, %v11382_v21  ;;  %v1159_v24 = vmul.f32 %v11385_v26, %v11385_v26 }
 0x10e   : > { %v11394_v25 = vsub.f32 %v11198_v28, %v1096_v36  ;;  %v11397_v50 = vsub.f32 %v11203_v29, %v1097_v38  ;;  %v1214_v60 = vsel %vm984_vm1, %v1158_v42, 0.0  ;;  %v1217_v52 = vsel %vm984_vm1, %v1159_v24, 0.0  ;;  %v11408_v29 = vld [vmem:[%s10718_s2] sm:$0xff]  }
 0x10f   : > { %1212 = vadd.xlane.f32.xlu1 %v1211_v31  ;;  %1215 = vadd.xlane.f32.xlu0 %v1214_v60 }
 0x110   : > { %v1160_v53 = vmul.f32 %v11394_v25, %v11394_v25  ;;  %v1161_v12 = vmul.f32 %v11397_v50, %v11397_v50  ;;  %8718 = vmatprep.subr.bf16.mxu0 %v11408_v29 }
 0x112   : > { %v1220_v13 = vsel %vm984_vm1, %v1160_v53, 0.0  ;;  %v1223_v28 = vsel %vm984_vm1, %v1161_v12, 0.0  ;;  %v11417_v12 = vld [vmem:[%s15753_s30] ss:$0 sm:$0xff] }
 0x113   : > { %1218 = vadd.xlane.f32.xlu1 %v1217_v52  ;;  %1221 = vadd.xlane.f32.xlu0 %v1220_v13 }
 0x117   : > { %1224 = vadd.xlane.f32.xlu1 %v1223_v28 }
 0x164   : > { %v1228_v32 = vpop.xlane.xlu0 %1227 }
 0x165   : > { %v1290_v46 = vmul.f32 0.03125, %v1228_v32 }
 0x167   : > { %v1322_v62 = vadd.f32 1e-05, %v1290_v46 }
 0x168   : > { %v1231_v0 = vpop.xlane.xlu1 %1230  ;;  %v1234_v2 = vpop.xlane.xlu0 %1233 }
 0x169   : > { %9743 = vrsqrt.f32 %v1322_v62  ;;  %v1291_v3 = vmul.f32 0.03125, %v1231_v0  ;;  %v1292_v16 = vmul.f32 0.03125, %v1234_v2 }
 0x16b   : > { %v1323_v17 = vadd.f32 1e-05, %v1291_v3  ;;  %v1324_v10 = vadd.f32 1e-05, %v1292_v16 }
 0x16c   : > { %v1237_v14 = vpop.xlane.xlu1 %1236  ;;  %v1240_v4 = vpop.xlane.xlu0 %1239 }
 0x16d   : > { %9745 = vrsqrt.f32 %v1323_v17  ;;  %v1293_v18 = vmul.f32 0.03125, %v1237_v14  ;;  %v1294_v19 = vmul.f32 0.03125, %v1240_v4  ;;  %v11426_v17 = vld [vmem:[%s15755_s29] ss:$0 sm:$0xff]  ;;  %s10571_s29 = smov 8  }
 0x16e   : > { %9747 = vrsqrt.f32 %v1324_v10 }
 0x16f   : > { %v1325_v22 = vadd.f32 1e-05, %v1293_v18  ;;  %v1326_v40 = vadd.f32 1e-05, %v1294_v19 }
 0x170   : > { %v1243_v20 = vpop.xlane.xlu1 %1242  ;;  %v1246_v56 = vpop.xlane.xlu0 %1245 }
 0x171   : > { %9749 = vrsqrt.f32 %v1325_v22  ;;  %v1295_v30 = vmul.f32 0.03125, %v1243_v20  ;;  %v1296_v31 = vmul.f32 0.03125, %v1246_v56 }
 0x172   : > { %9751 = vrsqrt.f32 %v1326_v40 }
 0x173   : > { %v9744_v8 = vpop.eup %9743  ;;  %v1327_v36 = vadd.f32 1e-05, %v1295_v30  ;;  %v1328_v38 = vadd.f32 1e-05, %v1296_v31 }
 0x174   : > { %v1249_v42 = vpop.xlane.xlu1 %1248  ;;  %v1252_v24 = vpop.xlane.xlu0 %1251  ;;  %v1386_v60 = vmul.f32 %v9744_v8, %v11210_v43 }
 0x175   : > { %9753 = vrsqrt.f32 %v1327_v36  ;;  %v1297_v52 = vmul.f32 0.03125, %v1249_v42  ;;  %v1298_v53 = vmul.f32 0.03125, %v1252_v24 }
 0x176   : > { %9755 = vrsqrt.f32 %v1328_v38  ;;  %v1424_v43 = vmul.f32 %v11417_v12, %v1386_v60 }
 0x177   : > { %v9746_v13 = vpop.eup %9745  ;;  %v1329_v28 = vadd.f32 1e-05, %v1297_v52  ;;  %v1330_v32 = vadd.f32 1e-05, %v1298_v53 }
 0x178   : > { %v9748_v46 = vpop.eup %9747  ;;  %v1255_v62 = vpop.xlane.xlu1 %1254  ;;  %v1387_v2 = vmul.f32 %v9746_v13, %v11220_v58  ;;  %v1462_v20 = vadd.f32 %v11426_v17, %v1424_v43 }
 0x179   : > { %v1258_v0 = vpop.xlane.xlu0 %1257  ;;  %9757 = vrsqrt.f32 %v1329_v28  ;;  %v1299_v3 = vmul.f32 0.03125, %v1255_v62  ;;  %v1388_v10 = vmul.f32 %v9748_v46, %v11213_v44 }
 0x17a   : > { %v1300_v16 = vmul.f32 0.03125, %v1258_v0  ;;  %9759 = vrsqrt.f32 %v1330_v32  ;;  %v1425_v14 = vmul.f32 %v11417_v12, %v1387_v2 }
 0x17b   : > { %v9750_v4 = vpop.eup %9749  ;;  %v1331_v18 = vadd.f32 1e-05, %v1299_v3  ;;  %v1426_v31 = vmul.f32 %v11417_v12, %v1388_v10 }
 0x17c   : > { %v1332_v19 = vadd.f32 1e-05, %v1300_v16  ;;  %v9752_v58 = vpop.eup %9751  ;;  %v1261_v22 = vpop.xlane.xlu1 %1260  ;;  %v1463_v56 = vadd.f32 %v11426_v17, %v1425_v14  ;;  %v1389_v30 = vmul.f32 %v9750_v4, %v11223_v59  ;;  %v9728_v16 = vld [vmem:[%s10709_s24 + $0x8] sm:$0xff]   ;;  %s10573_s24 = smov 24  }
 0x17d   : > { %v1264_v40 = vpop.xlane.xlu0 %1263  ;;  %9761 = vrsqrt.f32 %v1331_v18  ;;  %v1301_v8 = vmul.f32 0.03125, %v1261_v22  ;;  %v1390_v42 = vmul.f32 %v9752_v58, %v11232_v34  ;;  %v1464_v28 = vadd.f32 %v11426_v17, %v1426_v31 }
 0x17e   : > { %v1302_v44 = vmul.f32 0.03125, %v1264_v40  ;;  %9763 = vrsqrt.f32 %v1332_v19  ;;  %v11434_v36 = vpack.c.bf16 %v1463_v56, %v1462_v20  ;;  %v1427_v38 = vmul.f32 %v11417_v12, %v1389_v30 }
 0x17f   : > { %v9754_v24 = vpop.eup %9753  ;;  %v1333_v60 = vadd.f32 1e-05, %v1301_v8  ;;  %v1428_v62 = vmul.f32 %v11417_v12, %v1390_v42 }
 0x180   : > { %v1334_v52 = vadd.f32 1e-05, %v1302_v44  ;;  %v9756_v53 = vpop.eup %9755  ;;  %v1267_v13 = vpop.xlane.xlu1 %1266  ;;  %8666 = vmatprep.mubr.msk.bf16.mxu1 %vm984_vm1, %v11434_v36  ;;  %v1465_v32 = vadd.f32 %v11426_v17, %v1427_v38  ;;  %v1391_v46 = vmul.f32 %v9754_v24, %v11235_v37 }
 0x181   : > { %v1270_v59 = vpop.xlane.xlu0 %1269  ;;  %9765 = vrsqrt.f32 %v1333_v60  ;;  %v1303_v34 = vmul.f32 0.03125, %v1267_v13  ;;  %v1392_v2 = vmul.f32 %v9756_v53, %v11244_v23  ;;  %v1466_v58 = vadd.f32 %v11426_v17, %v1428_v62 }
 0x182   : > { %v1304_v0 = vmul.f32 0.03125, %v1270_v59  ;;  %9767 = vrsqrt.f32 %v1334_v52  ;;  %v11445_v43 = vpack.c.bf16 %v1465_v32, %v1464_v28  ;;  %v1429_v3 = vmul.f32 %v11417_v12, %v1391_v46 }
 0x183   : > { %v9758_v10 = vpop.eup %9757  ;;  %v1335_v14 = vadd.f32 1e-05, %v1303_v34  ;;  %v1430_v40 = vmul.f32 %v11417_v12, %v1392_v2 }
 0x184   : > { %v1336_v4 = vadd.f32 1e-05, %v1304_v0  ;;  %v9760_v18 = vpop.eup %9759  ;;  %v1273_v19 = vpop.xlane.xlu1 %1272  ;;  %8667 = vmatmul.mubr.msk.bf16.vlgmr.msra.gmra.mrb[0].mxu1 %vm984_vm1, %v11445_v43  ;;  %v1467_v22 = vadd.f32 %v11426_v17, %v1429_v3  ;;  %v1393_v23 = vmul.f32 %v9758_v10, %v11247_v41 }
 0x185   : > { %v1180_v37 = vpop.xlane.xlu0 %1179  ;;  %9769 = vrsqrt.f32 %v1335_v14  ;;  %v1305_v20 = vmul.f32 0.03125, %v1273_v19  ;;  %8683 = vmatpush3.bf16.msra.mxu1 %v11373_v48  ;;  %v1394_v8 = vmul.f32 %v9760_v18, %v11256_v39  ;;  %v1468_v52 = vadd.f32 %v11426_v17, %v1430_v40 }
 0x186   : > { %v1274_v56 = vmul.f32 0.03125, %v1180_v37  ;;  %9771 = vrsqrt.f32 %v1336_v4  ;;  %v11456_v30 = vpack.c.bf16 %v1467_v22, %v1466_v58  ;;  %v1431_v31 = vmul.f32 %v11417_v12, %v1393_v23  ;;  %8684 = vmatprep.subr.bf16.mxu1 %v9728_v16 }
 0x187   : > { %v9762_v44 = vpop.eup %9761  ;;  %v1337_v38 = vadd.f32 1e-05, %v1305_v20  ;;  %v1432_v13 = vmul.f32 %v11417_v12, %v1394_v8 }
 0x188   : > { %v1306_v42 = vadd.f32 1e-05, %v1274_v56  ;;  %v9764_v24 = vpop.eup %9763  ;;  %v1183_v41 = vpop.xlane.xlu1 %1182  ;;  %8670 = vmatprep.mubr.msk.bf16.mxu1 %vm984_vm1, %v11456_v30  ;;  %v1469_v48 = vadd.f32 %v11426_v17, %v1431_v31  ;;  %v1395_v53 = vmul.f32 %v9762_v44, %v11259_v45 }
 0x189   : > { %v1186_v60 = vpop.xlane.xlu0 %1185  ;;  %9773 = vrsqrt.f32 %v1337_v38  ;;  %v1275_v39 = vmul.f32 0.03125, %v1183_v41  ;;  %v1396_v28 = vmul.f32 %v9764_v24, %v11268_v33  ;;  %8685 = vmatpush3.bf16.msra.mxu1 %v9728_v16  ;;  %v1470_v10 = vadd.f32 %v11426_v17, %v1432_v13 }
 0x18a   : > { %v1276_v59 = vmul.f32 0.03125, %v1186_v60  ;;  %9775 = vrsqrt.f32 %v1306_v42  ;;  %v11467_v32 = vpack.c.bf16 %v1469_v48, %v1468_v52  ;;  %v1433_v46 = vmul.f32 %v11417_v12, %v1395_v53 }
 0x18b   : > { %v9766_v62 = vpop.eup %9765  ;;  %v1307_v34 = vadd.f32 1e-05, %v1275_v39  ;;  %v1434_v16 = vmul.f32 %v11417_v12, %v1396_v28 }
 0x18c   : > { %v1308_v0 = vadd.f32 1e-05, %v1276_v59  ;;  %v9768_v2 = vpop.eup %9767  ;;  %v1189_v3 = vpop.xlane.xlu1 %1188  ;;  %8671 = vmatmul.mubr.msk.bf16.gmra.mrb[4].mxu1 %vm984_vm1, %v11467_v32  ;;  %v1471_v14 = vadd.f32 %v11426_v17, %v1433_v46  ;;  %v1397_v33 = vmul.f32 %v9766_v62, %v11271_v47 }
 0x18d   : > { %v1192_v45 = vpop.xlane.xlu0 %1191  ;;  %9777 = vrsqrt.f32 %v1307_v34  ;;  %v1277_v4 = vmul.f32 0.03125, %v1189_v3  ;;  %v1398_v58 = vmul.f32 %v9768_v2, %v11280_v11  ;;  %v1472_v31 = vadd.f32 %v11426_v17, %v1434_v16 }
 0x18e   : > { %v1278_v18 = vmul.f32 0.03125, %v1192_v45  ;;  %9779 = vrsqrt.f32 %v1308_v0  ;;  %v11476_v19 = vpack.c.bf16 %v1471_v14, %v1470_v10  ;;  %v1435_v37 = vmul.f32 %v11417_v12, %v1397_v33 }
 0x18f   : > { %v9770_v22 = vpop.eup %9769  ;;  %v1309_v23 = vadd.f32 1e-05, %v1277_v4  ;;  %v1436_v38 = vmul.f32 %v11417_v12, %v1398_v58 }
 0x190   : > { %v1310_v40 = vadd.f32 1e-05, %v1278_v18  ;;  %v9772_v20 = vpop.eup %9771  ;;  %v1195_v56 = vpop.xlane.xlu1 %1194  ;;  %8674 = vmatprep.mubr.msk.bf16.mxu1 %vm984_vm1, %v11476_v19  ;;  %v1473_v8 = vadd.f32 %v11426_v17, %v1435_v37  ;;  %v1399_v44 = vmul.f32 %v9770_v22, %v11283_v49 }
 0x191   : > { %v1198_v47 = vpop.xlane.xlu0 %1197  ;;  %9781 = vrsqrt.f32 %v1309_v23  ;;  %v1279_v42 = vmul.f32 0.03125, %v1195_v56  ;;  %v1400_v24 = vmul.f32 %v9772_v20, %v11292_v27  ;;  %v1474_v59 = vadd.f32 %v11426_v17, %v1436_v38 }
 0x192   : > { %v1280_v11 = vmul.f32 0.03125, %v1198_v47  ;;  %9783 = vrsqrt.f32 %v1310_v40  ;;  %v11487_v41 = vpack.c.bf16 %v1473_v8, %v1472_v31  ;;  %v1437_v60 = vmul.f32 %v11417_v12, %v1399_v44 }
 0x193   : > { %v9774_v52 = vpop.eup %9773  ;;  %v1311_v48 = vadd.f32 1e-05, %v1279_v42  ;;  %v1438_v46 = vmul.f32 %v11417_v12, %v1400_v24 }
 0x194   : > { %v1312_v53 = vadd.f32 1e-05, %v1280_v11  ;;  %v9776_v13 = vpop.eup %9775  ;;  %v1201_v39 = vpop.xlane.xlu1 %1200  ;;  %8675 = vmatmul.mubr.msk.bf16.gmra.mrb[8].mxu1 %vm984_vm1, %v11487_v41  ;;  %v1475_v28 = vadd.f32 %v11426_v17, %v1437_v60  ;;  %v1401_v27 = vmul.f32 %v9774_v52, %v11295_v57 }
 0x195   : > { %v1204_v49 = vpop.xlane.xlu0 %1203  ;;  %9785 = vrsqrt.f32 %v1311_v48  ;;  %v1281_v62 = vmul.f32 0.03125, %v1201_v39  ;;  %v1370_v3 = vmul.f32 %v9776_v13, %v11304_v51  ;;  %v1476_v4 = vadd.f32 %v11426_v17, %v1438_v46 }
 0x196   : > { %v1282_v34 = vmul.f32 0.03125, %v1204_v49  ;;  %9787 = vrsqrt.f32 %v1312_v53  ;;  %v11496_v0 = vpack.c.bf16 %v1475_v28, %v1474_v59  ;;  %v1439_v2 = vmul.f32 %v11417_v12, %v1401_v27 }
 0x197   : > { %v9778_v45 = vpop.eup %9777  ;;  %v1313_v10 = vadd.f32 1e-05, %v1281_v62  ;;  %v1408_v58 = vmul.f32 %v11417_v12, %v1370_v3 }
 0x198   : > { %v1314_v14 = vadd.f32 1e-05, %v1282_v34  ;;  %v9780_v33 = vpop.eup %9779  ;;  %v1207_v16 = vpop.xlane.xlu1 %1206  ;;  %8678 = vmatprep.mubr.msk.bf16.mxu1 %vm984_vm1, %v11496_v0  ;;  %v1477_v18 = vadd.f32 %v11426_v17, %v1439_v2  ;;  %v1371_v37 = vmul.f32 %v9778_v45, %v11307_v61 }
 0x199   : > { %v1210_v57 = vpop.xlane.xlu0 %1209  ;;  %9789 = vrsqrt.f32 %v1313_v10  ;;  %v1283_v22 = vmul.f32 0.03125, %v1207_v16  ;;  %v1372_v23 = vmul.f32 %v9780_v33, %v11316_v63  ;;  %v1446_v42 = vadd.f32 %v11426_v17, %v1408_v58 }
 0x19a   : > { %v1284_v51 = vmul.f32 0.03125, %v1210_v57  ;;  %9791 = vrsqrt.f32 %v1314_v14  ;;  %v11507_v40 = vpack.c.bf16 %v1477_v18, %v1476_v4  ;;  %v1409_v20 = vmul.f32 %v11417_v12, %v1371_v37  ;;  %v9730_v14 = vld [vmem:[%s10718_s2 + $0x8] sm:$0xff]   ;;  %s10572_s2 = smov 16  }
 0x19b   : > { %v9782_v56 = vpop.eup %9781  ;;  %v1315_v47 = vadd.f32 1e-05, %v1283_v22  ;;  %v1410_v8 = vmul.f32 %v11417_v12, %v1372_v23 }
 0x19c   : > { %v1316_v31 = vadd.f32 1e-05, %v1284_v51  ;;  %v9784_v44 = vpop.eup %9783  ;;  %v1213_v38 = vpop.xlane.xlu1 %1212  ;;  %8679 = vmatmul.mubr.msk.bf16.gmra.mrb[12].mxu1 %vm984_vm1, %v11507_v40  ;;  %v1447_v63 = vadd.f32 %v11426_v17, %v1409_v20  ;;  %v1373_v11 = vmul.f32 %v9782_v56, %v11319_v1 }
 0x19d   : > { %v1216_v61 = vpop.xlane.xlu0 %1215  ;;  %9793 = vrsqrt.f32 %v1315_v47  ;;  %v1285_v24 = vmul.f32 0.03125, %v1213_v38  ;;  %v1374_v53 = vmul.f32 %v9784_v44, %v11328_v5  ;;  %v1448_v59 = vadd.f32 %v11426_v17, %v1410_v8 }
 0x19e   : > { %v1286_v60 = vmul.f32 0.03125, %v1216_v61  ;;  %9795 = vrsqrt.f32 %v1316_v31  ;;  %v11516_v52 = vpack.c.bf16 %v1447_v63, %v1446_v42  ;;  %v1411_v48 = vmul.f32 %v11417_v12, %v1373_v11 }
 0x19f   : > { %v9786_v13 = vpop.eup %9785  ;;  %v1317_v39 = vadd.f32 1e-05, %v1285_v24  ;;  %v1412_v5 = vmul.f32 %v11417_v12, %v1374_v53 }
 0x1a0   : > { %v1318_v49 = vadd.f32 1e-05, %v1286_v60  ;;  %v9788_v28 = vpop.eup %9787  ;;  %v1219_v27 = vpop.xlane.xlu1 %1218  ;;  %8650 = vmatprep.mubr.msk.bf16.mxu0 %vm984_vm1, %v11516_v52  ;;  %8686 = vmatprep.mubr.msk.bf16.mxu1 %vm984_vm1, %v11516_v52  ;;  %v1449_v46 = vadd.f32 %v11426_v17, %v1411_v48  ;;  %v1375_v62 = vmul.f32 %v9786_v13, %v11331_v15 }
 0x1a1   : > { %v1222_v1 = vpop.xlane.xlu0 %1221  ;;  %9797 = vrsqrt.f32 %v1317_v39  ;;  %v1287_v34 = vmul.f32 0.03125, %v1219_v27  ;;  %v1376_v3 = vmul.f32 %v9788_v28, %v11341_v9  ;;  %v1450_v4 = vadd.f32 %v11426_v17, %v1412_v5 }
 0x1a2   : > { %v1288_v2 = vmul.f32 0.03125, %v1222_v1  ;;  %9799 = vrsqrt.f32 %v1318_v49  ;;  %v11529_v45 = vpack.c.bf16 %v1449_v46, %v1448_v59  ;;  %v1413_v10 = vmul.f32 %v11417_v12, %v1375_v62 }
 0x1a3   : > { %v9790_v33 = vpop.eup %9789  ;;  %v1319_v16 = vadd.f32 1e-05, %v1287_v34  ;;  %v1414_v58 = vmul.f32 %v11417_v12, %v1376_v3 }
 0x1a4   : > { %v1320_v57 = vadd.f32 1e-05, %v1288_v2  ;;  %v9792_v18 = vpop.eup %9791  ;;  %v1225_v15 = vpop.xlane.xlu1 %1224  ;;  %8651 = vmatmul.mubr.msk.bf16.vlgmr.msra.gmra.mrb[0].mxu0 %vm984_vm1, %v11529_v45  ;;  %8687 = vmatmul.mubr.msk.bf16.vlgmr.msra.gmra.mrb[16].mxu1 %vm984_vm1, %v11529_v45  ;;  %v1451_v9 = vadd.f32 %v11426_v17, %v1413_v10  ;;  %v1377_v37 = vmul.f32 %v9790_v33, %v11344_v35 }
 0x1a5   : > { %9801 = vrsqrt.f32 %v1319_v16  ;;  %v1289_v22 = vmul.f32 0.03125, %v1225_v15  ;;  %v1378_v51 = vmul.f32 %v9792_v18, %v11354_v54  ;;  %8719 = vmatpush3.bf16.msra.mxu0 %v11408_v29  ;;  %v1452_v35 = vadd.f32 %v11426_v17, %v1414_v58 }
 0x1a6   : > { %9803 = vrsqrt.f32 %v1320_v57  ;;  %v1480_v23 = vpack.c.bf16 %v1451_v9, %v1450_v4  ;;  %v1415_v20 = vmul.f32 %v11417_v12, %v1377_v37  ;;  %8720 = vmatprep.subr.bf16.mxu0 %v9730_v14 }
 0x1a7   : > { %v9794_v56 = vpop.eup %9793  ;;  %v1321_v47 = vadd.f32 1e-05, %v1289_v22  ;;  %v1416_v31 = vmul.f32 %v11417_v12, %v1378_v51 }
 0x1a8   : > { %v9796_v8 = vpop.eup %9795  ;;  %8654 = vmatprep.mubr.msk.bf16.mxu0 %vm984_vm1, %v1480_v23  ;;  %8690 = vmatprep.mubr.msk.bf16.mxu1 %vm984_vm1, %v1480_v23  ;;  %v1453_v54 = vadd.f32 %v11426_v17, %v1415_v20  ;;  %v1379_v29 = vmul.f32 %v9794_v56, %v11357_v55 }
 0x1a9   : > { %9805 = vrsqrt.f32 %v1321_v47  ;;  %v1380_v44 = vmul.f32 %v9796_v8, %v11366_v6  ;;  %8721 = vmatpush3.bf16.msra.mxu0 %v9730_v14  ;;  %v1454_v63 = vadd.f32 %v11426_v17, %v1416_v31 }
 0x1aa   : > { %v1481_v38 = vpack.c.bf16 %v1453_v54, %v1452_v35  ;;  %v1417_v61 = vmul.f32 %v11417_v12, %v1379_v29 }
 0x1ab   : > { %v9798_v42 = vpop.eup %9797  ;;  %v1418_v55 = vmul.f32 %v11417_v12, %v1380_v44 }
 0x1ac   : > { %v9800_v11 = vpop.eup %9799  ;;  %8655 = vmatmul.mubr.msk.bf16.gmra.mrb[4].mxu0 %vm984_vm1, %v1481_v38  ;;  %8691 = vmatmul.mubr.msk.bf16.gmra.mrb[20].mxu1 %vm984_vm1, %v1481_v38  ;;  %v1455_v24 = vadd.f32 %v11426_v17, %v1417_v61  ;;  %v1381_v60 = vmul.f32 %v9798_v42, %v11369_v7 }
 0x1ad   : > { %v1382_v6 = vmul.f32 %v9800_v11, %v11382_v21  ;;  %v1456_v59 = vadd.f32 %v11426_v17, %v1418_v55 }
 0x1ae   : > { %v1482_v48 = vpack.c.bf16 %v1455_v24, %v1454_v63  ;;  %v1419_v53 = vmul.f32 %v11417_v12, %v1381_v60 }
 0x1af   : > { %v9802_v13 = vpop.eup %9801  ;;  %v1420_v39 = vmul.f32 %v11417_v12, %v1382_v6 }
 0x1b0   : > { %v9804_v49 = vpop.eup %9803  ;;  %8658 = vmatprep.mubr.msk.bf16.mxu0 %vm984_vm1, %v1482_v48  ;;  %8694 = vmatprep.mubr.msk.bf16.mxu1 %vm984_vm1, %v1482_v48  ;;  %v1457_v28 = vadd.f32 %v11426_v17, %v1419_v53  ;;  %v1383_v7 = vmul.f32 %v9802_v13, %v11385_v26 }
 0x1b1   : > { %v1384_v27 = vmul.f32 %v9804_v49, %v11394_v25  ;;  %v1458_v62 = vadd.f32 %v11426_v17, %v1420_v39 }
 0x1b2   : > { %v1483_v21 = vpack.c.bf16 %v1457_v28, %v1456_v59  ;;  %v1421_v1 = vmul.f32 %v11417_v12, %v1383_v7 }
 0x1b3   : > { %v9806_v46 = vpop.eup %9805  ;;  %v1422_v2 = vmul.f32 %v11417_v12, %v1384_v27 }
 0x1b4   : > { %8659 = vmatmul.mubr.msk.bf16.gmra.mrb[8].mxu0 %vm984_vm1, %v1483_v21  ;;  %8695 = vmatmul.mubr.msk.bf16.gmra.mrb[24].mxu1 %vm984_vm1, %v1483_v21  ;;  %v1459_v5 = vadd.f32 %v11426_v17, %v1421_v1  ;;  %v1385_v34 = vmul.f32 %v9806_v46, %v11397_v50  ;;  %v11628_v50 = vld [vmem:[%s15756_s0] ss:$0 sm:$0xff] }
 0x1b5   : > { %v1460_v25 = vadd.f32 %v11426_v17, %v1422_v2 }
 0x1b6   : > { %v1484_v3 = vpack.c.bf16 %v1459_v5, %v1458_v62  ;;  %v1423_v26 = vmul.f32 %v11417_v12, %v1385_v34 }
 0x1b8   : > { %8662 = vmatprep.mubr.msk.bf16.mxu0 %vm984_vm1, %v1484_v3  ;;  %8698 = vmatprep.mubr.msk.bf16.mxu1 %vm984_vm1, %v1484_v3  ;;  %v1461_v10 = vadd.f32 %v11426_v17, %v1423_v26 }
 0x1ba   : > { %v1485_v14 = vpack.c.bf16 %v1461_v10, %v1460_v25 }
 0x1bc   : > { %8663 = vmatmul.mubr.msk.bf16.gmra.mrb[12].mxu0 %vm984_vm1, %v1485_v14  ;;  %8699 = vmatmul.mubr.msk.bf16.gmra.mrb[28].mxu1 %vm984_vm1, %v1485_v14 }
 0x1bd   : > { %8702 = vmatprep.mubr.msk.bf16.mxu1 %vm984_vm1, %v11434_v36  ;;  %8722 = vmatprep.mubr.msk.bf16.mxu0 %vm984_vm1, %v11516_v52 }
 0x1c4   : > { %8703 = vmatmul.mubr.msk.bf16.gmra.mrb[32].mxu1 %vm984_vm1, %v11445_v43  ;;  %8723 = vmatmul.mubr.msk.bf16.vlgmr.msra.gmra.mrb[16].mxu0 %vm984_vm1, %v11529_v45 }
 0x1c5   : > { %8706 = vmatprep.mubr.msk.bf16.mxu1 %vm984_vm1, %v11456_v30  ;;  %8726 = vmatprep.mubr.msk.bf16.mxu0 %vm984_vm1, %v1480_v23 }
 0x1cc   : > { %8707 = vmatmul.mubr.msk.bf16.gmra.mrb[36].mxu1 %vm984_vm1, %v11467_v32  ;;  %8727 = vmatmul.mubr.msk.bf16.gmra.mrb[20].mxu0 %vm984_vm1, %v1481_v38 }
 0x1cd   : > { %8710 = vmatprep.mubr.msk.bf16.mxu1 %vm984_vm1, %v11476_v19  ;;  %8730 = vmatprep.mubr.msk.bf16.mxu0 %vm984_vm1, %v1482_v48  ;;  %v11669_v48 = vld [vmem:[%s15766_s25] ss:$0 sm:$0xff] }
 0x1d4   : > { %8711 = vmatmul.mubr.msk.bf16.gmra.mrb[40].mxu1 %vm984_vm1, %v11487_v41  ;;  %8731 = vmatmul.mubr.msk.bf16.gmra.mrb[24].mxu0 %vm984_vm1, %v1483_v21 }
 0x1d5   : > { %8714 = vmatprep.mubr.msk.bf16.mxu1 %vm984_vm1, %v11496_v0  ;;  %8734 = vmatprep.mubr.msk.bf16.mxu0 %vm984_vm1, %v1484_v3 }
 0x1dc   : > { %8715 = vmatmul.mubr.msk.bf16.gmra.mrb[44].mxu1 %vm984_vm1, %v11507_v40  ;;  %8735 = vmatmul.mubr.msk.bf16.gmra.mrb[28].mxu0 %vm984_vm1, %v1485_v14 }
 0x1dd   : > { %8738 = vmatprep.mubr.msk.bf16.mxu0 %vm984_vm1, %v11434_v36 }
 0x1e4   : > { %8739 = vmatmul.mubr.msk.bf16.gmra.mrb[32].mxu0 %vm984_vm1, %v11445_v43 }
 0x1e5   : > { %8742 = vmatprep.mubr.msk.bf16.mxu0 %vm984_vm1, %v11456_v30 }
 0x1ec   : > { %8743 = vmatmul.mubr.msk.bf16.gmra.mrb[36].mxu0 %vm984_vm1, %v11467_v32 }
 0x1ed   : > { %8746 = vmatprep.mubr.msk.bf16.mxu0 %vm984_vm1, %v11476_v19 }
 0x1f4   : > { %8747 = vmatmul.mubr.msk.bf16.gmra.mrb[40].mxu0 %vm984_vm1, %v11487_v41 }
 0x1f5   : > { %8750 = vmatprep.mubr.msk.bf16.mxu0 %vm984_vm1, %v11496_v0 }
 0x1fc   : > { %8751 = vmatmul.mubr.msk.bf16.gmra.mrb[44].mxu0 %vm984_vm1, %v11507_v40 }
 0x257   : > { %v8668_v12 = vpop.f32.mrb[0].mxu1 }
 0x258   : > { %v1672_v17 = vadd.f32 %v8668_v12, %v11628_v50  ;;  %v1663_v36 = vpop.f32.mrb[1].mxu1 }
 0x259   : > { %v8669_v43 = vpop.f32.mrb[2].mxu1  ;;  %v1664_v19 = vadd.f32 %v11628_v50, %v1663_v36 }
 0x25a   : > { %v1675_v30 = vadd.f32 %v8669_v43, %v11628_v50  ;;  %v1666_v32 = vpop.f32.mrb[3].mxu1 }
 0x25b   : > { %v1667_v41 = vadd.f32 %v11628_v50, %v1666_v32 }
 0x25c   : > { %v11634_v0 = vpack.c.bf16 %v1675_v30, %v1672_v17 }
 0x25d   : > { %v11636_v40 = vpack.c.bf16 %v1667_v41, %v1664_v19 }
 0x25e   : > { %15757 = vst [vmem:[#allocation6_spill] sm:$0xff] %v11634_v0 }
 0x25f   : > { %15758 = vst [vmem:[#allocation7_spill] sm:$0xff] %v11636_v40  ;;  %v8672_v52 = vpop.f32.mrb[4].mxu1  ;;  %8802 = vmatprep.mubr.msk.bf16.mxu0 %vm2142_vm2, %v11636_v40 }
 0x260   : > { %v1688_v45 = vadd.f32 %v8672_v52, %v11628_v50  ;;  %v1679_v33 = vpop.f32.mrb[5].mxu1 }
 0x261   : > { %v1680_v16 = vadd.f32 %v11628_v50, %v1679_v33  ;;  %v8673_v57 = vpop.f32.mrb[6].mxu1 }
 0x262   : > { %v1691_v4 = vadd.f32 %v8673_v57, %v11628_v50  ;;  %v1682_v18 = vpop.f32.mrb[7].mxu1 }
 0x263   : > { %v1683_v15 = vadd.f32 %v11628_v50, %v1682_v18 }
 0x264   : > { %v11644_v9 = vpack.c.bf16 %v1691_v4, %v1688_v45 }
 0x265   : > { %v11646_v37 = vpack.c.bf16 %v1683_v15, %v1680_v16 }
 0x266   : > { %15759 = vst [vmem:[#allocation8_spill] sm:$0xff] %v11644_v9 }
 0x267   : > { %15760 = vst [vmem:[#allocation9_spill] sm:$0xff] %v11646_v37  ;;  %v8676_v58 = vpop.f32.mrb[8].mxu1 }
 0x268   : > { %v1704_v22 = vadd.f32 %v8676_v58, %v11628_v50  ;;  %v1695_v51 = vpop.f32.mrb[9].mxu1 }
 0x269   : > { %v1696_v23 = vadd.f32 %v11628_v50, %v1695_v51  ;;  %v8677_v20 = vpop.f32.mrb[10].mxu1 }
 0x26a   : > { %v1707_v56 = vadd.f32 %v8677_v20, %v11628_v50  ;;  %v1698_v47 = vpop.f32.mrb[11].mxu1 }
 0x26b   : > { %v1699_v31 = vadd.f32 %v11628_v50, %v1698_v47 }
 0x26c   : > { %v11652_v8 = vpack.c.bf16 %v1707_v56, %v1704_v22 }
 0x26d   : > { %v11654_v35 = vpack.c.bf16 %v1699_v31, %v1696_v23 }
 0x26e   : > { %15761 = vst [vmem:[#allocation10_spill] sm:$0xff] %v11652_v8 }
 0x26f   : > { %15762 = vst [vmem:[#allocation11_spill] sm:$0xff] %v11654_v35  ;;  %v8680_v54 = vpop.f32.mrb[12].mxu1 }
 0x270   : > { %v1720_v29 = vadd.f32 %v8680_v54, %v11628_v50  ;;  %v1711_v44 = vpop.f32.mrb[13].mxu1 }
 0x271   : > { %v1712_v38 = vadd.f32 %v11628_v50, %v1711_v44  ;;  %v8681_v61 = vpop.f32.mrb[14].mxu1 }
 0x272   : > { %v1723_v42 = vadd.f32 %v8681_v61, %v11628_v50  ;;  %v1714_v63 = vpop.f32.mrb[15].mxu1 }
 0x273   : > { %v1715_v11 = vadd.f32 %v11628_v50, %v1714_v63 }
 0x274   : > { %v11660_v24 = vpack.c.bf16 %v1723_v42, %v1720_v29 }
 0x275   : > { %v11662_v60 = vpack.c.bf16 %v1715_v11, %v1712_v38 }
 0x276   : > { %15763 = vst [vmem:[#allocation12_spill] sm:$0xff] %v11660_v24 }
 0x277   : > { %15764 = vst [vmem:[#allocation13_spill] sm:$0xff] %v11662_v60  ;;  %v8652_v55 = vpop.f32.mrb[0].mxu0  ;;  %v8688_v6 = vpop.f32.mrb[16].mxu1 }
 0x278   : > { %v1608_v53 = vadd.f32 %v8652_v55, %v11628_v50  ;;  %v1599_v13 = vpop.f32.mrb[1].mxu0  ;;  %v1783_v39 = vpop.f32.mrb[17].mxu1  ;;  %v1792_v28 = vadd.f32 %v8688_v6, %v11669_v48 }
 0x279   : > { %v8653_v49 = vpop.f32.mrb[2].mxu0  ;;  %v8689_v59 = vpop.f32.mrb[18].mxu1  ;;  %v1600_v46 = vadd.f32 %v11628_v50, %v1599_v13  ;;  %v1784_v62 = vadd.f32 %v11669_v48, %v1783_v39 }
 0x27a   : > { %v1611_v7 = vadd.f32 %v8653_v49, %v11628_v50  ;;  %v1795_v27 = vadd.f32 %v8689_v59, %v11669_v48  ;;  %v1602_v21 = vpop.f32.mrb[3].mxu0  ;;  %v1786_v1 = vpop.f32.mrb[19].mxu1 }
 0x27b   : > { %v1603_v5 = vadd.f32 %v11628_v50, %v1602_v21  ;;  %v1787_v34 = vadd.f32 %v11669_v48, %v1786_v1 }
 0x27c   : > { %v11679_v2 = vpack.c.bf16 %v1611_v7, %v1608_v53  ;;  %v11681_v3 = vpack.c.bf16 %v1795_v27, %v1792_v28 }
 0x27d   : > { %v11683_v26 = vpack.c.bf16 %v1603_v5, %v1600_v46  ;;  %v11685_v25 = vpack.c.bf16 %v1787_v34, %v1784_v62 }
 0x27e   : > { %15767 = vst [vmem:[#allocation14_spill] sm:$0xff] %v11679_v2  ;;  %15768 = vst [vmem:[#allocation15_spill] sm:$0xff] %v11681_v3  ;;  %2965 = vrot.lane.b32.xlu1 %v11681_v3, %s10567_s9  ;;  %v2171_v56 = vsel %vm2142_vm2, %v11681_v3, 0 }
 0x27f   : > { %15769 = vst [vmem:[#allocation16_spill] sm:$0xff] %v11683_v26  ;;  %15770 = vst [vmem:[#allocation17_spill] sm:$0xff] %v11685_v25  ;;  %2963 = vrot.lane.b32.xlu0 %v11685_v25, %s10567_s9  ;;  %v8656_v10 = vpop.f32.mrb[4].mxu0  ;;  %v8692_v14 = vpop.f32.mrb[20].mxu1  ;;  %9390 = vmatprep.subr.msk.bf16.mxu1 %vm2142_vm2, %v11685_v25  ;;  %v2168_v12 = vsel %vm2142_vm2, %v11685_v25, 0 }
 0x280   : > { %v1624_v17 = vadd.f32 %v8656_v10, %v11628_v50  ;;  %8770 = vmatprep.mubr.msk.bf16.mxu1 %vm2142_vm2, %v11683_v26  ;;  %v1615_v36 = vpop.f32.mrb[5].mxu0  ;;  %v1799_v43 = vpop.f32.mrb[21].mxu1  ;;  %8755 = vmatpush3.bf16.xpose.msra.mxu1 %v2168_v12  ;;  %v1808_v41 = vadd.f32 %v8692_v14, %v11669_v48 }
 0x281   : > { %v1616_v30 = vadd.f32 %v11628_v50, %v1615_v36  ;;  %v8657_v32 = vpop.f32.mrb[6].mxu0  ;;  %v8693_v19 = vpop.f32.mrb[22].mxu1  ;;  %9391 = vmatprep.subr.msk.bf16.mxu1 %vm2142_vm2, %v11681_v3  ;;  %v1800_v57 = vadd.f32 %v11669_v48, %v1799_v43 }
 0x282   : > { %v1627_v52 = vadd.f32 %v8657_v32, %v11628_v50  ;;  %v1811_v45 = vadd.f32 %v8693_v19, %v11669_v48  ;;  %v1618_v33 = vpop.f32.mrb[7].mxu0  ;;  %v1802_v16 = vpop.f32.mrb[23].mxu1 }
 0x283   : > { %v1619_v4 = vadd.f32 %v11628_v50, %v1618_v33  ;;  %v1803_v18 = vadd.f32 %v11669_v48, %v1802_v16 }
 0x284   : > { %v11707_v15 = vpack.c.bf16 %v1627_v52, %v1624_v17  ;;  %v11709_v58 = vpack.c.bf16 %v1811_v45, %v1808_v41 }
 0x285   : > { %v11711_v22 = vpack.c.bf16 %v1619_v4, %v1616_v30  ;;  %v11713_v51 = vpack.c.bf16 %v1803_v18, %v1800_v57 }
 0x286   : > { %15771 = vst [vmem:[#allocation18_spill] sm:$0xff] %v11707_v15  ;;  %15772 = vst [vmem:[#allocation19_spill] sm:$0xff] %v11709_v58  ;;  %2969 = vrot.lane.b32.xlu0 %v11709_v58, %s10567_s9  ;;  %v2177_v4 = vsel %vm2142_vm2, %v11709_v58, 0 }
 0x287   : > { %15773 = vst [vmem:[#allocation20_spill] sm:$0xff] %v11711_v22  ;;  %15774 = vst [vmem:[#allocation21_spill] sm:$0xff] %v11713_v51  ;;  %v8660_v23 = vpop.f32.mrb[8].mxu0  ;;  %v8696_v20 = vpop.f32.mrb[24].mxu1  ;;  %v2174_v21 = vsel %vm2142_vm2, %v11713_v51, 0 }
 0x288   : > { %v1640_v47 = vadd.f32 %v8660_v23, %v11628_v50  ;;  %v1631_v31 = vpop.f32.mrb[9].mxu0  ;;  %v1815_v54 = vpop.f32.mrb[25].mxu1  ;;  %8757 = vmatpush3.bf16.xpose.msra.mxu1 %v2171_v56  ;;  %v1824_v61 = vadd.f32 %v8696_v20, %v11669_v48 }
 0x289   : > { %v1632_v29 = vadd.f32 %v11628_v50, %v1631_v31  ;;  %v8661_v44 = vpop.f32.mrb[10].mxu0  ;;  %v8697_v38 = vpop.f32.mrb[26].mxu1  ;;  %9392 = vmatprep.subr.msk.bf16.mxu1 %vm2142_vm2, %v11713_v51  ;;  %v1816_v6 = vadd.f32 %v11669_v48, %v1815_v54 }
 0x28a   : > { %v1643_v42 = vadd.f32 %v8661_v44, %v11628_v50  ;;  %v1827_v63 = vadd.f32 %v8697_v38, %v11669_v48  ;;  %2967 = vrot.lane.b32.xlu0 %v11713_v51, %s10567_s9  ;;  %v1634_v11 = vpop.f32.mrb[11].mxu0  ;;  %v1818_v55 = vpop.f32.mrb[27].mxu1 }
 0x28b   : > { %v1635_v53 = vadd.f32 %v11628_v50, %v1634_v11  ;;  %v1819_v13 = vadd.f32 %v11669_v48, %v1818_v55 }
 0x28c   : > { %v11731_v39 = vpack.c.bf16 %v1643_v42, %v1640_v47  ;;  %v11733_v49 = vpack.c.bf16 %v1827_v63, %v1824_v61 }
 0x28d   : > { %v11735_v59 = vpack.c.bf16 %v1635_v53, %v1632_v29  ;;  %v11737_v28 = vpack.c.bf16 %v1819_v13, %v1816_v6 }
 0x28e   : > { %15775 = vst [vmem:[#allocation22_spill] sm:$0xff] %v11731_v39  ;;  %15776 = vst [vmem:[#allocation23_spill] sm:$0xff] %v11733_v49  ;;  %2973 = vrot.lane.b32.xlu0 %v11733_v49, %s10567_s9 }
 0x28f   : > { %15777 = vst [vmem:[#allocation24_spill] sm:$0xff] %v11735_v59  ;;  %15778 = vst [vmem:[#allocation25_spill] sm:$0xff] %v11737_v28  ;;  %v8664_v7 = vpop.f32.mrb[12].mxu0  ;;  %v8700_v27 = vpop.f32.mrb[28].mxu1 }
 0x290   : > { %v1656_v1 = vadd.f32 %v8664_v7, %v11628_v50  ;;  %v1647_v46 = vpop.f32.mrb[13].mxu0  ;;  %v1831_v62 = vpop.f32.mrb[29].mxu1  ;;  %8759 = vmatpush3.bf16.xpose.msra.mxu1 %v2174_v21  ;;  %v1840_v14 = vadd.f32 %v8700_v27, %v11669_v48  ;;  %v2180_v21 = vsel %vm2142_vm2, %v11737_v28, 0 }
 0x291   : > { %v1648_v5 = vadd.f32 %v11628_v50, %v1647_v46  ;;  %v8665_v34 = vpop.f32.mrb[14].mxu0  ;;  %v8701_v10 = vpop.f32.mrb[30].mxu1  ;;  %9393 = vmatprep.subr.msk.bf16.mxu1 %vm2142_vm2, %v11709_v58  ;;  %v1832_v30 = vadd.f32 %v11669_v48, %v1831_v62 }
 0x292   : > { %v1659_v12 = vadd.f32 %v8665_v34, %v11628_v50  ;;  %v1843_v17 = vadd.f32 %v8701_v10, %v11669_v48  ;;  %2971 = vrot.lane.b32.xlu0 %v11737_v28, %s10567_s9  ;;  %v1650_v36 = vpop.f32.mrb[15].mxu0  ;;  %v1834_v43 = vpop.f32.mrb[31].mxu1 }
 0x293   : > { %v1651_v32 = vadd.f32 %v11628_v50, %v1650_v36  ;;  %v1835_v19 = vadd.f32 %v11669_v48, %v1834_v43  ;;  %v11770_v50 = vld [vmem:[%s15783_s1] ss:$0 sm:$0xff] }
 0x294   : > { %v11755_v41 = vpack.c.bf16 %v1659_v12, %v1656_v1  ;;  %v11757_v52 = vpack.c.bf16 %v1843_v17, %v1840_v14 }
 0x295   : > { %v11759_v45 = vpack.c.bf16 %v1651_v32, %v1648_v5  ;;  %v11761_v33 = vpack.c.bf16 %v1835_v19, %v1832_v30 }
 0x296   : > { %15779 = vst [vmem:[#allocation26_spill] sm:$0xff] %v11755_v41  ;;  %15780 = vst [vmem:[#allocation27_spill] sm:$0xff] %v11757_v52 }
 0x297   : > { %15781 = vst [vmem:[#allocation28_spill] sm:$0xff] %v11759_v45  ;;  %15782 = vst [vmem:[#allocation29_spill] sm:$0xff] %v11761_v33  ;;  %v8704_v16 = vpop.f32.mrb[32].mxu1  ;;  %2975 = vrot.lane.b32.xlu0 %v11761_v33, %s10567_s9  ;;  %v8724_v57 = vpop.f32.mrb[16].mxu0 }
 0x298   : > { %v1847_v18 = vpop.f32.mrb[33].mxu1  ;;  %v1967_v23 = vpop.f32.mrb[17].mxu0  ;;  %8761 = vmatpush3.bf16.xpose.msra.mxu1 %v2177_v4  ;;  %v1856_v47 = vadd.f32 %v8704_v16, %v11669_v48  ;;  %v1976_v31 = vadd.f32 %v8724_v57, %v11770_v50 }
 0x299   : > { %v8705_v20 = vpop.f32.mrb[34].mxu1  ;;  %v8725_v56 = vpop.f32.mrb[18].mxu0  ;;  %9394 = vmatprep.subr.msk.bf16.mxu1 %vm2142_vm2, %v11737_v28  ;;  %v1848_v61 = vadd.f32 %v11669_v48, %v1847_v18  ;;  %v1968_v42 = vadd.f32 %v11770_v50, %v1967_v23 }
 0x29a   : > { %v1859_v54 = vadd.f32 %v8705_v20, %v11669_v48  ;;  %v1979_v29 = vadd.f32 %v8725_v56, %v11770_v50  ;;  %v1850_v44 = vpop.f32.mrb[35].mxu1  ;;  %v1970_v38 = vpop.f32.mrb[19].mxu0 }
 0x29b   : > { %v1851_v63 = vadd.f32 %v11669_v48, %v1850_v44  ;;  %v1971_v11 = vadd.f32 %v11770_v50, %v1970_v38 }
 0x29c   : > { %v11784_v55 = vpack.c.bf16 %v1859_v54, %v1856_v47  ;;  %v11786_v6 = vpack.c.bf16 %v1979_v29, %v1976_v31  ;;  %v2183_v47 = vsel %vm2142_vm2, %v11733_v49, 0 }
 0x29d   : > { %v11788_v53 = vpack.c.bf16 %v1851_v63, %v1848_v61  ;;  %v11790_v13 = vpack.c.bf16 %v1971_v11, %v1968_v42 }
 0x29e   : > { %15784 = vst [vmem:[#allocation30_spill] sm:$0xff] %v11784_v55  ;;  %15785 = vst [vmem:[#allocation31_spill] sm:$0xff] %v11786_v6  ;;  %3158 = vrot.lane.b32.xlu1 %v11784_v55, %s10567_s9  ;;  %v2316_v31 = vsel %vm2142_vm2, %v11784_v55, 0 }
 0x29f   : > { %15786 = vst [vmem:[#allocation32_spill] sm:$0xff] %v11788_v53  ;;  %15787 = vst [vmem:[#allocation33_spill] sm:$0xff] %v11790_v13  ;;  %v8708_v7 = vpop.f32.mrb[36].mxu1  ;;  %v8728_v27 = vpop.f32.mrb[20].mxu0  ;;  %9398 = vmatprep.subr.msk.bf16.mxu0 %vm2142_vm2, %v11788_v53  ;;  %v2313_v1 = vsel %vm2142_vm2, %v11788_v53, 0 }
 0x2a0   : > { %v1863_v46 = vpop.f32.mrb[37].mxu1  ;;  %v1983_v62 = vpop.f32.mrb[21].mxu0  ;;  %8763 = vmatpush3.bf16.xpose.msra.mxu1 %v2180_v21  ;;  %8787 = vmatpush3.bf16.xpose.msra.mxu0 %v2313_v1  ;;  %v1872_v10 = vadd.f32 %v8708_v7, %v11669_v48  ;;  %v1992_v14 = vadd.f32 %v8728_v27, %v11770_v50 }
 0x2a1   : > { %v8709_v5 = vpop.f32.mrb[38].mxu1  ;;  %v8729_v34 = vpop.f32.mrb[22].mxu0  ;;  %9395 = vmatprep.subr.msk.bf16.mxu1 %vm2142_vm2, %v11733_v49  ;;  %9399 = vmatprep.subr.msk.bf16.mxu0 %vm2142_vm2, %v11784_v55  ;;  %v1864_v30 = vadd.f32 %v11669_v48, %v1863_v46  ;;  %v1984_v32 = vadd.f32 %v11770_v50, %v1983_v62 }
 0x2a2   : > { %v1875_v12 = vadd.f32 %v8709_v5, %v11669_v48  ;;  %v1995_v17 = vadd.f32 %v8729_v34, %v11770_v50  ;;  %v1866_v36 = vpop.f32.mrb[39].mxu1  ;;  %3156 = vrot.lane.b32.xlu1 %v11788_v53, %s10567_s9  ;;  %v1986_v43 = vpop.f32.mrb[23].mxu0 }
 0x2a3   : > { %v1867_v19 = vadd.f32 %v11669_v48, %v1866_v36  ;;  %v1987_v16 = vadd.f32 %v11770_v50, %v1986_v43  ;;  %v2186_v36 = vsel %vm2142_vm2, %v11761_v33, 0 }
 0x2a4   : > { %v11814_v57 = vpack.c.bf16 %v1875_v12, %v1872_v10  ;;  %v11816_v4 = vpack.c.bf16 %v1995_v17, %v1992_v14 }
 0x2a5   : > { %v11818_v18 = vpack.c.bf16 %v1867_v19, %v1864_v30  ;;  %v11820_v23 = vpack.c.bf16 %v1987_v16, %v1984_v32 }
 0x2a6   : > { %15788 = vst [vmem:[#allocation34_spill] sm:$0xff] %v11814_v57  ;;  %15789 = vst [vmem:[#allocation35_spill] sm:$0xff] %v11816_v4 }
 0x2a7   : > { %15790 = vst [vmem:[#allocation36_spill] sm:$0xff] %v11818_v18  ;;  %15791 = vst [vmem:[#allocation37_spill] sm:$0xff] %v11820_v23  ;;  %v8712_v20 = vpop.f32.mrb[40].mxu1  ;;  %3160 = vrot.lane.b32.xlu1 %v11818_v18, %s10567_s9  ;;  %v8732_v56 = vpop.f32.mrb[24].mxu0  ;;  %v2319_v43 = vsel %vm2142_vm2, %v11818_v18, 0 }
 0x2a8   : > { %v1888_v54 = vadd.f32 %v8712_v20, %v11669_v48  ;;  %v1879_v29 = vpop.f32.mrb[41].mxu1  ;;  %v1999_v44 = vpop.f32.mrb[25].mxu0  ;;  %8765 = vmatpush3.bf16.xpose.msra.mxu1 %v2183_v47  ;;  %8789 = vmatpush3.bf16.xpose.msra.mxu0 %v2316_v31  ;;  %v2008_v42 = vadd.f32 %v8732_v56, %v11770_v50 }
 0x2a9   : > { %v8713_v38 = vpop.f32.mrb[42].mxu1  ;;  %v8733_v61 = vpop.f32.mrb[26].mxu0  ;;  %9396 = vmatprep.subr.msk.bf16.mxu1 %vm2142_vm2, %v11761_v33  ;;  %9400 = vmatprep.subr.msk.bf16.mxu0 %vm2142_vm2, %v11818_v18  ;;  %v1880_v21 = vadd.f32 %v11669_v48, %v1879_v29  ;;  %v2000_v1 = vadd.f32 %v11770_v50, %v1999_v44 }
 0x2aa   : > { %v1891_v63 = vadd.f32 %v8713_v38, %v11669_v48  ;;  %v2011_v11 = vadd.f32 %v8733_v61, %v11770_v50  ;;  %v1882_v7 = vpop.f32.mrb[43].mxu1  ;;  %v2002_v27 = vpop.f32.mrb[27].mxu0 }
 0x2ab   : > { %v1883_v46 = vadd.f32 %v11669_v48, %v1882_v7  ;;  %v2003_v62 = vadd.f32 %v11770_v50, %v2002_v27  ;;  %3162 = vrot.lane.b32.xlu1 %v11814_v57, %s10567_s9 }
 0x2ac   : > { %v11842_v5 = vpack.c.bf16 %v1891_v63, %v1888_v54  ;;  %v11844_v34 = vpack.c.bf16 %v2011_v11, %v2008_v42 }
 0x2ad   : > { %v11846_v10 = vpack.c.bf16 %v1883_v46, %v1880_v21  ;;  %v11848_v14 = vpack.c.bf16 %v2003_v62, %v2000_v1  ;;  %v2189_v1 = vsel %vm2142_vm2, %v11757_v52, 0  ;;  %v2322_v46 = vsel %vm2142_vm2, %v11814_v57, 0 }
 0x2ae   : > { %15792 = vst [vmem:[#allocation38_spill] sm:$0xff] %v11844_v34 }
 0x2af   : > { %15793 = vst [vmem:[#allocation39_spill] sm:$0xff] %v11846_v10  ;;  %15794 = vst [vmem:[#allocation40_spill] sm:$0xff] %v11848_v14  ;;  %v8716_v12 = vpop.f32.mrb[44].mxu1  ;;  %v8736_v17 = vpop.f32.mrb[28].mxu0 }
 0x2b0   : > { %v1904_v30 = vadd.f32 %v8716_v12, %v11669_v48  ;;  %v1895_v32 = vpop.f32.mrb[45].mxu1  ;;  %v2015_v19 = vpop.f32.mrb[29].mxu0  ;;  %8767 = vmatpush3.bf16.xpose.msra.mxu1 %v2186_v36  ;;  %8791 = vmatpush3.bf16.xpose.msra.mxu0 %v2319_v43  ;;  %v2024_v47 = vadd.f32 %v8736_v17, %v11770_v50 }
 0x2b1   : > { %v1896_v16 = vadd.f32 %v11669_v48, %v1895_v32  ;;  %v8717_v20 = vpop.f32.mrb[46].mxu1  ;;  %v8737_v56 = vpop.f32.mrb[30].mxu0  ;;  %9397 = vmatprep.subr.msk.bf16.mxu1 %vm2142_vm2, %v11757_v52  ;;  %9401 = vmatprep.subr.msk.bf16.mxu0 %vm2142_vm2, %v11814_v57  ;;  %v2016_v38 = vadd.f32 %v11770_v50, %v2015_v19 }
 0x2b2   : > { %v1907_v31 = vadd.f32 %v8717_v20, %v11669_v48  ;;  %v2027_v54 = vadd.f32 %v8737_v56, %v11770_v50  ;;  %v1898_v29 = vpop.f32.mrb[47].mxu1  ;;  %v2018_v44 = vpop.f32.mrb[31].mxu0  ;;  %v2325_v20 = vsel %vm2142_vm2, %v11846_v10, 0 }
 0x2b3   : > { %v1899_v61 = vadd.f32 %v11669_v48, %v1898_v29  ;;  %v2019_v42 = vadd.f32 %v11770_v50, %v2018_v44 }
 0x2b4   : > { %v11866_v63 = vpack.c.bf16 %v1907_v31, %v1904_v30  ;;  %v11868_v11 = vpack.c.bf16 %v2027_v54, %v2024_v47 }
 0x2b5   : > { %v11870_v7 = vpack.c.bf16 %v1899_v61, %v1896_v16  ;;  %v11872_v27 = vpack.c.bf16 %v2019_v42, %v2016_v38 }
 0x2b6   : > { %15795 = vst [vmem:[#allocation41_spill] sm:$0xff] %v11866_v63  ;;  %15796 = vst [vmem:[#allocation42_spill] sm:$0xff] %v11868_v11 }
 0x2b7   : > { %15797 = vst [vmem:[#allocation43_spill] sm:$0xff] %v11870_v7  ;;  %15798 = vst [vmem:[#allocation44_spill] sm:$0xff] %v11872_v27  ;;  %v8740_v21 = vpop.f32.mrb[32].mxu0 }
 0x2b8   : > { %v2040_v62 = vadd.f32 %v8740_v21, %v11770_v50  ;;  %v2031_v48 = vpop.f32.mrb[33].mxu0  ;;  %8769 = vmatpush3.bf16.xpose.msra.mxu1 %v2189_v1  ;;  %8793 = vmatpush3.bf16.xpose.msra.mxu0 %v2322_v46  ;;  %v2328_v1 = vsel %vm2142_vm2, %v11842_v5, 0 }
 0x2b9   : > { %v8741_v12 = vpop.f32.mrb[34].mxu0  ;;  %9402 = vmatprep.subr.msk.bf16.mxu0 %vm2142_vm2, %v11846_v10  ;;  %8818 = vmatprep.subr.bf16.mxu1 %v11790_v13  ;;  %v2032_v43 = vadd.f32 %v11770_v50, %v2031_v48 }
 0x2ba   : > { %v2043_v17 = vadd.f32 %v8741_v12, %v11770_v50  ;;  %v2034_v36 = vpop.f32.mrb[35].mxu0 }
 0x2bb   : > { %v2035_v30 = vadd.f32 %v11770_v50, %v2034_v36 }
 0x2bc   : > { %v11885_v32 = vpack.c.bf16 %v2043_v17, %v2040_v62 }
 0x2bd   : > { %v11887_v19 = vpack.c.bf16 %v2035_v30, %v2032_v43 }
 0x2be   : > { %15799 = vst [vmem:[#allocation45_spill] sm:$0xff] %v11885_v32 }
 0x2bf   : > { %15800 = vst [vmem:[#allocation46_spill] sm:$0xff] %v11887_v19  ;;  %v8744_v16 = vpop.f32.mrb[36].mxu0  ;;  %8771 = vmatmul.mubr.msk.bf16.vlgmr.msra.gmra.mrb[48].mxu1 %vm2142_vm2, %v11679_v2 }
 0x2c0   : > { %v2056_v56 = vadd.f32 %v8744_v16, %v11770_v50  ;;  %v2047_v47 = vpop.f32.mrb[37].mxu0  ;;  %8774 = vmatprep.mubr.msk.bf16.mxu1 %vm2142_vm2, %v11711_v22  ;;  %8795 = vmatpush3.bf16.xpose.msra.mxu0 %v2325_v20 }
 0x2c1   : > { %v2048_v31 = vadd.f32 %v11770_v50, %v2047_v47  ;;  %8819 = vmatpush3.bf16.msra.mxu1 %v11790_v13  ;;  %v8745_v54 = vpop.f32.mrb[38].mxu0  ;;  %9403 = vmatprep.subr.msk.bf16.mxu0 %vm2142_vm2, %v11842_v5 }
 0x2c2   : > { %v2059_v29 = vadd.f32 %v8745_v54, %v11770_v50  ;;  %8820 = vmatprep.subr.bf16.mxu1 %v11786_v6  ;;  %v2050_v44 = vpop.f32.mrb[39].mxu0 }
 0x2c3   : > { %v2051_v38 = vadd.f32 %v11770_v50, %v2050_v44 }
 0x2c4   : > { %v11903_v61 = vpack.c.bf16 %v2059_v29, %v2056_v56  ;;  %v2331_v56 = vsel %vm2142_vm2, %v11870_v7, 0 }
 0x2c5   : > { %v11905_v42 = vpack.c.bf16 %v2051_v38, %v2048_v31  ;;  %8821 = vmatpush3.bf16.msra.mxu1 %v11786_v6 }
 0x2c6   : > { %15801 = vst [vmem:[#allocation47_spill] sm:$0xff] %v11903_v61  ;;  %8822 = vmatprep.subr.bf16.mxu1 %v11820_v23 }
 0x2c7   : > { %15802 = vst [vmem:[#allocation48_spill] sm:$0xff] %v11905_v42  ;;  %v8748_v21 = vpop.f32.mrb[40].mxu0  ;;  %8775 = vmatmul.mubr.msk.bf16.gmra.mrb[52].mxu1 %vm2142_vm2, %v11707_v15 }
 0x2c8   : > { %v2072_v46 = vadd.f32 %v8748_v21, %v11770_v50  ;;  %v2063_v62 = vpop.f32.mrb[41].mxu0  ;;  %8778 = vmatprep.mubr.msk.bf16.mxu1 %vm2142_vm2, %v11735_v59  ;;  %8797 = vmatpush3.bf16.xpose.msra.mxu0 %v2328_v1 }
 0x2c9   : > { %v2064_v48 = vadd.f32 %v11770_v50, %v2063_v62  ;;  %8823 = vmatpush3.bf16.msra.mxu1 %v11820_v23  ;;  %v8749_v12 = vpop.f32.mrb[42].mxu0  ;;  %9404 = vmatprep.subr.msk.bf16.mxu0 %vm2142_vm2, %v11870_v7  ;;  %v2334_v62 = vsel %vm2142_vm2, %v11866_v63, 0 }
 0x2ca   : > { %v2075_v17 = vadd.f32 %v8749_v12, %v11770_v50  ;;  %8824 = vmatprep.subr.bf16.mxu1 %v11816_v4  ;;  %v2066_v36 = vpop.f32.mrb[43].mxu0 }
 0x2cb   : > { %v2067_v43 = vadd.f32 %v11770_v50, %v2066_v36 }
 0x2cc   : > { %v11923_v30 = vpack.c.bf16 %v2075_v17, %v2072_v46 }
 0x2cd   : > { %v11925_v16 = vpack.c.bf16 %v2067_v43, %v2064_v48  ;;  %8825 = vmatpush3.bf16.msra.mxu1 %v11816_v4 }
 0x2ce   : > { %15803 = vst [vmem:[#allocation49_spill] sm:$0xff] %v11923_v30  ;;  %8826 = vmatprep.subr.bf16.mxu1 %v11848_v14 }
 0x2cf   : > { %15804 = vst [vmem:[#allocation50_spill] sm:$0xff] %v11925_v16  ;;  %v8752_v20 = vpop.f32.mrb[44].mxu0  ;;  %8779 = vmatmul.mubr.msk.bf16.gmra.mrb[56].mxu1 %vm2142_vm2, %v11731_v39 }
 0x2d0   : > { %v2088_v47 = vadd.f32 %v8752_v20, %v11770_v50  ;;  %v2079_v31 = vpop.f32.mrb[45].mxu0  ;;  %8782 = vmatprep.mubr.msk.bf16.mxu1 %vm2142_vm2, %v11759_v45  ;;  %8799 = vmatpush3.bf16.xpose.msra.mxu0 %v2331_v56 }
 0x2d1   : > { %v2080_v54 = vadd.f32 %v11770_v50, %v2079_v31  ;;  %8827 = vmatpush3.bf16.msra.mxu1 %v11848_v14  ;;  %v8753_v29 = vpop.f32.mrb[46].mxu0  ;;  %9405 = vmatprep.subr.msk.bf16.mxu0 %vm2142_vm2, %v11866_v63 }
 0x2d2   : > { %v2091_v44 = vadd.f32 %v8753_v29, %v11770_v50  ;;  %8828 = vmatprep.subr.bf16.mxu1 %v11844_v34  ;;  %v2082_v38 = vpop.f32.mrb[47].mxu0 }
 0x2d3   : > { %v2083_v21 = vadd.f32 %v11770_v50, %v2082_v38 }
 0x2d4   : > { %v11943_v1 = vpack.c.bf16 %v2091_v44, %v2088_v47 }
 0x2d5   : > { %v11945_v46 = vpack.c.bf16 %v2083_v21, %v2080_v54  ;;  %8829 = vmatpush3.bf16.msra.mxu1 %v11844_v34  ;;  %v931_v21 = vlaneseq }
 0x2d6   : > { %15805 = vst [vmem:[#allocation51_spill] sm:$0xff] %v11943_v1  ;;  %8830 = vmatprep.subr.bf16.mxu1 %v11872_v27 }
 0x2d7   : > { %15806 = vst [vmem:[#allocation52_spill] sm:$0xff] %v11945_v46  ;;  %8783 = vmatmul.mubr.msk.bf16.gmra.mrb[60].mxu1 %vm2142_vm2, %v11755_v41 }
 0x2d8   : > { %8801 = vmatpush3.bf16.xpose.msra.mxu0 %v2334_v62  ;;  %v11985_v62 = vshrl.u32 %v931_v21, 7 }
 0x2d9   : > { %8831 = vmatpush3.bf16.msra.mxu1 %v11872_v27 }
 0x2da   : > { %8832 = vmatprep.subr.bf16.mxu1 %v11868_v11  ;;  %v941_v55 = vadd.s32 72, %v11985_v62  ;;  %v947_v3 = vadd.s32 120, %v11985_v62  ;;  %v945_v51 = vadd.s32 104, %v11985_v62  ;;  %v942_v39 = vadd.s32 80, %v11985_v62 }
 0x2dd   : > { %8833 = vmatpush3.bf16.msra.mxu1 %v11868_v11 }
 0x2de   : > { %8850 = vmatprep.subr.bf16.mxu1 %v11887_v19 }
 0x2df   : > { %8803 = vmatmul.mubr.msk.bf16.vlgmr.msra.gmra.mrb[48].mxu0 %vm2142_vm2, %v11634_v0 }
 0x2e0   : > { %8806 = vmatprep.mubr.msk.bf16.mxu0 %vm2142_vm2, %v11646_v37 }
 0x2e7   : > { %8807 = vmatmul.mubr.msk.bf16.gmra.mrb[52].mxu0 %vm2142_vm2, %v11644_v9 }
 0x2e8   : > { %8810 = vmatprep.mubr.msk.bf16.mxu0 %vm2142_vm2, %v11654_v35 }
 0x2ef   : > { %8811 = vmatmul.mubr.msk.bf16.gmra.mrb[56].mxu0 %vm2142_vm2, %v11652_v8 }
 0x2f0   : > { %8814 = vmatprep.mubr.msk.bf16.mxu0 %vm2142_vm2, %v11662_v60  ;;  %v2966_v12 = vpop.permute.xlu1 %2965 }
 0x2f1   : > { %v2964_v50 = vpop.permute.xlu0 %2963  ;;  %v3007_v36 = vsel %vm2142_vm2, %v2966_v12, 0 }
 0x2f2   : > { %9406 = vmatprep.subr.msk.bf16.mxu0 %vm2142_vm2, %v2964_v50  ;;  %v3004_v48 = vsel %vm2142_vm2, %v2964_v50, 0  ;;  %v934_v50 = vadd.s32 16, %v11985_v62 }
 0x2f3   : > { %8883 = vmatpush3.bf16.xpose.msra.mxu0 %v3004_v48  ;;  %v11988_v48 = vand.u32 127, %v931_v21 }
 0x2f4   : > { %9407 = vmatprep.subr.msk.bf16.mxu0 %vm2142_vm2, %v2966_v12  ;;  %v935_v12 = vadd.s32 24, %v11985_v62 }
 0x2f5   : > { %vm952_vm3 = vcmp.le.s32.totalorder %v11988_v48, %v934_v50  ;;  %vm950_vm5 = vcmp.le.s32.totalorder %v11988_v48, %v11985_v62  ;;  %vm959_vm10 = vcmp.le.s32.totalorder %v11988_v48, %v941_v55  ;;  %vm965_vm11 = vcmp.le.s32.totalorder %v11988_v48, %v947_v3 }
 0x2f6   : > { %vm953_vm4 = vcmp.le.s32.totalorder %v11988_v48, %v935_v12  ;;  %vm963_vm12 = vcmp.le.s32.totalorder %v11988_v48, %v945_v51  ;;  %vm960_vm15 = vcmp.le.s32.totalorder %v11988_v48, %v942_v39  ;;  %v946_v39 = vadd.s32 112, %v11985_v62 }
 0x2f7   : > { %8815 = vmatmul.mubr.msk.bf16.gmra.mrb[60].mxu0 %vm2142_vm2, %v11660_v24 }
 0x2f8   : > { %v2970_v17 = vpop.permute.xlu0 %2969 }
 0x2f9   : > { %v3013_v47 = vsel %vm2142_vm2, %v2970_v17, 0 }
 0x2fb   : > { %8885 = vmatpush3.bf16.xpose.msra.mxu0 %v3007_v36  ;;  %v15528_v36 = vmov -1e+30  }
 0x2fc   : > { %v2968_v43 = vpop.permute.xlu0 %2967  ;;  %v12074_v34 = vsel %vm965_vm11, 0.0, %v15528_v36  ;;  %v12084_v23 = vsel %vm963_vm12, 0.0, %v15528_v36 }
 0x2fd   : > { %9408 = vmatprep.subr.msk.bf16.mxu0 %vm2142_vm2, %v2968_v43  ;;  %v3010_v20 = vsel %vm2142_vm2, %v2968_v43, 0  ;;  %v11995_v43 = vsel %vm952_vm3, 0.0, %v15528_v36  ;;  %15815 = vst [vmem:[#allocation61_spill] sm:$0xff] %v12074_v34  ;;  %15816 = vst [vmem:[#allocation62_spill] sm:$0xff] %v12084_v23  ;;  %vm964_vm3 = vcmp.le.s32.totalorder %v11988_v48, %v946_v39 }
 0x2fe   : > { %15807 = vst [vmem:[#allocation53_spill] sm:$0xff] %v11995_v43 }
 0x300   : > { %v2974_v56 = vpop.permute.xlu0 %2973 }
 0x301   : > { %v3019_v29 = vsel %vm2142_vm2, %v2974_v56, 0 }
 0x303   : > { %8887 = vmatpush3.bf16.xpose.msra.mxu0 %v3010_v20 }
 0x304   : > { %9409 = vmatprep.subr.msk.bf16.mxu0 %vm2142_vm2, %v2970_v17  ;;  %v2972_v31 = vpop.permute.xlu0 %2971  ;;  %v933_v17 = vadd.s32 8, %v11985_v62 }
 0x305   : > { %v3016_v54 = vsel %vm2142_vm2, %v2972_v31, 0 }
 0x306   : > { %vm951_vm6 = vcmp.le.s32.totalorder %v11988_v48, %v933_v17  ;;  %v937_v17 = vadd.s32 40, %v11985_v62 }
 0x307   : > { %v12015_v50 = vsel %vm951_vm6, 0.0, %v15528_v36  ;;  %vm6128_vm6 = vcmask 195584  }
 0x308   : > { %15810 = vst [vmem:[#allocation56_spill] sm:$0xff] %v12015_v50  ;;  %vm955_vm8 = vcmp.le.s32.totalorder %v11988_v48, %v937_v17 }
 0x309   : > { %v2976_v44 = vpop.permute.xlu0 %2975  ;;  %v12041_v28 = vsel %vm955_vm8, 0.0, %v15528_v36 }
 0x30a   : > { %v3022_v38 = vsel %vm2142_vm2, %v2976_v44, 0  ;;  %15812 = vst [vmem:[#allocation58_spill] sm:$0xff] %v12041_v28 }
 0x30b   : > { %8889 = vmatpush3.bf16.xpose.msra.mxu0 %v3013_v47 }
 0x30c   : > { %9410 = vmatprep.subr.msk.bf16.mxu0 %vm2142_vm2, %v2972_v31 }
 0x313   : > { %8891 = vmatpush3.bf16.xpose.msra.mxu0 %v3016_v54  ;;  %v939_v54 = vadd.s32 56, %v11985_v62 }
 0x314   : > { %9411 = vmatprep.subr.msk.bf16.mxu0 %vm2142_vm2, %v2974_v56  ;;  %v12000_v56 = vsel %vm953_vm4, 0.0, %v15528_v36 }
 0x315   : > { %15808 = vst [vmem:[#allocation54_spill] sm:$0xff] %v12000_v56  ;;  %vm957_vm7 = vcmp.le.s32.totalorder %v11988_v48, %v939_v54 }
 0x316   : > { %v12030_v57 = vsel %vm957_vm7, 0.0, %v15528_v36 }
 0x317   : > { %15811 = vst [vmem:[#allocation57_spill] sm:$0xff] %v12030_v57 }
 0x31b   : > { %8893 = vmatpush3.bf16.xpose.msra.mxu0 %v3019_v29  ;;  %v12008_v29 = vsel %vm950_vm5, 0.0, %v15528_v36  ;;  %vm6095_vm5 = vcmask 130048  }
 0x31c   : > { %9412 = vmatprep.subr.msk.bf16.mxu0 %vm2142_vm2, %v2976_v44  ;;  %15809 = vst [vmem:[#allocation55_spill] sm:$0xff] %v12008_v29 }
 0x323   : > { %8895 = vmatpush3.bf16.xpose.msra.mxu0 %v3022_v38 }
 0x392   : > { %v8772_v20 = vpop.f32.mrb[48].mxu1 }
 0x393   : > { %v12003_v47 = vadd.f32 %v8772_v20, %v11995_v43  ;;  %v2225_v31 = vpop.f32.mrb[49].mxu1 }
 0x394   : > { %v8773_v44 = vpop.f32.mrb[50].mxu1  ;;  %v12018_v12 = vadd.f32 %v2225_v31, %v12008_v29  ;;  %v943_v31 = vadd.s32 88, %v11985_v62 }
 0x395   : > { %v12011_v38 = vadd.f32 %v8773_v44, %v12000_v56  ;;  %2437 = vmax.xlane.f32.xlu0 %v12003_v47  ;;  %v2228_v21 = vpop.f32.mrb[51].mxu1 }
 0x396   : > { %v12024_v20 = vadd.f32 %v2228_v21, %v12015_v50  ;;  %vm961_vm9 = vcmp.le.s32.totalorder %v11988_v48, %v943_v31 }
 0x397   : > { %2439 = vmax.xlane.f32.xlu1 %v12011_v38  ;;  %v12052_v53 = vsel %vm961_vm9, 0.0, %v15528_v36 }
 0x398   : > { %15813 = vst [vmem:[#allocation59_spill] sm:$0xff] %v12052_v53 }
 0x399   : > { %2433 = vmax.xlane.f32.xlu0 %v12018_v12 }
 0x39a   : > { %v12027_v44 = vpop.f32.mrb[52].mxu1 }
 0x39b   : > { %v12032_v33 = vpop.f32.mrb[53].mxu1  ;;  %2435 = vmax.xlane.f32.xlu1 %v12024_v20 }
 0x39c   : > { %v8777_v54 = vpop.f32.mrb[54].mxu1 }
 0x39d   : > { %v12038_v18 = vadd.f32 %v8777_v54, %v12030_v57  ;;  %v2244_v21 = vpop.f32.mrb[55].mxu1 }
 0x39e   : > { %v12047_v49 = vadd.f32 %v2244_v21, %v12041_v28  ;;  %v12063_v21 = vsel %vm959_vm10, 0.0, %v15528_v36 }
 0x39f   : > { %2447 = vmax.xlane.f32.xlu1 %v12038_v18  ;;  %15814 = vst [vmem:[#allocation60_spill] sm:$0xff] %v12063_v21 }
 0x3a2   : > { %v12049_v17 = vpop.f32.mrb[56].mxu1 }
 0x3a3   : > { %v12054_v54 = vpop.f32.mrb[57].mxu1  ;;  %2443 = vmax.xlane.f32.xlu1 %v12047_v49 }
 0x3a4   : > { %v8781_v58 = vpop.f32.mrb[58].mxu1 }
 0x3a5   : > { %v12060_v31 = vadd.f32 %v8781_v58, %v12052_v53  ;;  %v2260_v25 = vpop.f32.mrb[59].mxu1 }
 0x3a6   : > { %v12069_v27 = vadd.f32 %v2260_v25, %v12063_v21 }
 0x3a7   : > { %2455 = vmax.xlane.f32.xlu1 %v12060_v31 }
 0x3aa   : > { %v12071_v55 = vpop.f32.mrb[60].mxu1 }
 0x3ab   : > { %2451 = vmax.xlane.f32.xlu1 %v12069_v27  ;;  %v12077_v58 = vpop.f32.mrb[61].mxu1 }
 0x3ac   : > { %v8785_v14 = vpop.f32.mrb[62].mxu1 }
 0x3ad   : > { %v12081_v11 = vadd.f32 %v8785_v14, %v12074_v34  ;;  %v2276_v3 = vpop.f32.mrb[63].mxu1 }
 0x3ae   : > { %v12090_v25 = vadd.f32 %v2276_v3, %v12084_v23 }
 0x3af   : > { %2977 = vrot.lane.b32.xlu0 %v11757_v52, %s10567_s9  ;;  %2463 = vmax.xlane.f32.xlu1 %v12081_v11 }
 0x3b2   : > { %v12092_v4 = vpop.f32.mrb[48].mxu0 }
 0x3b3   : > { %v12094_v13 = vpop.f32.mrb[49].mxu0  ;;  %2459 = vmax.xlane.f32.xlu1 %v12090_v25 }
 0x3b4   : > { %v8805_v51 = vpop.f32.mrb[50].mxu0 }
 0x3b5   : > { %v12098_v14 = vadd.f32 %v8805_v51, %v12000_v56  ;;  %v2373_v36 = vpop.f32.mrb[51].mxu0  ;;  %v938_v56 = vadd.s32 48, %v11985_v62 }
 0x3b6   : > { %v12102_v52 = vadd.f32 %v2373_v36, %v12015_v50 }
 0x3b7   : > { %2471 = vmax.xlane.f32.xlu1 %v12098_v14  ;;  %vm956_vm13 = vcmp.le.s32.totalorder %v11988_v48, %v938_v56 }
 0x3ba   : > { %v8808_v6 = vpop.f32.mrb[52].mxu0 }
 0x3bb   : > { %v2386_v24 = vpop.f32.mrb[53].mxu0  ;;  %2467 = vmax.xlane.f32.xlu1 %v12102_v52 }
 0x3bc   : > { %v8809_v3 = vpop.f32.mrb[54].mxu0 }
 0x3bd   : > { %v12106_v8 = vadd.f32 %v8809_v3, %v12030_v57  ;;  %v2389_v9 = vpop.f32.mrb[55].mxu0  ;;  %v936_v3 = vadd.s32 32, %v11985_v62  ;;  %v15817_v57 = vmov -1e+30  }
 0x3be   : > { %v12110_v51 = vadd.f32 %v2389_v9, %v12041_v28  ;;  %v12121_v9 = vsel %vm956_vm13, 0.0, %v15817_v57 }
 0x3bf   : > { %2479 = vmax.xlane.f32.xlu1 %v12106_v8  ;;  %15818 = vst [vmem:[#allocation63_spill] sm:$0xff] %v12121_v9  ;;  %vm954_vm14 = vcmp.le.s32.totalorder %v11988_v48, %v936_v3  ;;  %v12131_v56 = vadd.f32 %v12027_v44, %v12121_v9  ;;  %v940_v3 = vadd.s32 64, %v11985_v62 }
 0x3c0   : > { %v12134_v15 = vsel %vm954_vm14, 0.0, %v15817_v57 }
 0x3c1   : > { %15819 = vst [vmem:[#allocation64_spill] sm:$0xff] %v12134_v15  ;;  %v12145_v44 = vadd.f32 %v12032_v33, %v12134_v15  ;;  %vm958_vm0 = vcmp.le.s32.totalorder %v11988_v48, %v940_v3 }
 0x3c2   : > { %v8812_v60 = vpop.f32.mrb[56].mxu0  ;;  %v12162_v33 = vsel %vm958_vm0, 0.0, %v15817_v57 }
 0x3c3   : > { %v2402_v41 = vpop.f32.mrb[57].mxu0  ;;  %2475 = vmax.xlane.f32.xlu1 %v12110_v51  ;;  %15821 = vst [vmem:[#allocation66_spill] sm:$0xff] %v12162_v33  ;;  %v12169_v3 = vadd.f32 %v12054_v54, %v12162_v33  ;;  %v12196_v54 = vadd.f32 %v12094_v13, %v12008_v29 }
 0x3c4   : > { %v8813_v36 = vpop.f32.mrb[58].mxu0  ;;  %v12212_v13 = vadd.f32 %v2402_v41, %v12162_v33 }
 0x3c5   : > { %v12115_v50 = vadd.f32 %v8813_v36, %v12052_v53  ;;  %v2405_v35 = vpop.f32.mrb[59].mxu0 }
 0x3c6   : > { %v12124_v28 = vadd.f32 %v2405_v35, %v12063_v21  ;;  %v12148_v21 = vsel %vm960_vm15, 0.0, %v15817_v57 }
 0x3c7   : > { %2487 = vmax.xlane.f32.xlu1 %v12115_v50  ;;  %15820 = vst [vmem:[#allocation65_spill] sm:$0xff] %v12148_v21 }
 0x3ca   : > { %v8816_v37 = vpop.f32.mrb[60].mxu0 }
 0x3cb   : > { %v2418_v36 = vpop.f32.mrb[61].mxu0  ;;  %2483 = vmax.xlane.f32.xlu1 %v12124_v28 }
 0x3cc   : > { %v8817_v53 = vpop.f32.mrb[62].mxu0 }
 0x3cd   : > { %v12137_v45 = vadd.f32 %v8817_v53, %v12074_v34  ;;  %v2421_v35 = vpop.f32.mrb[63].mxu0  ;;  %v12159_v53 = vadd.f32 %v12049_v17, %v12148_v21  ;;  %v12172_v34 = vsel %vm964_vm3, 0.0, %v15817_v57 }
 0x3ce   : > { %2445 = vmax.xlane.f32.xlu0 %v12131_v56  ;;  %v12151_v1 = vadd.f32 %v2421_v35, %v12084_v23  ;;  %v944_v35 = vadd.s32 96, %v11985_v62  ;;  %15822 = vst [vmem:[#allocation67_spill] sm:$0xff] %v12172_v34  ;;  %v12178_v17 = vadd.f32 %v12071_v55, %v12172_v34  ;;  %v12204_v55 = vadd.f32 %v2386_v24, %v12134_v15 }
 0x3cf   : > { %2495 = vmax.xlane.f32.xlu1 %v12137_v45 }
 0x3d0   : > { %vm962_vm4 = vcmp.le.s32.totalorder %v11988_v48, %v944_v35  ;;  %v12191_v48 = vadd.f32 %v12092_v4, %v11995_v43  ;;  %v12208_v4 = vadd.f32 %v8812_v60, %v12148_v21 }
 0x3d1   : > { %v12181_v39 = vsel %vm962_vm4, 0.0, %v15817_v57  ;;  %v12200_v57 = vadd.f32 %v8808_v6, %v12121_v9  ;;  %v12216_v6 = vadd.f32 %v8816_v37, %v12172_v34 }
 0x3d2   : > { %2441 = vmax.xlane.f32.xlu0 %v12145_v44  ;;  %15823 = vst [vmem:[#allocation68_spill] sm:$0xff] %v12181_v39  ;;  %v12186_v62 = vadd.f32 %v12077_v58, %v12181_v39  ;;  %v12220_v24 = vadd.f32 %v2418_v36, %v12181_v39  ;;  %v12223_v58 = vpop.permute.xlu1 %3158 }
 0x3d3   : > { %2491 = vmax.xlane.f32.xlu1 %v12151_v1 }
 0x3d6   : > { %2453 = vmax.xlane.f32.xlu0 %v12159_v53  ;;  %v12225_v60 = vpop.permute.xlu1 %3156 }
 0x3da   : > { %2449 = vmax.xlane.f32.xlu0 %v12169_v3  ;;  %v12227_v35 = vpop.permute.xlu1 %3160 }
 0x3db   : > { %15824 = vst [vmem:[#allocation69_spill] sm:$0xff] %v12227_v35 }
 0x3de   : > { %2461 = vmax.xlane.f32.xlu0 %v12178_v17  ;;  %v12229_v41 = vpop.permute.xlu1 %3162 }
 0x3df   : > { %15825 = vst [vmem:[#allocation70_spill] sm:$0xff] %v12229_v41 }
 0x3e2   : > { %2457 = vmax.xlane.f32.xlu0 %v12186_v62 }
 0x3e6   : > { %2469 = vmax.xlane.f32.xlu0 %v12191_v48 }
 0x3ea   : > { %2465 = vmax.xlane.f32.xlu0 %v12196_v54 }
 0x3ee   : > { %2477 = vmax.xlane.f32.xlu0 %v12200_v57 }
 0x3f2   : > { %2473 = vmax.xlane.f32.xlu0 %v12204_v55 }
 0x3f6   : > { %2485 = vmax.xlane.f32.xlu0 %v12208_v4 }
 0x3fa   : > { %2481 = vmax.xlane.f32.xlu0 %v12212_v13 }
 0x3fe   : > { %2493 = vmax.xlane.f32.xlu0 %v12216_v6 }
 0x402   : > { %2489 = vmax.xlane.f32.xlu0 %v12220_v24 }
 0x422   : > { %v2438_v23 = vpop.xlane.xlu0 %2437 }
 0x423   : > { %v2499_v21 = vsub.f32 %v12003_v47, %v2438_v23 }
 0x424   : > { %v2440_v37 = vpop.xlane.xlu1 %2439 }
 0x425   : > { %v2533_v34 = vmul.f32 1.442695, %v2499_v21  ;;  %v2500_v33 = vsub.f32 %v12011_v38, %v2440_v37 }
 0x426   : > { %v2434_v9 = vpop.xlane.xlu0 %2433 }
 0x427   : > { %9807 = vpow2.f32 %v2533_v34  ;;  %v2535_v36 = vmul.f32 1.442695, %v2500_v33  ;;  %v2497_v39 = vsub.f32 %v12018_v12, %v2434_v9 }
 0x428   : > { %v2436_v15 = vpop.xlane.xlu1 %2435 }
 0x429   : > { %9809 = vpow2.f32 %v2535_v36  ;;  %v2529_v43 = vmul.f32 1.442695, %v2497_v39  ;;  %v2498_v29 = vsub.f32 %v12024_v20, %v2436_v15 }
 0x42a   : > { %v2978_v35 = vpop.permute.xlu0 %2977 }
 0x42b   : > { %9811 = vpow2.f32 %v2529_v43  ;;  %v2531_v41 = vmul.f32 1.442695, %v2498_v29  ;;  %9413 = vmatprep.subr.msk.bf16.mxu0 %vm2142_vm2, %v2978_v35  ;;  %v3025_v23 = vsel %vm2142_vm2, %v2978_v35, 0 }
 0x42c   : > { %v2448_v47 = vpop.xlane.xlu1 %2447  ;;  %8897 = vmatpush3.bf16.xpose.msra.mxu0 %v3025_v23 }
 0x42d   : > { %9813 = vpow2.f32 %v2531_v41  ;;  %v2504_v34 = vsub.f32 %v12038_v18, %v2448_v47 }
 0x42f   : > { %v2543_v38 = vmul.f32 1.442695, %v2504_v34 }
 0x430   : > { %v2444_v21 = vpop.xlane.xlu1 %2443 }
 0x431   : > { %v12238_v12 = vpop.eup %9807  ;;  %9815 = vpow2.f32 %v2543_v38  ;;  %v2502_v9 = vsub.f32 %v12047_v49, %v2444_v21 }
 0x432   : > { %2597 = vadd.xlane.f32.xlu0 %v12238_v12 }
 0x433   : > { %v12242_v15 = vpop.eup %9809  ;;  %v2539_v43 = vmul.f32 1.442695, %v2502_v9 }
 0x434   : > { %v2456_v29 = vpop.xlane.xlu1 %2455  ;;  %2599 = vadd.xlane.f32.xlu1 %v12242_v15 }
 0x435   : > { %v12245_v20 = vpop.eup %9811  ;;  %9817 = vpow2.f32 %v2539_v43  ;;  %v2508_v18 = vsub.f32 %v12060_v31, %v2456_v29 }
 0x436   : > { %2593 = vadd.xlane.f32.xlu0 %v12245_v20 }
 0x437   : > { %v12249_v33 = vpop.eup %9813  ;;  %v2551_v39 = vmul.f32 1.442695, %v2508_v18 }
 0x438   : > { %v2452_v35 = vpop.xlane.xlu1 %2451  ;;  %2595 = vadd.xlane.f32.xlu1 %v12249_v33 }
 0x439   : > { %9819 = vpow2.f32 %v2551_v39  ;;  %v2506_v49 = vsub.f32 %v12069_v27, %v2452_v35 }
 0x43b   : > { %v12253_v41 = vpop.eup %9815  ;;  %v2547_v37 = vmul.f32 1.442695, %v2506_v49 }
 0x43c   : > { %2607 = vadd.xlane.f32.xlu1 %v12253_v41  ;;  %v2464_v49 = vpop.xlane.xlu1 %2463 }
 0x43d   : > { %9821 = vpow2.f32 %v2547_v37 }
 0x43f   : > { %v12256_v36 = vpop.eup %9817 }
 0x440   : > { %2603 = vadd.xlane.f32.xlu1 %v12256_v36 }
 0x443   : > { %v12259_v31 = vpop.eup %9819 }
 0x444   : > { %2615 = vadd.xlane.f32.xlu1 %v12259_v31 }
 0x447   : > { %v12262_v23 = vpop.eup %9821 }
 0x448   : > { %2611 = vadd.xlane.f32.xlu1 %v12262_v23 }
 0x459   : > { %2941 = vrot.lane.b32.xlu1 %v11679_v2, %s10567_s9 }
 0x45b   : > { %v2446_v27 = vpop.xlane.xlu0 %2445 }
 0x45c   : > { %v2503_v47 = vsub.f32 %v12131_v56, %v2446_v27 }
 0x45d   : > { %3164 = vrot.lane.b32.xlu1 %v11846_v10, %s10567_s9 }
 0x45e   : > { %v2541_v34 = vmul.f32 1.442695, %v2503_v47 }
 0x45f   : > { %v2442_v38 = vpop.xlane.xlu0 %2441 }
 0x460   : > { %9823 = vpow2.f32 %v2541_v34  ;;  %v2501_v21 = vsub.f32 %v12145_v44, %v2442_v38  ;;  %v2512_v34 = vsub.f32 %v12081_v11, %v2464_v49  ;;  %v2460_v38 = vpop.xlane.xlu1 %2459 }
 0x462   : > { %v2537_v9 = vmul.f32 1.442695, %v2501_v21 }
 0x463   : > { %v2454_v43 = vpop.xlane.xlu0 %2453 }
 0x464   : > { %9825 = vpow2.f32 %v2537_v9  ;;  %v2507_v29 = vsub.f32 %v12159_v53, %v2454_v43  ;;  %v2559_v43 = vmul.f32 1.442695, %v2512_v34 }
 0x466   : > { %v2549_v18 = vmul.f32 1.442695, %v2507_v29  ;;  %v2510_v29 = vsub.f32 %v12090_v25, %v2460_v38 }
 0x467   : > { %v2450_v39 = vpop.xlane.xlu0 %2449 }
 0x468   : > { %9827 = vpow2.f32 %v2549_v18  ;;  %v2505_v35 = vsub.f32 %v12169_v3, %v2450_v39  ;;  %v2555_v11 = vmul.f32 1.442695, %v2510_v29 }
 0x46a   : > { %v12273_v56 = vpop.eup %9823  ;;  %v2545_v37 = vmul.f32 1.442695, %v2505_v35 }
 0x46b   : > { %2605 = vadd.xlane.f32.xlu0 %v12273_v56  ;;  %v2462_v27 = vpop.xlane.xlu0 %2461 }
 0x46c   : > { %9829 = vpow2.f32 %v2545_v37  ;;  %v2511_v44 = vsub.f32 %v12178_v17, %v2462_v27 }
 0x46e   : > { %v12277_v47 = vpop.eup %9825  ;;  %v2557_v53 = vmul.f32 1.442695, %v2511_v44 }
 0x46f   : > { %2601 = vadd.xlane.f32.xlu0 %v12277_v47  ;;  %v2458_v21 = vpop.xlane.xlu0 %2457 }
 0x470   : > { %9831 = vpow2.f32 %v2557_v53  ;;  %v2509_v3 = vsub.f32 %v12186_v62, %v2458_v21  ;;  %v2472_v62 = vpop.xlane.xlu1 %2471 }
 0x471   : > { %v2516_v34 = vsub.f32 %v12098_v14, %v2472_v62 }
 0x472   : > { %v12282_v9 = vpop.eup %9827  ;;  %v2553_v18 = vmul.f32 1.442695, %v2509_v3 }
 0x473   : > { %2613 = vadd.xlane.f32.xlu0 %v12282_v9  ;;  %v2470_v17 = vpop.xlane.xlu0 %2469  ;;  %v2567_v21 = vmul.f32 1.442695, %v2516_v34 }
 0x474   : > { %9833 = vpow2.f32 %v2553_v18  ;;  %v2515_v35 = vsub.f32 %v12191_v48, %v2470_v17  ;;  %v2468_v38 = vpop.xlane.xlu1 %2467 }
 0x475   : > { %9835 = vpow2.f32 %v2559_v43  ;;  %v2514_v3 = vsub.f32 %v12102_v52, %v2468_v38 }
 0x476   : > { %v12286_v39 = vpop.eup %9829  ;;  %9837 = vpow2.f32 %v2555_v11  ;;  %v2565_v27 = vmul.f32 1.442695, %v2515_v35 }
 0x477   : > { %2609 = vadd.xlane.f32.xlu0 %v12286_v39  ;;  %v2466_v49 = vpop.xlane.xlu0 %2465  ;;  %v2563_v43 = vmul.f32 1.442695, %v2514_v3 }
 0x478   : > { %v2513_v25 = vsub.f32 %v12196_v54, %v2466_v49  ;;  %9839 = vpow2.f32 %v2565_v27  ;;  %v2480_v17 = vpop.xlane.xlu1 %2479 }
 0x479   : > { %v2520_v38 = vsub.f32 %v12106_v8, %v2480_v17 }
 0x47a   : > { %v12290_v37 = vpop.eup %9831  ;;  %v2561_v53 = vmul.f32 1.442695, %v2513_v25 }
 0x47b   : > { %2621 = vadd.xlane.f32.xlu0 %v12290_v37  ;;  %v2478_v11 = vpop.xlane.xlu0 %2477  ;;  %v2575_v10 = vmul.f32 1.442695, %v2520_v38 }
 0x47c   : > { %9841 = vpow2.f32 %v2561_v53  ;;  %v2476_v35 = vpop.xlane.xlu1 %2475  ;;  %v2519_v62 = vsub.f32 %v12200_v57, %v2478_v11 }
 0x47d   : > { %9843 = vpow2.f32 %v2567_v21 }
 0x47e   : > { %v12294_v44 = vpop.eup %9833  ;;  %9845 = vpow2.f32 %v2563_v43  ;;  %v2573_v25 = vmul.f32 1.442695, %v2519_v62 }
 0x47f   : > { %2617 = vadd.xlane.f32.xlu0 %v12294_v44  ;;  %v12298_v48 = vpop.eup %9835  ;;  %v2474_v49 = vpop.xlane.xlu0 %2473 }
 0x480   : > { %v12302_v54 = vpop.eup %9837  ;;  %v2488_v27 = vpop.xlane.xlu1 %2487  ;;  %v2517_v34 = vsub.f32 %v12204_v55, %v2474_v49  ;;  %9847 = vpow2.f32 %v2573_v25 }
 0x481   : > { %2623 = vadd.xlane.f32.xlu1 %v12298_v48 }
 0x482   : > { %v12305_v14 = vpop.eup %9839  ;;  %v2569_v21 = vmul.f32 1.442695, %v2517_v34  ;;  %v2518_v34 = vsub.f32 %v12110_v51, %v2476_v35  ;;  %v2524_v51 = vsub.f32 %v12115_v50, %v2488_v27 }
 0x483   : > { %v2486_v53 = vpop.xlane.xlu0 %2485 }
 0x484   : > { %v2484_v3 = vpop.xlane.xlu1 %2483  ;;  %9849 = vpow2.f32 %v2569_v21  ;;  %v2523_v2 = vsub.f32 %v12208_v4, %v2486_v53  ;;  %v2571_v53 = vmul.f32 1.442695, %v2518_v34 }
 0x485   : > { %2619 = vadd.xlane.f32.xlu1 %v12302_v54  ;;  %9851 = vpow2.f32 %v2575_v10  ;;  %v2522_v57 = vsub.f32 %v12124_v28, %v2484_v3 }
 0x486   : > { %v12308_v29 = vpop.eup %9841  ;;  %v2581_v11 = vmul.f32 1.442695, %v2523_v2 }
 0x487   : > { %v12311_v18 = vpop.eup %9843  ;;  %v2482_v43 = vpop.xlane.xlu0 %2481  ;;  %v2579_v62 = vmul.f32 1.442695, %v2522_v57 }
 0x488   : > { %v12314_v52 = vpop.eup %9845  ;;  %9853 = vpow2.f32 %v2581_v11  ;;  %v2521_v10 = vsub.f32 %v12212_v13, %v2482_v43  ;;  %v2583_v43 = vmul.f32 1.442695, %v2524_v51 }
 0x489   : > { %2629 = vadd.xlane.f32.xlu1 %v12305_v14  ;;  %9855 = vpow2.f32 %v2579_v62 }
 0x48a   : > { %v12326_v49 = vpop.eup %9847  ;;  %v2577_v21 = vmul.f32 1.442695, %v2521_v10 }
 0x48b   : > { %v2494_v55 = vpop.xlane.xlu0 %2493 }
 0x48c   : > { %v2527_v8 = vsub.f32 %v12216_v6, %v2494_v55 }
 0x48d   : > { %2625 = vadd.xlane.f32.xlu1 %v12308_v29 }
 0x48e   : > { %v12330_v25 = vpop.eup %9849  ;;  %v2589_v2 = vmul.f32 1.442695, %v2527_v8 }
 0x48f   : > { %v12336_v4 = vpop.eup %9851  ;;  %v2490_v38 = vpop.xlane.xlu0 %2489 }
 0x490   : > { %9857 = vpow2.f32 %v2589_v2  ;;  %v2525_v57 = vsub.f32 %v12220_v24, %v2490_v38 }
 0x491   : > { %2631 = vadd.xlane.f32.xlu1 %v12311_v18  ;;  %9859 = vpow2.f32 %v2571_v53 }
 0x492   : > { %v12339_v3 = vpop.eup %9853  ;;  %v2585_v62 = vmul.f32 1.442695, %v2525_v57  ;;  %v15828_v57 = vld [vmem:[#allocation18_spill] sm:$0xff] }
 0x493   : > { %v12343_v13 = vpop.eup %9855 }
 0x495   : > { %2939 = vrot.lane.b32.xlu0 %v11683_v26, %s10567_s9  ;;  %2627 = vadd.xlane.f32.xlu1 %v12314_v52  ;;  %v2496_v26 = vpop.xlane.xlu1 %2495 }
 0x496   : > { %v2528_v27 = vsub.f32 %v12137_v45, %v2496_v26 }
 0x499   : > { %v2492_v17 = vpop.xlane.xlu1 %2491 }
 0x49a   : > { %v2526_v28 = vsub.f32 %v12151_v1, %v2492_v17  ;;  %v12347_v50 = vpop.eup %9857  ;;  %v2591_v17 = vmul.f32 1.442695, %v2528_v27 }
 0x49b   : > { %v12351_v8 = vpop.eup %9859 }
 0x49c   : > { %v2587_v6 = vmul.f32 1.442695, %v2526_v28 }
 0x49e   : > { %9861 = vpow2.f32 %v2587_v6 }
 0x49f   : > { %9863 = vpow2.f32 %v2577_v21 }
 0x4a6   : > { %3166 = vrot.lane.b32.xlu1 %v11842_v5, %s10567_s9 }
 0x4a8   : > { %v12354_v24 = vpop.eup %9861 }
 0x4a9   : > { %v12356_v34 = vpop.eup %9863 }
 0x4b4   : > { %2637 = vadd.xlane.f32.xlu0 %v12326_v49 }
 0x4b8   : > { %2633 = vadd.xlane.f32.xlu0 %v12330_v25 }
 0x4bc   : > { %2639 = vadd.xlane.f32.xlu0 %v12336_v4 }
 0x4bf   : > { %v2598_v35 = vpop.xlane.xlu0 %2597 }
 0x4c0   : > { %2645 = vadd.xlane.f32.xlu0 %v12339_v3 }
 0x4c1   : > { %v2600_v1 = vpop.xlane.xlu1 %2599 }
 0x4c2   : > { %9865 = vrcp.f32 %v2600_v1 }
 0x4c3   : > { %v2594_v11 = vpop.xlane.xlu0 %2593 }
 0x4c4   : > { %9867 = vrcp.f32 %v2594_v11  ;;  %2643 = vadd.xlane.f32.xlu0 %v12343_v13  ;;  %v15829_v11 = vld [vmem:[#allocation9_spill] sm:$0xff] }
 0x4c5   : > { %9869 = vrcp.f32 %v2598_v35  ;;  %v2596_v55 = vpop.xlane.xlu1 %2595 }
 0x4c6   : > { %9871 = vrcp.f32 %v2596_v55  ;;  %v15830_v55 = vld [vmem:[#allocation22_spill] sm:$0xff] }
 0x4c7   : > { %9873 = vpow2.f32 %v2583_v43  ;;  %v15827_v43 = vld [vmem:[#allocation28_spill] sm:$0xff] }
 0x4c8   : > { %2653 = vadd.xlane.f32.xlu0 %v12347_v50  ;;  %9875 = vpow2.f32 %v2585_v62 }
 0x4c9   : > { %9877 = vpow2.f32 %v2591_v17  ;;  %v15831_v17 = vld [vmem:[#allocation11_spill] sm:$0xff] }
 0x4ca   : > { %2635 = vadd.xlane.f32.xlu1 %v12351_v8 }
 0x4cc   : > { %2651 = vadd.xlane.f32.xlu0 %v12354_v24  ;;  %v9866_v28 = vpop.eup %9865 }
 0x4cd   : > { %v2692_v10 = vmul.f32 %v9866_v28, %v12242_v15  ;;  %v15832_v28 = vld [vmem:[#allocation26_spill] sm:$0xff] }
 0x4ce   : > { %v9868_v2 = vpop.eup %9867  ;;  %2641 = vadd.xlane.f32.xlu1 %v12356_v34 }
 0x4cf   : > { %v9870_v26 = vpop.eup %9869  ;;  %v2689_v38 = vmul.f32 %v9868_v2, %v12245_v20  ;;  %v15826_v20 = vld [vmem:[#allocation51_spill] sm:$0xff] }
 0x4d0   : > { %v9872_v45 = vpop.eup %9871  ;;  %v2691_v21 = vmul.f32 %v9870_v26, %v12238_v12  ;;  %v2608_v12 = vpop.xlane.xlu1 %2607 }
 0x4d1   : > { %v12361_v53 = vpop.eup %9873  ;;  %v2690_v6 = vmul.f32 %v9872_v45, %v12249_v33  ;;  %v15833_v45 = vld [vmem:[#allocation13_spill] sm:$0xff] }
 0x4d2   : > { %2647 = vadd.xlane.f32.xlu1 %v12361_v53  ;;  %v2722_v35 = vpack.c.bf16 %v2692_v10, %v2691_v21  ;;  %v12367_v1 = vpop.eup %9875  ;;  %v15834_v10 = vld [vmem:[#allocation8_spill] sm:$0xff] }
 0x4d3   : > { %v2721_v51 = vpack.c.bf16 %v2690_v6, %v2689_v38  ;;  %v12372_v15 = vpop.eup %9877  ;;  %v15835_v6 = vld [vmem:[#allocation10_spill] sm:$0xff] }
 0x4d4   : > { %v2604_v33 = vpop.xlane.xlu1 %2603 }
 0x4d5   : > { %8834 = vmatprep.mubr.bf16.mxu1 %v2721_v51 }
 0x4d6   : > { %2649 = vadd.xlane.f32.xlu1 %v12367_v1  ;;  %8835 = vmatmul.mubr.bf16.vlgmr.msra.gmra.mrb[64].mxu1 %v2722_v35 }
 0x4d7   : > { %8851 = vmatpush3.bf16.msra.mxu1 %v11887_v19 }
 0x4d8   : > { %8852 = vmatprep.subr.bf16.mxu1 %v11885_v32  ;;  %v2616_v27 = vpop.xlane.xlu1 %2615 }
 0x4da   : > { %2655 = vadd.xlane.f32.xlu1 %v12372_v15 }
 0x4db   : > { %8853 = vmatpush3.bf16.msra.mxu1 %v11885_v32 }
 0x4dc   : > { %8854 = vmatprep.subr.bf16.mxu1 %v11905_v42  ;;  %v2612_v26 = vpop.xlane.xlu1 %2611 }
 0x4df   : > { %8855 = vmatpush3.bf16.msra.mxu1 %v11905_v42 }
 0x4e0   : > { %8856 = vmatprep.subr.bf16.mxu1 %v11903_v61  ;;  %v2942_v51 = vpop.permute.xlu1 %2941 }
 0x4e2   : > { %3168 = vrot.lane.b32.xlu0 %v11870_v7, %s10567_s9 }
 0x4e3   : > { %8857 = vmatpush3.bf16.msra.mxu1 %v11903_v61 }
 0x4e4   : > { %8858 = vmatprep.subr.bf16.mxu1 %v11925_v16 }
 0x4e6   : > { %3132 = vrot.lane.b32.xlu0 %v11636_v40, %s10567_s9  ;;  %v15892_v40 = vld [vmem:[#allocation40_spill] sm:$0xff] }
 0x4e7   : > { %8859 = vmatpush3.bf16.msra.mxu1 %v11925_v16 }
 0x4e8   : > { %8860 = vmatprep.subr.bf16.mxu1 %v11923_v30 }
 0x4ea   : > { %2943 = vrot.lane.b32.xlu0 %v11711_v22, %s10567_s9  ;;  %v15890_v22 = vld [vmem:[#allocation37_spill] sm:$0xff] }
 0x4eb   : > { %8861 = vmatpush3.bf16.msra.mxu1 %v11923_v30  ;;  %3170 = vrot.lane.b32.xlu1 %v11866_v63, %s10567_s9  ;;  %v15891_v63 = vld [vmem:[#allocation42_spill] sm:$0xff] }
 0x4ec   : > { %8862 = vmatprep.subr.bf16.mxu1 %v11945_v46 }
 0x4ee   : > { %2947 = vrot.lane.b32.xlu0 %v11735_v59, %s10567_s9  ;;  %v15888_v59 = vld [vmem:[#allocation33_spill] sm:$0xff] }
 0x4ef   : > { %8863 = vmatpush3.bf16.msra.mxu1 %v11945_v46  ;;  %3134 = vrot.lane.b32.xlu1 %v11634_v0, %s10567_s9  ;;  %v15889_v0 = vld [vmem:[#allocation35_spill] sm:$0xff] }
 0x4f0   : > { %8864 = vmatprep.subr.bf16.mxu1 %v15826_v20 }
 0x4f2   : > { %2951 = vrot.lane.b32.xlu0 %v15827_v43, %s10567_s9 }
 0x4f3   : > { %8865 = vmatpush3.bf16.msra.mxu1 %v15826_v20  ;;  %2945 = vrot.lane.b32.xlu1 %v15828_v57, %s10567_s9 }
 0x4f4   : > { %9414 = vmatprep.subr.msk.bf16.mxu1 %vm2142_vm2, %v12225_v60 }
 0x4f6   : > { %3136 = vrot.lane.b32.xlu0 %v15829_v11, %s10567_s9 }
 0x4f7   : > { %2949 = vrot.lane.b32.xlu1 %v15830_v55, %s10567_s9 }
 0x4f8   : > { %v2606_v62 = vpop.xlane.xlu0 %2605 }
 0x4f9   : > { %9879 = vrcp.f32 %v2606_v62 }
 0x4fa   : > { %3140 = vrot.lane.b32.xlu0 %v15831_v17, %s10567_s9  ;;  %9881 = vrcp.f32 %v2604_v33  ;;  %v12426_v17 = vpop.permute.xlu1 %3164 }
 0x4fb   : > { %2953 = vrot.lane.b32.xlu1 %v15832_v28, %s10567_s9  ;;  %9883 = vrcp.f32 %v2608_v12 }
 0x4fc   : > { %v2602_v2 = vpop.xlane.xlu0 %2601 }
 0x4fd   : > { %9885 = vrcp.f32 %v2602_v2  ;;  %v15836_v2 = vld [vmem:[#allocation12_spill] sm:$0xff] }
 0x4fe   : > { %3144 = vrot.lane.b32.xlu0 %v15833_v45, %s10567_s9 }
 0x4ff   : > { %3138 = vrot.lane.b32.xlu1 %v15834_v10, %s10567_s9 }
 0x500   : > { %v2614_v38 = vpop.xlane.xlu0 %2613 }
 0x501   : > { %9887 = vrcp.f32 %v2614_v38 }
 0x502   : > { %9889 = vrcp.f32 %v2612_v26 }
 0x503   : > { %3142 = vrot.lane.b32.xlu1 %v15835_v6, %s10567_s9  ;;  %v9880_v21 = vpop.eup %9879  ;;  %9891 = vrcp.f32 %v2616_v27 }
 0x504   : > { %v2610_v35 = vpop.xlane.xlu0 %2609  ;;  %v9882_v12 = vpop.eup %9881  ;;  %v2695_v45 = vmul.f32 %v9880_v21, %v12273_v56 }
 0x505   : > { %9893 = vrcp.f32 %v2610_v35  ;;  %v9884_v33 = vpop.eup %9883  ;;  %v2694_v26 = vmul.f32 %v9882_v12, %v12256_v36 }
 0x506   : > { %v2696_v6 = vmul.f32 %v9884_v33, %v12253_v41 }
 0x507   : > { %v9886_v62 = vpop.eup %9885  ;;  %3146 = vrot.lane.b32.xlu1 %v15836_v2, %s10567_s9 }
 0x508   : > { %v2622_v10 = vpop.xlane.xlu0 %2621  ;;  %v2693_v38 = vmul.f32 %v9886_v62, %v12277_v47  ;;  %v2724_v28 = vpack.c.bf16 %v2696_v6, %v2695_v45 }
 0x50a   : > { %v2723_v27 = vpack.c.bf16 %v2694_v26, %v2693_v38 }
 0x50b   : > { %v9888_v11 = vpop.eup %9887 }
 0x50c   : > { %8838 = vmatprep.mubr.bf16.mxu1 %v2723_v27  ;;  %v2618_v35 = vpop.xlane.xlu0 %2617  ;;  %v9890_v55 = vpop.eup %9889  ;;  %v2699_v56 = vmul.f32 %v9888_v11, %v12282_v9 }
 0x50d   : > { %8839 = vmatmul.mubr.bf16.gmra.mrb[68].mxu1 %v2724_v28  ;;  %v9892_v43 = vpop.eup %9891  ;;  %v2698_v41 = vmul.f32 %v9890_v55, %v12262_v23 }
 0x50e   : > { %v2624_v2 = vpop.xlane.xlu1 %2623  ;;  %v2700_v45 = vmul.f32 %v9892_v43, %v12259_v31 }
 0x50f   : > { %v9894_v57 = vpop.eup %9893  ;;  %9895 = vrcp.f32 %v2624_v2 }
 0x510   : > { %v2940_v47 = vpop.permute.xlu0 %2939  ;;  %v2697_v36 = vmul.f32 %v9894_v57, %v12286_v39  ;;  %9897 = vrcp.f32 %v2618_v35  ;;  %v2726_v21 = vpack.c.bf16 %v2700_v45, %v2699_v56 }
 0x511   : > { %8898 = vmatprep.mubr.msk.bf16.mxu0 %vm2142_vm2, %v2940_v47  ;;  %9899 = vrcp.f32 %v2622_v10 }
 0x512   : > { %v2620_v6 = vpop.xlane.xlu1 %2619  ;;  %8899 = vmatmul.mubr.msk.bf16.vlgmr.msra.gmra.mrb[64].mxu0 %vm2142_vm2, %v2942_v51  ;;  %v2725_v28 = vpack.c.bf16 %v2698_v41, %v2697_v36  ;;  %v3197_v36 = vsel %vm2142_vm2, %v12225_v60, 0  ;;  %v15838_v41 = vld [vmem:[#allocation70_spill] sm:$0xff] }
 0x513   : > { %9901 = vrcp.f32 %v2620_v6  ;;  %v3206_v6 = vsel %vm2142_vm2, %v15838_v41, 0 }
 0x514   : > { %8842 = vmatprep.mubr.bf16.mxu1 %v2725_v28 }
 0x515   : > { %8843 = vmatmul.mubr.bf16.gmra.mrb[72].mxu1 %v2726_v21 }
 0x516   : > { %v2630_v9 = vpop.xlane.xlu1 %2629 }
 0x519   : > { %v9896_v11 = vpop.eup %9895 }
 0x51a   : > { %v2626_v12 = vpop.xlane.xlu1 %2625  ;;  %v9898_v39 = vpop.eup %9897  ;;  %v2704_v55 = vmul.f32 %v9896_v11, %v12298_v48 }
 0x51b   : > { %v9900_v57 = vpop.eup %9899  ;;  %v2701_v31 = vmul.f32 %v9898_v39, %v12294_v44 }
 0x51c   : > { %v2703_v10 = vmul.f32 %v9900_v57, %v12290_v37 }
 0x51d   : > { %v9902_v23 = vpop.eup %9901 }
 0x51e   : > { %v2632_v33 = vpop.xlane.xlu1 %2631  ;;  %v2702_v43 = vmul.f32 %v9902_v23, %v12302_v54  ;;  %v2728_v62 = vpack.c.bf16 %v2704_v55, %v2703_v10 }
 0x51f   : > { %9903 = vrcp.f32 %v2632_v33 }
 0x520   : > { %v2727_v51 = vpack.c.bf16 %v2702_v43, %v2701_v31  ;;  %9905 = vrcp.f32 %v2626_v12 }
 0x521   : > { %9907 = vrcp.f32 %v2630_v9  ;;  %v3209_v9 = vsel %vm2142_vm2, %v12426_v17, 0 }
 0x522   : > { %v2628_v2 = vpop.xlane.xlu1 %2627  ;;  %8846 = vmatprep.mubr.bf16.mxu1 %v2727_v51 }
 0x523   : > { %9909 = vrcp.f32 %v2628_v2  ;;  %8847 = vmatmul.mubr.bf16.gmra.mrb[76].mxu1 %v2728_v62 }
 0x526   : > { %v3167_v21 = vpop.permute.xlu1 %3166 }
 0x527   : > { %v3212_v23 = vsel %vm2142_vm2, %v3167_v21, 0 }
 0x529   : > { %v9904_v38 = vpop.eup %9903 }
 0x52a   : > { %v9906_v26 = vpop.eup %9905  ;;  %v2708_v35 = vmul.f32 %v9904_v38, %v12311_v18  ;;  %v3200_v18 = vsel %vm2142_vm2, %v12223_v58, 0 }
 0x52b   : > { %v9908_v27 = vpop.eup %9907  ;;  %v2705_v44 = vmul.f32 %v9906_v26, %v12308_v29  ;;  %v15837_v29 = vld [vmem:[#allocation69_spill] sm:$0xff] }
 0x52c   : > { %v2707_v37 = vmul.f32 %v9908_v27, %v12305_v14  ;;  %v3203_v14 = vsel %vm2142_vm2, %v15837_v29, 0 }
 0x52d   : > { %v9910_v48 = vpop.eup %9909 }
 0x52e   : > { %v2706_v54 = vmul.f32 %v9910_v48, %v12314_v52  ;;  %v2730_v47 = vpack.c.bf16 %v2708_v35, %v2707_v37 }
 0x530   : > { %v2729_v56 = vpack.c.bf16 %v2706_v54, %v2705_v44 }
 0x532   : > { %8866 = vmatprep.mubr.bf16.mxu1 %v2729_v56 }
 0x533   : > { %8867 = vmatmul.mubr.bf16.vlgmr.msra.gmra.mrb[80].mxu1 %v2730_v47 }
 0x534   : > { %8915 = vmatpush3.bf16.xpose.msra.mxu1 %v3197_v36 }
 0x535   : > { %9415 = vmatprep.subr.msk.bf16.mxu1 %vm2142_vm2, %v12223_v58 }
 0x53c   : > { %8917 = vmatpush3.bf16.xpose.msra.mxu1 %v3200_v18 }
 0x53d   : > { %9416 = vmatprep.subr.msk.bf16.mxu1 %vm2142_vm2, %v15837_v29 }
 0x541   : > { %v2638_v52 = vpop.xlane.xlu0 %2637 }
 0x544   : > { %8919 = vmatpush3.bf16.xpose.msra.mxu1 %v3203_v14 }
 0x545   : > { %9417 = vmatprep.subr.msk.bf16.mxu1 %vm2142_vm2, %v15838_v41  ;;  %v2634_v60 = vpop.xlane.xlu0 %2633 }
 0x549   : > { %v2640_v45 = vpop.xlane.xlu0 %2639 }
 0x54a   : > { %9911 = vrcp.f32 %v2640_v45 }
 0x54b   : > { %9913 = vrcp.f32 %v2634_v60 }
 0x54c   : > { %8921 = vmatpush3.bf16.xpose.msra.mxu1 %v3206_v6  ;;  %9915 = vrcp.f32 %v2638_v52 }
 0x54d   : > { %9418 = vmatprep.subr.msk.bf16.mxu1 %vm2142_vm2, %v12426_v17  ;;  %v2646_v58 = vpop.xlane.xlu0 %2645 }
 0x551   : > { %v2644_v28 = vpop.xlane.xlu0 %2643 }
 0x554   : > { %8923 = vmatpush3.bf16.xpose.msra.mxu1 %v3209_v9  ;;  %v9912_v17 = vpop.eup %9911 }
 0x555   : > { %9419 = vmatprep.subr.msk.bf16.mxu1 %vm2142_vm2, %v3167_v21  ;;  %v2654_v11 = vpop.xlane.xlu0 %2653  ;;  %v9914_v31 = vpop.eup %9913  ;;  %v2712_v62 = vmul.f32 %v9912_v17, %v12336_v4 }
 0x556   : > { %v9916_v43 = vpop.eup %9915  ;;  %v2709_v26 = vmul.f32 %v9914_v31, %v12330_v25 }
 0x557   : > { %v2636_v12 = vpop.xlane.xlu1 %2635  ;;  %v2711_v35 = vmul.f32 %v9916_v43, %v12326_v49 }
 0x558   : > { %9917 = vrcp.f32 %v2636_v12 }
 0x559   : > { %v2652_v39 = vpop.xlane.xlu0 %2651  ;;  %9919 = vrcp.f32 %v2644_v28  ;;  %v2732_v56 = vpack.c.bf16 %v2712_v62, %v2711_v35 }
 0x55b   : > { %v2642_v57 = vpop.xlane.xlu1 %2641 }
 0x55c   : > { %9921 = vrcp.f32 %v2642_v57  ;;  %8925 = vmatpush3.bf16.xpose.msra.mxu1 %v3212_v23 }
 0x55d   : > { %v3169_v55 = vpop.permute.xlu0 %3168  ;;  %9923 = vrcp.f32 %v2646_v58 }
 0x55e   : > { %9420 = vmatprep.subr.msk.bf16.mxu1 %vm2142_vm2, %v3169_v55  ;;  %v3215_v38 = vsel %vm2142_vm2, %v3169_v55, 0 }
 0x55f   : > { %v2648_v33 = vpop.xlane.xlu1 %2647 }
 0x560   : > { %9925 = vrcp.f32 %v2648_v33 }
 0x561   : > { %v3133_v10 = vpop.permute.xlu0 %3132  ;;  %9927 = vrcp.f32 %v2652_v39 }
 0x562   : > { %v9918_v51 = vpop.eup %9917 }
 0x563   : > { %v2650_v2 = vpop.xlane.xlu1 %2649  ;;  %v2710_v27 = vmul.f32 %v9918_v51, %v12351_v8  ;;  %v9920_v48 = vpop.eup %9919 }
 0x564   : > { %9929 = vrcp.f32 %v2650_v2  ;;  %8927 = vmatpush3.bf16.xpose.msra.mxu1 %v3215_v38  ;;  %v2714_v25 = vmul.f32 %v9920_v48, %v12343_v13  ;;  %v15847_v48 = vld [vmem:[#allocation55_spill] sm:$0xff] }
 0x565   : > { %v2944_v44 = vpop.permute.xlu0 %2943  ;;  %v2731_v54 = vpack.c.bf16 %v2710_v27, %v2709_v26  ;;  %9931 = vrcp.f32 %v2654_v11 }
 0x566   : > { %v9922_v37 = vpop.eup %9921  ;;  %8902 = vmatprep.mubr.msk.bf16.mxu0 %vm2142_vm2, %v2944_v44 }
 0x567   : > { %v2656_v4 = vpop.xlane.xlu1 %2655  ;;  %8870 = vmatprep.mubr.bf16.mxu1 %v2731_v54  ;;  %v2713_v47 = vmul.f32 %v9922_v37, %v12356_v34  ;;  %v9924_v36 = vpop.eup %9923 }
 0x568   : > { %9933 = vrcp.f32 %v2656_v4  ;;  %8871 = vmatmul.mubr.bf16.gmra.mrb[84].mxu1 %v2732_v56  ;;  %v2715_v49 = vmul.f32 %v9924_v36, %v12339_v3  ;;  %v15849_v56 = vld [vmem:[#allocation56_spill] sm:$0xff]  ;;  %v15852_v36 = vld [vmem:[#allocation53_spill] sm:$0xff] }
 0x569   : > { %v2733_v8 = vpack.c.bf16 %v2714_v25, %v2713_v47  ;;  %v2948_v11 = vpop.permute.xlu0 %2947 }
 0x56a   : > { %v9926_v18 = vpop.eup %9925 }
 0x56b   : > { %v3171_v29 = vpop.permute.xlu1 %3170  ;;  %8874 = vmatprep.mubr.bf16.mxu1 %v2733_v8  ;;  %v2716_v52 = vmul.f32 %v9926_v18, %v12361_v53  ;;  %v9928_v14 = vpop.eup %9927 }
 0x56c   : > { %9421 = vmatprep.subr.msk.bf16.mxu1 %vm2142_vm2, %v3171_v29  ;;  %v3218_v41 = vsel %vm2142_vm2, %v3171_v29, 0  ;;  %v2718_v6 = vmul.f32 %v9928_v14, %v12354_v24  ;;  %v15854_v29 = vld [vmem:[#allocation54_spill] sm:$0xff] }
 0x56d   : > { %8929 = vmatpush3.bf16.xpose.msra.mxu1 %v3218_v41  ;;  %v2734_v34 = vpack.c.bf16 %v2716_v52, %v2715_v49  ;;  %v2952_v24 = vpop.permute.xlu0 %2951 }
 0x56e   : > { %v9930_v60 = vpop.eup %9929 }
 0x56f   : > { %v3135_v13 = vpop.permute.xlu1 %3134  ;;  %v2717_v45 = vmul.f32 %v9930_v60, %v12367_v1  ;;  %v9932_v58 = vpop.eup %9931 }
 0x570   : > { %8875 = vmatmul.mubr.bf16.gmra.mrb[88].mxu1 %v2734_v34  ;;  %v2719_v53 = vmul.f32 %v9932_v58, %v12347_v50 }
 0x571   : > { %v2735_v28 = vpack.c.bf16 %v2718_v6, %v2717_v45  ;;  %v3137_v39 = vpop.permute.xlu0 %3136 }
 0x572   : > { %v9934_v21 = vpop.eup %9933 }
 0x573   : > { %v2946_v3 = vpop.permute.xlu1 %2945  ;;  %8878 = vmatprep.mubr.bf16.mxu1 %v2735_v28  ;;  %v2720_v9 = vmul.f32 %v9934_v21, %v12372_v15 }
 0x574   : > { %8903 = vmatmul.mubr.msk.bf16.gmra.mrb[68].mxu0 %vm2142_vm2, %v2946_v3 }
 0x575   : > { %8906 = vmatprep.mubr.msk.bf16.mxu0 %vm2142_vm2, %v2948_v11  ;;  %v2736_v12 = vpack.c.bf16 %v2720_v9, %v2719_v53  ;;  %v3141_v57 = vpop.permute.xlu0 %3140 }
 0x577   : > { %v2950_v1 = vpop.permute.xlu1 %2949 }
 0x578   : > { %8879 = vmatmul.mubr.bf16.gmra.mrb[92].mxu1 %v2736_v12 }
 0x579   : > { %8930 = vmatprep.mubr.msk.bf16.mxu1 %vm2142_vm2, %v3133_v10  ;;  %v3145_v55 = vpop.permute.xlu0 %3144 }
 0x57b   : > { %v2954_v50 = vpop.permute.xlu1 %2953 }
 0x57c   : > { %8907 = vmatmul.mubr.msk.bf16.gmra.mrb[72].mxu0 %vm2142_vm2, %v2950_v1 }
 0x57d   : > { %8910 = vmatprep.mubr.msk.bf16.mxu0 %vm2142_vm2, %v2952_v24 }
 0x57f   : > { %v3139_v15 = vpop.permute.xlu1 %3138 }
 0x580   : > { %8931 = vmatmul.mubr.msk.bf16.vlgmr.msra.gmra.mrb[96].mxu1 %vm2142_vm2, %v3135_v13 }
 0x581   : > { %8934 = vmatprep.mubr.msk.bf16.mxu1 %vm2142_vm2, %v3137_v39  ;;  %v15871_v39 = vld [vmem:[#allocation64_spill] sm:$0xff] }
 0x583   : > { %v3143_v23 = vpop.permute.xlu1 %3142 }
 0x584   : > { %8911 = vmatmul.mubr.msk.bf16.gmra.mrb[76].mxu0 %vm2142_vm2, %v2954_v50 }
 0x587   : > { %v3147_v17 = vpop.permute.xlu1 %3146 }
 0x588   : > { %8935 = vmatmul.mubr.msk.bf16.gmra.mrb[100].mxu1 %vm2142_vm2, %v3139_v15 }
 0x589   : > { %8938 = vmatprep.mubr.msk.bf16.mxu1 %vm2142_vm2, %v3141_v57 }
 0x590   : > { %8939 = vmatmul.mubr.msk.bf16.gmra.mrb[104].mxu1 %vm2142_vm2, %v3143_v23  ;;  %v15872_v23 = vld [vmem:[#allocation58_spill] sm:$0xff] }
 0x591   : > { %8942 = vmatprep.mubr.msk.bf16.mxu1 %vm2142_vm2, %v3145_v55 }
 0x598   : > { %8943 = vmatmul.mubr.msk.bf16.gmra.mrb[108].mxu1 %vm2142_vm2, %v3147_v17 }
 0x5a9   : > { %v12492_v33 = vpop.f32.mrb[64].mxu1 }
 0x5aa   : > { %15839 = vst [vmem:[#allocation69_spill] sm:$0xff] %v12492_v33  ;;  %v12494_v31 = vpop.f32.mrb[65].mxu1 }
 0x5ab   : > { %15840 = vst [vmem:[#allocation70_spill] sm:$0xff] %v12494_v31  ;;  %v12496_v43 = vpop.f32.mrb[66].mxu1 }
 0x5ac   : > { %15841 = vst [vmem:[#allocation71_spill] sm:$0xff] %v12496_v43  ;;  %v12498_v10 = vpop.f32.mrb[67].mxu1  ;;  %v15887_v43 = vld [vmem:[#allocation31_spill] sm:$0xff] }
 0x5ad   : > { %15842 = vst [vmem:[#allocation72_spill] sm:$0xff] %v12498_v10 }
 0x5e0   : > { %v12500_v51 = vpop.f32.mrb[68].mxu1 }
 0x5e1   : > { %15843 = vst [vmem:[#allocation73_spill] sm:$0xff] %v12500_v51  ;;  %v12502_v62 = vpop.f32.mrb[69].mxu1 }
 0x5e2   : > { %15844 = vst [vmem:[#allocation74_spill] sm:$0xff] %v12502_v62  ;;  %v12504_v2 = vpop.f32.mrb[70].mxu1  ;;  %v15886_v62 = vld [vmem:[#allocation61_spill] sm:$0xff] }
 0x5e3   : > { %15845 = vst [vmem:[#allocation75_spill] sm:$0xff] %v12504_v2  ;;  %v12506_v38 = vpop.f32.mrb[71].mxu1 }
 0x5e4   : > { %15846 = vst [vmem:[#allocation76_spill] sm:$0xff] %v12506_v38 }
 0x5e5   : > { %v8900_v26 = vpop.f32.mrb[64].mxu0 }
 0x5e6   : > { %v3061_v27 = vpop.f32.mrb[65].mxu0  ;;  %v12522_v8 = vadd.f32 %v8900_v26, %v15852_v36 }
 0x5e7   : > { %v12509_v35 = vadd.f32 %v3061_v27, %v15847_v48  ;;  %v8901_v44 = vpop.f32.mrb[66].mxu0  ;;  %v15875_v27 = vld [vmem:[#allocation63_spill] sm:$0xff] }
 0x5e8   : > { %v12511_v54 = vpop.f32.mrb[72].mxu1  ;;  %v3064_v37 = vpop.f32.mrb[67].mxu0  ;;  %v12529_v49 = vadd.f32 %v8901_v44, %v15854_v29 }
 0x5e9   : > { %15848 = vst [vmem:[#allocation77_spill] sm:$0xff] %v12511_v54  ;;  %v12514_v4 = vadd.f32 %v3064_v37, %v15849_v56  ;;  %v12516_v47 = vpop.f32.mrb[73].mxu1  ;;  %3317 = vmax.xlane.f32.xlu0 %v12509_v35 }
 0x5ea   : > { %15850 = vst [vmem:[#allocation78_spill] sm:$0xff] %v12516_v47  ;;  %v12519_v25 = vpop.f32.mrb[74].mxu1 }
 0x5eb   : > { %15851 = vst [vmem:[#allocation79_spill] sm:$0xff] %v12519_v25  ;;  %v12524_v18 = vpop.f32.mrb[75].mxu1  ;;  %3319 = vmax.xlane.f32.xlu1 %v12514_v4 }
 0x5ec   : > { %15853 = vst [vmem:[#allocation80_spill] sm:$0xff] %v12524_v18  ;;  %v15885_v18 = vld [vmem:[#allocation67_spill] sm:$0xff] }
 0x5ed   : > { %3321 = vmax.xlane.f32.xlu0 %v12522_v8 }
 0x5f1   : > { %3323 = vmax.xlane.f32.xlu0 %v12529_v49 }
 0x5f6   : > { %v12532_v52 = vpop.f32.mrb[76].mxu1 }
 0x5f7   : > { %15855 = vst [vmem:[#allocation81_spill] sm:$0xff] %v12532_v52  ;;  %v12534_v14 = vpop.f32.mrb[77].mxu1  ;;  %v15884_v52 = vld [vmem:[#allocation62_spill] sm:$0xff] }
 0x5f8   : > { %15856 = vst [vmem:[#allocation82_spill] sm:$0xff] %v12534_v14  ;;  %v12536_v41 = vpop.f32.mrb[78].mxu1 }
 0x5f9   : > { %15857 = vst [vmem:[#allocation83_spill] sm:$0xff] %v12536_v41  ;;  %v12538_v34 = vpop.f32.mrb[79].mxu1 }
 0x5fa   : > { %15858 = vst [vmem:[#allocation84_spill] sm:$0xff] %v12538_v34 }
 0x606   : > { %v12540_v60 = vpop.f32.mrb[80].mxu1 }
 0x607   : > { %15859 = vst [vmem:[#allocation85_spill] sm:$0xff] %v12540_v60  ;;  %v12542_v13 = vpop.f32.mrb[81].mxu1 }
 0x608   : > { %15860 = vst [vmem:[#allocation86_spill] sm:$0xff] %v12542_v13  ;;  %v12544_v45 = vpop.f32.mrb[82].mxu1  ;;  %v15882_v13 = vld [vmem:[#allocation59_spill] sm:$0xff] }
 0x609   : > { %15861 = vst [vmem:[#allocation87_spill] sm:$0xff] %v12544_v45  ;;  %v12546_v6 = vpop.f32.mrb[83].mxu1  ;;  %v15883_v45 = vld [vmem:[#allocation68_spill] sm:$0xff] }
 0x60a   : > { %15862 = vst [vmem:[#allocation88_spill] sm:$0xff] %v12546_v6 }
 0x63b   : > { %v12548_v58 = vpop.f32.mrb[84].mxu1 }
 0x63c   : > { %15863 = vst [vmem:[#allocation89_spill] sm:$0xff] %v12548_v58  ;;  %v12550_v28 = vpop.f32.mrb[85].mxu1 }
 0x63d   : > { %15864 = vst [vmem:[#allocation90_spill] sm:$0xff] %v12550_v28  ;;  %v12552_v21 = vpop.f32.mrb[86].mxu1  ;;  %v15880_v28 = vld [vmem:[#allocation60_spill] sm:$0xff] }
 0x63e   : > { %15865 = vst [vmem:[#allocation91_spill] sm:$0xff] %v12552_v21  ;;  %v12554_v3 = vpop.f32.mrb[87].mxu1 }
 0x63f   : > { %15866 = vst [vmem:[#allocation92_spill] sm:$0xff] %v12554_v3 }
 0x643   : > { %v12556_v53 = vpop.f32.mrb[88].mxu1 }
 0x644   : > { %15867 = vst [vmem:[#allocation93_spill] sm:$0xff] %v12556_v53  ;;  %v12558_v9 = vpop.f32.mrb[89].mxu1  ;;  %v15879_v53 = vld [vmem:[#allocation66_spill] sm:$0xff] }
 0x645   : > { %15868 = vst [vmem:[#allocation94_spill] sm:$0xff] %v12558_v9  ;;  %v12560_v11 = vpop.f32.mrb[90].mxu1  ;;  %v15878_v9 = vld [vmem:[#allocation57_spill] sm:$0xff] }
 0x646   : > { %15869 = vst [vmem:[#allocation95_spill] sm:$0xff] %v12560_v11  ;;  %v12562_v12 = vpop.f32.mrb[91].mxu1 }
 0x647   : > { %15870 = vst [vmem:[#allocation96_spill] sm:$0xff] %v12562_v12  ;;  %v8904_v24 = vpop.f32.mrb[68].mxu0 }
 0x648   : > { %v3077_v1 = vpop.f32.mrb[69].mxu0  ;;  %v12576_v44 = vadd.f32 %v8904_v24, %v15875_v27 }
 0x649   : > { %v12565_v50 = vadd.f32 %v3077_v1, %v15871_v39  ;;  %v8905_v15 = vpop.f32.mrb[70].mxu0 }
 0x64a   : > { %v3080_v57 = vpop.f32.mrb[71].mxu0  ;;  %v12584_v12 = vadd.f32 %v8905_v15, %v15878_v9 }
 0x64b   : > { %v12568_v55 = vadd.f32 %v3080_v57, %v15872_v23  ;;  %v12570_v17 = vpop.f32.mrb[92].mxu1  ;;  %3325 = vmax.xlane.f32.xlu0 %v12565_v50 }
 0x64c   : > { %15873 = vst [vmem:[#allocation97_spill] sm:$0xff] %v12570_v17  ;;  %v12573_v26 = vpop.f32.mrb[93].mxu1 }
 0x64d   : > { %15874 = vst [vmem:[#allocation98_spill] sm:$0xff] %v12573_v26  ;;  %v12578_v37 = vpop.f32.mrb[94].mxu1  ;;  %3327 = vmax.xlane.f32.xlu1 %v12568_v55 }
 0x64e   : > { %15876 = vst [vmem:[#allocation99_spill] sm:$0xff] %v12578_v37  ;;  %v12581_v1 = vpop.f32.mrb[95].mxu1 }
 0x64f   : > { %15877 = vst [vmem:[#allocation100_spill] sm:$0xff] %v12581_v1  ;;  %3329 = vmax.xlane.f32.xlu0 %v12576_v44  ;;  %v8908_v57 = vpop.f32.mrb[72].mxu0  ;;  %v15881_v1 = vld [vmem:[#allocation65_spill] sm:$0xff] }
 0x650   : > { %v3093_v17 = vpop.f32.mrb[73].mxu0  ;;  %v12600_v58 = vadd.f32 %v8908_v57, %v15881_v1 }
 0x651   : > { %v12588_v11 = vadd.f32 %v3093_v17, %v15879_v53  ;;  %3331 = vmax.xlane.f32.xlu1 %v12584_v12  ;;  %v8909_v24 = vpop.f32.mrb[74].mxu0 }
 0x652   : > { %v3096_v26 = vpop.f32.mrb[75].mxu0  ;;  %v12608_v6 = vadd.f32 %v8909_v24, %v15882_v13 }
 0x653   : > { %v12592_v37 = vadd.f32 %v3096_v26, %v15880_v28  ;;  %v12594_v3 = vpop.f32.mrb[96].mxu1  ;;  %3333 = vmax.xlane.f32.xlu0 %v12588_v11 }
 0x654   : > { %v12597_v15 = vpop.f32.mrb[97].mxu1 }
 0x655   : > { %v12602_v21 = vpop.f32.mrb[98].mxu1  ;;  %3335 = vmax.xlane.f32.xlu1 %v12592_v37 }
 0x656   : > { %v12605_v17 = vpop.f32.mrb[99].mxu1 }
 0x657   : > { %3337 = vmax.xlane.f32.xlu0 %v12600_v58  ;;  %v8912_v26 = vpop.f32.mrb[76].mxu0 }
 0x658   : > { %v3109_v60 = vpop.f32.mrb[77].mxu0  ;;  %v12624_v54 = vadd.f32 %v8912_v26, %v15885_v18 }
 0x659   : > { %v12612_v14 = vadd.f32 %v3109_v60, %v15883_v45  ;;  %3339 = vmax.xlane.f32.xlu1 %v12608_v6  ;;  %v8913_v57 = vpop.f32.mrb[78].mxu0 }
 0x65a   : > { %v3112_v34 = vpop.f32.mrb[79].mxu0  ;;  %v12632_v38 = vadd.f32 %v8913_v57, %v15886_v62 }
 0x65b   : > { %v12616_v41 = vadd.f32 %v3112_v34, %v15884_v52  ;;  %3341 = vmax.xlane.f32.xlu0 %v12612_v14  ;;  %v12619_v47 = vpop.f32.mrb[100].mxu1 }
 0x65c   : > { %v12621_v24 = vpop.f32.mrb[101].mxu1 }
 0x65d   : > { %3343 = vmax.xlane.f32.xlu1 %v12616_v41  ;;  %v12627_v60 = vpop.f32.mrb[102].mxu1 }
 0x65e   : > { %v12629_v25 = vpop.f32.mrb[103].mxu1 }
 0x65f   : > { %3345 = vmax.xlane.f32.xlu0 %v12624_v54 }
 0x661   : > { %3347 = vmax.xlane.f32.xlu1 %v12632_v38 }
 0x663   : > { %v12636_v34 = vpop.f32.mrb[104].mxu1 }
 0x664   : > { %v12638_v51 = vpop.f32.mrb[105].mxu1 }
 0x665   : > { %v12640_v2 = vpop.f32.mrb[106].mxu1 }
 0x666   : > { %v12642_v26 = vpop.f32.mrb[107].mxu1 }
 0x66b   : > { %v12644_v31 = vpop.f32.mrb[108].mxu1 }
 0x66c   : > { %v12646_v10 = vpop.f32.mrb[109].mxu1 }
 0x66d   : > { %v12648_v33 = vpop.f32.mrb[110].mxu1 }
 0x66e   : > { %v12650_v57 = vpop.f32.mrb[111].mxu1 }
 0x672   : > { %3631 = vrot.lane.b32.xlu1 %v15887_v43, %s10567_s9  ;;  %v15893_v43 = vld [vmem:[#allocation38_spill] sm:$0xff] }
 0x675   : > { %3629 = vrot.lane.b32.xlu0 %v15888_v59, %s10567_s9 }
 0x676   : > { %3635 = vrot.lane.b32.xlu1 %v15889_v0, %s10567_s9  ;;  %v15894_v0 = vld [vmem:[#allocation44_spill] sm:$0xff] }
 0x679   : > { %3633 = vrot.lane.b32.xlu0 %v15890_v22, %s10567_s9 }
 0x67a   : > { %3643 = vrot.lane.b32.xlu1 %v15891_v63, %s10567_s9 }
 0x67d   : > { %3637 = vrot.lane.b32.xlu0 %v15892_v40, %s10567_s9  ;;  %v15895_v40 = vld [vmem:[#allocation21_spill] sm:$0xff] }
 0x67e   : > { %3760 = vrot.lane.b32.xlu1 %v11885_v32, %s10567_s9  ;;  %v15896_v32 = vld [vmem:[#allocation17_spill] sm:$0xff] }
 0x681   : > { %3639 = vrot.lane.b32.xlu0 %v15893_v43, %s10567_s9 }
 0x682   : > { %3764 = vrot.lane.b32.xlu1 %v11903_v61, %s10567_s9 }
 0x685   : > { %3641 = vrot.lane.b32.xlu0 %v15894_v0, %s10567_s9  ;;  %v15897_v0 = vld [vmem:[#allocation19_spill] sm:$0xff] }
 0x686   : > { %3768 = vrot.lane.b32.xlu1 %v11923_v30, %s10567_s9  ;;  %v15898_v30 = vld [vmem:[#allocation15_spill] sm:$0xff] }
 0x689   : > { %3758 = vrot.lane.b32.xlu0 %v11887_v19, %s10567_s9  ;;  %v15899_v19 = vld [vmem:[#allocation32_spill] sm:$0xff] }
 0x68a   : > { %3899 = vrot.lane.b32.xlu1 %v15895_v40, %s10569_s6 }
 0x68d   : > { %3895 = vrot.lane.b32.xlu0 %v15896_v32, %s10569_s6  ;;  %v15900_v32 = vld [vmem:[#allocation23_spill] sm:$0xff] }
 0x68e   : > { %3770 = vrot.lane.b32.xlu1 %v11945_v46, %s10567_s9  ;;  %v3318_v46 = vpop.xlane.xlu0 %3317 }
 0x68f   : > { %v3381_v40 = vsub.f32 %v12509_v35, %v3318_v46 }
 0x691   : > { %3762 = vrot.lane.b32.xlu0 %v11905_v42, %s10567_s9  ;;  %v15901_v42 = vld [vmem:[#allocation30_spill] sm:$0xff]  ;;  %v3413_v43 = vmul.f32 1.442695, %v3381_v40 }
 0x692   : > { %3901 = vrot.lane.b32.xlu1 %v15897_v0, %s10569_s6  ;;  %v15902_v0 = vld [vmem:[#allocation25_spill] sm:$0xff] }
 0x693   : > { %9935 = vpow2.f32 %v3413_v43 }
 0x695   : > { %3897 = vrot.lane.b32.xlu0 %v15898_v30, %s10569_s6  ;;  %v15903_v30 = vld [vmem:[#allocation36_spill] sm:$0xff] }
 0x696   : > { %4072 = vrot.lane.b32.xlu1 %v15899_v19, %s10569_s6  ;;  %v15904_v19 = vld [vmem:[#allocation29_spill] sm:$0xff] }
 0x699   : > { %3766 = vrot.lane.b32.xlu0 %v11925_v16, %s10567_s9  ;;  %v3322_v16 = vpop.xlane.xlu0 %3321 }
 0x69a   : > { %3905 = vrot.lane.b32.xlu1 %v15900_v32, %s10569_s6  ;;  %v3320_v32 = vpop.xlane.xlu1 %3319  ;;  %v3383_v61 = vsub.f32 %v12522_v8, %v3322_v16 }
 0x69c   : > { %v3417_v63 = vmul.f32 1.442695, %v3383_v61 }
 0x69d   : > { %3772 = vrot.lane.b32.xlu0 %v15826_v20, %s10567_s9  ;;  %v3324_v20 = vpop.xlane.xlu0 %3323 }
 0x69e   : > { %4074 = vrot.lane.b32.xlu1 %v15901_v42, %s10569_s6  ;;  %v3382_v42 = vsub.f32 %v12514_v4, %v3320_v32  ;;  %9937 = vpow2.f32 %v3417_v63 }
 0x6a0   : > { %v3415_v22 = vmul.f32 1.442695, %v3382_v42 }
 0x6a1   : > { %3903 = vrot.lane.b32.xlu0 %v15902_v0, %s10569_s6  ;;  %v3384_v0 = vsub.f32 %v12529_v49, %v3324_v20 }
 0x6a2   : > { %4076 = vrot.lane.b32.xlu1 %v15903_v30, %s10569_s6  ;;  %9939 = vpow2.f32 %v3415_v22 }
 0x6a3   : > { %v3419_v30 = vmul.f32 1.442695, %v3384_v0 }
 0x6a5   : > { %3907 = vrot.lane.b32.xlu0 %v15904_v19, %s10569_s6  ;;  %9941 = vpow2.f32 %v3419_v30  ;;  %v12708_v19 = vpop.eup %9935 }
 0x6a8   : > { %v12711_v46 = vpop.eup %9937 }
 0x6ac   : > { %v12714_v40 = vpop.eup %9939 }
 0x6af   : > { %v12717_v32 = vpop.eup %9941 }
 0x6c4   : > { %3477 = vadd.xlane.f32.xlu0 %v12708_v19 }
 0x6c6   : > { %3481 = vadd.xlane.f32.xlu1 %v12711_v46 }
 0x6c8   : > { %3479 = vadd.xlane.f32.xlu0 %v12714_v40 }
 0x6ca   : > { %3483 = vadd.xlane.f32.xlu1 %v12717_v32 }
 0x6d8   : > { %v3326_v63 = vpop.xlane.xlu0 %3325 }
 0x6d9   : > { %v3385_v61 = vsub.f32 %v12565_v50, %v3326_v63 }
 0x6da   : > { %v3328_v0 = vpop.xlane.xlu1 %3327 }
 0x6db   : > { %v3386_v22 = vsub.f32 %v12568_v55, %v3328_v0  ;;  %v3421_v35 = vmul.f32 1.442695, %v3385_v61 }
 0x6dc   : > { %v3330_v42 = vpop.xlane.xlu0 %3329 }
 0x6dd   : > { %v3423_v30 = vmul.f32 1.442695, %v3386_v22  ;;  %v3387_v16 = vsub.f32 %v12576_v44, %v3330_v42 }
 0x6de   : > { %v3332_v20 = vpop.xlane.xlu1 %3331 }
 0x6df   : > { %9943 = vpow2.f32 %v3423_v30  ;;  %v3425_v43 = vmul.f32 1.442695, %v3387_v16  ;;  %v3388_v8 = vsub.f32 %v12584_v12, %v3332_v20 }
 0x6e0   : > { %v3334_v4 = vpop.xlane.xlu0 %3333 }
 0x6e1   : > { %9945 = vpow2.f32 %v3425_v43  ;;  %v3389_v49 = vsub.f32 %v12588_v11, %v3334_v4  ;;  %v3427_v0 = vmul.f32 1.442695, %v3388_v8 }
 0x6e2   : > { %v3336_v59 = vpop.xlane.xlu1 %3335  ;;  %9947 = vpow2.f32 %v3421_v35 }
 0x6e3   : > { %v3429_v7 = vmul.f32 1.442695, %v3389_v49 }
 0x6e4   : > { %v3338_v55 = vpop.xlane.xlu0 %3337 }
 0x6e5   : > { %9949 = vpow2.f32 %v3429_v7  ;;  %v3391_v50 = vsub.f32 %v12600_v58, %v3338_v55  ;;  %v3390_v58 = vsub.f32 %v12592_v37, %v3336_v59 }
 0x6e6   : > { %v3340_v63 = vpop.xlane.xlu1 %3339  ;;  %9951 = vpow2.f32 %v3427_v0 }
 0x6e7   : > { %v3433_v44 = vmul.f32 1.442695, %v3391_v50  ;;  %v3392_v61 = vsub.f32 %v12608_v6, %v3340_v63  ;;  %v3431_v8 = vmul.f32 1.442695, %v3390_v58 }
 0x6e8   : > { %v3342_v22 = vpop.xlane.xlu0 %3341 }
 0x6e9   : > { %v12726_v42 = vpop.eup %9943  ;;  %v3393_v12 = vsub.f32 %v12612_v14, %v3342_v22  ;;  %9953 = vpow2.f32 %v3433_v44  ;;  %v3435_v20 = vmul.f32 1.442695, %v3392_v61 }
 0x6ea   : > { %v3344_v30 = vpop.xlane.xlu1 %3343  ;;  %3487 = vadd.xlane.f32.xlu1 %v12726_v42 }
 0x6eb   : > { %v12731_v11 = vpop.eup %9945  ;;  %v3437_v16 = vmul.f32 1.442695, %v3393_v12  ;;  %v3394_v0 = vsub.f32 %v12616_v41, %v3344_v30 }
 0x6ec   : > { %3489 = vadd.xlane.f32.xlu0 %v12731_v11  ;;  %v3346_v7 = vpop.xlane.xlu0 %3345  ;;  %v12735_v43 = vpop.eup %9947 }
 0x6ed   : > { %9955 = vpow2.f32 %v3437_v16  ;;  %v3395_v49 = vsub.f32 %v12624_v54, %v3346_v7  ;;  %v3439_v61 = vmul.f32 1.442695, %v3394_v0  ;;  %v12791_v0 = vadd.f32 %v12629_v25, %v15872_v23 }
 0x6ee   : > { %v3348_v35 = vpop.xlane.xlu1 %3347  ;;  %9957 = vpow2.f32 %v3435_v20  ;;  %v12763_v20 = vadd.f32 %v12602_v21, %v15854_v29 }
 0x6ef   : > { %v12737_v6 = vpop.eup %9949  ;;  %v3396_v14 = vsub.f32 %v12632_v38, %v3348_v35  ;;  %v3441_v50 = vmul.f32 1.442695, %v3395_v49 }
 0x6f0   : > { %3485 = vadd.xlane.f32.xlu0 %v12735_v43  ;;  %3493 = vadd.xlane.f32.xlu1 %v12737_v6  ;;  %v3630_v4 = vpop.permute.xlu0 %3629  ;;  %v12743_v37 = vpop.eup %9951 }
 0x6f1   : > { %v3443_v55 = vmul.f32 1.442695, %v3396_v14  ;;  %8946 = vmatprep.subr.bf16.mxu0 %v3630_v4 }
 0x6f2   : > { %v3632_v59 = vpop.permute.xlu1 %3631  ;;  %8947 = vmatpush3.bf16.msra.mxu0 %v3630_v4  ;;  %v12771_v4 = vadd.f32 %v12605_v17, %v15849_v56 }
 0x6f3   : > { %9959 = vpow2.f32 %v3443_v55  ;;  %8948 = vmatprep.subr.bf16.mxu0 %v3632_v59  ;;  %v12747_v63 = vpop.eup %9953  ;;  %v12779_v55 = vadd.f32 %v12627_v60, %v15878_v9 }
 0x6f4   : > { %3491 = vadd.xlane.f32.xlu0 %v12743_v37  ;;  %v3634_v38 = vpop.permute.xlu0 %3633  ;;  %9961 = vpow2.f32 %v3431_v8 }
 0x6f5   : > { %9963 = vpow2.f32 %v3441_v50  ;;  %v12796_v50 = vadd.f32 %v12597_v15, %v15847_v48  ;;  %v12812_v15 = vadd.f32 %v12619_v47, %v15875_v27  ;;  %v12823_v47 = vadd.f32 %v12638_v51, %v15879_v53  ;;  %v15906_v51 = vld [vmem:[#allocation27_spill] sm:$0xff] }
 0x6f6   : > { %v3636_v44 = vpop.permute.xlu1 %3635  ;;  %8949 = vmatpush3.bf16.msra.mxu0 %v3632_v59  ;;  %9965 = vpow2.f32 %v3439_v61  ;;  %v12786_v59 = vadd.f32 %v12594_v3, %v15852_v36  ;;  %v12803_v3 = vadd.f32 %v12636_v34, %v15881_v1  ;;  %v12818_v34 = vadd.f32 %v12621_v24, %v15871_v39  ;;  %v15905_v24 = vld [vmem:[#allocation34_spill] sm:$0xff] }
 0x6f7   : > { %v12749_v54 = vpop.eup %9955  ;;  %8950 = vmatprep.subr.bf16.mxu0 %v3634_v38 }
 0x6f8   : > { %3497 = vadd.xlane.f32.xlu0 %v12747_v63  ;;  %3501 = vadd.xlane.f32.xlu1 %v12749_v54  ;;  %v3638_v22 = vpop.permute.xlu0 %3637  ;;  %v12753_v16 = vpop.eup %9957 }
 0x6fa   : > { %v3644_v12 = vpop.permute.xlu1 %3643  ;;  %8951 = vmatpush3.bf16.msra.mxu0 %v3634_v38 }
 0x6fb   : > { %8952 = vmatprep.subr.bf16.mxu0 %v3636_v44 }
 0x6fc   : > { %3499 = vadd.xlane.f32.xlu0 %v12753_v16  ;;  %v3640_v41 = vpop.permute.xlu0 %3639 }
 0x6fd   : > { %v12756_v30 = vpop.eup %9959 }
 0x6fe   : > { %3507 = vadd.xlane.f32.xlu1 %v12756_v30  ;;  %8953 = vmatpush3.bf16.msra.mxu0 %v3636_v44  ;;  %v12759_v7 = vpop.eup %9961  ;;  %v3761_v58 = vpop.permute.xlu1 %3760 }
 0x6ff   : > { %8954 = vmatprep.subr.bf16.mxu0 %v3638_v22  ;;  %v12767_v14 = vpop.eup %9963 }
 0x700   : > { %3495 = vadd.xlane.f32.xlu0 %v12759_v7  ;;  %v3642_v35 = vpop.permute.xlu0 %3641  ;;  %v12775_v21 = vpop.eup %9965 }
 0x702   : > { %3355 = vmax.xlane.f32.xlu1 %v12763_v20  ;;  %8955 = vmatpush3.bf16.msra.mxu0 %v3638_v22  ;;  %v3765_v49 = vpop.permute.xlu1 %3764 }
 0x703   : > { %8956 = vmatprep.subr.bf16.mxu0 %v3640_v41 }
 0x704   : > { %3505 = vadd.xlane.f32.xlu0 %v12767_v14  ;;  %v3759_v8 = vpop.permute.xlu0 %3758 }
 0x705   : > { %8978 = vmatprep.subr.bf16.mxu1 %v3759_v8 }
 0x706   : > { %3351 = vmax.xlane.f32.xlu1 %v12771_v4  ;;  %8957 = vmatpush3.bf16.msra.mxu0 %v3640_v41  ;;  %v3769_v38 = vpop.permute.xlu1 %3768 }
 0x707   : > { %8979 = vmatpush3.bf16.msra.mxu1 %v3759_v8  ;;  %8958 = vmatprep.subr.bf16.mxu0 %v3642_v35  ;;  %v12838_v8 = vadd.f32 %v12640_v2, %v15882_v13  ;;  %v12856_v2 = vadd.f32 %v12646_v10, %v15883_v45 }
 0x708   : > { %8980 = vmatprep.subr.bf16.mxu1 %v3761_v58  ;;  %3503 = vadd.xlane.f32.xlu0 %v12775_v21  ;;  %v12782_v17 = vpop.permute.xlu0 %3895 }
 0x70a   : > { %3363 = vmax.xlane.f32.xlu1 %v12779_v55  ;;  %8959 = vmatpush3.bf16.msra.mxu0 %v3642_v35  ;;  %v12808_v44 = vpop.permute.xlu1 %3899 }
 0x70b   : > { %8981 = vmatpush3.bf16.msra.mxu1 %v3761_v58  ;;  %8960 = vmatprep.subr.bf16.mxu0 %v3644_v12 }
 0x70c   : > { %3353 = vmax.xlane.f32.xlu0 %v12786_v59  ;;  %v3763_v60 = vpop.permute.xlu0 %3762 }
 0x70d   : > { %8982 = vmatprep.subr.bf16.mxu1 %v3763_v60 }
 0x70e   : > { %3359 = vmax.xlane.f32.xlu1 %v12791_v0  ;;  %8961 = vmatpush3.bf16.msra.mxu0 %v3644_v12  ;;  %v3771_v61 = vpop.permute.xlu1 %3770 }
 0x70f   : > { %8983 = vmatpush3.bf16.msra.mxu1 %v3763_v60  ;;  %9422 = vmatprep.subr.msk.bf16.mxu0 %vm2142_vm2, %v12782_v17 }
 0x710   : > { %8984 = vmatprep.subr.bf16.mxu1 %v3765_v49  ;;  %3349 = vmax.xlane.f32.xlu0 %v12796_v50  ;;  %v12806_v25 = vpop.permute.xlu0 %3897 }
 0x712   : > { %3369 = vmax.xlane.f32.xlu1 %v12803_v3  ;;  %v3902_v12 = vpop.permute.xlu1 %3901 }
 0x713   : > { %8985 = vmatpush3.bf16.msra.mxu1 %v3765_v49 }
 0x714   : > { %3361 = vmax.xlane.f32.xlu0 %v12812_v15  ;;  %v3767_v22 = vpop.permute.xlu0 %3766 }
 0x715   : > { %8986 = vmatprep.subr.bf16.mxu1 %v3767_v22 }
 0x716   : > { %v12826_v58 = vpop.permute.xlu1 %4072 }
 0x717   : > { %8987 = vmatpush3.bf16.msra.mxu1 %v3767_v22  ;;  %v12850_v22 = vadd.f32 %v12644_v31, %v15885_v18  ;;  %v12869_v31 = vadd.f32 %v12650_v57, %v15884_v52 }
 0x718   : > { %8988 = vmatprep.subr.bf16.mxu1 %v3769_v38  ;;  %3357 = vmax.xlane.f32.xlu0 %v12818_v34  ;;  %v3773_v41 = vpop.permute.xlu0 %3772 }
 0x71a   : > { %v12834_v35 = vpop.permute.xlu1 %3905 }
 0x71b   : > { %8989 = vmatpush3.bf16.msra.mxu1 %v3769_v38  ;;  %v12843_v38 = vadd.f32 %v12642_v26, %v15880_v28  ;;  %v12863_v26 = vadd.f32 %v12648_v33, %v15886_v62 }
 0x71c   : > { %8990 = vmatprep.subr.bf16.mxu1 %v3771_v61  ;;  %3365 = vmax.xlane.f32.xlu0 %v12823_v47  ;;  %v3904_v49 = vpop.permute.xlu0 %3903 }
 0x71e   : > { %v12845_v60 = vpop.permute.xlu1 %4074 }
 0x71f   : > { %8991 = vmatpush3.bf16.msra.mxu1 %v3771_v61 }
 0x720   : > { %8992 = vmatprep.subr.bf16.mxu1 %v3773_v41  ;;  %v12852_v61 = vpop.permute.xlu0 %3907 }
 0x723   : > { %8993 = vmatpush3.bf16.msra.mxu1 %v3773_v41  ;;  %4078 = vrot.lane.b32.xlu1 %v15905_v24, %s10569_s6  ;;  %v12858_v41 = vpop.permute.xlu1 %4076 }
 0x724   : > { %9430 = vmatprep.subr.msk.bf16.mxu1 %vm2142_vm2, %v12826_v58 }
 0x732   : > { %3909 = vrot.lane.b32.xlu0 %v15906_v51, %s10569_s6 }
 0x747   : > { %3371 = vmax.xlane.f32.xlu1 %v12838_v8 }
 0x74b   : > { %3367 = vmax.xlane.f32.xlu1 %v12843_v38 }
 0x74f   : > { %3377 = vmax.xlane.f32.xlu1 %v12850_v22 }
 0x751   : > { %3373 = vmax.xlane.f32.xlu0 %v12856_v2  ;;  %v3478_v51 = vpop.xlane.xlu0 %3477 }
 0x752   : > { %9967 = vrcp.f32 %v3478_v51 }
 0x753   : > { %v3482_v24 = vpop.xlane.xlu1 %3481  ;;  %3379 = vmax.xlane.f32.xlu1 %v12863_v26 }
 0x754   : > { %9969 = vrcp.f32 %v3482_v24 }
 0x755   : > { %v3480_v10 = vpop.xlane.xlu0 %3479 }
 0x756   : > { %9971 = vrcp.f32 %v3480_v10  ;;  %v3936_v10 = vsel %vm2142_vm2, %v12782_v17, 0  ;;  %v3948_v17 = vsel %vm2142_vm2, %v3904_v49, 0 }
 0x757   : > { %v3484_v18 = vpop.xlane.xlu1 %3483  ;;  %3375 = vmax.xlane.f32.xlu1 %v12869_v31 }
 0x758   : > { %9973 = vrcp.f32 %v3484_v18 }
 0x75c   : > { %v9968_v33 = vpop.eup %9967 }
 0x75d   : > { %v3573_v13 = vmul.f32 %v9968_v33, %v12708_v19  ;;  %v3939_v19 = vsel %vm2142_vm2, %v12806_v25, 0 }
 0x75e   : > { %v9970_v62 = vpop.eup %9969 }
 0x75f   : > { %v3575_v51 = vmul.f32 %v9970_v62, %v12711_v46  ;;  %v3942_v62 = vsel %vm2142_vm2, %v12808_v44, 0 }
 0x760   : > { %v9972_v45 = vpop.eup %9971 }
 0x761   : > { %v3574_v1 = vmul.f32 %v9972_v45, %v12714_v40  ;;  %v3945_v45 = vsel %vm2142_vm2, %v3902_v12, 0 }
 0x762   : > { %v9974_v28 = vpop.eup %9973 }
 0x763   : > { %v3576_v57 = vmul.f32 %v9974_v28, %v12717_v32  ;;  %v3605_v52 = vpack.c.bf16 %v3574_v1, %v3573_v13 }
 0x765   : > { %8962 = vmatprep.mubr.bf16.mxu0 %v3605_v52  ;;  %v3606_v24 = vpack.c.bf16 %v3576_v57, %v3575_v51 }
 0x767   : > { %8963 = vmatmul.mubr.bf16.vlgmr.msra.gmra.mrb[80].mxu0 %v3606_v24 }
 0x768   : > { %9011 = vmatpush3.bf16.xpose.msra.mxu0 %v3936_v10 }
 0x769   : > { %9423 = vmatprep.subr.msk.bf16.mxu0 %vm2142_vm2, %v12806_v25 }
 0x770   : > { %9013 = vmatpush3.bf16.xpose.msra.mxu0 %v3939_v19 }
 0x771   : > { %9424 = vmatprep.subr.msk.bf16.mxu0 %vm2142_vm2, %v12808_v44 }
 0x777   : > { %v3488_v52 = vpop.xlane.xlu1 %3487 }
 0x778   : > { %9015 = vmatpush3.bf16.xpose.msra.mxu0 %v3942_v62  ;;  %9975 = vrcp.f32 %v3488_v52  ;;  %v3951_v52 = vsel %vm2142_vm2, %v12834_v35, 0 }
 0x779   : > { %9425 = vmatprep.subr.msk.bf16.mxu0 %vm2142_vm2, %v3902_v12  ;;  %v3490_v18 = vpop.xlane.xlu0 %3489 }
 0x77d   : > { %v3486_v13 = vpop.xlane.xlu0 %3485  ;;  %v3494_v1 = vpop.xlane.xlu1 %3493 }
 0x77e   : > { %9977 = vrcp.f32 %v3486_v13 }
 0x77f   : > { %9979 = vrcp.f32 %v3490_v18 }
 0x780   : > { %9017 = vmatpush3.bf16.xpose.msra.mxu0 %v3945_v45 }
 0x781   : > { %9426 = vmatprep.subr.msk.bf16.mxu0 %vm2142_vm2, %v3904_v49  ;;  %v3492_v28 = vpop.xlane.xlu0 %3491 }
 0x782   : > { %9981 = vrcp.f32 %v3492_v28  ;;  %v9976_v40 = vpop.eup %9975 }
 0x783   : > { %v3578_v51 = vmul.f32 %v9976_v40, %v12726_v42 }
 0x785   : > { %v3498_v46 = vpop.xlane.xlu0 %3497  ;;  %v3502_v32 = vpop.xlane.xlu1 %3501 }
 0x788   : > { %9019 = vmatpush3.bf16.xpose.msra.mxu0 %v3948_v17  ;;  %v9978_v25 = vpop.eup %9977 }
 0x789   : > { %9427 = vmatprep.subr.msk.bf16.mxu0 %vm2142_vm2, %v12834_v35  ;;  %v3500_v44 = vpop.xlane.xlu0 %3499  ;;  %v9980_v33 = vpop.eup %9979  ;;  %v3577_v12 = vmul.f32 %v9978_v25, %v12735_v43  ;;  %v3954_v35 = vsel %vm2142_vm2, %v12852_v61, 0 }
 0x78a   : > { %9983 = vrcp.f32 %v3500_v44  ;;  %v3579_v49 = vmul.f32 %v9980_v33, %v12731_v11 }
 0x78b   : > { %v3508_v57 = vpop.xlane.xlu1 %3507  ;;  %9985 = vrcp.f32 %v3494_v1  ;;  %v3607_v10 = vpack.c.bf16 %v3578_v51, %v3577_v12 }
 0x78c   : > { %v9982_v24 = vpop.eup %9981  ;;  %9987 = vrcp.f32 %v3498_v46 }
 0x78d   : > { %v3496_v19 = vpop.xlane.xlu0 %3495  ;;  %v3580_v62 = vmul.f32 %v9982_v24, %v12743_v37  ;;  %8966 = vmatprep.mubr.bf16.mxu0 %v3607_v10 }
 0x78e   : > { %9989 = vrcp.f32 %v3496_v19 }
 0x78f   : > { %v3356_v18 = vpop.xlane.xlu1 %3355  ;;  %v3608_v43 = vpack.c.bf16 %v3580_v62, %v3579_v49 }
 0x790   : > { %9021 = vmatpush3.bf16.xpose.msra.mxu0 %v3951_v52  ;;  %v3400_v19 = vsub.f32 %v12763_v20, %v3356_v18 }
 0x791   : > { %9428 = vmatprep.subr.msk.bf16.mxu0 %vm2142_vm2, %v12852_v61  ;;  %8967 = vmatmul.mubr.bf16.gmra.mrb[84].mxu0 %v3608_v43  ;;  %v3506_v42 = vpop.xlane.xlu0 %3505 }
 0x792   : > { %9991 = vrcp.f32 %v3506_v42  ;;  %v3451_v42 = vmul.f32 1.442695, %v3400_v19 }
 0x793   : > { %v3352_v13 = vpop.xlane.xlu1 %3351  ;;  %9993 = vrcp.f32 %v3502_v32 }
 0x794   : > { %v3398_v11 = vsub.f32 %v12771_v4, %v3352_v13  ;;  %v9984_v45 = vpop.eup %9983  ;;  %9995 = vrcp.f32 %v3508_v57 }
 0x795   : > { %v3504_v37 = vpop.xlane.xlu0 %3503  ;;  %v9986_v28 = vpop.eup %9985  ;;  %v3584_v17 = vmul.f32 %v9984_v45, %v12753_v16 }
 0x796   : > { %v3447_v1 = vmul.f32 1.442695, %v3398_v11  ;;  %9997 = vrcp.f32 %v3504_v37  ;;  %v9988_v46 = vpop.eup %9987  ;;  %v3581_v32 = vmul.f32 %v9986_v28, %v12737_v6  ;;  %v15907_v37 = vld [vmem:[#allocation16_spill] sm:$0xff] }
 0x797   : > { %v3583_v33 = vmul.f32 %v9988_v46, %v12747_v63  ;;  %v3364_v28 = vpop.xlane.xlu1 %3363 }
 0x798   : > { %v9990_v40 = vpop.eup %9989  ;;  %9999 = vpow2.f32 %v3447_v1  ;;  %9023 = vmatpush3.bf16.xpose.msra.mxu0 %v3954_v35  ;;  %v15908_v1 = vld [vmem:[#allocation14_spill] sm:$0xff] }
 0x799   : > { %v3354_v25 = vpop.xlane.xlu0 %3353  ;;  %v3582_v4 = vmul.f32 %v9990_v40, %v12759_v7  ;;  %v3610_v57 = vpack.c.bf16 %v3584_v17, %v3583_v33  ;;  %v15909_v40 = vld [vmem:[#allocation39_spill] sm:$0xff] }
 0x79a   : > { %v3399_v44 = vsub.f32 %v12786_v59, %v3354_v25 }
 0x79b   : > { %v3609_v12 = vpack.c.bf16 %v3582_v4, %v3581_v32  ;;  %v3360_v46 = vpop.xlane.xlu1 %3359  ;;  %v3404_v4 = vsub.f32 %v12779_v55, %v3364_v28 }
 0x79c   : > { %v3449_v51 = vmul.f32 1.442695, %v3399_v44  ;;  %v9992_v24 = vpop.eup %9991 }
 0x79d   : > { %8970 = vmatprep.mubr.bf16.mxu0 %v3609_v12  ;;  %v3350_v61 = vpop.xlane.xlu0 %3349  ;;  %v9994_v10 = vpop.eup %9993  ;;  %v3587_v59 = vmul.f32 %v9992_v24, %v12767_v14  ;;  %v3459_v12 = vmul.f32 1.442695, %v3404_v4  ;;  %v15914_v4 = vld [vmem:[#allocation6_spill] sm:$0xff] }
 0x79e   : > { %10001 = vpow2.f32 %v3449_v51  ;;  %v3397_v16 = vsub.f32 %v12796_v50, %v3350_v61  ;;  %8971 = vmatmul.mubr.bf16.gmra.mrb[88].mxu0 %v3610_v57  ;;  %v9996_v6 = vpop.eup %9995  ;;  %v3585_v63 = vmul.f32 %v9994_v10, %v12749_v54  ;;  %v3402_v10 = vsub.f32 %v12791_v0, %v3360_v46 }
 0x79f   : > { %v3588_v20 = vmul.f32 %v9996_v6, %v12756_v30  ;;  %v3370_v32 = vpop.xlane.xlu1 %3369 }
 0x7a0   : > { %v9998_v49 = vpop.eup %9997  ;;  %v3445_v7 = vmul.f32 1.442695, %v3397_v16  ;;  %v3407_v51 = vsub.f32 %v12803_v3, %v3370_v32  ;;  %v15913_v32 = vld [vmem:[#allocation20_spill] sm:$0xff] }
 0x7a1   : > { %v3362_v62 = vpop.xlane.xlu0 %3361  ;;  %v3586_v52 = vmul.f32 %v9998_v49, %v12775_v21  ;;  %v3612_v18 = vpack.c.bf16 %v3588_v20, %v3587_v59  ;;  %v3455_v49 = vmul.f32 1.442695, %v3402_v10  ;;  %v15922_v10 = vld [vmem:[#allocation8_spill] sm:$0xff] }
 0x7a2   : > { %v12913_v43 = vpop.eup %9999  ;;  %10003 = vpow2.f32 %v3445_v7  ;;  %v3403_v35 = vsub.f32 %v12812_v15, %v3362_v62  ;;  %v3465_v57 = vmul.f32 1.442695, %v3407_v51  ;;  %v15917_v51 = vld [vmem:[#allocation28_spill] sm:$0xff] }
 0x7a3   : > { %3511 = vadd.xlane.f32.xlu0 %v12913_v43  ;;  %v3611_v50 = vpack.c.bf16 %v3586_v52, %v3585_v63  ;;  %10005 = vpow2.f32 %v3451_v42  ;;  %v12939_v33 = vpop.permute.xlu1 %4078 }
 0x7a4   : > { %v3457_v17 = vmul.f32 1.442695, %v3403_v35  ;;  %v15910_v35 = vld [vmem:[#allocation43_spill] sm:$0xff] }
 0x7a5   : > { %8974 = vmatprep.mubr.bf16.mxu0 %v3611_v50  ;;  %v3358_v13 = vpop.xlane.xlu0 %3357 }
 0x7a6   : > { %8975 = vmatmul.mubr.bf16.gmra.mrb[92].mxu0 %v3612_v18  ;;  %v3401_v25 = vsub.f32 %v12818_v34, %v3358_v13  ;;  %10007 = vpow2.f32 %v3457_v17  ;;  %v15911_v17 = vld [vmem:[#allocation7_spill] sm:$0xff] }
 0x7a8   : > { %v12917_v14 = vpop.eup %10001  ;;  %v3453_v44 = vmul.f32 1.442695, %v3401_v25  ;;  %v15912_v25 = vld [vmem:[#allocation41_spill] sm:$0xff] }
 0x7a9   : > { %3513 = vadd.xlane.f32.xlu1 %v12917_v14  ;;  %v3366_v54 = vpop.xlane.xlu0 %3365 }
 0x7aa   : > { %10009 = vpow2.f32 %v3453_v44  ;;  %v3405_v7 = vsub.f32 %v12823_v47, %v3366_v54  ;;  %v15915_v44 = vld [vmem:[#allocation24_spill] sm:$0xff] }
 0x7ab   : > { %10011 = vpow2.f32 %v3459_v12  ;;  %v15916_v12 = vld [vmem:[#allocation18_spill] sm:$0xff] }
 0x7ac   : > { %v12920_v21 = vpop.eup %10003  ;;  %10013 = vpow2.f32 %v3465_v57  ;;  %v3461_v0 = vmul.f32 1.442695, %v3405_v7  ;;  %v15919_v57 = vld [vmem:[#allocation9_spill] sm:$0xff] }
 0x7ad   : > { %3509 = vadd.xlane.f32.xlu1 %v12920_v21  ;;  %v3910_v11 = vpop.permute.xlu0 %3909  ;;  %v12925_v45 = vpop.eup %10005 }
 0x7ae   : > { %9429 = vmatprep.subr.msk.bf16.mxu0 %vm2142_vm2, %v3910_v11  ;;  %v3957_v30 = vsel %vm2142_vm2, %v3910_v11, 0 }
 0x7af   : > { %9025 = vmatpush3.bf16.xpose.msra.mxu0 %v3957_v30 }
 0x7b0   : > { %v12942_v24 = vpop.eup %10007 }
 0x7b1   : > { %3515 = vadd.xlane.f32.xlu1 %v12925_v45 }
 0x7b4   : > { %v12946_v55 = vpop.eup %10009 }
 0x7b5   : > { %v12951_v6 = vpop.eup %10011 }
 0x7b9   : > { %3879 = vrot.lane.b32.xlu0 %v15907_v37, %s10569_s6 }
 0x7c2   : > { %3881 = vrot.lane.b32.xlu1 %v15908_v1, %s10569_s6 }
 0x7c6   : > { %4080 = vrot.lane.b32.xlu1 %v15909_v40, %s10569_s6 }
 0x7ca   : > { %4082 = vrot.lane.b32.xlu1 %v11842_v5, %s10569_s6 }
 0x7d4   : > { %v3372_v15 = vpop.xlane.xlu1 %3371 }
 0x7d5   : > { %v3408_v63 = vsub.f32 %v12838_v8, %v3372_v15  ;;  %v15918_v15 = vld [vmem:[#allocation22_spill] sm:$0xff] }
 0x7d7   : > { %v3467_v47 = vmul.f32 1.442695, %v3408_v63 }
 0x7d8   : > { %v3368_v34 = vpop.xlane.xlu1 %3367  ;;  %3521 = vadd.xlane.f32.xlu0 %v12942_v24 }
 0x7d9   : > { %v3406_v61 = vsub.f32 %v12843_v38, %v3368_v34  ;;  %v12955_v38 = vpop.eup %10013  ;;  %v15920_v34 = vld [vmem:[#allocation26_spill] sm:$0xff] }
 0x7db   : > { %v3463_v19 = vmul.f32 1.442695, %v3406_v61  ;;  %v15921_v61 = vld [vmem:[#allocation11_spill] sm:$0xff] }
 0x7dc   : > { %v3378_v16 = vpop.xlane.xlu1 %3377  ;;  %3517 = vadd.xlane.f32.xlu0 %v12946_v55 }
 0x7dd   : > { %10015 = vpow2.f32 %v3463_v19  ;;  %v3411_v3 = vsub.f32 %v12850_v22, %v3378_v16  ;;  %v15923_v19 = vld [vmem:[#allocation13_spill] sm:$0xff]  ;;  %v15924_v16 = vld [vmem:[#allocation10_spill] sm:$0xff] }
 0x7de   : > { %v3374_v52 = vpop.xlane.xlu0 %3373 }
 0x7df   : > { %v3473_v59 = vmul.f32 1.442695, %v3411_v3  ;;  %v3409_v50 = vsub.f32 %v12856_v2, %v3374_v52  ;;  %v15925_v3 = vld [vmem:[#allocation12_spill] sm:$0xff] }
 0x7e0   : > { %v3380_v62 = vpop.xlane.xlu1 %3379  ;;  %3523 = vadd.xlane.f32.xlu0 %v12951_v6 }
 0x7e1   : > { %10017 = vpow2.f32 %v3473_v59  ;;  %v3469_v8 = vmul.f32 1.442695, %v3409_v50  ;;  %v3412_v54 = vsub.f32 %v12863_v26, %v3380_v62 }
 0x7e2   : > { %10019 = vpow2.f32 %v3455_v49 }
 0x7e3   : > { %10021 = vpow2.f32 %v3461_v0 }
 0x7e4   : > { %v3376_v42 = vpop.xlane.xlu1 %3375  ;;  %3529 = vadd.xlane.f32.xlu0 %v12955_v38 }
 0x7e5   : > { %v3410_v22 = vsub.f32 %v12869_v31, %v3376_v42  ;;  %v3475_v31 = vmul.f32 1.442695, %v3412_v54 }
 0x7e7   : > { %v12960_v20 = vpop.eup %10015  ;;  %v3471_v18 = vmul.f32 1.442695, %v3410_v22 }
 0x7e8   : > { %3527 = vadd.xlane.f32.xlu0 %v12960_v20 }
 0x7e9   : > { %10023 = vpow2.f32 %v3471_v18 }
 0x7ea   : > { %10025 = vpow2.f32 %v3467_v47 }
 0x7eb   : > { %v12964_v13 = vpop.eup %10017  ;;  %10027 = vpow2.f32 %v3469_v8 }
 0x7ec   : > { %3537 = vadd.xlane.f32.xlu0 %v12964_v13  ;;  %v12968_v11 = vpop.eup %10019  ;;  %10029 = vpow2.f32 %v3475_v31 }
 0x7ed   : > { %v12971_v30 = vpop.eup %10021 }
 0x7ee   : > { %3519 = vadd.xlane.f32.xlu1 %v12968_v11 }
 0x7f2   : > { %3525 = vadd.xlane.f32.xlu1 %v12971_v30 }
 0x7f3   : > { %v12974_v2 = vpop.eup %10023 }
 0x7f4   : > { %3535 = vadd.xlane.f32.xlu0 %v12974_v2  ;;  %v12977_v28 = vpop.eup %10025 }
 0x7f5   : > { %v12980_v26 = vpop.eup %10027 }
 0x7f6   : > { %3531 = vadd.xlane.f32.xlu1 %v12977_v28  ;;  %v12983_v46 = vpop.eup %10029 }
 0x7fa   : > { %3533 = vadd.xlane.f32.xlu1 %v12980_v26 }
 0x7fe   : > { %3539 = vadd.xlane.f32.xlu1 %v12983_v46 }
 0x80a   : > { %4084 = vrot.lane.b32.xlu0 %v15910_v35, %s10569_s6 }
 0x80e   : > { %4056 = vrot.lane.b32.xlu0 %v15911_v17, %s10569_s6  ;;  %v15967_v17 = vld [vmem:[#allocation35_spill] sm:$0xff] }
 0x80f   : > { %4086 = vrot.lane.b32.xlu1 %v15912_v25, %s10569_s6  ;;  %v15970_v25 = vld [vmem:[#allocation40_spill] sm:$0xff] }
 0x812   : > { %3883 = vrot.lane.b32.xlu0 %v15913_v32, %s10569_s6 }
 0x813   : > { %4058 = vrot.lane.b32.xlu1 %v15914_v4, %s10569_s6  ;;  %v15968_v4 = vld [vmem:[#allocation37_spill] sm:$0xff] }
 0x816   : > { %3887 = vrot.lane.b32.xlu0 %v15915_v44, %s10569_s6 }
 0x817   : > { %3885 = vrot.lane.b32.xlu1 %v15916_v12, %s10569_s6 }
 0x81a   : > { %3891 = vrot.lane.b32.xlu0 %v15917_v51, %s10569_s6  ;;  %v15971_v51 = vld [vmem:[#allocation45_spill] sm:$0xff] }
 0x81b   : > { %3889 = vrot.lane.b32.xlu1 %v15918_v15, %s10569_s6 }
 0x81e   : > { %4060 = vrot.lane.b32.xlu0 %v15919_v57, %s10569_s6  ;;  %v15965_v57 = vld [vmem:[#allocation31_spill] sm:$0xff] }
 0x81f   : > { %3893 = vrot.lane.b32.xlu1 %v15920_v34, %s10569_s6  ;;  %v15969_v34 = vld [vmem:[#allocation42_spill] sm:$0xff] }
 0x822   : > { %4064 = vrot.lane.b32.xlu0 %v15921_v61, %s10569_s6 }
 0x823   : > { %4062 = vrot.lane.b32.xlu1 %v15922_v10, %s10569_s6  ;;  %v15966_v10 = vld [vmem:[#allocation33_spill] sm:$0xff] }
 0x826   : > { %4068 = vrot.lane.b32.xlu0 %v15923_v19, %s10569_s6 }
 0x827   : > { %4066 = vrot.lane.b32.xlu1 %v15924_v16, %s10569_s6 }
 0x82b   : > { %4070 = vrot.lane.b32.xlu1 %v15925_v3, %s10569_s6 }
 0x830   : > { %v3512_v49 = vpop.xlane.xlu0 %3511 }
 0x831   : > { %10031 = vrcp.f32 %v3512_v49 }
 0x834   : > { %v3880_v7 = vpop.permute.xlu0 %3879 }
 0x835   : > { %9026 = vmatprep.mubr.msk.bf16.mxu0 %vm2142_vm2, %v3880_v7 }
 0x836   : > { %v3514_v59 = vpop.xlane.xlu1 %3513 }
 0x83a   : > { %v13019_v62 = vpop.f32.mrb[80].mxu0  ;;  %v3510_v0 = vpop.xlane.xlu1 %3509 }
 0x83b   : > { %15926 = vst [vmem:[#allocation16_spill] sm:$0xff] %v13019_v62  ;;  %10033 = vrcp.f32 %v3510_v0  ;;  %v13021_v63 = vpop.f32.mrb[81].mxu0  ;;  %v10032_v8 = vpop.eup %10031 }
 0x83c   : > { %15927 = vst [vmem:[#allocation14_spill] sm:$0xff] %v13021_v63  ;;  %v13023_v52 = vpop.f32.mrb[82].mxu0  ;;  %10035 = vrcp.f32 %v3514_v59  ;;  %v3590_v49 = vmul.f32 %v10032_v8, %v12913_v43  ;;  %v4116_v43 = vsel %vm2142_vm2, %v12845_v60, 0  ;;  %v15964_v63 = vld [vmem:[#allocation61_spill] sm:$0xff] }
 0x83d   : > { %15928 = vst [vmem:[#allocation39_spill] sm:$0xff] %v13023_v52  ;;  %v13027_v22 = vpop.f32.mrb[83].mxu0 }
 0x83e   : > { %15929 = vst [vmem:[#allocation20_spill] sm:$0xff] %v13027_v22  ;;  %v3516_v50 = vpop.xlane.xlu1 %3515 }
 0x83f   : > { %10037 = vrcp.f32 %v3516_v50  ;;  %v4113_v50 = vsel %vm2142_vm2, %v12826_v58, 0 }
 0x842   : > { %v3882_v18 = vpop.permute.xlu1 %3881 }
 0x843   : > { %9027 = vmatmul.mubr.msk.bf16.vlgmr.msra.gmra.mrb[96].mxu0 %vm2142_vm2, %v3882_v18 }
 0x845   : > { %v10034_v54 = vpop.eup %10033 }
 0x846   : > { %v3589_v31 = vmul.f32 %v10034_v54, %v12920_v21  ;;  %v10036_v7 = vpop.eup %10035 }
 0x847   : > { %v3591_v42 = vmul.f32 %v10036_v7, %v12917_v14  ;;  %v4119_v14 = vsel %vm2142_vm2, %v12858_v41, 0 }
 0x848   : > { %v3613_v59 = vpack.c.bf16 %v3590_v49, %v3589_v31 }
 0x849   : > { %v10038_v0 = vpop.eup %10037 }
 0x84a   : > { %v3592_v62 = vmul.f32 %v10038_v0, %v12925_v45  ;;  %8994 = vmatprep.mubr.bf16.mxu1 %v3613_v59 }
 0x84c   : > { %v3614_v47 = vpack.c.bf16 %v3592_v62, %v3591_v42  ;;  %v4081_v42 = vpop.permute.xlu1 %4080 }
 0x84d   : > { %v4125_v31 = vsel %vm2142_vm2, %v4081_v42, 0 }
 0x84e   : > { %8995 = vmatmul.mubr.bf16.vlgmr.msra.gmra.mrb[112].mxu1 %v3614_v47 }
 0x84f   : > { %9043 = vmatpush3.bf16.xpose.msra.mxu1 %v4113_v50 }
 0x850   : > { %9431 = vmatprep.subr.msk.bf16.mxu1 %vm2142_vm2, %v12845_v60  ;;  %v4122_v60 = vsel %vm2142_vm2, %v12939_v33, 0  ;;  %v4083_v49 = vpop.permute.xlu1 %4082 }
 0x857   : > { %9045 = vmatpush3.bf16.xpose.msra.mxu1 %v4116_v43 }
 0x858   : > { %9432 = vmatprep.subr.msk.bf16.mxu1 %vm2142_vm2, %v12858_v41 }
 0x85f   : > { %9047 = vmatpush3.bf16.xpose.msra.mxu1 %v4119_v14 }
 0x860   : > { %9433 = vmatprep.subr.msk.bf16.mxu1 %vm2142_vm2, %v12939_v33 }
 0x864   : > { %v13048_v21 = vpop.f32.mrb[84].mxu0 }
 0x865   : > { %15930 = vst [vmem:[#allocation24_spill] sm:$0xff] %v13048_v21  ;;  %v13050_v58 = vpop.f32.mrb[85].mxu0  ;;  %v3522_v45 = vpop.xlane.xlu0 %3521 }
 0x866   : > { %15931 = vst [vmem:[#allocation18_spill] sm:$0xff] %v13050_v58  ;;  %v13052_v62 = vpop.f32.mrb[86].mxu0 }
 0x867   : > { %15932 = vst [vmem:[#allocation22_spill] sm:$0xff] %v13052_v62  ;;  %9049 = vmatpush3.bf16.xpose.msra.mxu1 %v4122_v60  ;;  %v13058_v41 = vpop.f32.mrb[87].mxu0  ;;  %v4128_v60 = vsel %vm2142_vm2, %v4083_v49, 0 }
 0x868   : > { %15933 = vst [vmem:[#allocation101_spill] sm:$0xff] %v13058_v41  ;;  %9434 = vmatprep.subr.msk.bf16.mxu1 %vm2142_vm2, %v4081_v42 }
 0x869   : > { %v3518_v8 = vpop.xlane.xlu0 %3517 }
 0x86d   : > { %v3524_v54 = vpop.xlane.xlu0 %3523 }
 0x86e   : > { %10039 = vrcp.f32 %v3524_v54 }
 0x86f   : > { %9051 = vmatpush3.bf16.xpose.msra.mxu1 %v4125_v31  ;;  %10041 = vrcp.f32 %v3518_v8 }
 0x870   : > { %9435 = vmatprep.subr.msk.bf16.mxu1 %vm2142_vm2, %v4083_v49  ;;  %10043 = vrcp.f32 %v3522_v45 }
 0x871   : > { %v13065_v33 = vpop.f32.mrb[88].mxu0  ;;  %v3530_v7 = vpop.xlane.xlu0 %3529 }
 0x872   : > { %15934 = vst [vmem:[#allocation102_spill] sm:$0xff] %v13065_v33  ;;  %v13067_v59 = vpop.f32.mrb[89].mxu0 }
 0x873   : > { %15935 = vst [vmem:[#allocation103_spill] sm:$0xff] %v13067_v59  ;;  %v13069_v0 = vpop.f32.mrb[90].mxu0 }
 0x874   : > { %15936 = vst [vmem:[#allocation104_spill] sm:$0xff] %v13069_v0  ;;  %v13073_v43 = vpop.f32.mrb[91].mxu0 }
 0x875   : > { %15937 = vst [vmem:[#allocation105_spill] sm:$0xff] %v13073_v43  ;;  %v3528_v42 = vpop.xlane.xlu0 %3527 }
 0x877   : > { %9053 = vmatpush3.bf16.xpose.msra.mxu1 %v4128_v60 }
 0x878   : > { %v10040_v60 = vpop.eup %10039 }
 0x879   : > { %v13078_v31 = vpop.f32.mrb[92].mxu0  ;;  %v3538_v14 = vpop.xlane.xlu0 %3537  ;;  %v3596_v50 = vmul.f32 %v10040_v60, %v12951_v6 }
 0x87a   : > { %15938 = vst [vmem:[#allocation106_spill] sm:$0xff] %v13078_v31  ;;  %v13080_v18 = vpop.f32.mrb[93].mxu0  ;;  %v10042_v59 = vpop.eup %10041 }
 0x87b   : > { %15939 = vst [vmem:[#allocation107_spill] sm:$0xff] %v13080_v18  ;;  %v13082_v47 = vpop.f32.mrb[94].mxu0  ;;  %v3520_v58 = vpop.xlane.xlu1 %3519 }
 0x87c   : > { %15940 = vst [vmem:[#allocation108_spill] sm:$0xff] %v13082_v47  ;;  %10045 = vrcp.f32 %v3520_v58  ;;  %v13086_v33 = vpop.f32.mrb[95].mxu0  ;;  %v10044_v43 = vpop.eup %10043 }
 0x87d   : > { %15941 = vst [vmem:[#allocation109_spill] sm:$0xff] %v13086_v33  ;;  %10047 = vrcp.f32 %v3528_v42  ;;  %v3593_v42 = vmul.f32 %v10042_v59, %v12946_v55 }
 0x87f   : > { %v3526_v54 = vpop.xlane.xlu1 %3525 }
 0x880   : > { %10049 = vrcp.f32 %v3526_v54 }
 0x881   : > { %v3536_v8 = vpop.xlane.xlu0 %3535  ;;  %10051 = vrcp.f32 %v3530_v7 }
 0x883   : > { %v3532_v45 = vpop.xlane.xlu1 %3531 }
 0x884   : > { %10053 = vrcp.f32 %v3532_v45  ;;  %v3595_v45 = vmul.f32 %v10044_v43, %v12942_v24 }
 0x885   : > { %v4085_v0 = vpop.permute.xlu0 %4084  ;;  %10055 = vrcp.f32 %v3536_v8 }
 0x886   : > { %v10046_v41 = vpop.eup %10045  ;;  %9436 = vmatprep.subr.msk.bf16.mxu1 %vm2142_vm2, %v4085_v0  ;;  %v4131_v58 = vsel %vm2142_vm2, %v4085_v0, 0  ;;  %v3616_v8 = vpack.c.bf16 %v3596_v50, %v3595_v45 }
 0x887   : > { %v3534_v49 = vpop.xlane.xlu1 %3533  ;;  %9055 = vmatpush3.bf16.xpose.msra.mxu1 %v4131_v58  ;;  %v3594_v7 = vmul.f32 %v10046_v41, %v12968_v11  ;;  %v10048_v54 = vpop.eup %10047 }
 0x888   : > { %10057 = vrcp.f32 %v3534_v49  ;;  %v3598_v6 = vmul.f32 %v10048_v54, %v12960_v20 }
 0x889   : > { %v4057_v18 = vpop.permute.xlu0 %4056  ;;  %v3615_v33 = vpack.c.bf16 %v3594_v7, %v3593_v42  ;;  %10059 = vrcp.f32 %v3538_v14 }
 0x88a   : > { %v10050_v31 = vpop.eup %10049 }
 0x88b   : > { %v3540_v47 = vpop.xlane.xlu1 %3539  ;;  %8998 = vmatprep.mubr.bf16.mxu1 %v3615_v33  ;;  %v3597_v0 = vmul.f32 %v10050_v31, %v12971_v30  ;;  %v10052_v60 = vpop.eup %10051 }
 0x88c   : > { %10061 = vrcp.f32 %v3540_v47  ;;  %8999 = vmatmul.mubr.bf16.gmra.mrb[116].mxu1 %v3616_v8  ;;  %v3599_v59 = vmul.f32 %v10052_v60, %v12955_v38 }
 0x88d   : > { %v3884_v55 = vpop.permute.xlu0 %3883  ;;  %v3617_v11 = vpack.c.bf16 %v3598_v6, %v3597_v0 }
 0x88e   : > { %v10054_v41 = vpop.eup %10053  ;;  %9030 = vmatprep.mubr.msk.bf16.mxu0 %vm2142_vm2, %v3884_v55 }
 0x88f   : > { %v4087_v24 = vpop.permute.xlu1 %4086  ;;  %9002 = vmatprep.mubr.bf16.mxu1 %v3617_v11  ;;  %v3600_v50 = vmul.f32 %v10054_v41, %v12977_v28  ;;  %v10056_v43 = vpop.eup %10055 }
 0x890   : > { %9437 = vmatprep.subr.msk.bf16.mxu1 %vm2142_vm2, %v4087_v24  ;;  %v4134_v30 = vsel %vm2142_vm2, %v4087_v24, 0  ;;  %v3602_v31 = vmul.f32 %v10056_v43, %v12974_v2 }
 0x891   : > { %9057 = vmatpush3.bf16.xpose.msra.mxu1 %v4134_v30  ;;  %v3618_v20 = vpack.c.bf16 %v3600_v50, %v3599_v59  ;;  %v3888_v54 = vpop.permute.xlu0 %3887 }
 0x892   : > { %v10058_v47 = vpop.eup %10057 }
 0x893   : > { %v4059_v33 = vpop.permute.xlu1 %4058  ;;  %v3601_v14 = vmul.f32 %v10058_v47, %v12980_v26  ;;  %v10060_v49 = vpop.eup %10059 }
 0x894   : > { %9003 = vmatmul.mubr.bf16.gmra.mrb[120].mxu1 %v3618_v20  ;;  %v3603_v28 = vmul.f32 %v10060_v49, %v12964_v13 }
 0x895   : > { %v3619_v58 = vpack.c.bf16 %v3602_v31, %v3601_v14  ;;  %v3892_v2 = vpop.permute.xlu0 %3891 }
 0x896   : > { %v10062_v42 = vpop.eup %10061 }
 0x897   : > { %v3886_v38 = vpop.permute.xlu1 %3885  ;;  %9006 = vmatprep.mubr.bf16.mxu1 %v3619_v58  ;;  %v3604_v7 = vmul.f32 %v10062_v42, %v12983_v46 }
 0x898   : > { %9031 = vmatmul.mubr.msk.bf16.gmra.mrb[100].mxu0 %vm2142_vm2, %v3886_v38 }
 0x899   : > { %9034 = vmatprep.mubr.msk.bf16.mxu0 %vm2142_vm2, %v3888_v54  ;;  %v3620_v45 = vpack.c.bf16 %v3604_v7, %v3603_v28  ;;  %v4061_v8 = vpop.permute.xlu0 %4060  ;;  %v15959_v28 = vld [vmem:[#allocation65_spill] sm:$0xff] }
 0x89b   : > { %v3890_v26 = vpop.permute.xlu1 %3889 }
 0x89c   : > { %9007 = vmatmul.mubr.bf16.gmra.mrb[124].mxu1 %v3620_v45 }
 0x89d   : > { %9058 = vmatprep.mubr.msk.bf16.mxu1 %vm2142_vm2, %v4057_v18  ;;  %v4065_v0 = vpop.permute.xlu0 %4064 }
 0x89f   : > { %v3894_v13 = vpop.permute.xlu1 %3893 }
 0x8a0   : > { %9035 = vmatmul.mubr.msk.bf16.gmra.mrb[104].mxu0 %vm2142_vm2, %v3890_v26 }
 0x8a1   : > { %9038 = vmatprep.mubr.msk.bf16.mxu0 %vm2142_vm2, %v3892_v2  ;;  %v4069_v6 = vpop.permute.xlu0 %4068 }
 0x8a3   : > { %v4063_v46 = vpop.permute.xlu1 %4062 }
 0x8a4   : > { %9059 = vmatmul.mubr.msk.bf16.vlgmr.msra.gmra.mrb[128].mxu1 %vm2142_vm2, %v4059_v33 }
 0x8a5   : > { %9062 = vmatprep.mubr.msk.bf16.mxu1 %vm2142_vm2, %v4061_v8 }
 0x8a7   : > { %v4067_v18 = vpop.permute.xlu1 %4066 }
 0x8a8   : > { %9039 = vmatmul.mubr.msk.bf16.gmra.mrb[108].mxu0 %vm2142_vm2, %v3894_v13 }
 0x8ab   : > { %v4071_v60 = vpop.permute.xlu1 %4070 }
 0x8ac   : > { %9063 = vmatmul.mubr.msk.bf16.gmra.mrb[132].mxu1 %vm2142_vm2, %v4063_v46 }
 0x8ad   : > { %9066 = vmatprep.mubr.msk.bf16.mxu1 %vm2142_vm2, %v4065_v0 }
 0x8b4   : > { %9067 = vmatmul.mubr.msk.bf16.gmra.mrb[136].mxu1 %vm2142_vm2, %v4067_v18 }
 0x8b5   : > { %9070 = vmatprep.mubr.msk.bf16.mxu1 %vm2142_vm2, %v4069_v6 }
 0x8bc   : > { %9071 = vmatmul.mubr.msk.bf16.gmra.mrb[140].mxu1 %vm2142_vm2, %v4071_v60 }
 0x916   : > { %v9028_v55 = vpop.f32.mrb[96].mxu0 }
 0x917   : > { %v3993_v11 = vpop.f32.mrb[97].mxu0  ;;  %v13128_v43 = vadd.f32 %v9028_v55, %v15852_v36 }
 0x918   : > { %v13121_v41 = vadd.f32 %v3993_v11, %v15847_v48  ;;  %v9029_v24 = vpop.f32.mrb[98].mxu0 }
 0x919   : > { %v3996_v59 = vpop.f32.mrb[99].mxu0  ;;  %v13133_v30 = vadd.f32 %v9029_v24, %v15854_v29 }
 0x91a   : > { %v13124_v50 = vadd.f32 %v3996_v59, %v15849_v56  ;;  %4233 = vmax.xlane.f32.xlu0 %v13121_v41 }
 0x91c   : > { %4235 = vmax.xlane.f32.xlu1 %v13124_v50 }
 0x91e   : > { %4237 = vmax.xlane.f32.xlu0 %v13128_v43 }
 0x921   : > { %v13135_v20 = vpop.f32.mrb[112].mxu1 }
 0x922   : > { %15942 = vst [vmem:[#allocation110_spill] sm:$0xff] %v13135_v20  ;;  %v13137_v47 = vpop.f32.mrb[113].mxu1  ;;  %4239 = vmax.xlane.f32.xlu0 %v13133_v30 }
 0x923   : > { %15943 = vst [vmem:[#allocation111_spill] sm:$0xff] %v13137_v47  ;;  %v13140_v33 = vpop.f32.mrb[114].mxu1  ;;  %v15962_v47 = vld [vmem:[#allocation62_spill] sm:$0xff] }
 0x924   : > { %15944 = vst [vmem:[#allocation112_spill] sm:$0xff] %v13140_v33  ;;  %v13144_v31 = vpop.f32.mrb[115].mxu1  ;;  %v15963_v33 = vld [vmem:[#allocation67_spill] sm:$0xff] }
 0x925   : > { %15945 = vst [vmem:[#allocation113_spill] sm:$0xff] %v13144_v31 }
 0x95f   : > { %v13148_v58 = vpop.f32.mrb[116].mxu1 }
 0x960   : > { %15946 = vst [vmem:[#allocation114_spill] sm:$0xff] %v13148_v58  ;;  %v13150_v42 = vpop.f32.mrb[117].mxu1 }
 0x961   : > { %15947 = vst [vmem:[#allocation115_spill] sm:$0xff] %v13150_v42  ;;  %v13152_v38 = vpop.f32.mrb[118].mxu1 }
 0x962   : > { %15948 = vst [vmem:[#allocation116_spill] sm:$0xff] %v13152_v38  ;;  %v13156_v7 = vpop.f32.mrb[119].mxu1 }
 0x963   : > { %15949 = vst [vmem:[#allocation117_spill] sm:$0xff] %v13156_v7  ;;  %v15961_v7 = vld [vmem:[#allocation68_spill] sm:$0xff] }
 0x967   : > { %v13160_v45 = vpop.f32.mrb[120].mxu1 }
 0x968   : > { %15950 = vst [vmem:[#allocation118_spill] sm:$0xff] %v13160_v45  ;;  %v13162_v2 = vpop.f32.mrb[121].mxu1  ;;  %v15960_v45 = vld [vmem:[#allocation59_spill] sm:$0xff] }
 0x969   : > { %15951 = vst [vmem:[#allocation119_spill] sm:$0xff] %v13162_v2  ;;  %v13164_v26 = vpop.f32.mrb[122].mxu1 }
 0x96a   : > { %15952 = vst [vmem:[#allocation120_spill] sm:$0xff] %v13164_v26  ;;  %v13168_v13 = vpop.f32.mrb[123].mxu1 }
 0x96b   : > { %15953 = vst [vmem:[#allocation121_spill] sm:$0xff] %v13168_v13  ;;  %v9032_v0 = vpop.f32.mrb[100].mxu0 }
 0x96c   : > { %v4009_v18 = vpop.f32.mrb[101].mxu0  ;;  %v13184_v8 = vadd.f32 %v9032_v0, %v15875_v27 }
 0x96d   : > { %v13173_v6 = vadd.f32 %v4009_v18, %v15871_v39  ;;  %v9033_v60 = vpop.f32.mrb[102].mxu0  ;;  %v15958_v18 = vld [vmem:[#allocation60_spill] sm:$0xff] }
 0x96e   : > { %v4012_v55 = vpop.f32.mrb[103].mxu0 }
 0x96f   : > { %v13176_v11 = vadd.f32 %v4012_v55, %v15872_v23  ;;  %v13178_v24 = vpop.f32.mrb[124].mxu1  ;;  %4241 = vmax.xlane.f32.xlu0 %v13173_v6  ;;  %v13194_v55 = vadd.f32 %v9033_v60, %v15878_v9 }
 0x970   : > { %15954 = vst [vmem:[#allocation122_spill] sm:$0xff] %v13178_v24  ;;  %v13181_v59 = vpop.f32.mrb[125].mxu1 }
 0x971   : > { %15955 = vst [vmem:[#allocation123_spill] sm:$0xff] %v13181_v59  ;;  %v13186_v46 = vpop.f32.mrb[126].mxu1  ;;  %4243 = vmax.xlane.f32.xlu1 %v13176_v11 }
 0x972   : > { %15956 = vst [vmem:[#allocation124_spill] sm:$0xff] %v13186_v46  ;;  %v13191_v54 = vpop.f32.mrb[127].mxu1 }
 0x973   : > { %15957 = vst [vmem:[#allocation125_spill] sm:$0xff] %v13191_v54  ;;  %4245 = vmax.xlane.f32.xlu0 %v13184_v8  ;;  %v9036_v49 = vpop.f32.mrb[104].mxu0 }
 0x974   : > { %v4025_v0 = vpop.f32.mrb[105].mxu0  ;;  %v13212_v59 = vadd.f32 %v9036_v49, %v15959_v28 }
 0x975   : > { %v13200_v14 = vadd.f32 %v4025_v0, %v15879_v53  ;;  %4247 = vmax.xlane.f32.xlu1 %v13194_v55  ;;  %v9037_v2 = vpop.f32.mrb[106].mxu0 }
 0x976   : > { %v4028_v13 = vpop.f32.mrb[107].mxu0  ;;  %v13220_v26 = vadd.f32 %v9037_v2, %v15960_v45 }
 0x977   : > { %v13204_v24 = vadd.f32 %v4028_v13, %v15958_v18  ;;  %v13206_v46 = vpop.f32.mrb[128].mxu1  ;;  %4249 = vmax.xlane.f32.xlu0 %v13200_v14 }
 0x978   : > { %v13209_v60 = vpop.f32.mrb[129].mxu1 }
 0x979   : > { %v13214_v54 = vpop.f32.mrb[130].mxu1  ;;  %4251 = vmax.xlane.f32.xlu1 %v13204_v24 }
 0x97a   : > { %v13217_v0 = vpop.f32.mrb[131].mxu1 }
 0x97b   : > { %4253 = vmax.xlane.f32.xlu0 %v13212_v59  ;;  %v9040_v13 = vpop.f32.mrb[108].mxu0 }
 0x97c   : > { %v4041_v42 = vpop.f32.mrb[109].mxu0  ;;  %v13236_v21 = vadd.f32 %v9040_v13, %v15963_v33 }
 0x97d   : > { %v13224_v58 = vadd.f32 %v4041_v42, %v15961_v7  ;;  %4255 = vmax.xlane.f32.xlu1 %v13220_v26  ;;  %v9041_v49 = vpop.f32.mrb[110].mxu0 }
 0x97e   : > { %v4044_v38 = vpop.f32.mrb[111].mxu0  ;;  %v13244_v22 = vadd.f32 %v9041_v49, %v15964_v63 }
 0x97f   : > { %v13228_v31 = vadd.f32 %v4044_v38, %v15962_v47  ;;  %4257 = vmax.xlane.f32.xlu0 %v13224_v58  ;;  %v13231_v20 = vpop.f32.mrb[132].mxu1 }
 0x980   : > { %v13233_v2 = vpop.f32.mrb[133].mxu1 }
 0x981   : > { %4259 = vmax.xlane.f32.xlu1 %v13228_v31  ;;  %v13239_v42 = vpop.f32.mrb[134].mxu1 }
 0x982   : > { %v13241_v62 = vpop.f32.mrb[135].mxu1 }
 0x983   : > { %4261 = vmax.xlane.f32.xlu0 %v13236_v21 }
 0x985   : > { %4263 = vmax.xlane.f32.xlu1 %v13244_v22 }
 0x987   : > { %v13248_v38 = vpop.f32.mrb[136].mxu1 }
 0x988   : > { %v13250_v52 = vpop.f32.mrb[137].mxu1 }
 0x989   : > { %v13252_v19 = vpop.f32.mrb[138].mxu1 }
 0x98a   : > { %v13254_v13 = vpop.f32.mrb[139].mxu1 }
 0x98f   : > { %v13256_v3 = vpop.f32.mrb[140].mxu1 }
 0x990   : > { %v13258_v61 = vpop.f32.mrb[141].mxu1 }
 0x991   : > { %v13260_v16 = vpop.f32.mrb[142].mxu1 }
 0x992   : > { %v13262_v49 = vpop.f32.mrb[143].mxu1 }
 0x996   : > { %4539 = vrot.lane.b32.xlu1 %v15965_v57, %s10569_s6  ;;  %v15972_v57 = vld [vmem:[#allocation38_spill] sm:$0xff] }
 0x999   : > { %4537 = vrot.lane.b32.xlu0 %v15966_v10, %s10569_s6  ;;  %v15973_v10 = vld [vmem:[#allocation47_spill] sm:$0xff] }
 0x99a   : > { %4543 = vrot.lane.b32.xlu1 %v15967_v17, %s10569_s6  ;;  %v15974_v17 = vld [vmem:[#allocation44_spill] sm:$0xff] }
 0x99d   : > { %4541 = vrot.lane.b32.xlu0 %v15968_v4, %s10569_s6  ;;  %v15975_v4 = vld [vmem:[#allocation49_spill] sm:$0xff] }
 0x99e   : > { %4551 = vrot.lane.b32.xlu1 %v15969_v34, %s10569_s6  ;;  %v15976_v34 = vld [vmem:[#allocation46_spill] sm:$0xff] }
 0x9a1   : > { %4545 = vrot.lane.b32.xlu0 %v15970_v25, %s10569_s6  ;;  %v15977_v25 = vld [vmem:[#allocation21_spill] sm:$0xff] }
 0x9a2   : > { %4660 = vrot.lane.b32.xlu1 %v15971_v51, %s10569_s6  ;;  %v15978_v51 = vld [vmem:[#allocation17_spill] sm:$0xff] }
 0x9a5   : > { %4547 = vrot.lane.b32.xlu0 %v15972_v57, %s10569_s6  ;;  %v15979_v57 = vld [vmem:[#allocation52_spill] sm:$0xff] }
 0x9a6   : > { %4664 = vrot.lane.b32.xlu1 %v15973_v10, %s10569_s6  ;;  %v15980_v10 = vld [vmem:[#allocation48_spill] sm:$0xff] }
 0x9a9   : > { %4549 = vrot.lane.b32.xlu0 %v15974_v17, %s10569_s6  ;;  %v15981_v17 = vld [vmem:[#allocation19_spill] sm:$0xff] }
 0x9aa   : > { %4668 = vrot.lane.b32.xlu1 %v15975_v4, %s10569_s6  ;;  %v15982_v4 = vld [vmem:[#allocation15_spill] sm:$0xff] }
 0x9ad   : > { %4658 = vrot.lane.b32.xlu0 %v15976_v34, %s10569_s6  ;;  %v15983_v34 = vld [vmem:[#allocation32_spill] sm:$0xff] }
 0x9ae   : > { %4799 = vrot.lane.b32.xlu1 %v15977_v25, %s10570_s21  ;;  %v15984_v25 = vld [vmem:[#allocation50_spill] sm:$0xff] }
 0x9b1   : > { %4795 = vrot.lane.b32.xlu0 %v15978_v51, %s10570_s21  ;;  %v15985_v51 = vld [vmem:[#allocation23_spill] sm:$0xff] }
 0x9b2   : > { %4670 = vrot.lane.b32.xlu1 %v15979_v57, %s10569_s6  ;;  %v15986_v57 = vld [vmem:[#allocation51_spill] sm:$0xff] }
 0x9b5   : > { %4662 = vrot.lane.b32.xlu0 %v15980_v10, %s10569_s6  ;;  %v15987_v10 = vld [vmem:[#allocation30_spill] sm:$0xff] }
 0x9b6   : > { %4801 = vrot.lane.b32.xlu1 %v15981_v17, %s10570_s21  ;;  %v15988_v17 = vld [vmem:[#allocation25_spill] sm:$0xff] }
 0x9b9   : > { %4797 = vrot.lane.b32.xlu0 %v15982_v4, %s10570_s21  ;;  %v15989_v4 = vld [vmem:[#allocation36_spill] sm:$0xff] }
 0x9ba   : > { %4972 = vrot.lane.b32.xlu1 %v15983_v34, %s10570_s21  ;;  %v15990_v34 = vld [vmem:[#allocation29_spill] sm:$0xff] }
 0x9bd   : > { %4666 = vrot.lane.b32.xlu0 %v15984_v25, %s10569_s6  ;;  %v15991_v25 = vld [vmem:[#allocation34_spill] sm:$0xff] }
 0x9be   : > { %4805 = vrot.lane.b32.xlu1 %v15985_v51, %s10570_s21  ;;  %v15992_v51 = vld [vmem:[#allocation27_spill] sm:$0xff] }
 0x9c1   : > { %4672 = vrot.lane.b32.xlu0 %v15986_v57, %s10569_s6 }
 0x9c2   : > { %4974 = vrot.lane.b32.xlu1 %v15987_v10, %s10570_s21  ;;  %v4234_v10 = vpop.xlane.xlu0 %4233 }
 0x9c5   : > { %4803 = vrot.lane.b32.xlu0 %v15988_v17, %s10570_s21  ;;  %v4236_v17 = vpop.xlane.xlu1 %4235 }
 0x9c6   : > { %4976 = vrot.lane.b32.xlu1 %v15989_v4, %s10570_s21  ;;  %v4298_v4 = vsub.f32 %v13124_v50, %v4236_v17 }
 0x9c9   : > { %4807 = vrot.lane.b32.xlu0 %v15990_v34, %s10570_s21  ;;  %v4331_v34 = vmul.f32 1.442695, %v4298_v4 }
 0x9ca   : > { %4978 = vrot.lane.b32.xlu1 %v15991_v25, %s10570_s21  ;;  %v4297_v25 = vsub.f32 %v13121_v41, %v4234_v10 }
 0x9cd   : > { %4809 = vrot.lane.b32.xlu0 %v15992_v51, %s10570_s21 }
 0x9ce   : > { %4781 = vrot.lane.b32.xlu1 %v15908_v1, %s10570_s21  ;;  %v4329_v1 = vmul.f32 1.442695, %v4297_v25 }
 0x9d0   : > { %10063 = vpow2.f32 %v4329_v1 }
 0x9d1   : > { %4779 = vrot.lane.b32.xlu0 %v15907_v37, %s10570_s21  ;;  %v4238_v37 = vpop.xlane.xlu0 %4237  ;;  %10065 = vpow2.f32 %v4331_v34 }
 0x9d2   : > { %4980 = vrot.lane.b32.xlu1 %v15909_v40, %s10570_s21  ;;  %v4299_v40 = vsub.f32 %v13128_v43, %v4238_v37 }
 0x9d5   : > { %4785 = vrot.lane.b32.xlu0 %v15916_v12, %s10570_s21  ;;  %v4240_v51 = vpop.xlane.xlu0 %4239  ;;  %v4333_v12 = vmul.f32 1.442695, %v4299_v40 }
 0x9d6   : > { %4783 = vrot.lane.b32.xlu1 %v15913_v32, %s10570_s21  ;;  %v4300_v32 = vsub.f32 %v13133_v30, %v4240_v51 }
 0x9d7   : > { %10067 = vpow2.f32 %v4333_v12 }
 0x9da   : > { %4982 = vrot.lane.b32.xlu1 %v11842_v5, %s10570_s21  ;;  %v13336_v57 = vpop.eup %10063  ;;  %v4335_v5 = vmul.f32 1.442695, %v4300_v32 }
 0x9db   : > { %v13339_v41 = vpop.eup %10065 }
 0x9dc   : > { %10069 = vpow2.f32 %v4335_v5 }
 0x9e1   : > { %v13342_v10 = vpop.eup %10067 }
 0x9e6   : > { %v13347_v1 = vpop.eup %10069 }
 0x9f4   : > { %4393 = vadd.xlane.f32.xlu0 %v13336_v57 }
 0x9f8   : > { %4395 = vadd.xlane.f32.xlu0 %v13339_v41 }
 0x9fc   : > { %v4242_v50 = vpop.xlane.xlu0 %4241 }
 0x9fd   : > { %v4301_v30 = vsub.f32 %v13173_v6, %v4242_v50 }
 0x9fe   : > { %v4244_v43 = vpop.xlane.xlu1 %4243  ;;  %4397 = vadd.xlane.f32.xlu1 %v13342_v10 }
 0x9ff   : > { %v4302_v25 = vsub.f32 %v13176_v11, %v4244_v43  ;;  %v4337_v51 = vmul.f32 1.442695, %v4301_v30 }
 0xa00   : > { %v4246_v17 = vpop.xlane.xlu0 %4245 }
 0xa01   : > { %v4339_v4 = vmul.f32 1.442695, %v4302_v25  ;;  %v4303_v37 = vsub.f32 %v13184_v8, %v4246_v17 }
 0xa02   : > { %v4248_v34 = vpop.xlane.xlu1 %4247  ;;  %4399 = vadd.xlane.f32.xlu1 %v13347_v1 }
 0xa03   : > { %10071 = vpow2.f32 %v4339_v4  ;;  %v4341_v40 = vmul.f32 1.442695, %v4303_v37  ;;  %v4304_v32 = vsub.f32 %v13194_v55, %v4248_v34 }
 0xa04   : > { %v4250_v12 = vpop.xlane.xlu0 %4249 }
 0xa05   : > { %10073 = vpow2.f32 %v4341_v40  ;;  %v4305_v11 = vsub.f32 %v13200_v14, %v4250_v12  ;;  %v4343_v43 = vmul.f32 1.442695, %v4304_v32 }
 0xa06   : > { %v4252_v5 = vpop.xlane.xlu1 %4251  ;;  %10075 = vpow2.f32 %v4337_v51 }
 0xa07   : > { %v4345_v6 = vmul.f32 1.442695, %v4305_v11  ;;  %v4306_v40 = vsub.f32 %v13204_v24, %v4252_v5 }
 0xa08   : > { %v4254_v50 = vpop.xlane.xlu0 %4253 }
 0xa09   : > { %10077 = vpow2.f32 %v4345_v6  ;;  %v4307_v8 = vsub.f32 %v13212_v59, %v4254_v50  ;;  %v4347_v11 = vmul.f32 1.442695, %v4306_v40 }
 0xa0a   : > { %v4256_v25 = vpop.xlane.xlu1 %4255  ;;  %10079 = vpow2.f32 %v4343_v43 }
 0xa0b   : > { %v4349_v17 = vmul.f32 1.442695, %v4307_v8  ;;  %v4308_v30 = vsub.f32 %v13220_v26, %v4256_v25 }
 0xa0c   : > { %v4258_v35 = vpop.xlane.xlu0 %4257 }
 0xa0d   : > { %v13354_v4 = vpop.eup %10071  ;;  %v4309_v55 = vsub.f32 %v13224_v58, %v4258_v35  ;;  %10081 = vpow2.f32 %v4349_v17  ;;  %v4351_v51 = vmul.f32 1.442695, %v4308_v30 }
 0xa0e   : > { %v4260_v37 = vpop.xlane.xlu1 %4259  ;;  %4403 = vadd.xlane.f32.xlu1 %v13354_v4 }
 0xa0f   : > { %v13359_v14 = vpop.eup %10073  ;;  %v4353_v34 = vmul.f32 1.442695, %v4309_v55  ;;  %v4310_v43 = vsub.f32 %v13228_v31, %v4260_v37 }
 0xa10   : > { %4405 = vadd.xlane.f32.xlu0 %v13359_v14  ;;  %v4262_v59 = vpop.xlane.xlu0 %4261  ;;  %v13363_v12 = vpop.eup %10075 }
 0xa11   : > { %10083 = vpow2.f32 %v4353_v34  ;;  %v4311_v6 = vsub.f32 %v13236_v21, %v4262_v59  ;;  %v4355_v55 = vmul.f32 1.442695, %v4310_v43 }
 0xa12   : > { %v4264_v32 = vpop.xlane.xlu1 %4263  ;;  %10085 = vpow2.f32 %v4351_v51 }
 0xa13   : > { %v13365_v26 = vpop.eup %10077  ;;  %v4312_v35 = vsub.f32 %v13244_v22, %v4264_v32  ;;  %v4357_v8 = vmul.f32 1.442695, %v4311_v6  ;;  %v13391_v32 = vadd.f32 %v13214_v54, %v15854_v29 }
 0xa14   : > { %4401 = vadd.xlane.f32.xlu0 %v13363_v12  ;;  %4409 = vadd.xlane.f32.xlu1 %v13365_v26  ;;  %v4538_v58 = vpop.permute.xlu0 %4537  ;;  %v13371_v5 = vpop.eup %10079 }
 0xa15   : > { %v4359_v50 = vmul.f32 1.442695, %v4312_v35  ;;  %9074 = vmatprep.subr.bf16.mxu0 %v4538_v58 }
 0xa16   : > { %v4540_v24 = vpop.permute.xlu1 %4539  ;;  %9075 = vmatpush3.bf16.msra.mxu0 %v4538_v58 }
 0xa17   : > { %10087 = vpow2.f32 %v4359_v50  ;;  %9076 = vmatprep.subr.bf16.mxu0 %v4540_v24  ;;  %v13375_v25 = vpop.eup %10081 }
 0xa18   : > { %4407 = vadd.xlane.f32.xlu0 %v13371_v5  ;;  %v4542_v22 = vpop.permute.xlu0 %4541  ;;  %10089 = vpow2.f32 %v4347_v11  ;;  %v13399_v11 = vadd.f32 %v13217_v0, %v15849_v56 }
 0xa19   : > { %10091 = vpow2.f32 %v4357_v8  ;;  %v13419_v8 = vadd.f32 %v13241_v62, %v15872_v23 }
 0xa1a   : > { %v4544_v17 = vpop.permute.xlu1 %4543  ;;  %9077 = vmatpush3.bf16.msra.mxu0 %v4540_v24  ;;  %10093 = vpow2.f32 %v4355_v55  ;;  %v13407_v24 = vadd.f32 %v13239_v42, %v15878_v9  ;;  %v13445_v55 = vadd.f32 %v13252_v19, %v15960_v45  ;;  %v13460_v19 = vadd.f32 %v13250_v52, %v15879_v53 }
 0xa1b   : > { %v13377_v21 = vpop.eup %10083  ;;  %9078 = vmatprep.subr.bf16.mxu0 %v4542_v22 }
 0xa1c   : > { %4413 = vadd.xlane.f32.xlu0 %v13375_v25  ;;  %4417 = vadd.xlane.f32.xlu1 %v13377_v21  ;;  %v4546_v30 = vpop.permute.xlu0 %4545  ;;  %v13381_v59 = vpop.eup %10085 }
 0xa1e   : > { %v4552_v34 = vpop.permute.xlu1 %4551  ;;  %9079 = vmatpush3.bf16.msra.mxu0 %v4542_v22  ;;  %v13414_v22 = vadd.f32 %v13206_v46, %v15852_v36  ;;  %v13431_v46 = vadd.f32 %v13248_v38, %v15959_v28 }
 0xa1f   : > { %9080 = vmatprep.subr.bf16.mxu0 %v4544_v17 }
 0xa20   : > { %4415 = vadd.xlane.f32.xlu0 %v13381_v59  ;;  %v4548_v31 = vpop.permute.xlu0 %4547 }
 0xa21   : > { %v13384_v37 = vpop.eup %10087 }
 0xa22   : > { %4423 = vadd.xlane.f32.xlu1 %v13384_v37  ;;  %9081 = vmatpush3.bf16.msra.mxu0 %v4544_v17  ;;  %v13387_v40 = vpop.eup %10089  ;;  %v4661_v51 = vpop.permute.xlu1 %4660  ;;  %v13424_v17 = vadd.f32 %v13209_v60, %v15847_v48  ;;  %v13440_v60 = vadd.f32 %v13231_v20, %v15875_v27  ;;  %v13455_v20 = vadd.f32 %v13254_v13, %v15958_v18 }
 0xa23   : > { %9082 = vmatprep.subr.bf16.mxu0 %v4546_v30  ;;  %v13395_v58 = vpop.eup %10091  ;;  %v13472_v13 = vadd.f32 %v13258_v61, %v15961_v7 }
 0xa24   : > { %4411 = vadd.xlane.f32.xlu0 %v13387_v40  ;;  %v4550_v35 = vpop.permute.xlu0 %4549  ;;  %v13403_v54 = vpop.eup %10093 }
 0xa26   : > { %4271 = vmax.xlane.f32.xlu1 %v13391_v32  ;;  %9083 = vmatpush3.bf16.msra.mxu0 %v4546_v30  ;;  %v4665_v50 = vpop.permute.xlu1 %4664 }
 0xa27   : > { %9084 = vmatprep.subr.bf16.mxu0 %v4548_v31 }
 0xa28   : > { %4421 = vadd.xlane.f32.xlu0 %v13395_v58  ;;  %v4659_v6 = vpop.permute.xlu0 %4658 }
 0xa29   : > { %9106 = vmatprep.subr.bf16.mxu1 %v4659_v6 }
 0xa2a   : > { %4267 = vmax.xlane.f32.xlu1 %v13399_v11  ;;  %9085 = vmatpush3.bf16.msra.mxu0 %v4548_v31  ;;  %v4669_v43 = vpop.permute.xlu1 %4668 }
 0xa2b   : > { %9107 = vmatpush3.bf16.msra.mxu1 %v4659_v6  ;;  %9086 = vmatprep.subr.bf16.mxu0 %v4550_v35 }
 0xa2c   : > { %9108 = vmatprep.subr.bf16.mxu1 %v4661_v51  ;;  %4419 = vadd.xlane.f32.xlu0 %v13403_v54  ;;  %v13410_v0 = vpop.permute.xlu0 %4795 }
 0xa2e   : > { %4279 = vmax.xlane.f32.xlu1 %v13407_v24  ;;  %9087 = vmatpush3.bf16.msra.mxu0 %v4550_v35  ;;  %v13436_v30 = vpop.permute.xlu1 %4799 }
 0xa2f   : > { %9109 = vmatpush3.bf16.msra.mxu1 %v4661_v51  ;;  %9088 = vmatprep.subr.bf16.mxu0 %v4552_v34 }
 0xa30   : > { %4269 = vmax.xlane.f32.xlu0 %v13414_v22  ;;  %v4663_v42 = vpop.permute.xlu0 %4662 }
 0xa31   : > { %9110 = vmatprep.subr.bf16.mxu1 %v4663_v42 }
 0xa32   : > { %4275 = vmax.xlane.f32.xlu1 %v13419_v8  ;;  %9089 = vmatpush3.bf16.msra.mxu0 %v4552_v34  ;;  %v13450_v34 = vadd.f32 %v13233_v2, %v15871_v39  ;;  %v4671_v31 = vpop.permute.xlu1 %4670  ;;  %v13465_v2 = vadd.f32 %v13256_v3, %v15963_v33 }
 0xa33   : > { %9111 = vmatpush3.bf16.msra.mxu1 %v4663_v42  ;;  %9438 = vmatprep.subr.msk.bf16.mxu0 %vm2142_vm2, %v13410_v0 }
 0xa34   : > { %9112 = vmatprep.subr.bf16.mxu1 %v4665_v50  ;;  %4265 = vmax.xlane.f32.xlu0 %v13424_v17  ;;  %v13434_v62 = vpop.permute.xlu0 %4797 }
 0xa36   : > { %4285 = vmax.xlane.f32.xlu1 %v13431_v46  ;;  %v13468_v51 = vpop.permute.xlu1 %4801 }
 0xa37   : > { %9113 = vmatpush3.bf16.msra.mxu1 %v4665_v50 }
 0xa38   : > { %4277 = vmax.xlane.f32.xlu0 %v13440_v60  ;;  %v4667_v38 = vpop.permute.xlu0 %4666 }
 0xa39   : > { %9114 = vmatprep.subr.bf16.mxu1 %v4667_v38 }
 0xa3a   : > { %4287 = vmax.xlane.f32.xlu1 %v13445_v55  ;;  %v13476_v35 = vpop.permute.xlu1 %4972 }
 0xa3b   : > { %9115 = vmatpush3.bf16.msra.mxu1 %v4667_v38 }
 0xa3c   : > { %9116 = vmatprep.subr.bf16.mxu1 %v4669_v43  ;;  %4273 = vmax.xlane.f32.xlu0 %v13450_v34  ;;  %v4673_v52 = vpop.permute.xlu0 %4672 }
 0xa3e   : > { %4283 = vmax.xlane.f32.xlu1 %v13455_v20  ;;  %v13484_v61 = vpop.permute.xlu1 %4805 }
 0xa3f   : > { %9117 = vmatpush3.bf16.msra.mxu1 %v4669_v43 }
 0xa40   : > { %9118 = vmatprep.subr.bf16.mxu1 %v4671_v31  ;;  %4281 = vmax.xlane.f32.xlu0 %v13460_v19  ;;  %v13488_v6 = vpop.permute.xlu0 %4803 }
 0xa42   : > { %4293 = vmax.xlane.f32.xlu1 %v13465_v2  ;;  %v13486_v3 = vpop.permute.xlu1 %4974 }
 0xa43   : > { %9119 = vmatpush3.bf16.msra.mxu1 %v4671_v31 }
 0xa44   : > { %9120 = vmatprep.subr.bf16.mxu1 %v4673_v52  ;;  %4289 = vmax.xlane.f32.xlu0 %v13472_v13  ;;  %v13492_v43 = vpop.permute.xlu0 %4807 }
 0xa46   : > { %v13490_v50 = vpop.permute.xlu1 %4976 }
 0xa47   : > { %9121 = vmatpush3.bf16.msra.mxu1 %v4673_v52  ;;  %v13509_v52 = vadd.f32 %v13262_v49, %v15962_v47 }
 0xa48   : > { %9446 = vmatprep.subr.msk.bf16.mxu1 %vm2142_vm2, %v13476_v35  ;;  %v13496_v38 = vpop.permute.xlu0 %4809 }
 0xa4a   : > { %v13494_v42 = vpop.permute.xlu1 %4978 }
 0xa4e   : > { %v13502_v31 = vpop.permute.xlu1 %4781 }
 0xa52   : > { %v13511_v33 = vpop.permute.xlu1 %4980 }
 0xa53   : > { %4789 = vrot.lane.b32.xlu1 %v15918_v15, %s10570_s21  ;;  %v13500_v15 = vadd.f32 %v13260_v16, %v15964_v63 }
 0xa56   : > { %v13516_v28 = vpop.permute.xlu1 %4783 }
 0xa5a   : > { %4787 = vrot.lane.b32.xlu0 %v15915_v44, %s10570_s21  ;;  %v13504_v44 = vpop.permute.xlu0 %4779  ;;  %v13518_v45 = vpop.permute.xlu1 %4982 }
 0xa5e   : > { %v13514_v7 = vpop.permute.xlu0 %4785 }
 0xa77   : > { %4295 = vmax.xlane.f32.xlu1 %v13500_v15 }
 0xa7b   : > { %4291 = vmax.xlane.f32.xlu1 %v13509_v52 }
 0xa81   : > { %v4394_v16 = vpop.xlane.xlu0 %4393 }
 0xa82   : > { %10095 = vrcp.f32 %v4394_v16 }
 0xa85   : > { %v4396_v63 = vpop.xlane.xlu0 %4395 }
 0xa86   : > { %10097 = vrcp.f32 %v4396_v63 }
 0xa8b   : > { %v4398_v53 = vpop.xlane.xlu1 %4397 }
 0xa8c   : > { %v10096_v18 = vpop.eup %10095  ;;  %10099 = vrcp.f32 %v4398_v53  ;;  %v4836_v53 = vsel %vm2142_vm2, %v13410_v0, 0 }
 0xa8d   : > { %v4489_v47 = vmul.f32 %v10096_v18, %v13336_v57 }
 0xa8f   : > { %v4400_v27 = vpop.xlane.xlu1 %4399 }
 0xa90   : > { %v10098_v49 = vpop.eup %10097  ;;  %10101 = vrcp.f32 %v4400_v27 }
 0xa91   : > { %v4490_v9 = vmul.f32 %v10098_v49, %v13339_v41 }
 0xa93   : > { %v4521_v39 = vpack.c.bf16 %v4490_v9, %v4489_v47 }
 0xa95   : > { %9090 = vmatprep.mubr.bf16.mxu0 %v4521_v39 }
 0xa96   : > { %v10100_v23 = vpop.eup %10099 }
 0xa97   : > { %v4491_v16 = vmul.f32 %v10100_v23, %v13342_v10 }
 0xa9a   : > { %v10102_v29 = vpop.eup %10101 }
 0xa9b   : > { %v4492_v63 = vmul.f32 %v10102_v29, %v13347_v1  ;;  %v4404_v48 = vpop.xlane.xlu1 %4403  ;;  %v4839_v29 = vsel %vm2142_vm2, %v13434_v62, 0  ;;  %v4842_v1 = vsel %vm2142_vm2, %v13436_v30, 0 }
 0xa9c   : > { %10103 = vrcp.f32 %v4404_v48 }
 0xa9d   : > { %v4406_v36 = vpop.xlane.xlu0 %4405  ;;  %v4522_v56 = vpack.c.bf16 %v4492_v63, %v4491_v16 }
 0xa9f   : > { %9091 = vmatmul.mubr.bf16.vlgmr.msra.gmra.mrb[112].mxu0 %v4522_v56 }
 0xaa0   : > { %9139 = vmatpush3.bf16.xpose.msra.mxu0 %v4836_v53 }
 0xaa1   : > { %9439 = vmatprep.subr.msk.bf16.mxu0 %vm2142_vm2, %v13434_v62  ;;  %v4402_v9 = vpop.xlane.xlu0 %4401  ;;  %v4410_v23 = vpop.xlane.xlu1 %4409 }
 0xaa2   : > { %10105 = vrcp.f32 %v4402_v9  ;;  %v4845_v9 = vsel %vm2142_vm2, %v13468_v51, 0 }
 0xaa3   : > { %10107 = vrcp.f32 %v4406_v36 }
 0xaa5   : > { %v4408_v39 = vpop.xlane.xlu0 %4407 }
 0xaa6   : > { %10109 = vrcp.f32 %v4408_v39  ;;  %v10104_v27 = vpop.eup %10103 }
 0xaa7   : > { %v4494_v36 = vmul.f32 %v10104_v27, %v13354_v4 }
 0xaa8   : > { %9141 = vmatpush3.bf16.xpose.msra.mxu0 %v4839_v29 }
 0xaa9   : > { %9440 = vmatprep.subr.msk.bf16.mxu0 %vm2142_vm2, %v13436_v30  ;;  %v4414_v56 = vpop.xlane.xlu0 %4413  ;;  %v4418_v57 = vpop.xlane.xlu1 %4417 }
 0xaac   : > { %v10106_v48 = vpop.eup %10105 }
 0xaad   : > { %v4416_v47 = vpop.xlane.xlu0 %4415  ;;  %v10108_v18 = vpop.eup %10107  ;;  %v4493_v41 = vmul.f32 %v10106_v48, %v13363_v12 }
 0xaae   : > { %10111 = vrcp.f32 %v4416_v47  ;;  %v4495_v16 = vmul.f32 %v10108_v18, %v13359_v14 }
 0xaaf   : > { %v4424_v10 = vpop.xlane.xlu1 %4423  ;;  %10113 = vrcp.f32 %v4410_v23  ;;  %v4523_v62 = vpack.c.bf16 %v4494_v36, %v4493_v41  ;;  %v4848_v41 = vsel %vm2142_vm2, %v13488_v6, 0 }
 0xab0   : > { %v10110_v0 = vpop.eup %10109  ;;  %9143 = vmatpush3.bf16.xpose.msra.mxu0 %v4842_v1  ;;  %10115 = vrcp.f32 %v4414_v56 }
 0xab1   : > { %9441 = vmatprep.subr.msk.bf16.mxu0 %vm2142_vm2, %v13468_v51  ;;  %v4412_v49 = vpop.xlane.xlu0 %4411  ;;  %v4496_v12 = vmul.f32 %v10110_v0, %v13371_v5  ;;  %9094 = vmatprep.mubr.bf16.mxu0 %v4523_v62 }
 0xab2   : > { %10117 = vrcp.f32 %v4412_v49 }
 0xab3   : > { %v4272_v4 = vpop.xlane.xlu1 %4271  ;;  %v4524_v63 = vpack.c.bf16 %v4496_v12, %v4495_v16 }
 0xab5   : > { %9095 = vmatmul.mubr.bf16.gmra.mrb[116].mxu0 %v4524_v63  ;;  %v4422_v53 = vpop.xlane.xlu0 %4421 }
 0xab6   : > { %10119 = vrcp.f32 %v4422_v53 }
 0xab7   : > { %v4268_v30 = vpop.xlane.xlu1 %4267  ;;  %10121 = vrcp.f32 %v4418_v57 }
 0xab8   : > { %v4314_v39 = vsub.f32 %v13399_v11, %v4268_v30  ;;  %9145 = vmatpush3.bf16.xpose.msra.mxu0 %v4845_v9  ;;  %v10112_v23 = vpop.eup %10111  ;;  %10123 = vrcp.f32 %v4424_v10 }
 0xab9   : > { %9442 = vmatprep.subr.msk.bf16.mxu0 %vm2142_vm2, %v13488_v6  ;;  %v4420_v14 = vpop.xlane.xlu0 %4419  ;;  %v10114_v5 = vpop.eup %10113  ;;  %v4500_v48 = vmul.f32 %v10112_v23, %v13381_v59 }
 0xaba   : > { %v4363_v29 = vmul.f32 1.442695, %v4314_v39  ;;  %10125 = vrcp.f32 %v4420_v14  ;;  %v10116_v56 = vpop.eup %10115  ;;  %v4497_v51 = vmul.f32 %v10114_v5, %v13365_v26  ;;  %v4857_v14 = vsel %vm2142_vm2, %v13496_v38, 0 }
 0xabb   : > { %v4499_v18 = vmul.f32 %v10116_v56, %v13375_v25 }
 0xabc   : > { %v10118_v27 = vpop.eup %10117  ;;  %10127 = vpow2.f32 %v4363_v29  ;;  %v15993_v29 = vld [vmem:[#allocation43_spill] sm:$0xff] }
 0xabd   : > { %v4270_v47 = vpop.xlane.xlu0 %4269  ;;  %v4498_v11 = vmul.f32 %v10118_v27, %v13387_v40  ;;  %v4526_v1 = vpack.c.bf16 %v4500_v48, %v4499_v18  ;;  %v4316_v40 = vsub.f32 %v13391_v32, %v4272_v4  ;;  %v4851_v32 = vsel %vm2142_vm2, %v13484_v61, 0  ;;  %v15994_v48 = vld [vmem:[#allocation28_spill] sm:$0xff] }
 0xabe   : > { %v4315_v57 = vsub.f32 %v13414_v22, %v4270_v47 }
 0xabf   : > { %v4525_v36 = vpack.c.bf16 %v4498_v11, %v4497_v51  ;;  %v4367_v53 = vmul.f32 1.442695, %v4316_v40 }
 0xac0   : > { %v4365_v10 = vmul.f32 1.442695, %v4315_v57  ;;  %9147 = vmatpush3.bf16.xpose.msra.mxu0 %v4848_v41  ;;  %v10120_v0 = vpop.eup %10119 }
 0xac1   : > { %9443 = vmatprep.subr.msk.bf16.mxu0 %vm2142_vm2, %v13484_v61  ;;  %9098 = vmatprep.mubr.bf16.mxu0 %v4525_v36  ;;  %v4266_v59 = vpop.xlane.xlu0 %4265  ;;  %v10122_v26 = vpop.eup %10121  ;;  %v4503_v49 = vmul.f32 %v10120_v0, %v13395_v58 }
 0xac2   : > { %10129 = vpow2.f32 %v4365_v10  ;;  %v4313_v22 = vsub.f32 %v13424_v17, %v4266_v59  ;;  %9099 = vmatmul.mubr.bf16.gmra.mrb[120].mxu0 %v4526_v1  ;;  %v10124_v25 = vpop.eup %10123  ;;  %v4501_v16 = vmul.f32 %v10122_v26, %v13377_v21  ;;  %v4280_v21 = vpop.xlane.xlu1 %4279 }
 0xac3   : > { %v4504_v30 = vmul.f32 %v10124_v25, %v13384_v37 }
 0xac4   : > { %v10126_v62 = vpop.eup %10125  ;;  %v4361_v6 = vmul.f32 1.442695, %v4313_v22 }
 0xac5   : > { %v4502_v12 = vmul.f32 %v10126_v62, %v13403_v54  ;;  %v4528_v4 = vpack.c.bf16 %v4504_v30, %v4503_v49  ;;  %v4278_v37 = vpop.xlane.xlu0 %4277  ;;  %v4854_v54 = vsel %vm2142_vm2, %v13492_v43, 0 }
 0xac6   : > { %v13559_v63 = vpop.eup %10127  ;;  %10131 = vpow2.f32 %v4361_v6  ;;  %v4276_v9 = vpop.xlane.xlu1 %4275  ;;  %v4319_v51 = vsub.f32 %v13440_v60, %v4278_v37  ;;  %v15996_v37 = vld [vmem:[#allocation26_spill] sm:$0xff] }
 0xac7   : > { %4427 = vadd.xlane.f32.xlu0 %v13559_v63  ;;  %v4527_v17 = vpack.c.bf16 %v4502_v12, %v4501_v16  ;;  %10133 = vpow2.f32 %v4367_v53 }
 0xac8   : > { %9149 = vmatpush3.bf16.xpose.msra.mxu0 %v4851_v32  ;;  %v4373_v11 = vmul.f32 1.442695, %v4319_v51 }
 0xac9   : > { %9444 = vmatprep.subr.msk.bf16.mxu0 %vm2142_vm2, %v13492_v43  ;;  %9102 = vmatprep.mubr.bf16.mxu0 %v4527_v17 }
 0xaca   : > { %9103 = vmatmul.mubr.bf16.gmra.mrb[124].mxu0 %v4528_v4  ;;  %v4286_v23 = vpop.xlane.xlu1 %4285  ;;  %10135 = vpow2.f32 %v4373_v11 }
 0xacb   : > { %9154 = vmatprep.mubr.msk.bf16.mxu0 %vm2142_vm2, %v13504_v44  ;;  %v4274_v44 = vpop.xlane.xlu0 %4273  ;;  %v4323_v36 = vsub.f32 %v13431_v46, %v4286_v23  ;;  %v16000_v23 = vld [vmem:[#allocation9_spill] sm:$0xff] }
 0xacc   : > { %v13569_v58 = vpop.eup %10129 }
 0xacd   : > { %4429 = vadd.xlane.f32.xlu1 %v13569_v58  ;;  %v4381_v10 = vmul.f32 1.442695, %v4323_v36 }
 0xace   : > { %v4288_v5 = vpop.xlane.xlu1 %4287 }
 0xacf   : > { %v4282_v43 = vpop.xlane.xlu0 %4281 }
 0xad0   : > { %v13574_v61 = vpop.eup %10131  ;;  %9151 = vmatpush3.bf16.xpose.msra.mxu0 %v4854_v54  ;;  %v4321_v0 = vsub.f32 %v13460_v19, %v4282_v43  ;;  %v15997_v54 = vld [vmem:[#allocation6_spill] sm:$0xff]  ;;  %v16002_v43 = vld [vmem:[#allocation11_spill] sm:$0xff] }
 0xad1   : > { %9445 = vmatprep.subr.msk.bf16.mxu0 %vm2142_vm2, %v13496_v38  ;;  %4425 = vadd.xlane.f32.xlu1 %v13574_v61  ;;  %v13579_v39 = vpop.eup %10133 }
 0xad2   : > { %v4284_v27 = vpop.xlane.xlu1 %4283  ;;  %v4377_v46 = vmul.f32 1.442695, %v4321_v0 }
 0xad3   : > { %v4290_v56 = vpop.xlane.xlu0 %4289  ;;  %v4322_v60 = vsub.f32 %v13455_v20, %v4284_v27 }
 0xad4   : > { %v13602_v1 = vpop.eup %10135  ;;  %v4325_v19 = vsub.f32 %v13472_v13, %v4290_v56 }
 0xad5   : > { %4431 = vadd.xlane.f32.xlu1 %v13579_v39 }
 0xad6   : > { %v4294_v38 = vpop.xlane.xlu1 %4293  ;;  %v4385_v62 = vmul.f32 1.442695, %v4325_v19 }
 0xad7   : > { %v4788_v47 = vpop.permute.xlu0 %4787  ;;  %v4327_v59 = vsub.f32 %v13465_v2, %v4294_v38 }
 0xad8   : > { %9153 = vmatpush3.bf16.xpose.msra.mxu0 %v4857_v14  ;;  %v16001_v14 = vld [vmem:[#allocation10_spill] sm:$0xff] }
 0xad9   : > { %v4389_v20 = vmul.f32 1.442695, %v4327_v59 }
 0xada   : > { %v4790_v57 = vpop.permute.xlu1 %4789 }
 0xadd   : > { %4984 = vrot.lane.b32.xlu0 %v15993_v29, %s10570_s21  ;;  %v16004_v29 = vld [vmem:[#allocation13_spill] sm:$0xff] }
 0xadf   : > { %9155 = vmatmul.mubr.msk.bf16.vlgmr.msra.gmra.mrb[128].mxu0 %vm2142_vm2, %v13502_v31  ;;  %v4317_v31 = vsub.f32 %v13450_v34, %v4274_v44  ;;  %v15999_v44 = vld [vmem:[#allocation8_spill] sm:$0xff] }
 0xae0   : > { %9158 = vmatprep.mubr.msk.bf16.mxu0 %vm2142_vm2, %v13516_v28  ;;  %v4320_v28 = vsub.f32 %v13407_v24, %v4280_v21  ;;  %v4379_v24 = vmul.f32 1.442695, %v4322_v60  ;;  %v15995_v21 = vld [vmem:[#allocation41_spill] sm:$0xff] }
 0xae1   : > { %v4369_v18 = vmul.f32 1.442695, %v4317_v31 }
 0xae2   : > { %v4375_v41 = vmul.f32 1.442695, %v4320_v28 }
 0xae3   : > { %10137 = vpow2.f32 %v4369_v18 }
 0xae4   : > { %10139 = vpow2.f32 %v4375_v41 }
 0xae5   : > { %10141 = vpow2.f32 %v4381_v10 }
 0xae6   : > { %4791 = vrot.lane.b32.xlu1 %v15994_v48, %s10570_s21 }
 0xae7   : > { %9159 = vmatmul.mubr.msk.bf16.gmra.mrb[132].mxu0 %vm2142_vm2, %v13514_v7  ;;  %v4318_v7 = vsub.f32 %v13419_v8, %v4276_v9  ;;  %v4324_v8 = vsub.f32 %v13445_v55, %v4288_v5  ;;  %v15998_v9 = vld [vmem:[#allocation7_spill] sm:$0xff]  ;;  %v16003_v5 = vld [vmem:[#allocation12_spill] sm:$0xff] }
 0xae8   : > { %9162 = vmatprep.mubr.msk.bf16.mxu0 %vm2142_vm2, %v4788_v47 }
 0xae9   : > { %v4371_v34 = vmul.f32 1.442695, %v4318_v7  ;;  %v4383_v22 = vmul.f32 1.442695, %v4324_v8 }
 0xaeb   : > { %10143 = vpow2.f32 %v4371_v34  ;;  %v5013_v34 = vsel %vm2142_vm2, %v13476_v35, 0  ;;  %v5019_v35 = vsel %vm2142_vm2, %v13490_v50, 0 }
 0xaec   : > { %10145 = vpow2.f32 %v4379_v24  ;;  %v5016_v24 = vsel %vm2142_vm2, %v13486_v3, 0 }
 0xaed   : > { %v13607_v26 = vpop.eup %10137  ;;  %10147 = vpow2.f32 %v4377_v46 }
 0xaee   : > { %v13611_v40 = vpop.eup %10139  ;;  %10149 = vpow2.f32 %v4389_v20 }
 0xaef   : > { %9163 = vmatmul.mubr.msk.bf16.gmra.mrb[136].mxu0 %vm2142_vm2, %v4790_v57  ;;  %v13615_v2 = vpop.eup %10141  ;;  %10151 = vpow2.f32 %v4383_v22 }
 0xaf0   : > { %10153 = vpow2.f32 %v4385_v62 }
 0xaf5   : > { %v13619_v49 = vpop.eup %10143 }
 0xaf6   : > { %v13623_v13 = vpop.eup %10145 }
 0xaf7   : > { %v13626_v30 = vpop.eup %10147 }
 0xafc   : > { %4437 = vadd.xlane.f32.xlu0 %v13602_v1 }
 0xb00   : > { %4433 = vadd.xlane.f32.xlu0 %v13607_v26 }
 0xb04   : > { %v4296_v25 = vpop.xlane.xlu1 %4295  ;;  %4439 = vadd.xlane.f32.xlu0 %v13611_v40 }
 0xb05   : > { %v4328_v55 = vsub.f32 %v13500_v15, %v4296_v25  ;;  %v13629_v15 = vpop.eup %10149 }
 0xb07   : > { %v4391_v12 = vmul.f32 1.442695, %v4328_v55 }
 0xb08   : > { %v4292_v6 = vpop.xlane.xlu1 %4291  ;;  %4445 = vadd.xlane.f32.xlu0 %v13615_v2 }
 0xb09   : > { %v4326_v16 = vsub.f32 %v13509_v52, %v4292_v6  ;;  %v13632_v52 = vpop.eup %10151  ;;  %v5025_v6 = vsel %vm2142_vm2, %v13511_v33, 0 }
 0xb0a   : > { %4435 = vadd.xlane.f32.xlu1 %v13619_v49  ;;  %v13635_v32 = vpop.eup %10153 }
 0xb0b   : > { %v4387_v53 = vmul.f32 1.442695, %v4326_v16 }
 0xb0c   : > { %4443 = vadd.xlane.f32.xlu0 %v13623_v13 }
 0xb0d   : > { %10155 = vpow2.f32 %v4387_v53 }
 0xb0e   : > { %4441 = vadd.xlane.f32.xlu1 %v13626_v30  ;;  %10157 = vpow2.f32 %v4391_v12 }
 0xb10   : > { %4453 = vadd.xlane.f32.xlu0 %v13629_v15 }
 0xb12   : > { %4447 = vadd.xlane.f32.xlu1 %v13632_v52 }
 0xb16   : > { %4449 = vadd.xlane.f32.xlu1 %v13635_v32 }
 0xb17   : > { %v13638_v17 = vpop.eup %10155 }
 0xb18   : > { %4451 = vadd.xlane.f32.xlu0 %v13638_v17  ;;  %v13641_v4 = vpop.eup %10157 }
 0xb1a   : > { %4455 = vadd.xlane.f32.xlu1 %v13641_v4 }
 0xb2b   : > { %4986 = vrot.lane.b32.xlu1 %v15995_v21, %s10570_s21 }
 0xb2e   : > { %4793 = vrot.lane.b32.xlu0 %v15996_v37, %s10570_s21 }
 0xb2f   : > { %4958 = vrot.lane.b32.xlu1 %v15997_v54, %s10570_s21  ;;  %v16043_v54 = vld [vmem:[#allocation67_spill] sm:$0xff] }
 0xb32   : > { %4956 = vrot.lane.b32.xlu0 %v15998_v9, %s10570_s21 }
 0xb33   : > { %4962 = vrot.lane.b32.xlu1 %v15999_v44, %s10570_s21  ;;  %v5028_v44 = vsel %vm2142_vm2, %v13518_v45, 0 }
 0xb36   : > { %4960 = vrot.lane.b32.xlu0 %v16000_v23, %s10570_s21 }
 0xb37   : > { %4966 = vrot.lane.b32.xlu1 %v16001_v14, %s10570_s21 }
 0xb3a   : > { %4964 = vrot.lane.b32.xlu0 %v16002_v43, %s10570_s21 }
 0xb3b   : > { %4970 = vrot.lane.b32.xlu1 %v16003_v5, %s10570_s21 }
 0xb3e   : > { %4968 = vrot.lane.b32.xlu0 %v16004_v29, %s10570_s21 }
 0xb54   : > { %v4428_v56 = vpop.xlane.xlu0 %4427 }
 0xb55   : > { %10159 = vrcp.f32 %v4428_v56 }
 0xb58   : > { %v4985_v59 = vpop.permute.xlu0 %4984 }
 0xb5a   : > { %v4430_v27 = vpop.xlane.xlu1 %4429 }
 0xb5e   : > { %v4426_v48 = vpop.xlane.xlu1 %4425 }
 0xb5f   : > { %10161 = vrcp.f32 %v4426_v48  ;;  %v10160_v51 = vpop.eup %10159 }
 0xb60   : > { %10163 = vrcp.f32 %v4430_v27  ;;  %v4506_v57 = vmul.f32 %v10160_v51, %v13559_v63  ;;  %v16042_v51 = vld [vmem:[#allocation62_spill] sm:$0xff] }
 0xb62   : > { %v4432_v47 = vpop.xlane.xlu1 %4431 }
 0xb63   : > { %10165 = vrcp.f32 %v4432_v47 }
 0xb66   : > { %v4792_v38 = vpop.permute.xlu1 %4791 }
 0xb67   : > { %9166 = vmatprep.mubr.msk.bf16.mxu0 %vm2142_vm2, %v4792_v38 }
 0xb69   : > { %v10162_v11 = vpop.eup %10161 }
 0xb6a   : > { %v4505_v31 = vmul.f32 %v10162_v11, %v13574_v61  ;;  %v10164_v28 = vpop.eup %10163 }
 0xb6b   : > { %v4507_v36 = vmul.f32 %v10164_v28, %v13569_v58 }
 0xb6c   : > { %v4529_v18 = vpack.c.bf16 %v4506_v57, %v4505_v31  ;;  %v5031_v31 = vsel %vm2142_vm2, %v4985_v59, 0 }
 0xb6d   : > { %v10166_v41 = vpop.eup %10165 }
 0xb6e   : > { %v4508_v7 = vmul.f32 %v10166_v41, %v13579_v39  ;;  %9122 = vmatprep.mubr.bf16.mxu1 %v4529_v18 }
 0xb70   : > { %v4530_v10 = vpack.c.bf16 %v4508_v7, %v4507_v36 }
 0xb72   : > { %v13669_v60 = vpop.f32.mrb[112].mxu0  ;;  %9123 = vmatmul.mubr.bf16.vlgmr.msra.gmra.mrb[144].mxu1 %v4530_v10 }
 0xb73   : > { %16005 = vst [vmem:[#allocation21_spill] sm:$0xff] %v13669_v60  ;;  %9171 = vmatpush3.bf16.xpose.msra.mxu1 %v5013_v34  ;;  %v13673_v0 = vpop.f32.mrb[113].mxu0 }
 0xb74   : > { %16006 = vst [vmem:[#allocation17_spill] sm:$0xff] %v13673_v0  ;;  %9447 = vmatprep.subr.msk.bf16.mxu1 %vm2142_vm2, %v13486_v3  ;;  %v13677_v63 = vpop.f32.mrb[114].mxu0  ;;  %v5022_v3 = vsel %vm2142_vm2, %v13494_v42, 0 }
 0xb75   : > { %16007 = vst [vmem:[#allocation19_spill] sm:$0xff] %v13677_v63  ;;  %v13681_v61 = vpop.f32.mrb[115].mxu0 }
 0xb76   : > { %16008 = vst [vmem:[#allocation15_spill] sm:$0xff] %v13681_v61 }
 0xb7b   : > { %9173 = vmatpush3.bf16.xpose.msra.mxu1 %v5016_v24 }
 0xb7c   : > { %9448 = vmatprep.subr.msk.bf16.mxu1 %vm2142_vm2, %v13490_v50 }
 0xb83   : > { %9175 = vmatpush3.bf16.xpose.msra.mxu1 %v5019_v35 }
 0xb84   : > { %9449 = vmatprep.subr.msk.bf16.mxu1 %vm2142_vm2, %v13494_v42 }
 0xb88   : > { %v13693_v8 = vpop.f32.mrb[116].mxu0 }
 0xb89   : > { %16009 = vst [vmem:[#allocation32_spill] sm:$0xff] %v13693_v8  ;;  %v13695_v46 = vpop.f32.mrb[117].mxu0  ;;  %v4438_v20 = vpop.xlane.xlu0 %4437 }
 0xb8a   : > { %16010 = vst [vmem:[#allocation23_spill] sm:$0xff] %v13695_v46  ;;  %v13697_v22 = vpop.f32.mrb[118].mxu0 }
 0xb8b   : > { %16011 = vst [vmem:[#allocation30_spill] sm:$0xff] %v13697_v22  ;;  %9177 = vmatpush3.bf16.xpose.msra.mxu1 %v5022_v3  ;;  %v13703_v50 = vpop.f32.mrb[119].mxu0 }
 0xb8c   : > { %16012 = vst [vmem:[#allocation25_spill] sm:$0xff] %v13703_v50  ;;  %9450 = vmatprep.subr.msk.bf16.mxu1 %vm2142_vm2, %v13511_v33 }
 0xb8d   : > { %v4434_v62 = vpop.xlane.xlu0 %4433 }
 0xb91   : > { %v4440_v55 = vpop.xlane.xlu0 %4439 }
 0xb92   : > { %10167 = vrcp.f32 %v4440_v55 }
 0xb93   : > { %9179 = vmatpush3.bf16.xpose.msra.mxu1 %v5025_v6  ;;  %10169 = vrcp.f32 %v4434_v62 }
 0xb94   : > { %9451 = vmatprep.subr.msk.bf16.mxu1 %vm2142_vm2, %v13518_v45  ;;  %10171 = vrcp.f32 %v4438_v20 }
 0xb95   : > { %v13713_v42 = vpop.f32.mrb[120].mxu0  ;;  %v4446_v16 = vpop.xlane.xlu0 %4445 }
 0xb96   : > { %16013 = vst [vmem:[#allocation36_spill] sm:$0xff] %v13713_v42  ;;  %v13715_v12 = vpop.f32.mrb[121].mxu0 }
 0xb97   : > { %16014 = vst [vmem:[#allocation29_spill] sm:$0xff] %v13715_v12  ;;  %v13717_v53 = vpop.f32.mrb[122].mxu0  ;;  %v4436_v21 = vpop.xlane.xlu1 %4435 }
 0xb98   : > { %16015 = vst [vmem:[#allocation34_spill] sm:$0xff] %v13717_v53  ;;  %10173 = vrcp.f32 %v4436_v21  ;;  %v13721_v33 = vpop.f32.mrb[123].mxu0 }
 0xb99   : > { %16016 = vst [vmem:[#allocation27_spill] sm:$0xff] %v13721_v33  ;;  %v4444_v9 = vpop.xlane.xlu0 %4443 }
 0xb9a   : > { %10175 = vrcp.f32 %v4444_v9 }
 0xb9b   : > { %9181 = vmatpush3.bf16.xpose.msra.mxu1 %v5028_v44  ;;  %v4442_v23 = vpop.xlane.xlu1 %4441 }
 0xb9c   : > { %10177 = vrcp.f32 %v4442_v23  ;;  %9452 = vmatprep.subr.msk.bf16.mxu1 %vm2142_vm2, %v4985_v59  ;;  %v10168_v5 = vpop.eup %10167 }
 0xb9d   : > { %v13728_v14 = vpop.f32.mrb[124].mxu0  ;;  %10179 = vrcp.f32 %v4446_v16  ;;  %v10170_v27 = vpop.eup %10169  ;;  %v4512_v57 = vmul.f32 %v10168_v5, %v13611_v40 }
 0xb9e   : > { %16017 = vst [vmem:[#allocation43_spill] sm:$0xff] %v13728_v14  ;;  %v13730_v43 = vpop.f32.mrb[125].mxu0  ;;  %v10172_v47 = vpop.eup %10171  ;;  %v4509_v18 = vmul.f32 %v10170_v27, %v13607_v26 }
 0xb9f   : > { %16018 = vst [vmem:[#allocation28_spill] sm:$0xff] %v13730_v43  ;;  %v13732_v29 = vpop.f32.mrb[126].mxu0  ;;  %v4448_v56 = vpop.xlane.xlu1 %4447  ;;  %v4511_v7 = vmul.f32 %v10172_v47, %v13602_v1 }
 0xba0   : > { %16019 = vst [vmem:[#allocation41_spill] sm:$0xff] %v13732_v29  ;;  %10181 = vrcp.f32 %v4448_v56  ;;  %v13736_v45 = vpop.f32.mrb[127].mxu0  ;;  %v4454_v38 = vpop.xlane.xlu0 %4453 }
 0xba1   : > { %16020 = vst [vmem:[#allocation26_spill] sm:$0xff] %v13736_v45  ;;  %v4532_v35 = vpack.c.bf16 %v4512_v57, %v4511_v7  ;;  %v16024_v7 = vld [vmem:[#allocation54_spill] sm:$0xff] }
 0xba2   : > { %v10174_v11 = vpop.eup %10173 }
 0xba3   : > { %9183 = vmatpush3.bf16.xpose.msra.mxu1 %v5031_v31  ;;  %v4450_v28 = vpop.xlane.xlu1 %4449  ;;  %v4510_v41 = vmul.f32 %v10174_v11, %v13619_v49 }
 0xba4   : > { %v10176_v36 = vpop.eup %10175  ;;  %10183 = vrcp.f32 %v4450_v28 }
 0xba5   : > { %10185 = vrcp.f32 %v4454_v38  ;;  %v4452_v10 = vpop.xlane.xlu0 %4451  ;;  %v4531_v34 = vpack.c.bf16 %v4510_v41, %v4509_v18  ;;  %v4514_v59 = vmul.f32 %v10176_v36, %v13623_v13  ;;  %v16021_v38 = vld [vmem:[#allocation55_spill] sm:$0xff]  ;;  %v16022_v18 = vld [vmem:[#allocation56_spill] sm:$0xff] }
 0xba6   : > { %v10178_v24 = vpop.eup %10177  ;;  %10187 = vrcp.f32 %v4452_v10 }
 0xba7   : > { %v4456_v20 = vpop.xlane.xlu1 %4455  ;;  %9126 = vmatprep.mubr.bf16.mxu1 %v4531_v34  ;;  %v4513_v40 = vmul.f32 %v10178_v24, %v13626_v30  ;;  %v10180_v3 = vpop.eup %10179 }
 0xba8   : > { %10189 = vrcp.f32 %v4456_v20  ;;  %9127 = vmatmul.mubr.bf16.gmra.mrb[148].mxu1 %v4532_v35  ;;  %v4515_v55 = vmul.f32 %v10180_v3, %v13615_v2  ;;  %v16025_v35 = vld [vmem:[#allocation58_spill] sm:$0xff]  ;;  %v16026_v3 = vld [vmem:[#allocation64_spill] sm:$0xff] }
 0xba9   : > { %v4794_v26 = vpop.permute.xlu0 %4793  ;;  %v4533_v49 = vpack.c.bf16 %v4514_v59, %v4513_v40 }
 0xbaa   : > { %v10182_v62 = vpop.eup %10181  ;;  %9167 = vmatmul.mubr.msk.bf16.gmra.mrb[140].mxu0 %vm2142_vm2, %v4794_v26 }
 0xbab   : > { %v4987_v1 = vpop.permute.xlu1 %4986  ;;  %9130 = vmatprep.mubr.bf16.mxu1 %v4533_v49  ;;  %v4516_v6 = vmul.f32 %v10182_v62, %v13632_v52  ;;  %v16027_v49 = vld [vmem:[#allocation57_spill] sm:$0xff] }
 0xbac   : > { %9453 = vmatprep.subr.msk.bf16.mxu1 %vm2142_vm2, %v4987_v1  ;;  %v5034_v30 = vsel %vm2142_vm2, %v4987_v1, 0 }
 0xbad   : > { %9185 = vmatpush3.bf16.xpose.msra.mxu1 %v5034_v30  ;;  %v4534_v13 = vpack.c.bf16 %v4516_v6, %v4515_v55  ;;  %v16028_v6 = vld [vmem:[#allocation63_spill] sm:$0xff] }
 0xbae   : > { %v10184_v16 = vpop.eup %10183 }
 0xbaf   : > { %v10186_v21 = vpop.eup %10185  ;;  %v4517_v44 = vmul.f32 %v10184_v16, %v13635_v32  ;;  %v4957_v32 = vpop.permute.xlu0 %4956 }
 0xbb0   : > { %v10188_v9 = vpop.eup %10187  ;;  %9131 = vmatmul.mubr.bf16.gmra.mrb[152].mxu1 %v4534_v13  ;;  %v4519_v52 = vmul.f32 %v10186_v21, %v13629_v15  ;;  %v4959_v40 = vpop.permute.xlu1 %4958  ;;  %v16029_v21 = vld [vmem:[#allocation60_spill] sm:$0xff] }
 0xbb1   : > { %v4518_v23 = vmul.f32 %v10188_v9, %v13638_v17  ;;  %v16023_v17 = vld [vmem:[#allocation53_spill] sm:$0xff] }
 0xbb2   : > { %v10190_v5 = vpop.eup %10189  ;;  %v9156_v56 = vpop.f32.mrb[128].mxu0 }
 0xbb3   : > { %v4893_v27 = vpop.f32.mrb[129].mxu0  ;;  %v4535_v2 = vpack.c.bf16 %v4518_v23, %v4517_v44  ;;  %v4520_v47 = vmul.f32 %v10190_v5, %v13641_v4  ;;  %v13764_v36 = vadd.f32 %v9156_v56, %v16023_v17  ;;  %v4961_v59 = vpop.permute.xlu0 %4960  ;;  %v16030_v5 = vld [vmem:[#allocation66_spill] sm:$0xff] }
 0xbb4   : > { %v13757_v11 = vadd.f32 %v4893_v27, %v16021_v38  ;;  %v9157_v31 = vpop.f32.mrb[130].mxu0  ;;  %v4963_v44 = vpop.permute.xlu1 %4962  ;;  %v16031_v27 = vld [vmem:[#allocation59_spill] sm:$0xff] }
 0xbb5   : > { %v4896_v57 = vpop.f32.mrb[131].mxu0  ;;  %9134 = vmatprep.mubr.bf16.mxu1 %v4535_v2  ;;  %v4536_v28 = vpack.c.bf16 %v4520_v47, %v4519_v52  ;;  %v13770_v10 = vadd.f32 %v9157_v31, %v16024_v7  ;;  %v16032_v52 = vld [vmem:[#allocation65_spill] sm:$0xff] }
 0xbb6   : > { %v13760_v41 = vadd.f32 %v4896_v57, %v16022_v18  ;;  %5133 = vmax.xlane.f32.xlu0 %v13757_v11 }
 0xbb7   : > { %v4965_v23 = vpop.permute.xlu0 %4964 }
 0xbb8   : > { %5135 = vmax.xlane.f32.xlu1 %v13760_v41  ;;  %9135 = vmatmul.mubr.bf16.gmra.mrb[156].mxu1 %v4536_v28  ;;  %v4967_v31 = vpop.permute.xlu1 %4966 }
 0xbb9   : > { %9186 = vmatprep.mubr.msk.bf16.mxu1 %vm2142_vm2, %v4957_v32 }
 0xbba   : > { %v9160_v15 = vpop.f32.mrb[132].mxu0  ;;  %5137 = vmax.xlane.f32.xlu0 %v13764_v36 }
 0xbbb   : > { %v4909_v4 = vpop.f32.mrb[133].mxu0  ;;  %v13787_v30 = vadd.f32 %v9160_v15, %v16028_v6  ;;  %v4969_v57 = vpop.permute.xlu0 %4968 }
 0xbbc   : > { %v9161_v34 = vpop.f32.mrb[134].mxu0  ;;  %v13777_v26 = vadd.f32 %v4909_v4, %v16026_v3  ;;  %v4971_v28 = vpop.permute.xlu1 %4970 }
 0xbbd   : > { %v4912_v24 = vpop.f32.mrb[135].mxu0  ;;  %v13783_v62 = vadd.f32 %v9161_v34, %v16027_v49 }
 0xbbe   : > { %v13773_v20 = vadd.f32 %v4912_v24, %v16025_v35  ;;  %5139 = vmax.xlane.f32.xlu0 %v13770_v10 }
 0xbc0   : > { %5143 = vmax.xlane.f32.xlu1 %v13773_v20  ;;  %9187 = vmatmul.mubr.msk.bf16.vlgmr.msra.gmra.mrb[160].mxu1 %vm2142_vm2, %v4959_v40 }
 0xbc1   : > { %9190 = vmatprep.mubr.msk.bf16.mxu1 %vm2142_vm2, %v4961_v59 }
 0xbc2   : > { %5141 = vmax.xlane.f32.xlu0 %v13777_v26  ;;  %v9164_v1 = vpop.f32.mrb[136].mxu0 }
 0xbc3   : > { %v4925_v55 = vpop.f32.mrb[137].mxu0  ;;  %v13805_v47 = vadd.f32 %v9164_v1, %v16032_v52 }
 0xbc4   : > { %5147 = vmax.xlane.f32.xlu1 %v13783_v62  ;;  %v9165_v13 = vpop.f32.mrb[138].mxu0  ;;  %v13795_v56 = vadd.f32 %v4925_v55, %v16030_v5 }
 0xbc5   : > { %v4928_v16 = vpop.f32.mrb[139].mxu0  ;;  %v13801_v2 = vadd.f32 %v9165_v13, %v16031_v27 }
 0xbc6   : > { %v13791_v9 = vadd.f32 %v4928_v16, %v16029_v21  ;;  %5145 = vmax.xlane.f32.xlu0 %v13787_v30 }
 0xbc8   : > { %5151 = vmax.xlane.f32.xlu1 %v13791_v9  ;;  %9191 = vmatmul.mubr.msk.bf16.gmra.mrb[164].mxu1 %vm2142_vm2, %v4963_v44 }
 0xbc9   : > { %9194 = vmatprep.mubr.msk.bf16.mxu1 %vm2142_vm2, %v4965_v23 }
 0xbca   : > { %5149 = vmax.xlane.f32.xlu0 %v13795_v56 }
 0xbcc   : > { %5155 = vmax.xlane.f32.xlu1 %v13801_v2 }
 0xbce   : > { %5153 = vmax.xlane.f32.xlu0 %v13805_v47 }
 0xbd0   : > { %9195 = vmatmul.mubr.msk.bf16.gmra.mrb[168].mxu1 %vm2142_vm2, %v4967_v31  ;;  %v16046_v31 = vld [vmem:[#allocation61_spill] sm:$0xff] }
 0xbd1   : > { %9198 = vmatprep.mubr.msk.bf16.mxu1 %vm2142_vm2, %v4969_v57  ;;  %v16041_v57 = vld [vmem:[#allocation68_spill] sm:$0xff] }
 0xbd8   : > { %9199 = vmatmul.mubr.msk.bf16.gmra.mrb[172].mxu1 %vm2142_vm2, %v4971_v28 }
 0xc45   : > { %v13812_v32 = vpop.f32.mrb[144].mxu1  ;;  %v5136_v53 = vpop.xlane.xlu1 %5135 }
 0xc46   : > { %16033 = vst [vmem:[#allocation6_spill] sm:$0xff] %v13812_v32  ;;  %v13814_v15 = vpop.f32.mrb[145].mxu1 }
 0xc47   : > { %16034 = vst [vmem:[#allocation7_spill] sm:$0xff] %v13814_v15  ;;  %v13816_v4 = vpop.f32.mrb[146].mxu1  ;;  %v5134_v15 = vpop.xlane.xlu0 %5133 }
 0xc48   : > { %16035 = vst [vmem:[#allocation8_spill] sm:$0xff] %v13816_v4  ;;  %v13820_v24 = vpop.f32.mrb[147].mxu1  ;;  %v5197_v0 = vsub.f32 %v13757_v11, %v5134_v15 }
 0xc49   : > { %16036 = vst [vmem:[#allocation9_spill] sm:$0xff] %v13820_v24 }
 0xc4b   : > { %v5138_v43 = vpop.xlane.xlu0 %5137 }
 0xc4c   : > { %v5199_v22 = vsub.f32 %v13764_v36, %v5138_v43 }
 0xc4d   : > { %v5144_v46 = vpop.xlane.xlu1 %5143 }
 0xc4e   : > { %v5233_v61 = vmul.f32 1.442695, %v5199_v22 }
 0xc4f   : > { %v5140_v29 = vpop.xlane.xlu0 %5139 }
 0xc51   : > { %v5148_v8 = vpop.xlane.xlu1 %5147 }
 0xc7b   : > { %v13824_v59 = vpop.f32.mrb[148].mxu1 }
 0xc7c   : > { %16037 = vst [vmem:[#allocation10_spill] sm:$0xff] %v13824_v59  ;;  %v13826_v1 = vpop.f32.mrb[149].mxu1 }
 0xc7d   : > { %16038 = vst [vmem:[#allocation11_spill] sm:$0xff] %v13826_v1  ;;  %v13828_v55 = vpop.f32.mrb[150].mxu1  ;;  %v9168_v13 = vpop.f32.mrb[140].mxu0 }
 0xc7e   : > { %16039 = vst [vmem:[#allocation12_spill] sm:$0xff] %v13828_v55  ;;  %v13832_v44 = vpop.f32.mrb[151].mxu1  ;;  %v4941_v23 = vpop.f32.mrb[141].mxu0  ;;  %v13844_v37 = vadd.f32 %v9168_v13, %v16043_v54  ;;  %v16054_v55 = vld [vmem:[#allocation33_spill] sm:$0xff] }
 0xc7f   : > { %16040 = vst [vmem:[#allocation13_spill] sm:$0xff] %v13832_v44  ;;  %v13837_v28 = vadd.f32 %v4941_v23, %v16041_v57  ;;  %v9169_v40 = vpop.f32.mrb[142].mxu0 }
 0xc80   : > { %v4944_v34 = vpop.f32.mrb[143].mxu0  ;;  %v13852_v19 = vadd.f32 %v9169_v40, %v16046_v31 }
 0xc81   : > { %v13840_v48 = vadd.f32 %v4944_v34, %v16042_v51  ;;  %5157 = vmax.xlane.f32.xlu0 %v13837_v28  ;;  %v5229_v51 = vmul.f32 1.442695, %v5197_v0  ;;  %v5202_v0 = vsub.f32 %v13773_v20, %v5144_v46 }
 0xc83   : > { %v13846_v16 = vpop.f32.mrb[152].mxu1  ;;  %5159 = vmax.xlane.f32.xlu1 %v13840_v48 }
 0xc84   : > { %16044 = vst [vmem:[#allocation55_spill] sm:$0xff] %v13846_v16  ;;  %v13849_v25 = vpop.f32.mrb[153].mxu1 }
 0xc85   : > { %16045 = vst [vmem:[#allocation56_spill] sm:$0xff] %v13849_v25  ;;  %v13854_v23 = vpop.f32.mrb[154].mxu1  ;;  %5161 = vmax.xlane.f32.xlu0 %v13844_v37 }
 0xc86   : > { %16047 = vst [vmem:[#allocation53_spill] sm:$0xff] %v13854_v23  ;;  %v13859_v58 = vpop.f32.mrb[155].mxu1 }
 0xc87   : > { %16048 = vst [vmem:[#allocation54_spill] sm:$0xff] %v13859_v58  ;;  %5163 = vmax.xlane.f32.xlu1 %v13852_v19  ;;  %v16053_v58 = vld [vmem:[#allocation31_spill] sm:$0xff] }
 0xc8b   : > { %v13864_v39 = vpop.f32.mrb[156].mxu1 }
 0xc8c   : > { %16049 = vst [vmem:[#allocation58_spill] sm:$0xff] %v13864_v39  ;;  %v13866_v1 = vpop.f32.mrb[157].mxu1  ;;  %v16055_v39 = vld [vmem:[#allocation40_spill] sm:$0xff] }
 0xc8d   : > { %16050 = vst [vmem:[#allocation64_spill] sm:$0xff] %v13866_v1  ;;  %v13868_v40 = vpop.f32.mrb[158].mxu1 }
 0xc8e   : > { %16051 = vst [vmem:[#allocation57_spill] sm:$0xff] %v13868_v40  ;;  %v13872_v59 = vpop.f32.mrb[159].mxu1  ;;  %v16056_v40 = vld [vmem:[#allocation37_spill] sm:$0xff] }
 0xc8f   : > { %16052 = vst [vmem:[#allocation63_spill] sm:$0xff] %v13872_v59 }
 0xc93   : > { %v13876_v16 = vpop.f32.mrb[160].mxu1 }
 0xc94   : > { %v13878_v23 = vpop.f32.mrb[161].mxu1 }
 0xc95   : > { %v13880_v13 = vpop.f32.mrb[162].mxu1 }
 0xc96   : > { %v13882_v25 = vpop.f32.mrb[163].mxu1 }
 0xc98   : > { %5439 = vrot.lane.b32.xlu1 %v16053_v58, %s10570_s21  ;;  %v16057_v58 = vld [vmem:[#allocation38_spill] sm:$0xff] }
 0xc9b   : > { %5437 = vrot.lane.b32.xlu0 %v16054_v55, %s10570_s21  ;;  %v13888_v44 = vpop.f32.mrb[164].mxu1  ;;  %v16058_v55 = vld [vmem:[#allocation35_spill] sm:$0xff] }
 0xc9c   : > { %5445 = vrot.lane.b32.xlu1 %v16055_v39, %s10570_s21  ;;  %v13892_v34 = vpop.f32.mrb[165].mxu1  ;;  %v16059_v39 = vld [vmem:[#allocation42_spill] sm:$0xff] }
 0xc9d   : > { %v13894_v1 = vpop.f32.mrb[166].mxu1 }
 0xc9e   : > { %v13896_v59 = vpop.f32.mrb[167].mxu1 }
 0xc9f   : > { %5441 = vrot.lane.b32.xlu0 %v16056_v40, %s10570_s21  ;;  %v16060_v40 = vld [vmem:[#allocation44_spill] sm:$0xff] }
 0xca0   : > { %5447 = vrot.lane.b32.xlu1 %v16057_v58, %s10570_s21  ;;  %v16061_v58 = vld [vmem:[#allocation45_spill] sm:$0xff] }
 0xca3   : > { %5443 = vrot.lane.b32.xlu0 %v16058_v55, %s10570_s21  ;;  %v13904_v24 = vpop.f32.mrb[168].mxu1  ;;  %v16062_v55 = vld [vmem:[#allocation46_spill] sm:$0xff] }
 0xca4   : > { %5451 = vrot.lane.b32.xlu1 %v16059_v39, %s10570_s21  ;;  %v13908_v32 = vpop.f32.mrb[169].mxu1  ;;  %v16063_v39 = vld [vmem:[#allocation47_spill] sm:$0xff] }
 0xca5   : > { %v13910_v4 = vpop.f32.mrb[170].mxu1 }
 0xca6   : > { %v13912_v45 = vpop.f32.mrb[171].mxu1 }
 0xca7   : > { %5449 = vrot.lane.b32.xlu0 %v16060_v40, %s10570_s21  ;;  %v16066_v40 = vld [vmem:[#allocation48_spill] sm:$0xff] }
 0xca8   : > { %5560 = vrot.lane.b32.xlu1 %v16061_v58, %s10570_s21  ;;  %v5142_v58 = vpop.xlane.xlu0 %5141 }
 0xcab   : > { %5558 = vrot.lane.b32.xlu0 %v16062_v55, %s10570_s21  ;;  %v13920_v14 = vpop.f32.mrb[172].mxu1 }
 0xcac   : > { %5564 = vrot.lane.b32.xlu1 %v16063_v39, %s10570_s21  ;;  %v13924_v12 = vpop.f32.mrb[173].mxu1  ;;  %v5146_v50 = vpop.xlane.xlu0 %5145  ;;  %v5201_v39 = vsub.f32 %v13777_v26, %v5142_v58  ;;  %v5198_v26 = vsub.f32 %v13760_v41, %v5136_v53 }
 0xcad   : > { %16064 = vst [vmem:[#allocation60_spill] sm:$0xff] %v13924_v12  ;;  %v13926_v33 = vpop.f32.mrb[174].mxu1  ;;  %v5203_v55 = vsub.f32 %v13787_v30, %v5146_v50  ;;  %v5152_v12 = vpop.xlane.xlu1 %5151  ;;  %v5200_v50 = vsub.f32 %v13770_v10, %v5140_v29 }
 0xcae   : > { %v13928_v42 = vpop.f32.mrb[175].mxu1  ;;  %v5237_v57 = vmul.f32 1.442695, %v5201_v39 }
 0xcaf   : > { %16065 = vst [vmem:[#allocation66_spill] sm:$0xff] %v13928_v42  ;;  %5562 = vrot.lane.b32.xlu0 %v16066_v40, %s10570_s21  ;;  %v5241_v63 = vmul.f32 1.442695, %v5203_v55  ;;  %v5204_v40 = vsub.f32 %v13783_v62, %v5148_v8  ;;  %v5235_v11 = vmul.f32 1.442695, %v5200_v50 }
 0xcb0   : > { %v5150_v60 = vpop.xlane.xlu0 %5149 }
 0xcb1   : > { %10191 = vpow2.f32 %v5241_v63  ;;  %v5243_v30 = vmul.f32 1.442695, %v5204_v40  ;;  %v5156_v36 = vpop.xlane.xlu1 %5155  ;;  %v5231_v63 = vmul.f32 1.442695, %v5198_v26  ;;  %v5205_v41 = vsub.f32 %v13795_v56, %v5150_v60 }
 0xcb2   : > { %10193 = vpow2.f32 %v5233_v61  ;;  %v5208_v22 = vsub.f32 %v13801_v2, %v5156_v36 }
 0xcb3   : > { %10195 = vpow2.f32 %v5237_v57 }
 0xcb4   : > { %v5154_v42 = vpop.xlane.xlu0 %5153  ;;  %10197 = vpow2.f32 %v5229_v51  ;;  %v5251_v29 = vmul.f32 1.442695, %v5208_v22  ;;  %v5239_v51 = vmul.f32 1.442695, %v5202_v0 }
 0xcb5   : > { %v5207_v43 = vsub.f32 %v13805_v47, %v5154_v42  ;;  %10199 = vpow2.f32 %v5243_v30  ;;  %v5206_v42 = vsub.f32 %v13791_v9, %v5152_v12  ;;  %v5245_v12 = vmul.f32 1.442695, %v5205_v41 }
 0xcb6   : > { %10201 = vpow2.f32 %v5235_v11 }
 0xcb7   : > { %v5249_v15 = vmul.f32 1.442695, %v5207_v43  ;;  %v5247_v46 = vmul.f32 1.442695, %v5206_v42 }
 0xcb9   : > { %10203 = vpow2.f32 %v5249_v15 }
 0xcba   : > { %10205 = vpow2.f32 %v5231_v63 }
 0xcbb   : > { %v13941_v8 = vpop.eup %10191  ;;  %10207 = vpow2.f32 %v5251_v29 }
 0xcbc   : > { %v13945_v61 = vpop.eup %10193  ;;  %10209 = vpow2.f32 %v5239_v51 }
 0xcbd   : > { %v13949_v53 = vpop.eup %10195  ;;  %10211 = vpow2.f32 %v5247_v46 }
 0xcbe   : > { %v13953_v10 = vpop.eup %10197  ;;  %10213 = vpow2.f32 %v5245_v12 }
 0xcbf   : > { %v13956_v20 = vpop.eup %10199 }
 0xcc0   : > { %v13959_v62 = vpop.eup %10201 }
 0xcc3   : > { %v13962_v60 = vpop.eup %10203 }
 0xcc4   : > { %v13965_v9 = vpop.eup %10205 }
 0xcc5   : > { %v13968_v56 = vpop.eup %10207 }
 0xcc6   : > { %v13971_v2 = vpop.eup %10209 }
 0xcc7   : > { %v13974_v47 = vpop.eup %10211 }
 0xcc8   : > { %v13977_v57 = vpop.eup %10213 }
 0xcce   : > { %5305 = vadd.xlane.f32.xlu0 %v13941_v8 }
 0xcd0   : > { %5297 = vadd.xlane.f32.xlu1 %v13945_v61 }
 0xcd2   : > { %5301 = vadd.xlane.f32.xlu0 %v13949_v53 }
 0xcd4   : > { %5293 = vadd.xlane.f32.xlu1 %v13953_v10 }
 0xcd6   : > { %5307 = vadd.xlane.f32.xlu0 %v13956_v20 }
 0xcd8   : > { %5299 = vadd.xlane.f32.xlu1 %v13959_v62 }
 0xcda   : > { %5313 = vadd.xlane.f32.xlu0 %v13962_v60 }
 0xcdc   : > { %5295 = vadd.xlane.f32.xlu1 %v13965_v9 }
 0xcde   : > { %5315 = vadd.xlane.f32.xlu0 %v13968_v56 }
 0xce0   : > { %5303 = vadd.xlane.f32.xlu1 %v13971_v2 }
 0xce2   : > { %5311 = vadd.xlane.f32.xlu0 %v13974_v47 }
 0xce4   : > { %5309 = vadd.xlane.f32.xlu1 %v13977_v57 }
 0xd0e   : > { %v5158_v58 = vpop.xlane.xlu0 %5157 }
 0xd0f   : > { %v5209_v40 = vsub.f32 %v13837_v28, %v5158_v58 }
 0xd10   : > { %v5160_v55 = vpop.xlane.xlu1 %5159 }
 0xd11   : > { %v5210_v43 = vsub.f32 %v13840_v48, %v5160_v55  ;;  %v5253_v22 = vmul.f32 1.442695, %v5209_v40  ;;  %v13997_v55 = vadd.f32 %v13880_v13, %v16024_v7  ;;  %v14002_v40 = vadd.f32 %v13876_v16, %v16023_v17 }
 0xd12   : > { %v5162_v39 = vpop.xlane.xlu0 %5161  ;;  %v14012_v13 = vadd.f32 %v13878_v23, %v16021_v38  ;;  %v14017_v17 = vadd.f32 %v13894_v1, %v16027_v49  ;;  %v14027_v38 = vadd.f32 %v13896_v59, %v16025_v35  ;;  %v14032_v49 = vadd.f32 %v13892_v34, %v16026_v3  ;;  %v16072_v1 = vld [vmem:[#allocation50_spill] sm:$0xff] }
 0xd13   : > { %v5211_v50 = vsub.f32 %v13844_v37, %v5162_v39  ;;  %v5255_v0 = vmul.f32 1.442695, %v5210_v43  ;;  %v14042_v35 = vadd.f32 %v13904_v24, %v16032_v52  ;;  %v14047_v59 = vadd.f32 %v13912_v45, %v16029_v21  ;;  %v16067_v45 = vld [vmem:[#allocation62_spill] sm:$0xff] }
 0xd14   : > { %v5164_v30 = vpop.xlane.xlu1 %5163  ;;  %v14052_v3 = vadd.f32 %v13908_v32, %v16030_v5  ;;  %v14062_v52 = vadd.f32 %v13920_v14, %v16043_v54  ;;  %v16068_v21 = vld [vmem:[#allocation66_spill] sm:$0xff]  ;;  %v16069_v5 = vld [vmem:[#allocation68_spill] sm:$0xff] }
 0xd15   : > { %v5257_v36 = vmul.f32 1.442695, %v5211_v50  ;;  %v5212_v26 = vsub.f32 %v13852_v19, %v5164_v30  ;;  %v14007_v50 = vadd.f32 %v13882_v25, %v16022_v18  ;;  %v14022_v18 = vadd.f32 %v13888_v44, %v16028_v6  ;;  %v16070_v32 = vld [vmem:[#allocation60_spill] sm:$0xff] }
 0xd16   : > { %v5438_v11 = vpop.permute.xlu0 %5437  ;;  %v14037_v6 = vadd.f32 %v13910_v4, %v16031_v27  ;;  %v14057_v27 = vadd.f32 %v13926_v33, %v16046_v31  ;;  %v14067_v4 = vadd.f32 %v16068_v21, %v16067_v45  ;;  %v14072_v24 = vadd.f32 %v16070_v32, %v16069_v5  ;;  %v16071_v33 = vld [vmem:[#allocation49_spill] sm:$0xff] }
 0xd17   : > { %10215 = vpow2.f32 %v5257_v36  ;;  %v5259_v15 = vmul.f32 1.442695, %v5212_v26  ;;  %9202 = vmatprep.subr.bf16.mxu0 %v5438_v11 }
 0xd18   : > { %v5440_v63 = vpop.permute.xlu1 %5439  ;;  %9203 = vmatpush3.bf16.msra.mxu0 %v5438_v11 }
 0xd19   : > { %10217 = vpow2.f32 %v5259_v15  ;;  %9204 = vmatprep.subr.bf16.mxu0 %v5440_v63 }
 0xd1a   : > { %v5442_v42 = vpop.permute.xlu0 %5441  ;;  %10219 = vpow2.f32 %v5253_v22 }
 0xd1b   : > { %10221 = vpow2.f32 %v5255_v0 }
 0xd1c   : > { %v5446_v28 = vpop.permute.xlu1 %5445  ;;  %9205 = vmatpush3.bf16.msra.mxu0 %v5440_v63 }
 0xd1d   : > { %9206 = vmatprep.subr.bf16.mxu0 %v5442_v42 }
 0xd1e   : > { %v5444_v37 = vpop.permute.xlu0 %5443 }
 0xd20   : > { %v5448_v48 = vpop.permute.xlu1 %5447  ;;  %9207 = vmatpush3.bf16.msra.mxu0 %v5442_v42 }
 0xd21   : > { %v13984_v19 = vpop.eup %10215  ;;  %9208 = vmatprep.subr.bf16.mxu0 %v5444_v37 }
 0xd22   : > { %5321 = vadd.xlane.f32.xlu1 %v13984_v19  ;;  %v5450_v29 = vpop.permute.xlu0 %5449 }
 0xd23   : > { %v13987_v51 = vpop.eup %10217 }
 0xd24   : > { %v5452_v41 = vpop.permute.xlu1 %5451  ;;  %5323 = vadd.xlane.f32.xlu0 %v13987_v51  ;;  %9209 = vmatpush3.bf16.msra.mxu0 %v5444_v37  ;;  %v13990_v46 = vpop.eup %10219 }
 0xd25   : > { %9210 = vmatprep.subr.bf16.mxu0 %v5446_v28  ;;  %v13993_v58 = vpop.eup %10221 }
 0xd26   : > { %5317 = vadd.xlane.f32.xlu1 %v13990_v46  ;;  %v5559_v12 = vpop.permute.xlu0 %5558 }
 0xd27   : > { %9234 = vmatprep.subr.bf16.mxu1 %v5559_v12 }
 0xd28   : > { %v5561_v39 = vpop.permute.xlu1 %5560  ;;  %5319 = vadd.xlane.f32.xlu0 %v13993_v58  ;;  %9211 = vmatpush3.bf16.msra.mxu0 %v5446_v28 }
 0xd29   : > { %9235 = vmatpush3.bf16.msra.mxu1 %v5559_v12  ;;  %9212 = vmatprep.subr.bf16.mxu0 %v5448_v48 }
 0xd2a   : > { %9236 = vmatprep.subr.bf16.mxu1 %v5561_v39  ;;  %5171 = vmax.xlane.f32.xlu1 %v13997_v55  ;;  %v5563_v7 = vpop.permute.xlu0 %5562 }
 0xd2c   : > { %5169 = vmax.xlane.f32.xlu0 %v14002_v40  ;;  %9213 = vmatpush3.bf16.msra.mxu0 %v5448_v48  ;;  %v5565_v25 = vpop.permute.xlu1 %5564 }
 0xd2d   : > { %9237 = vmatpush3.bf16.msra.mxu1 %v5561_v39  ;;  %9214 = vmatprep.subr.bf16.mxu0 %v5450_v29 }
 0xd2e   : > { %9238 = vmatprep.subr.bf16.mxu1 %v5563_v7  ;;  %5167 = vmax.xlane.f32.xlu1 %v14007_v50 }
 0xd30   : > { %5165 = vmax.xlane.f32.xlu0 %v14012_v13  ;;  %9215 = vmatpush3.bf16.msra.mxu0 %v5450_v29 }
 0xd31   : > { %9239 = vmatpush3.bf16.msra.mxu1 %v5563_v7  ;;  %9216 = vmatprep.subr.bf16.mxu0 %v5452_v41 }
 0xd32   : > { %9240 = vmatprep.subr.bf16.mxu1 %v5565_v25  ;;  %5179 = vmax.xlane.f32.xlu1 %v14017_v17 }
 0xd34   : > { %5177 = vmax.xlane.f32.xlu0 %v14022_v18  ;;  %9217 = vmatpush3.bf16.msra.mxu0 %v5452_v41 }
 0xd35   : > { %9241 = vmatpush3.bf16.msra.mxu1 %v5565_v25 }
 0xd36   : > { %5175 = vmax.xlane.f32.xlu1 %v14027_v38 }
 0xd38   : > { %5173 = vmax.xlane.f32.xlu0 %v14032_v49 }
 0xd3a   : > { %5187 = vmax.xlane.f32.xlu1 %v14037_v6 }
 0xd3c   : > { %5185 = vmax.xlane.f32.xlu0 %v14042_v35 }
 0xd3e   : > { %5183 = vmax.xlane.f32.xlu1 %v14047_v59 }
 0xd40   : > { %5181 = vmax.xlane.f32.xlu0 %v14052_v3 }
 0xd42   : > { %5195 = vmax.xlane.f32.xlu1 %v14057_v27 }
 0xd44   : > { %5193 = vmax.xlane.f32.xlu0 %v14062_v52 }
 0xd46   : > { %5191 = vmax.xlane.f32.xlu1 %v14067_v4 }
 0xd48   : > { %5189 = vmax.xlane.f32.xlu0 %v14072_v24 }
 0xd57   : > { %5568 = vrot.lane.b32.xlu1 %v16071_v33, %s10570_s21 }
 0xd5b   : > { %v5306_v54 = vpop.xlane.xlu0 %5305 }
 0xd5d   : > { %v5298_v14 = vpop.xlane.xlu1 %5297 }
 0xd5e   : > { %5566 = vrot.lane.b32.xlu0 %v16072_v1, %s10570_s21 }
 0xd5f   : > { %v5302_v16 = vpop.xlane.xlu0 %5301 }
 0xd61   : > { %v5294_v44 = vpop.xlane.xlu1 %5293 }
 0xd63   : > { %v5308_v31 = vpop.xlane.xlu0 %5307 }
 0xd65   : > { %v5300_v23 = vpop.xlane.xlu1 %5299 }
 0xd66   : > { %10223 = vrcp.f32 %v5300_v23 }
 0xd67   : > { %v5314_v34 = vpop.xlane.xlu0 %5313  ;;  %10225 = vrcp.f32 %v5294_v44 }
 0xd68   : > { %10227 = vrcp.f32 %v5298_v14 }
 0xd69   : > { %v5296_v30 = vpop.xlane.xlu1 %5295 }
 0xd6a   : > { %10229 = vrcp.f32 %v5296_v30 }
 0xd6b   : > { %v5316_v43 = vpop.xlane.xlu0 %5315  ;;  %10231 = vrcp.f32 %v5302_v16 }
 0xd6d   : > { %v5304_v36 = vpop.xlane.xlu1 %5303 }
 0xd6e   : > { %10233 = vrcp.f32 %v5304_v36 }
 0xd6f   : > { %10235 = vrcp.f32 %v5308_v31  ;;  %v5312_v26 = vpop.xlane.xlu0 %5311 }
 0xd70   : > { %10237 = vrcp.f32 %v5306_v54  ;;  %v10224_v11 = vpop.eup %10223 }
 0xd71   : > { %10239 = vrcp.f32 %v5312_v26  ;;  %v5310_v22 = vpop.xlane.xlu1 %5309  ;;  %v10226_v15 = vpop.eup %10225  ;;  %v5392_v42 = vmul.f32 %v10224_v11, %v13959_v62 }
 0xd72   : > { %10241 = vrcp.f32 %v5310_v22  ;;  %v10228_v63 = vpop.eup %10227  ;;  %v5389_v28 = vmul.f32 %v10226_v15, %v13953_v10 }
 0xd73   : > { %v5391_v29 = vmul.f32 %v10228_v63, %v13945_v61  ;;  %10243 = vrcp.f32 %v5316_v43 }
 0xd74   : > { %v10230_v0 = vpop.eup %10229  ;;  %10245 = vrcp.f32 %v5314_v34 }
 0xd75   : > { %v5390_v37 = vmul.f32 %v10230_v0, %v13965_v9  ;;  %v10232_v48 = vpop.eup %10231  ;;  %v5422_v39 = vpack.c.bf16 %v5392_v42, %v5391_v29 }
 0xd76   : > { %v5393_v25 = vmul.f32 %v10232_v48, %v13949_v53 }
 0xd77   : > { %v5421_v41 = vpack.c.bf16 %v5390_v37, %v5389_v28 }
 0xd78   : > { %v10234_v12 = vpop.eup %10233 }
 0xd79   : > { %v10236_v7 = vpop.eup %10235  ;;  %9218 = vmatprep.mubr.bf16.mxu0 %v5421_v41  ;;  %v5394_v45 = vmul.f32 %v10234_v12, %v13971_v2 }
 0xd7a   : > { %v10238_v21 = vpop.eup %10237  ;;  %9219 = vmatmul.mubr.bf16.vlgmr.msra.gmra.mrb[144].mxu0 %v5422_v39  ;;  %v5396_v9 = vmul.f32 %v10236_v7, %v13956_v20 }
 0xd7b   : > { %v10240_v62 = vpop.eup %10239  ;;  %v5423_v10 = vpack.c.bf16 %v5394_v45, %v5393_v25  ;;  %v5395_v32 = vmul.f32 %v10238_v21, %v13941_v8 }
 0xd7c   : > { %v10242_v5 = vpop.eup %10241  ;;  %v5398_v33 = vmul.f32 %v10240_v62, %v13974_v47 }
 0xd7d   : > { %9222 = vmatprep.mubr.bf16.mxu0 %v5423_v10  ;;  %v5397_v61 = vmul.f32 %v10242_v5, %v13977_v57  ;;  %v5424_v54 = vpack.c.bf16 %v5396_v9, %v5395_v32  ;;  %v10244_v14 = vpop.eup %10243 }
 0xd7e   : > { %v10246_v53 = vpop.eup %10245  ;;  %v5400_v2 = vmul.f32 %v10244_v14, %v13968_v56 }
 0xd7f   : > { %v5425_v1 = vpack.c.bf16 %v5398_v33, %v5397_v61  ;;  %v5399_v16 = vmul.f32 %v10246_v53, %v13962_v60 }
 0xd81   : > { %v5426_v44 = vpack.c.bf16 %v5400_v2, %v5399_v16 }
 0xd82   : > { %9223 = vmatmul.mubr.bf16.gmra.mrb[148].mxu0 %v5424_v54 }
 0xd83   : > { %9226 = vmatprep.mubr.bf16.mxu0 %v5425_v1 }
 0xd8a   : > { %9227 = vmatmul.mubr.bf16.gmra.mrb[152].mxu0 %v5426_v44 }
 0xdaf   : > { %v5322_v20 = vpop.xlane.xlu1 %5321 }
 0xdb1   : > { %v5324_v31 = vpop.xlane.xlu0 %5323 }
 0xdb2   : > { %10247 = vrcp.f32 %v5324_v31 }
 0xdb3   : > { %v5318_v57 = vpop.xlane.xlu1 %5317 }
 0xdb4   : > { %10249 = vrcp.f32 %v5318_v57 }
 0xdb5   : > { %10251 = vrcp.f32 %v5322_v20  ;;  %v5320_v8 = vpop.xlane.xlu0 %5319 }
 0xdb6   : > { %10253 = vrcp.f32 %v5320_v8 }
 0xdb7   : > { %v5172_v47 = vpop.xlane.xlu1 %5171 }
 0xdb8   : > { %v5216_v23 = vsub.f32 %v13997_v55, %v5172_v47 }
 0xdb9   : > { %v5170_v34 = vpop.xlane.xlu0 %5169 }
 0xdba   : > { %v5267_v30 = vmul.f32 1.442695, %v5216_v23  ;;  %v5215_v43 = vsub.f32 %v14002_v40, %v5170_v34 }
 0xdbb   : > { %v5168_v56 = vpop.xlane.xlu1 %5167 }
 0xdbc   : > { %10255 = vpow2.f32 %v5267_v30  ;;  %v5265_v60 = vmul.f32 1.442695, %v5215_v43  ;;  %v5214_v36 = vsub.f32 %v14007_v50, %v5168_v56  ;;  %v10248_v26 = vpop.eup %10247 }
 0xdbd   : > { %v5166_v11 = vpop.xlane.xlu0 %5165  ;;  %v5404_v40 = vmul.f32 %v10248_v26, %v13987_v51  ;;  %v16073_v26 = vld [vmem:[#allocation52_spill] sm:$0xff] }
 0xdbe   : > { %v10250_v22 = vpop.eup %10249  ;;  %10257 = vpow2.f32 %v5265_v60  ;;  %v5263_v15 = vmul.f32 1.442695, %v5214_v36  ;;  %v5213_v63 = vsub.f32 %v14012_v13, %v5166_v11  ;;  %v16074_v11 = vld [vmem:[#allocation51_spill] sm:$0xff] }
 0xdbf   : > { %v10252_v0 = vpop.eup %10251  ;;  %v5180_v42 = vpop.xlane.xlu1 %5179  ;;  %v5401_v29 = vmul.f32 %v10250_v22, %v13990_v46  ;;  %v16075_v22 = vld [vmem:[#allocation39_spill] sm:$0xff] }
 0xdc0   : > { %v10254_v28 = vpop.eup %10253  ;;  %10259 = vpow2.f32 %v5263_v15  ;;  %v5261_v55 = vmul.f32 1.442695, %v5213_v63  ;;  %v5220_v37 = vsub.f32 %v14017_v17, %v5180_v42  ;;  %v5403_v13 = vmul.f32 %v10252_v0, %v13984_v19  ;;  %v16076_v15 = vld [vmem:[#allocation16_spill] sm:$0xff]  ;;  %v16078_v42 = vld [vmem:[#allocation15_spill] sm:$0xff] }
 0xdc1   : > { %v5178_v48 = vpop.xlane.xlu0 %5177  ;;  %v5402_v50 = vmul.f32 %v10254_v28, %v13993_v58  ;;  %v16077_v63 = vpack.i.bf16 %v16075_v22, %v16076_v15  ;;  %v16079_v28 = vld [vmem:[#allocation17_spill] sm:$0xff] }
 0xdc2   : > { %10261 = vpow2.f32 %v5261_v55  ;;  %v5275_v41 = vmul.f32 1.442695, %v5220_v37  ;;  %v5219_v12 = vsub.f32 %v14022_v18, %v5178_v48  ;;  %v5428_v17 = vpack.c.bf16 %v5404_v40, %v5403_v13  ;;  %v16081_v48 = vld [vmem:[#allocation19_spill] sm:$0xff]  ;;  %v16084_v13 = vld [vmem:[#allocation20_spill] sm:$0xff] }
 0xdc3   : > { %v5176_v39 = vpop.xlane.xlu1 %5175  ;;  %v5427_v7 = vpack.c.bf16 %v5402_v50, %v5401_v29  ;;  %v16080_v55 = vpack.i.bf16 %v16078_v42, %v16079_v28  ;;  %v16082_v29 = vld [vmem:[#allocation21_spill] sm:$0xff] }
 0xdc4   : > { %10263 = vpow2.f32 %v5275_v41  ;;  %v5273_v25 = vmul.f32 1.442695, %v5219_v12  ;;  %v5218_v45 = vsub.f32 %v14027_v38, %v5176_v39  ;;  %v16083_v50 = vpack.i.bf16 %v16081_v48, %v16082_v29  ;;  %v16100_v48 = vld [vmem:[#allocation102_spill] sm:$0xff] }
 0xdc5   : > { %9230 = vmatprep.mubr.bf16.mxu0 %v5427_v7  ;;  %v5174_v51 = vpop.xlane.xlu0 %5173  ;;  %v9731_v7 = vld [vmem:[%s10727_s3] sm:$0xff]  }
 0xdc6   : > { %v14103_v21 = vpop.eup %10255  ;;  %10265 = vpow2.f32 %v5273_v25  ;;  %v5271_v46 = vmul.f32 1.442695, %v5218_v45  ;;  %v5217_v58 = vsub.f32 %v14032_v49, %v5174_v51  ;;  %9231 = vmatmul.mubr.bf16.gmra.mrb[156].mxu0 %v5428_v17  ;;  %9266 = vmatprep.subr.bf16.mxu0 %v9731_v7  ;;  %v9732_v25 = vld [vmem:[%s10727_s3 + $0x8] sm:$0xff]  }
 0xdc7   : > { %5331 = vadd.xlane.f32.xlu0 %v14103_v21  ;;  %v5188_v18 = vpop.xlane.xlu1 %5187  ;;  %9267 = vmatpush3.bf16.msra.mxu0 %v9731_v7 }
 0xdc8   : > { %v14107_v19 = vpop.eup %10257  ;;  %10267 = vpow2.f32 %v5271_v46  ;;  %v5269_v62 = vmul.f32 1.442695, %v5217_v58  ;;  %v5224_v10 = vsub.f32 %v14037_v6, %v5188_v18  ;;  %9268 = vmatprep.subr.bf16.mxu0 %v9732_v25 }
 0xdc9   : > { %5329 = vadd.xlane.f32.xlu1 %v14107_v19  ;;  %v5186_v38 = vpop.xlane.xlu0 %5185 }
 0xdca   : > { %v14111_v5 = vpop.eup %10259  ;;  %10269 = vpow2.f32 %v5269_v62  ;;  %v5283_v9 = vmul.f32 1.442695, %v5224_v10  ;;  %v5223_v61 = vsub.f32 %v14042_v35, %v5186_v38 }
 0xdcb   : > { %5327 = vadd.xlane.f32.xlu0 %v14111_v5  ;;  %v5184_v49 = vpop.xlane.xlu1 %5183  ;;  %9269 = vmatpush3.bf16.msra.mxu0 %v9732_v25 }
 0xdcc   : > { %v14115_v32 = vpop.eup %10261  ;;  %10271 = vpow2.f32 %v5283_v9  ;;  %v5281_v33 = vmul.f32 1.442695, %v5223_v61  ;;  %v5222_v54 = vsub.f32 %v14047_v59, %v5184_v49  ;;  %v16087_v61 = vld [vmem:[#allocation22_spill] sm:$0xff]  ;;  %v16088_v49 = vld [vmem:[#allocation24_spill] sm:$0xff] }
 0xdcd   : > { %5325 = vadd.xlane.f32.xlu1 %v14115_v32  ;;  %v5182_v6 = vpop.xlane.xlu0 %5181 }
 0xdce   : > { %v14119_v14 = vpop.eup %10263  ;;  %10273 = vpow2.f32 %v5281_v33  ;;  %v5279_v1 = vmul.f32 1.442695, %v5222_v54  ;;  %v5221_v53 = vsub.f32 %v14052_v3, %v5182_v6  ;;  %v16089_v33 = vpack.i.bf16 %v16087_v61, %v16088_v49  ;;  %v16090_v54 = vld [vmem:[#allocation101_spill] sm:$0xff]  ;;  %v16091_v6 = vld [vmem:[#allocation18_spill] sm:$0xff] }
 0xdcf   : > { %5339 = vadd.xlane.f32.xlu0 %v14119_v14  ;;  %v5196_v35 = vpop.xlane.xlu1 %5195 }
 0xdd0   : > { %v14123_v2 = vpop.eup %10265  ;;  %10275 = vpow2.f32 %v5279_v1  ;;  %v5277_v16 = vmul.f32 1.442695, %v5221_v53  ;;  %v5228_v37 = vsub.f32 %v14057_v27, %v5196_v35  ;;  %v16085_v27 = vld [vmem:[#allocation14_spill] sm:$0xff]  ;;  %v16092_v1 = vpack.i.bf16 %v16090_v54, %v16091_v6  ;;  %v16111_v54 = vld [vmem:[#allocation108_spill] sm:$0xff] }
 0xdd1   : > { %5337 = vadd.xlane.f32.xlu1 %v14123_v2  ;;  %v5194_v44 = vpop.xlane.xlu0 %5193  ;;  %v16086_v39 = vpack.i.bf16 %v16084_v13, %v16085_v27  ;;  %v16103_v13 = vld [vmem:[#allocation103_spill] sm:$0xff]  ;;  %v16112_v6 = vld [vmem:[#allocation106_spill] sm:$0xff] }
 0xdd2   : > { %v14126_v59 = vpop.eup %10267  ;;  %10277 = vpow2.f32 %v5277_v16  ;;  %v5227_v20 = vsub.f32 %v14062_v52, %v5194_v44  ;;  %v5291_v41 = vmul.f32 1.442695, %v5228_v37 }
 0xdd3   : > { %5335 = vadd.xlane.f32.xlu0 %v14126_v59  ;;  %v5192_v57 = vpop.xlane.xlu1 %5191 }
 0xdd4   : > { %v14130_v31 = vpop.eup %10269  ;;  %v5289_v3 = vmul.f32 1.442695, %v5227_v20  ;;  %v5226_v0 = vsub.f32 %v14067_v4, %v5192_v57  ;;  %v16093_v57 = vld [vmem:[#allocation30_spill] sm:$0xff] }
 0xdd5   : > { %5333 = vadd.xlane.f32.xlu1 %v14130_v31  ;;  %v5190_v8 = vpop.xlane.xlu0 %5189 }
 0xdd6   : > { %v14133_v47 = vpop.eup %10271  ;;  %10279 = vpow2.f32 %v5289_v3  ;;  %v5225_v23 = vsub.f32 %v14072_v24, %v5190_v8  ;;  %v5287_v40 = vmul.f32 1.442695, %v5226_v0  ;;  %v16094_v8 = vld [vmem:[#allocation32_spill] sm:$0xff] }
 0xdd7   : > { %5347 = vadd.xlane.f32.xlu0 %v14133_v47  ;;  %v5569_v56 = vpop.permute.xlu1 %5568 }
 0xdd8   : > { %v14137_v34 = vpop.eup %10273  ;;  %v5285_v30 = vmul.f32 1.442695, %v5225_v23  ;;  %v16095_v23 = vpack.i.bf16 %v16093_v57, %v16094_v8  ;;  %v16120_v8 = vld [vmem:[#allocation26_spill] sm:$0xff] }
 0xdd9   : > { %5345 = vadd.xlane.f32.xlu1 %v14137_v34  ;;  %v5567_v52 = vpop.permute.xlu0 %5566 }
 0xdda   : > { %v14140_v43 = vpop.eup %10275  ;;  %10281 = vpow2.f32 %v5285_v30  ;;  %9242 = vmatprep.subr.bf16.mxu1 %v5567_v52  ;;  %v16096_v30 = vld [vmem:[#allocation25_spill] sm:$0xff] }
 0xddb   : > { %5343 = vadd.xlane.f32.xlu0 %v14140_v43  ;;  %9243 = vmatpush3.bf16.msra.mxu1 %v5567_v52  ;;  %10283 = vpow2.f32 %v5287_v40  ;;  %v16097_v52 = vld [vmem:[#allocation23_spill] sm:$0xff]  ;;  %v16099_v40 = vld [vmem:[#allocation104_spill] sm:$0xff] }
 0xddc   : > { %v14143_v60 = vpop.eup %10277  ;;  %9244 = vmatprep.subr.bf16.mxu1 %v5569_v56  ;;  %10285 = vpow2.f32 %v5291_v41  ;;  %v16101_v29 = vpack.i.bf16 %v16099_v40, %v16100_v48  ;;  %v16102_v41 = vld [vmem:[#allocation105_spill] sm:$0xff] }
 0xddd   : > { %5341 = vadd.xlane.f32.xlu1 %v14143_v60  ;;  %v16104_v27 = vpack.i.bf16 %v16102_v41, %v16103_v13 }
 0xddf   : > { %9245 = vmatpush3.bf16.msra.mxu1 %v5569_v56  ;;  %v16098_v56 = vpack.i.bf16 %v16096_v30, %v16097_v52 }
 0xde0   : > { %v14146_v24 = vpop.eup %10279 }
 0xde1   : > { %5353 = vadd.xlane.f32.xlu1 %v14146_v24 }
 0xde4   : > { %v14149_v36 = vpop.eup %10281 }
 0xde5   : > { %5349 = vadd.xlane.f32.xlu1 %v14149_v36  ;;  %v14170_v12 = vpop.eup %10283 }
 0xde6   : > { %v14173_v4 = vpop.eup %10285 }
 0xdf1   : > { %5570 = vrot.lane.b32.xlu0 %v16073_v26, %s10570_s21 }
 0xdf6   : > { %5572 = vrot.lane.b32.xlu1 %v16074_v11, %s10570_s21 }
 0xdfa   : > { %9491 = vrot.lane.b32.xlu1 %v16077_v63, %s10571_s29 }
 0xdfe   : > { %9496 = vrot.lane.b32.xlu1 %v16080_v55, %s10572_s2 }
 0xe02   : > { %9501 = vrot.lane.b32.xlu1 %v16083_v50, %s10572_s2 }
 0xe10   : > { %5351 = vadd.xlane.f32.xlu0 %v14170_v12 }
 0xe14   : > { %5355 = vadd.xlane.f32.xlu0 %v14173_v4 }
 0xe2a   : > { %9486 = vrot.lane.b32.xlu0 %v16086_v39, %s10571_s29 }
 0xe4d   : > { %v9220_v45 = vpop.f32.mrb[144].mxu0 }
 0xe4e   : > { %v5495_v17 = vpop.f32.mrb[145].mxu0 }
 0xe4f   : > { %v9221_v51 = vpop.f32.mrb[146].mxu0 }
 0xe50   : > { %v9510_v46 = vpack.i.bf16 %v9221_v51, %v9220_v45  ;;  %v5498_v58 = vpop.f32.mrb[147].mxu0  ;;  %v16105_v45 = vld [vmem:[#allocation34_spill] sm:$0xff] }
 0xe51   : > { %v9505_v18 = vpack.i.bf16 %v5498_v58, %v5495_v17  ;;  %v16106_v17 = vld [vmem:[#allocation36_spill] sm:$0xff] }
 0xe52   : > { %9511 = vrot.lane.b32.xlu1 %v9510_v46, %s10573_s24  ;;  %v16107_v51 = vpack.i.bf16 %v16105_v45, %v16106_v17 }
 0xe53   : > { %9506 = vrot.lane.b32.xlu0 %v9505_v18, %s10573_s24  ;;  %v16108_v18 = vld [vmem:[#allocation27_spill] sm:$0xff] }
 0xe54   : > { %v5332_v62 = vpop.xlane.xlu0 %5331 }
 0xe55   : > { %v9224_v10 = vpop.f32.mrb[148].mxu0 }
 0xe56   : > { %v5511_v38 = vpop.f32.mrb[149].mxu0  ;;  %v5330_v9 = vpop.xlane.xlu1 %5329  ;;  %9521 = vrot.lane.b32.xlu1 %v16089_v33, %s10571_s29 }
 0xe57   : > { %9516 = vrot.lane.b32.xlu0 %v16092_v1, %s10571_s29  ;;  %v9225_v53 = vpop.f32.mrb[150].mxu0  ;;  %v16113_v1 = vpack.i.bf16 %v16111_v54, %v16112_v6 }
 0xe58   : > { %v9540_v35 = vpack.i.bf16 %v9225_v53, %v9224_v10  ;;  %v5514_v16 = vpop.f32.mrb[151].mxu0  ;;  %v5328_v44 = vpop.xlane.xlu0 %5327  ;;  %v16109_v10 = vld [vmem:[#allocation29_spill] sm:$0xff]  ;;  %v16115_v53 = vld [vmem:[#allocation107_spill] sm:$0xff] }
 0xe59   : > { %v9535_v20 = vpack.i.bf16 %v5514_v16, %v5511_v38  ;;  %10287 = vrcp.f32 %v5328_v44  ;;  %v16110_v38 = vpack.i.bf16 %v16108_v18, %v16109_v10  ;;  %v16117_v16 = vld [vmem:[#allocation41_spill] sm:$0xff]  ;;  %v16118_v44 = vld [vmem:[#allocation43_spill] sm:$0xff] }
 0xe5a   : > { %v5326_v3 = vpop.xlane.xlu1 %5325  ;;  %9531 = vrot.lane.b32.xlu1 %v16095_v23, %s10572_s2  ;;  %v16121_v23 = vld [vmem:[#allocation28_spill] sm:$0xff] }
 0xe5b   : > { %10289 = vrcp.f32 %v5326_v3  ;;  %9526 = vrot.lane.b32.xlu0 %v16098_v56, %s10572_s2  ;;  %v16122_v30 = vpack.i.bf16 %v16120_v8, %v16121_v23  ;;  %v16142_v23 = vld [vmem:[#allocation10_spill] sm:$0xff] }
 0xe5c   : > { %v5340_v26 = vpop.xlane.xlu0 %5339  ;;  %10291 = vrcp.f32 %v5330_v9  ;;  %v16114_v9 = vld [vmem:[#allocation109_spill] sm:$0xff] }
 0xe5d   : > { %v9228_v11 = vpop.f32.mrb[152].mxu0 }
 0xe5e   : > { %v5527_v22 = vpop.f32.mrb[153].mxu0  ;;  %v5338_v15 = vpop.xlane.xlu1 %5337  ;;  %9541 = vrot.lane.b32.xlu1 %v9540_v35, %s10573_s24 }
 0xe5f   : > { %9536 = vrot.lane.b32.xlu0 %v9535_v20, %s10573_s24  ;;  %v9229_v63 = vpop.f32.mrb[154].mxu0  ;;  %v16119_v20 = vpack.i.bf16 %v16117_v16, %v16118_v44  ;;  %v16138_v16 = vld [vmem:[#allocation117_spill] sm:$0xff]  ;;  %v16139_v44 = vld [vmem:[#allocation115_spill] sm:$0xff] }
 0xe60   : > { %v9570_v0 = vpack.i.bf16 %v9229_v63, %v9228_v11  ;;  %v5530_v42 = vpop.f32.mrb[155].mxu0  ;;  %v5336_v28 = vpop.xlane.xlu0 %5335 }
 0xe61   : > { %v9565_v55 = vpack.i.bf16 %v5530_v42, %v5527_v22 }
 0xe62   : > { %v5334_v37 = vpop.xlane.xlu1 %5333  ;;  %9551 = vrot.lane.b32.xlu1 %v16101_v29, %s10571_s29 }
 0xe63   : > { %v10288_v50 = vpop.eup %10287  ;;  %9546 = vrot.lane.b32.xlu0 %v16104_v27, %s10571_s29  ;;  %10293 = vrcp.f32 %v5334_v37 }
 0xe64   : > { %v5348_v39 = vpop.xlane.xlu0 %5347  ;;  %v5406_v58 = vmul.f32 %v10288_v50, %v14111_v5  ;;  %10295 = vrcp.f32 %v5332_v62  ;;  %v16116_v62 = vpack.i.bf16 %v16114_v9, %v16115_v53  ;;  %v16135_v53 = vld [vmem:[#allocation116_spill] sm:$0xff] }
 0xe65   : > { %v10290_v7 = vpop.eup %10289  ;;  %10297 = vrcp.f32 %v5336_v28 }
 0xe66   : > { %v5346_v25 = vpop.xlane.xlu1 %5345  ;;  %9561 = vrot.lane.b32.xlu1 %v16107_v51, %s10572_s2  ;;  %v5405_v46 = vmul.f32 %v10290_v7, %v14115_v32  ;;  %10299 = vrcp.f32 %v5338_v15  ;;  %v10292_v35 = vpop.eup %10291 }
 0xe67   : > { %9556 = vrot.lane.b32.xlu0 %v16110_v38, %s10572_s2  ;;  %v5407_v11 = vmul.f32 %v10292_v35, %v14107_v19  ;;  %v16129_v38 = vld [vmem:[#allocation8_spill] sm:$0xff] }
 0xe68   : > { %v5344_v61 = vpop.xlane.xlu0 %5343  ;;  %v5429_v49 = vpack.c.bf16 %v5406_v58, %v5405_v46  ;;  %v16126_v46 = vld [vmem:[#allocation113_spill] sm:$0xff]  ;;  %v16127_v58 = vld [vmem:[#allocation111_spill] sm:$0xff] }
 0xe69   : > { %v16128_v18 = vpack.i.bf16 %v16126_v46, %v16127_v58 }
 0xe6a   : > { %v5342_v33 = vpop.xlane.xlu1 %5341  ;;  %9571 = vrot.lane.b32.xlu1 %v9570_v0, %s10573_s24  ;;  %9250 = vmatprep.mubr.bf16.mxu1 %v5429_v49 }
 0xe6b   : > { %9566 = vrot.lane.b32.xlu0 %v9565_v55, %s10573_s24  ;;  %10301 = vrcp.f32 %v5342_v33  ;;  %v16132_v33 = vld [vmem:[#allocation9_spill] sm:$0xff] }
 0xe6c   : > { %v5571_v32 = vpop.permute.xlu0 %5570  ;;  %10303 = vrcp.f32 %v5340_v26 }
 0xe6d   : > { %9246 = vmatprep.subr.bf16.mxu1 %v5571_v32  ;;  %v10294_v57 = vpop.eup %10293  ;;  %10305 = vrcp.f32 %v5344_v61  ;;  %v16130_v61 = vld [vmem:[#allocation6_spill] sm:$0xff] }
 0xe6e   : > { %v5354_v5 = vpop.xlane.xlu1 %5353  ;;  %9581 = vrot.lane.b32.xlu1 %v16113_v1, %s10571_s29  ;;  %9247 = vmatpush3.bf16.msra.mxu1 %v5571_v32  ;;  %v10296_v52 = vpop.eup %10295  ;;  %v5409_v26 = vmul.f32 %v10294_v57, %v14130_v31  ;;  %10307 = vrcp.f32 %v5346_v25  ;;  %v16131_v49 = vpack.i.bf16 %v16129_v38, %v16130_v61  ;;  %v16133_v32 = vld [vmem:[#allocation7_spill] sm:$0xff] }
 0xe6f   : > { %9576 = vrot.lane.b32.xlu0 %v16116_v62, %s10571_s29  ;;  %v10298_v56 = vpop.eup %10297  ;;  %v5408_v15 = vmul.f32 %v10296_v52, %v14103_v21  ;;  %10309 = vrcp.f32 %v5348_v39  ;;  %v16136_v62 = vld [vmem:[#allocation114_spill] sm:$0xff]  ;;  %v16144_v52 = vld [vmem:[#allocation13_spill] sm:$0xff] }
 0xe70   : > { %v5410_v63 = vmul.f32 %v10298_v56, %v14126_v59  ;;  %v10300_v42 = vpop.eup %10299  ;;  %v16137_v35 = vpack.i.bf16 %v16135_v53, %v16136_v62  ;;  %v16145_v56 = vld [vmem:[#allocation11_spill] sm:$0xff] }
 0xe71   : > { %v5430_v0 = vpack.c.bf16 %v5408_v15, %v5407_v11  ;;  %v5411_v19 = vmul.f32 %v10300_v42, %v14123_v2  ;;  %v16146_v11 = vpack.i.bf16 %v16144_v52, %v16145_v56  ;;  %v16148_v15 = vld [vmem:[#allocation118_spill] sm:$0xff] }
 0xe72   : > { %9591 = vrot.lane.b32.xlu1 %v16119_v20, %s10572_s2  ;;  %v5350_v3 = vpop.xlane.xlu1 %5349  ;;  %v5431_v28 = vpack.c.bf16 %v5410_v63, %v5409_v26  ;;  %v16140_v20 = vpack.i.bf16 %v16138_v16, %v16139_v44  ;;  %v16147_v26 = vld [vmem:[#allocation120_spill] sm:$0xff]  ;;  %v16160_v56 = vld [vmem:[#allocation74_spill] sm:$0xff] }
 0xe73   : > { %9586 = vrot.lane.b32.xlu0 %v16122_v30, %s10572_s2  ;;  %10311 = vrcp.f32 %v5350_v3  ;;  %v16149_v63 = vpack.i.bf16 %v16147_v26, %v16148_v15 }
 0xe75   : > { %v10302_v55 = vpop.eup %10301 }
 0xe76   : > { %v5573_v22 = vpop.permute.xlu1 %5572  ;;  %v10304_v37 = vpop.eup %10303  ;;  %v5413_v31 = vmul.f32 %v10302_v55, %v14143_v60 }
 0xe77   : > { %9248 = vmatprep.subr.bf16.mxu1 %v5573_v22  ;;  %v10306_v40 = vpop.eup %10305  ;;  %v5412_v21 = vmul.f32 %v10304_v37, %v14119_v14 }
 0xe78   : > { %9249 = vmatpush3.bf16.msra.mxu1 %v5573_v22  ;;  %v5414_v48 = vmul.f32 %v10306_v40, %v14140_v43  ;;  %v10308_v50 = vpop.eup %10307 }
 0xe79   : > { %v5432_v29 = vpack.c.bf16 %v5412_v21, %v5411_v19  ;;  %v10310_v41 = vpop.eup %10309  ;;  %v5415_v13 = vmul.f32 %v10308_v50, %v14137_v34  ;;  %v16124_v34 = vld [vmem:[#allocation110_spill] sm:$0xff]  ;;  %v16153_v50 = vld [vmem:[#allocation71_spill] sm:$0xff] }
 0xe7a   : > { %v5433_v59 = vpack.c.bf16 %v5414_v48, %v5413_v31  ;;  %v5416_v27 = vmul.f32 %v10310_v41, %v14133_v47  ;;  %v16123_v47 = vld [vmem:[#allocation112_spill] sm:$0xff]  ;;  %v16154_v41 = vld [vmem:[#allocation69_spill] sm:$0xff] }
 0xe7b   : > { %9251 = vmatmul.mubr.bf16.vlgmr.msra.gmra.mrb[176].mxu1 %v5430_v0  ;;  %v16125_v51 = vpack.i.bf16 %v16123_v47, %v16124_v34  ;;  %v16151_v0 = vld [vmem:[#allocation119_spill] sm:$0xff] }
 0xe7c   : > { %9254 = vmatprep.mubr.bf16.mxu1 %v5431_v28  ;;  %v5434_v39 = vpack.c.bf16 %v5416_v27, %v5415_v13  ;;  %v16155_v27 = vld [vmem:[#allocation72_spill] sm:$0xff] }
 0xe7d   : > { %v10312_v10 = vpop.eup %10311 }
 0xe7e   : > { %v5417_v6 = vmul.f32 %v10312_v10, %v14149_v36 }
 0xe83   : > { %9255 = vmatmul.mubr.bf16.gmra.mrb[180].mxu1 %v5432_v29 }
 0xe84   : > { %9258 = vmatprep.mubr.bf16.mxu1 %v5433_v59 }
 0xe8b   : > { %9259 = vmatmul.mubr.bf16.gmra.mrb[184].mxu1 %v5434_v39 }
 0xe99   : > { %v9232_v7 = vpop.f32.mrb[156].mxu0 }
 0xe9a   : > { %v5543_v2 = vpop.f32.mrb[157].mxu0 }
 0xe9b   : > { %v9233_v25 = vpop.f32.mrb[158].mxu0 }
 0xe9c   : > { %v9600_v60 = vpack.i.bf16 %v9233_v25, %v9232_v7  ;;  %v5546_v14 = vpop.f32.mrb[159].mxu0  ;;  %v16156_v7 = vld [vmem:[#allocation70_spill] sm:$0xff] }
 0xe9d   : > { %v9595_v45 = vpack.i.bf16 %v5546_v14, %v5543_v2  ;;  %v5352_v43 = vpop.xlane.xlu0 %5351 }
 0xe9e   : > { %10313 = vrcp.f32 %v5352_v43  ;;  %9601 = vrot.lane.b32.xlu1 %v9600_v60, %s10573_s24 }
 0xe9f   : > { %9596 = vrot.lane.b32.xlu0 %v9595_v45, %s10573_s24  ;;  %10315 = vrcp.f32 %v5354_v5  ;;  %v16134_v5 = vpack.i.bf16 %v16132_v33, %v16133_v32 }
 0xea1   : > { %v5356_v17 = vpop.xlane.xlu0 %5355 }
 0xea2   : > { %10317 = vrcp.f32 %v5356_v17  ;;  %9611 = vrot.lane.b32.xlu1 %v16125_v51, %s10571_s29 }
 0xea3   : > { %9606 = vrot.lane.b32.xlu0 %v16128_v18, %s10571_s29 }
 0xea5   : > { %v9487_v55 = vpop.permute.xlu0 %9486 }
 0xea6   : > { %9621 = vrot.lane.b32.xlu1 %v16131_v49, %s10572_s2  ;;  %v9489_v31 = vunpack.i.h.bf16 %v9487_v55  ;;  %v9488_v21 = vunpack.i.l.bf16 %v9487_v55 }
 0xea7   : > { %9616 = vrot.lane.b32.xlu0 %v16134_v5, %s10572_s2 }
 0xea8   : > { %v10314_v54 = vpop.eup %10313  ;;  %v6064_v39 = vsel %vm2142_vm2, %v16155_v27, %v9489_v31  ;;  %v6063_v2 = vsel %vm2142_vm2, %v16156_v7, %v9488_v21 }
 0xea9   : > { %v5418_v1 = vmul.f32 %v10314_v54, %v14170_v12  ;;  %v10316_v9 = vpop.eup %10315  ;;  %v16141_v12 = vld [vmem:[#allocation12_spill] sm:$0xff] }
 0xeaa   : > { %9631 = vrot.lane.b32.xlu1 %v16137_v35, %s10571_s29  ;;  %v5419_v8 = vmul.f32 %v10316_v9, %v14146_v24  ;;  %v16143_v30 = vpack.i.bf16 %v16141_v12, %v16142_v23  ;;  %v9492_v24 = vpop.permute.xlu1 %9491 }
 0xeab   : > { %9626 = vrot.lane.b32.xlu0 %v16140_v20, %s10571_s29  ;;  %v5435_v3 = vpack.c.bf16 %v5418_v1, %v5417_v6  ;;  %v9494_v40 = vunpack.i.h.bf16 %v9492_v24  ;;  %v9493_v19 = vunpack.i.l.bf16 %v9492_v24 }
 0xeac   : > { %v10318_v57 = vpop.eup %10317 }
 0xead   : > { %9262 = vmatprep.mubr.bf16.mxu1 %v5435_v3  ;;  %v5420_v36 = vmul.f32 %v10318_v57, %v14173_v4  ;;  %v16150_v4 = vld [vmem:[#allocation121_spill] sm:$0xff]  ;;  %v6066_v59 = vsel %vm2142_vm2, %v16153_v50, %v9494_v40  ;;  %v6065_v13 = vsel %vm2142_vm2, %v16154_v41, %v9493_v19  ;;  %v16157_v57 = vld [vmem:[#allocation75_spill] sm:$0xff] }
 0xeae   : > { %9641 = vrot.lane.b32.xlu1 %v16143_v30, %s10572_s2  ;;  %v16152_v42 = vpack.i.bf16 %v16150_v4, %v16151_v0  ;;  %v9497_v28 = vpop.permute.xlu1 %9496  ;;  %v16159_v30 = vld [vmem:[#allocation76_spill] sm:$0xff] }
 0xeaf   : > { %9636 = vrot.lane.b32.xlu0 %v16146_v11, %s10572_s2  ;;  %v5436_v22 = vpack.c.bf16 %v5420_v36, %v5419_v8  ;;  %v9499_v60 = vunpack.i.h.bf16 %v9497_v28  ;;  %v9498_v14 = vunpack.i.l.bf16 %v9497_v28  ;;  %v16158_v36 = vld [vmem:[#allocation73_spill] sm:$0xff] }
 0xeb1   : > { %9263 = vmatmul.mubr.bf16.gmra.mrb[188].mxu1 %v5436_v22  ;;  %v6096_v10 = vsel %vm6095_vm5, %v6063_v2, %v9498_v14  ;;  %v6097_v38 = vsel %vm6095_vm5, %v6064_v39, %v9499_v60  ;;  %v16161_v14 = vld [vmem:[#allocation79_spill] sm:$0xff] }
 0xeb2   : > { %9651 = vrot.lane.b32.xlu1 %v16149_v63, %s10571_s29  ;;  %v9502_v37 = vpop.permute.xlu1 %9501 }
 0xeb3   : > { %9646 = vrot.lane.b32.xlu0 %v16152_v42, %s10571_s29  ;;  %v9504_v48 = vunpack.i.h.bf16 %v9502_v37  ;;  %v9503_v29 = vunpack.i.l.bf16 %v9502_v37 }
 0xeb5   : > { %v6098_v47 = vsel %vm6095_vm5, %v6065_v13, %v9503_v29  ;;  %v6099_v34 = vsel %vm6095_vm5, %v6066_v59, %v9504_v48 }
 0xec4   : > { %v9512_v25 = vpop.permute.xlu1 %9511 }
 0xec5   : > { %v9514_v45 = vunpack.i.h.bf16 %v9512_v25  ;;  %v9513_v43 = vunpack.i.l.bf16 %v9512_v25  ;;  %v9507_v17 = vpop.permute.xlu0 %9506 }
 0xec6   : > { %v9509_v51 = vunpack.i.h.bf16 %v9507_v17  ;;  %v9508_v46 = vunpack.i.l.bf16 %v9507_v17 }
 0xec7   : > { %v6131_v58 = vsel %vm6128_vm6, %v6098_v47, %v9513_v43  ;;  %v6132_v18 = vsel %vm6128_vm6, %v6099_v34, %v9514_v45  ;;  %v16162_v43 = vld [vmem:[#allocation77_spill] sm:$0xff]  ;;  %v16163_v34 = vld [vmem:[#allocation80_spill] sm:$0xff] }
 0xec8   : > { %v6162_v61 = vpack.c.bf16 %v6132_v18, %v6131_v58  ;;  %v6129_v49 = vsel %vm6128_vm6, %v6096_v10, %v9508_v46  ;;  %v6130_v33 = vsel %vm6128_vm6, %v6097_v38, %v9509_v51  ;;  %v9522_v32 = vpop.permute.xlu1 %9521  ;;  %v16164_v46 = vld [vmem:[#allocation78_spill] sm:$0xff] }
 0xec9   : > { %v9517_v5 = vpop.permute.xlu0 %9516  ;;  %v6161_v54 = vpack.c.bf16 %v6130_v33, %v6129_v49  ;;  %v9524_v6 = vunpack.i.h.bf16 %v9522_v32  ;;  %v9523_v1 = vunpack.i.l.bf16 %v9522_v32 }
 0xeca   : > { %v9519_v53 = vunpack.i.h.bf16 %v9517_v5  ;;  %v9518_v62 = vunpack.i.l.bf16 %v9517_v5 }
 0xecb   : > { %9270 = vmatprep.mubr.msk.bf16.mxu0 %vm984_vm1, %v6161_v54  ;;  %v6070_v8 = vsel %vm2142_vm2, %v16157_v57, %v9524_v6  ;;  %v6069_v12 = vsel %vm2142_vm2, %v16158_v36, %v9523_v1 }
 0xecc   : > { %v9532_v9 = vpop.permute.xlu1 %9531  ;;  %9271 = vmatmul.mubr.msk.bf16.vlgmr.msra.gmra.mrb[160].mxu0 %vm984_vm1, %v6162_v61  ;;  %v6068_v52 = vsel %vm2142_vm2, %v16159_v30, %v9519_v53  ;;  %v6067_v11 = vsel %vm2142_vm2, %v16160_v56, %v9518_v62 }
 0xecd   : > { %v9527_v35 = vpop.permute.xlu0 %9526  ;;  %v9534_v16 = vunpack.i.h.bf16 %v9532_v9  ;;  %v9533_v44 = vunpack.i.l.bf16 %v9532_v9 }
 0xece   : > { %v9529_v20 = vunpack.i.h.bf16 %v9527_v35  ;;  %v9528_v3 = vunpack.i.l.bf16 %v9527_v35 }
 0xecf   : > { %v6102_v63 = vsel %vm6095_vm5, %v6069_v12, %v9533_v44  ;;  %v6103_v24 = vsel %vm6095_vm5, %v6070_v8, %v9534_v16 }
 0xed0   : > { %v9542_v23 = vpop.permute.xlu1 %9541  ;;  %v6100_v42 = vsel %vm6095_vm5, %v6067_v11, %v9528_v3  ;;  %v6101_v28 = vsel %vm6095_vm5, %v6068_v52, %v9529_v20  ;;  %v16165_v11 = vld [vmem:[#allocation83_spill] sm:$0xff] }
 0xed1   : > { %v9544_v22 = vunpack.i.h.bf16 %v9542_v23  ;;  %v9543_v26 = vunpack.i.l.bf16 %v9542_v23  ;;  %v9537_v15 = vpop.permute.xlu0 %9536 }
 0xed2   : > { %v9539_v4 = vunpack.i.h.bf16 %v9537_v15  ;;  %v9538_v0 = vunpack.i.l.bf16 %v9537_v15 }
 0xed3   : > { %v6135_v55 = vsel %vm6128_vm6, %v6102_v63, %v9543_v26  ;;  %v6136_v37 = vsel %vm6128_vm6, %v6103_v24, %v9544_v22  ;;  %v16166_v26 = vld [vmem:[#allocation81_spill] sm:$0xff]  ;;  %v16167_v24 = vld [vmem:[#allocation84_spill] sm:$0xff] }
 0xed4   : > { %v6133_v40 = vsel %vm6128_vm6, %v6100_v42, %v9538_v0  ;;  %v6134_v19 = vsel %vm6128_vm6, %v6101_v28, %v9539_v4  ;;  %v9552_v31 = vpop.permute.xlu1 %9551  ;;  %v6164_v21 = vpack.c.bf16 %v6136_v37, %v6135_v55  ;;  %v16168_v0 = vld [vmem:[#allocation82_spill] sm:$0xff] }
 0xed5   : > { %v9547_v48 = vpop.permute.xlu0 %9546  ;;  %v6163_v29 = vpack.c.bf16 %v6134_v19, %v6133_v40  ;;  %v9554_v50 = vunpack.i.h.bf16 %v9552_v31  ;;  %v9553_v59 = vunpack.i.l.bf16 %v9552_v31 }
 0xed6   : > { %v9549_v13 = vunpack.i.h.bf16 %v9547_v48  ;;  %v9548_v27 = vunpack.i.l.bf16 %v9547_v48 }
 0xed7   : > { %9274 = vmatprep.mubr.msk.bf16.mxu0 %vm984_vm1, %v6163_v29  ;;  %v6074_v45 = vsel %vm2142_vm2, %v16161_v14, %v9554_v50  ;;  %v6073_v17 = vsel %vm2142_vm2, %v16162_v43, %v9553_v59 }
 0xed8   : > { %v9562_v41 = vpop.permute.xlu1 %9561  ;;  %9275 = vmatmul.mubr.msk.bf16.gmra.mrb[164].mxu0 %vm984_vm1, %v6164_v21  ;;  %v6072_v51 = vsel %vm2142_vm2, %v16163_v34, %v9549_v13  ;;  %v6071_v58 = vsel %vm2142_vm2, %v16164_v46, %v9548_v27  ;;  %v16172_v46 = vld [vmem:[#allocation54_spill] sm:$0xff] }
 0xed9   : > { %v9557_v39 = vpop.permute.xlu0 %9556  ;;  %v9564_v7 = vunpack.i.h.bf16 %v9562_v41  ;;  %v9563_v2 = vunpack.i.l.bf16 %v9562_v41 }
 0xeda   : > { %v9559_v25 = vunpack.i.h.bf16 %v9557_v39  ;;  %v9558_v60 = vunpack.i.l.bf16 %v9557_v39 }
 0xedb   : > { %v6106_v61 = vsel %vm6095_vm5, %v6073_v17, %v9563_v2  ;;  %v6107_v49 = vsel %vm6095_vm5, %v6074_v45, %v9564_v7  ;;  %v16169_v17 = vld [vmem:[#allocation53_spill] sm:$0xff] }
 0xedc   : > { %v9572_v47 = vpop.permute.xlu1 %9571  ;;  %v6104_v5 = vsel %vm6095_vm5, %v6071_v58, %v9558_v60  ;;  %v6105_v54 = vsel %vm6095_vm5, %v6072_v51, %v9559_v25  ;;  %v16173_v58 = vld [vmem:[#allocation56_spill] sm:$0xff] }
 0xedd   : > { %v9574_v18 = vunpack.i.h.bf16 %v9572_v47  ;;  %v9573_v10 = vunpack.i.l.bf16 %v9572_v47  ;;  %v9567_v38 = vpop.permute.xlu0 %9566  ;;  %v16170_v47 = vld [vmem:[#allocation55_spill] sm:$0xff] }
 0xede   : > { %v9569_v33 = vunpack.i.h.bf16 %v9567_v38  ;;  %v9568_v32 = vunpack.i.l.bf16 %v9567_v38  ;;  %v16171_v34 = vpack.i.bf16 %v16169_v17, %v16170_v47  ;;  %v10516_v17 = vld [vmem:[%s15751_s20 + $0x38] sm:$0xff] }
 0xedf   : > { %v6139_v6 = vsel %vm6128_vm6, %v6106_v61, %v9573_v10  ;;  %v6140_v1 = vsel %vm6128_vm6, %v6107_v49, %v9574_v18  ;;  %v16174_v18 = vpack.i.bf16 %v16172_v46, %v16173_v58  ;;  %v10518_v58 = vld [vmem:[%s15751_s20 + $0x30] sm:$0xff] }
 0xee0   : > { %v6166_v9 = vpack.c.bf16 %v6140_v1, %v6139_v6  ;;  %v6137_v53 = vsel %vm6128_vm6, %v6104_v5, %v9568_v32  ;;  %v6138_v62 = vsel %vm6128_vm6, %v6105_v54, %v9569_v33  ;;  %v9582_v16 = vpop.permute.xlu1 %9581  ;;  %v16175_v32 = vld [vmem:[#allocation124_spill] sm:$0xff]  ;;  %v16176_v5 = vld [vmem:[#allocation122_spill] sm:$0xff]  ;;  %v16178_v1 = vld [vmem:[#allocation125_spill] sm:$0xff] }
 0xee1   : > { %v6165_v35 = vpack.c.bf16 %v6138_v62, %v6137_v53  ;;  %v9577_v44 = vpop.permute.xlu0 %9576  ;;  %v9584_v3 = vunpack.i.h.bf16 %v9582_v16  ;;  %v9583_v57 = vunpack.i.l.bf16 %v9582_v16  ;;  %v16177_v54 = vpack.i.bf16 %v16175_v32, %v16176_v5 }
 0xee2   : > { %v9579_v36 = vunpack.i.h.bf16 %v9577_v44  ;;  %v9578_v12 = vunpack.i.l.bf16 %v9577_v44 }
 0xee3   : > { %9278 = vmatprep.mubr.msk.bf16.mxu0 %vm984_vm1, %v6165_v35  ;;  %v6078_v22 = vsel %vm2142_vm2, %v16165_v11, %v9584_v3  ;;  %v6077_v15 = vsel %vm2142_vm2, %v16166_v26, %v9583_v57  ;;  %v16182_v3 = vld [vmem:[#allocation58_spill] sm:$0xff] }
 0xee4   : > { %9279 = vmatmul.mubr.msk.bf16.gmra.mrb[168].mxu0 %vm984_vm1, %v6166_v9  ;;  %v9592_v20 = vpop.permute.xlu1 %9591  ;;  %v6076_v4 = vsel %vm2142_vm2, %v16167_v24, %v9579_v36  ;;  %v6075_v42 = vsel %vm2142_vm2, %v16168_v0, %v9578_v12  ;;  %v16179_v9 = vld [vmem:[#allocation123_spill] sm:$0xff]  ;;  %v16185_v36 = vld [vmem:[#allocation64_spill] sm:$0xff]  ;;  %v10511_v24 = vld [vmem:[%s15751_s20] sm:$0xff] }
 0xee5   : > { %v9587_v8 = vpop.permute.xlu0 %9586  ;;  %v9594_v23 = vunpack.i.h.bf16 %v9592_v20  ;;  %v9593_v30 = vunpack.i.l.bf16 %v9592_v20  ;;  %v16180_v53 = vpack.i.bf16 %v16178_v1, %v16179_v9  ;;  %v16181_v20 = vld [vmem:[#allocation57_spill] sm:$0xff] }
 0xee6   : > { %v9589_v52 = vunpack.i.h.bf16 %v9587_v8  ;;  %v9588_v56 = vunpack.i.l.bf16 %v9587_v8  ;;  %v16183_v57 = vpack.i.bf16 %v16181_v20, %v16182_v3  ;;  %v16184_v8 = vld [vmem:[#allocation63_spill] sm:$0xff] }
 0xee7   : > { %v6110_v40 = vsel %vm6095_vm5, %v6077_v15, %v9593_v30  ;;  %v6111_v19 = vsel %vm6095_vm5, %v6078_v22, %v9594_v23  ;;  %v16186_v12 = vpack.i.bf16 %v16184_v8, %v16185_v36 }
 0xee8   : > { %v6108_v48 = vsel %vm6095_vm5, %v6075_v42, %v9588_v56  ;;  %v6109_v29 = vsel %vm6095_vm5, %v6076_v4, %v9589_v52 }
 0xf10   : > { %v9602_v63 = vpop.permute.xlu1 %9601 }
 0xf11   : > { %v9604_v28 = vunpack.i.h.bf16 %v9602_v63  ;;  %v9603_v55 = vunpack.i.l.bf16 %v9602_v63  ;;  %v9597_v37 = vpop.permute.xlu0 %9596  ;;  %v14403_v63 = vld [vmem:[%s16187_s18] ss:$0 sm:$0xff] }
 0xf12   : > { %v9599_v31 = vunpack.i.h.bf16 %v9597_v37  ;;  %v9598_v21 = vunpack.i.l.bf16 %v9597_v37 }
 0xf13   : > { %v6143_v50 = vsel %vm6128_vm6, %v6110_v40, %v9603_v55  ;;  %v6144_v59 = vsel %vm6128_vm6, %v6111_v19, %v9604_v28  ;;  %v10512_v28 = vld [vmem:[%s15751_s20 + $0x10] sm:$0xff]  ;;  %v10513_v40 = vld [vmem:[%s15751_s20 + $0x8] sm:$0xff] }
 0xf14   : > { %v6168_v41 = vpack.c.bf16 %v6144_v59, %v6143_v50  ;;  %v6141_v13 = vsel %vm6128_vm6, %v6108_v48, %v9598_v21  ;;  %v6142_v27 = vsel %vm6128_vm6, %v6109_v29, %v9599_v31  ;;  %v10514_v21 = vld [vmem:[%s15751_s20 + $0x18] sm:$0xff]  ;;  %v14428_v59 = vpop.permute.xlu1 %9611 }
 0xf15   : > { %v6167_v39 = vpack.c.bf16 %v6142_v27, %v6141_v13 }
 0xf17   : > { %9282 = vmatprep.mubr.msk.bf16.mxu0 %vm984_vm1, %v6167_v39 }
 0xf18   : > { %9283 = vmatmul.mubr.msk.bf16.gmra.mrb[172].mxu0 %vm984_vm1, %v6168_v41  ;;  %v14430_v41 = vpop.permute.xlu0 %9606 }
 0xf1c   : > { %v14450_v46 = vpop.permute.xlu0 %9616 }
 0xf4e   : > { %v9252_v7 = vpop.f32.mrb[176].mxu1 }
 0xf4f   : > { %v5616_v2 = vpop.f32.mrb[177].mxu1 }
 0xf50   : > { %v9253_v25 = vpop.f32.mrb[178].mxu1 }
 0xf51   : > { %v9655_v60 = vpack.i.bf16 %v9253_v25, %v9252_v7  ;;  %v5619_v14 = vpop.f32.mrb[179].mxu1  ;;  %v10515_v25 = vld [vmem:[%s15751_s20 + $0x20] sm:$0xff] }
 0xf52   : > { %v9660_v45 = vpack.i.bf16 %v5619_v14, %v5616_v2 }
 0xf53   : > { %9656 = vrot.lane.b32.xlu1 %v9655_v60, %s10573_s24 }
 0xf54   : > { %9661 = vrot.lane.b32.xlu0 %v9660_v45, %s10573_s24 }
 0xf56   : > { %v9256_v43 = vpop.f32.mrb[180].mxu1 }
 0xf57   : > { %9671 = vrot.lane.b32.xlu1 %v16171_v34, %s10572_s2  ;;  %v5632_v51 = vpop.f32.mrb[181].mxu1  ;;  %v10517_v34 = vld [vmem:[%s15751_s20 + $0x28] sm:$0xff] }
 0xf58   : > { %9666 = vrot.lane.b32.xlu0 %v16174_v18, %s10572_s2  ;;  %v9257_v10 = vpop.f32.mrb[182].mxu1 }
 0xf59   : > { %v9675_v38 = vpack.i.bf16 %v9257_v10, %v9256_v43  ;;  %v5635_v61 = vpop.f32.mrb[183].mxu1  ;;  %v14442_v43 = vpop.permute.xlu1 %9621 }
 0xf5a   : > { %v9680_v49 = vpack.i.bf16 %v5635_v61, %v5632_v51 }
 0xf5b   : > { %9676 = vrot.lane.b32.xlu1 %v9675_v38, %s10573_s24 }
 0xf5c   : > { %9681 = vrot.lane.b32.xlu0 %v9680_v49, %s10573_s24 }
 0xf5e   : > { %v9260_v33 = vpop.f32.mrb[184].mxu1 }
 0xf5f   : > { %9691 = vrot.lane.b32.xlu1 %v16177_v54, %s10571_s29  ;;  %v5648_v6 = vpop.f32.mrb[185].mxu1  ;;  %v14473_v54 = vpop.permute.xlu1 %9631 }
 0xf60   : > { %9686 = vrot.lane.b32.xlu0 %v16180_v53, %s10571_s29  ;;  %v9261_v62 = vpop.f32.mrb[186].mxu1  ;;  %s16224_s29 = scalar_lea.vmem %s15484_s16, %s10686_s28 }
 0xf61   : > { %v9695_v35 = vpack.i.bf16 %v9261_v62, %v9260_v33  ;;  %v5651_v16 = vpop.f32.mrb[187].mxu1 }
 0xf62   : > { %v9700_v44 = vpack.i.bf16 %v5651_v16, %v5648_v6  ;;  %v14475_v6 = vpop.permute.xlu0 %9626 }
 0xf63   : > { %9696 = vrot.lane.b32.xlu1 %v9695_v35, %s10573_s24  ;;  %v10519_v35 = vld [vmem:[%s15751_s20 + $0x50] sm:$0xff]  ;;  %v14487_v8 = vpop.permute.xlu1 %9641 }
 0xf64   : > { %9701 = vrot.lane.b32.xlu0 %v9700_v44, %s10573_s24  ;;  %v10520_v44 = vld [vmem:[%s15751_s20 + $0x40] sm:$0xff] }
 0xf67   : > { %9711 = vrot.lane.b32.xlu1 %v16183_v57, %s10572_s2 }
 0xf68   : > { %9706 = vrot.lane.b32.xlu0 %v16186_v12, %s10572_s2  ;;  %v10521_v12 = vld [vmem:[%s15751_s20 + $0x58] sm:$0xff] }
 0xf84   : > { %v9264_v23 = vpop.f32.mrb[188].mxu1 }
 0xf85   : > { %v5664_v30 = vpop.f32.mrb[189].mxu1 }
 0xf86   : > { %v9265_v52 = vpop.f32.mrb[190].mxu1 }
 0xf87   : > { %v9720_v56 = vpack.i.bf16 %v9265_v52, %v9264_v23  ;;  %v5667_v11 = vpop.f32.mrb[191].mxu1 }
 0xf88   : > { %v9715_v22 = vpack.i.bf16 %v5667_v11, %v5664_v30  ;;  %v10522_v30 = vld [vmem:[%s15751_s20 + $0x48] sm:$0xff] }
 0xf89   : > { %9721 = vrot.lane.b32.xlu1 %v9720_v56, %s10573_s24  ;;  %v14498_v56 = vpop.permute.xlu0 %9636 }
 0xf8a   : > { %9716 = vrot.lane.b32.xlu0 %v9715_v22, %s10573_s24 }
 0xf9f   : > { %v9272_v26 = vpop.f32.mrb[160].mxu0 }
 0xfa0   : > { %v6275_v15 = vpop.f32.mrb[161].mxu0  ;;  %v6404_v55 = vadd.f32 %v10512_v28, %v9272_v26  ;;  %v9608_v28 = vunpack.i.l.bf16 %v14430_v41 }
 0xfa1   : > { %v6402_v4 = vadd.f32 %v10511_v24, %v6275_v15  ;;  %v9273_v0 = vpop.f32.mrb[162].mxu0 }
 0xfa2   : > { %v6278_v42 = vpop.f32.mrb[163].mxu0  ;;  %v14418_v31 = vadd.f32 %v14403_v63, %v6404_v55  ;;  %v6405_v48 = vadd.f32 %v10514_v21, %v9273_v0  ;;  %v9613_v0 = vunpack.i.l.bf16 %v14428_v59  ;;  %v14517_v55 = vpop.permute.xlu1 %9651  ;;  %v9623_v21 = vunpack.i.l.bf16 %v14442_v43 }
 0xfa3   : > { %v14412_v37 = vadd.f32 %v14403_v63, %v6402_v4  ;;  %v6403_v19 = vadd.f32 %v10513_v40, %v6278_v42  ;;  %v9614_v4 = vunpack.i.h.bf16 %v14428_v59  ;;  %v9609_v42 = vunpack.i.h.bf16 %v14430_v41  ;;  %v16188_v41 = vld [vmem:[#allocation87_spill] sm:$0xff] }
 0xfa4   : > { %v14433_v27 = vadd.f32 %v14403_v63, %v6405_v48  ;;  %v6481_v7 = vsel %vm984_vm1, %v14418_v31, 0.0  ;;  %v14523_v48 = vpop.permute.xlu0 %9646  ;;  %v9618_v59 = vunpack.i.l.bf16 %v14450_v46 }
 0xfa5   : > { %v14424_v29 = vadd.f32 %v14403_v63, %v6403_v19  ;;  %v6475_v50 = vsel %vm984_vm1, %v14412_v37, 0.0  ;;  %v9624_v19 = vunpack.i.h.bf16 %v14442_v43 }
 0xfa6   : > { %v6484_v38 = vsel %vm984_vm1, %v14433_v27, 0.0 }
 0xfa7   : > { %v6478_v2 = vsel %vm984_vm1, %v14424_v29, 0.0 }
 0xfa9   : > { %6476 = vadd.xlane.f32.xlu0 %v6475_v50  ;;  %v9619_v50 = vunpack.i.h.bf16 %v14450_v46 }
 0xfab   : > { %v9276_v13 = vpop.f32.mrb[164].mxu0 }
 0xfac   : > { %v6291_v39 = vpop.f32.mrb[165].mxu0  ;;  %v6408_v18 = vadd.f32 %v10518_v58, %v9276_v13 }
 0xfad   : > { %v6406_v60 = vadd.f32 %v10515_v25, %v6291_v39  ;;  %6482 = vadd.xlane.f32.xlu0 %v6481_v7  ;;  %6479 = vadd.xlane.f32.xlu1 %v6478_v2  ;;  %v9277_v14 = vpop.f32.mrb[166].mxu0  ;;  %v6082_v39 = vsel %vm2142_vm2, %v16188_v41, %v9614_v4  ;;  %v16189_v7 = vld [vmem:[#allocation85_spill] sm:$0xff]  ;;  %v16190_v25 = vld [vmem:[#allocation88_spill] sm:$0xff] }
 0xfae   : > { %v6294_v45 = vpop.f32.mrb[167].mxu0  ;;  %v6409_v47 = vadd.f32 %v10516_v17, %v9277_v14  ;;  %v14469_v32 = vadd.f32 %v14403_v63, %v6408_v18  ;;  %v6081_v2 = vsel %vm2142_vm2, %v16189_v7, %v9613_v0  ;;  %v16191_v14 = vld [vmem:[#allocation86_spill] sm:$0xff]  ;;  %v16193_v4 = vld [vmem:[#allocation89_spill] sm:$0xff] }
 0xfaf   : > { %v6407_v51 = vadd.f32 %v10517_v34, %v6294_v45  ;;  %v14456_v10 = vadd.f32 %v14403_v63, %v6406_v60  ;;  %v6080_v60 = vsel %vm2142_vm2, %v16190_v25, %v9609_v42  ;;  %v6079_v45 = vsel %vm2142_vm2, %v16191_v14, %v9608_v28  ;;  %v16194_v42 = vld [vmem:[#allocation92_spill] sm:$0xff] }
 0xfb0   : > { %v14464_v49 = vadd.f32 %v14403_v63, %v6409_v47  ;;  %v6493_v62 = vsel %vm984_vm1, %v14469_v32, 0.0  ;;  %v6114_v17 = vsel %vm6095_vm5, %v6081_v2, %v9623_v21  ;;  %v6115_v47 = vsel %vm6095_vm5, %v6082_v39, %v9624_v19 }
 0xfb1   : > { %v14461_v61 = vadd.f32 %v14403_v63, %v6407_v51  ;;  %6485 = vadd.xlane.f32.xlu0 %v6484_v38  ;;  %v6487_v5 = vsel %vm984_vm1, %v14456_v10, 0.0  ;;  %v6112_v58 = vsel %vm6095_vm5, %v6079_v45, %v9618_v59  ;;  %v6113_v18 = vsel %vm6095_vm5, %v6080_v60, %v9619_v50 }
 0xfb2   : > { %v6496_v9 = vsel %vm984_vm1, %v14464_v49, 0.0  ;;  %v9654_v2 = vunpack.i.h.bf16 %v14517_v55  ;;  %v9653_v14 = vunpack.i.l.bf16 %v14517_v55  ;;  %v16196_v55 = vld [vmem:[#allocation95_spill] sm:$0xff] }
 0xfb3   : > { %v6490_v33 = vsel %vm984_vm1, %v14461_v61, 0.0 }
 0xfb4   : > { %6491 = vadd.xlane.f32.xlu1 %v6490_v33 }
 0xfb5   : > { %6488 = vadd.xlane.f32.xlu0 %v6487_v5  ;;  %v9634_v5 = vunpack.i.h.bf16 %v14473_v54 }
 0xfb7   : > { %v9280_v1 = vpop.f32.mrb[168].mxu0 }
 0xfb8   : > { %6497 = vadd.xlane.f32.xlu1 %v6496_v9  ;;  %v6307_v53 = vpop.f32.mrb[169].mxu0  ;;  %v6412_v16 = vadd.f32 %v10519_v35, %v9280_v1  ;;  %v9633_v1 = vunpack.i.l.bf16 %v14473_v54  ;;  %v9644_v54 = vunpack.i.h.bf16 %v14487_v8 }
 0xfb9   : > { %v6410_v20 = vadd.f32 %v10520_v44, %v6307_v53  ;;  %6494 = vadd.xlane.f32.xlu0 %v6493_v62  ;;  %v9281_v3 = vpop.f32.mrb[170].mxu0  ;;  %v9629_v62 = vunpack.i.h.bf16 %v14475_v6 }
 0xfba   : > { %v6310_v57 = vpop.f32.mrb[171].mxu0  ;;  %v6413_v23 = vadd.f32 %v10521_v12, %v9281_v3  ;;  %v14501_v11 = vadd.f32 %v14403_v63, %v6412_v16  ;;  %v9628_v3 = vunpack.i.l.bf16 %v14475_v6  ;;  %v6085_v0 = vsel %vm2142_vm2, %v16193_v4, %v9633_v1 }
 0xfbb   : > { %v14490_v36 = vadd.f32 %v14403_v63, %v6410_v20  ;;  %v6411_v52 = vadd.f32 %v10522_v30, %v6310_v57  ;;  %v9643_v57 = vunpack.i.l.bf16 %v14487_v8  ;;  %v9638_v30 = vunpack.i.l.bf16 %v14498_v56 }
 0xfbc   : > { %v14509_v15 = vadd.f32 %v14403_v63, %v6413_v23  ;;  %v6505_v40 = vsel %vm984_vm1, %v14501_v11, 0.0  ;;  %v6084_v6 = vsel %vm2142_vm2, %v16194_v42, %v9629_v62  ;;  %v6090_v1 = vsel %vm2142_vm2, %v16196_v55, %v9654_v2  ;;  %v10526_v2 = vld [vmem:[%s15751_s20 + $0x68] sm:$0xff] }
 0xfbd   : > { %v14504_v22 = vadd.f32 %v14403_v63, %v6411_v52  ;;  %v6499_v26 = vsel %vm984_vm1, %v14490_v36, 0.0  ;;  %v9639_v52 = vunpack.i.h.bf16 %v14498_v56  ;;  %v6118_v19 = vsel %vm6095_vm5, %v6085_v0, %v9643_v57 }
 0xfbe   : > { %6500 = vadd.xlane.f32.xlu0 %v6499_v26  ;;  %v6508_v13 = vsel %vm984_vm1, %v14509_v15, 0.0  ;;  %v16192_v26 = vld [vmem:[#allocation91_spill] sm:$0xff] }
 0xfbf   : > { %v6502_v24 = vsel %vm984_vm1, %v14504_v22, 0.0  ;;  %v6117_v7 = vsel %vm6095_vm5, %v6084_v6, %v9639_v52 }
 0xfc0   : > { %6503 = vadd.xlane.f32.xlu1 %v6502_v24  ;;  %v6086_v24 = vsel %vm2142_vm2, %v16192_v26, %v9634_v5 }
 0xfc1   : > { %v6119_v59 = vsel %vm6095_vm5, %v6086_v24, %v9644_v54 }
 0xfc2   : > { %6506 = vadd.xlane.f32.xlu0 %v6505_v40  ;;  %v16195_v40 = vld [vmem:[#allocation90_spill] sm:$0xff] }
 0xfc3   : > { %v6083_v8 = vsel %vm2142_vm2, %v16195_v40, %v9628_v3 }
 0xfc4   : > { %6509 = vadd.xlane.f32.xlu1 %v6508_v13  ;;  %v6116_v13 = vsel %vm6095_vm5, %v6083_v8, %v9638_v30 }
 0xfc5   : > { %v9657_v43 = vpop.permute.xlu1 %9656 }
 0xfc6   : > { %v9659_v34 = vunpack.i.h.bf16 %v9657_v43  ;;  %v9658_v51 = vunpack.i.l.bf16 %v9657_v43  ;;  %v9662_v46 = vpop.permute.xlu0 %9661 }
 0xfc7   : > { %v9664_v38 = vunpack.i.h.bf16 %v9662_v46  ;;  %v9663_v33 = vunpack.i.l.bf16 %v9662_v46 }
 0xfc8   : > { %v6148_v9 = vsel %vm6128_vm6, %v6115_v47, %v9659_v34  ;;  %v6147_v53 = vsel %vm6128_vm6, %v6114_v17, %v9658_v51  ;;  %v9649_v34 = vunpack.i.h.bf16 %v14523_v48  ;;  %v9648_v51 = vunpack.i.l.bf16 %v14523_v48 }
 0xfc9   : > { %v6170_v35 = vpack.c.bf16 %v6148_v9, %v6147_v53  ;;  %v6145_v16 = vsel %vm6128_vm6, %v6112_v58, %v9663_v33  ;;  %v6146_v44 = vsel %vm6128_vm6, %v6113_v18, %v9664_v38  ;;  %v9672_v20 = vpop.permute.xlu1 %9671  ;;  %v16197_v9 = vld [vmem:[#allocation93_spill] sm:$0xff] }
 0xfca   : > { %v6169_v12 = vpack.c.bf16 %v6146_v44, %v6145_v16  ;;  %v9667_v23 = vpop.permute.xlu0 %9666  ;;  %v9674_v18 = vunpack.i.h.bf16 %v9672_v20  ;;  %v9673_v38 = vunpack.i.l.bf16 %v9672_v20  ;;  %v6089_v53 = vsel %vm2142_vm2, %v16197_v9, %v9653_v14  ;;  %v16199_v16 = vld [vmem:[#allocation94_spill] sm:$0xff] }
 0xfcb   : > { %v9669_v33 = vunpack.i.h.bf16 %v9667_v23  ;;  %v9668_v5 = vunpack.i.l.bf16 %v9667_v23  ;;  %v6087_v44 = vsel %vm2142_vm2, %v16199_v16, %v9648_v51  ;;  %v16204_v16 = vld [vmem:[#allocation97_spill] sm:$0xff] }
 0xfcc   : > { %9286 = vmatprep.mubr.msk.bf16.mxu0 %vm984_vm1, %v6169_v12  ;;  %v6123_v12 = vsel %vm6095_vm5, %v6090_v1, %v9674_v18  ;;  %v6122_v23 = vsel %vm6095_vm5, %v6089_v53, %v9673_v38 }
 0xfcd   : > { %v9677_v28 = vpop.permute.xlu1 %9676  ;;  %9287 = vmatmul.mubr.msk.bf16.gmra.mrb[176].mxu0 %vm984_vm1, %v6170_v35  ;;  %v16198_v35 = vld [vmem:[#allocation96_spill] sm:$0xff]  ;;  %v6120_v52 = vsel %vm6095_vm5, %v6087_v44, %v9668_v5 }
 0xfce   : > { %v9679_v56 = vunpack.i.h.bf16 %v9677_v28  ;;  %v9678_v21 = vunpack.i.l.bf16 %v9677_v28  ;;  %v9682_v50 = vpop.permute.xlu0 %9681  ;;  %v6088_v48 = vsel %vm2142_vm2, %v16198_v35, %v9649_v34  ;;  %v16203_v35 = vld [vmem:[#allocation99_spill] sm:$0xff] }
 0xfcf   : > { %v9684_v41 = vunpack.i.h.bf16 %v9682_v50  ;;  %v9683_v39 = vunpack.i.l.bf16 %v9682_v50  ;;  %v6121_v26 = vsel %vm6095_vm5, %v6088_v48, %v9669_v33 }
 0xfd0   : > { %v6152_v25 = vsel %vm6128_vm6, %v6119_v59, %v9679_v56  ;;  %v6151_v60 = vsel %vm6128_vm6, %v6118_v19, %v9678_v21  ;;  %v10523_v19 = vld [vmem:[%s15751_s20 + $0x70] sm:$0xff]  ;;  %v10524_v21 = vld [vmem:[%s15751_s20 + $0x60] sm:$0xff] }
 0xfd1   : > { %v6172_v45 = vpack.c.bf16 %v6152_v25, %v6151_v60  ;;  %v6149_v43 = vsel %vm6128_vm6, %v6116_v13, %v9683_v39  ;;  %v6150_v17 = vsel %vm6128_vm6, %v6117_v7, %v9684_v41  ;;  %v14573_v47 = vpop.permute.xlu1 %9691  ;;  %v10525_v39 = vld [vmem:[%s15751_s20 + $0x78] sm:$0xff] }
 0xfd2   : > { %v6171_v46 = vpack.c.bf16 %v6150_v17, %v6149_v43  ;;  %v14577_v58 = vpop.permute.xlu0 %9686  ;;  %v9693_v18 = vunpack.i.l.bf16 %v14573_v47 }
 0xfd3   : > { %v9689_v5 = vunpack.i.h.bf16 %v14577_v58  ;;  %v9688_v55 = vunpack.i.l.bf16 %v14577_v58 }
 0xfd4   : > { %9290 = vmatprep.mubr.msk.bf16.mxu0 %vm984_vm1, %v6171_v46  ;;  %v9694_v46 = vunpack.i.h.bf16 %v14573_v47  ;;  %v6093_v44 = vsel %vm2142_vm2, %v16204_v16, %v9693_v18 }
 0xfd5   : > { %v9697_v62 = vpop.permute.xlu1 %9696  ;;  %9291 = vmatmul.mubr.msk.bf16.gmra.mrb[180].mxu0 %vm984_vm1, %v6172_v45 }
 0xfd6   : > { %v9699_v20 = vunpack.i.h.bf16 %v9697_v62  ;;  %v9698_v3 = vunpack.i.l.bf16 %v9697_v62  ;;  %v9702_v57 = vpop.permute.xlu0 %9701  ;;  %v6094_v48 = vsel %vm2142_vm2, %v16203_v35, %v9694_v46 }
 0xfd7   : > { %v9704_v54 = vunpack.i.h.bf16 %v9702_v57  ;;  %v9703_v30 = vunpack.i.l.bf16 %v9702_v57  ;;  %v16206_v57 = vld [vmem:[#allocation98_spill] sm:$0xff] }
 0xfd8   : > { %v6156_v24 = vsel %vm6128_vm6, %v6123_v12, %v9699_v20  ;;  %v6155_v4 = vsel %vm6128_vm6, %v6122_v23, %v9698_v3  ;;  %v16205_v20 = vld [vmem:[#allocation100_spill] sm:$0xff]  ;;  %v6091_v12 = vsel %vm2142_vm2, %v16206_v57, %v9688_v55  ;;  %v10534_v57 = vld [vmem:[%s15751_s20 + $0xa8] sm:$0xff] }
 0xfd9   : > { %v6174_v0 = vpack.c.bf16 %v6156_v24, %v6155_v4  ;;  %v6153_v42 = vsel %vm6128_vm6, %v6120_v52, %v9703_v30  ;;  %v6154_v6 = vsel %vm6128_vm6, %v6121_v26, %v9704_v54  ;;  %v9712_v51 = vpop.permute.xlu1 %9711  ;;  %v6092_v3 = vsel %vm2142_vm2, %v16205_v20, %v9689_v5  ;;  %v10533_v20 = vld [vmem:[%s15751_s20 + $0xb8] sm:$0xff] }
 0xfda   : > { %v6173_v28 = vpack.c.bf16 %v6154_v6, %v6153_v42  ;;  %v9707_v38 = vpop.permute.xlu0 %9706  ;;  %v9714_v1 = vunpack.i.h.bf16 %v9712_v51  ;;  %v9713_v9 = vunpack.i.l.bf16 %v9712_v51 }
 0xfdb   : > { %v9709_v53 = vunpack.i.h.bf16 %v9707_v38  ;;  %v9708_v62 = vunpack.i.l.bf16 %v9707_v38 }
 0xfdc   : > { %9294 = vmatprep.mubr.msk.bf16.mxu0 %vm984_vm1, %v6173_v28  ;;  %v6127_v30 = vsel %vm6095_vm5, %v6094_v48, %v9714_v1  ;;  %v6126_v52 = vsel %vm6095_vm5, %v6093_v44, %v9713_v9  ;;  %v10531_v9 = vld [vmem:[%s15751_s20 + $0xb0] sm:$0xff] }
 0xfdd   : > { %9295 = vmatmul.mubr.msk.bf16.gmra.mrb[184].mxu0 %vm984_vm1, %v6174_v0  ;;  %v6124_v4 = vsel %vm6095_vm5, %v6091_v12, %v9708_v62  ;;  %v6125_v0 = vsel %vm6095_vm5, %v6092_v3, %v9709_v53  ;;  %v10532_v62 = vld [vmem:[%s15751_s20 + $0xa0] sm:$0xff] }
 0xfeb   : > { %v9284_v40 = vpop.f32.mrb[172].mxu0 }
 0xfec   : > { %v6323_v8 = vpop.f32.mrb[173].mxu0  ;;  %v6416_v56 = vadd.f32 %v10523_v19, %v9284_v40 }
 0xfed   : > { %v6414_v50 = vadd.f32 %v10524_v21, %v6323_v8  ;;  %v9285_v59 = vpop.f32.mrb[174].mxu0 }
 0xfee   : > { %v6326_v13 = vpop.f32.mrb[175].mxu0  ;;  %v6417_v7 = vadd.f32 %v10525_v39, %v9285_v59  ;;  %v14615_v60 = vadd.f32 %v14403_v63, %v6416_v56 }
 0xfef   : > { %v14606_v41 = vadd.f32 %v14403_v63, %v6414_v50  ;;  %v6415_v25 = vadd.f32 %v10526_v2, %v6326_v13  ;;  %v10527_v50 = vld [vmem:[%s15751_s20 + $0x90] sm:$0xff]  ;;  %v10528_v13 = vld [vmem:[%s15751_s20 + $0x80] sm:$0xff] }
 0xff0   : > { %v14623_v43 = vadd.f32 %v14403_v63, %v6417_v7  ;;  %v6517_v34 = vsel %vm984_vm1, %v14615_v60, 0.0 }
 0xff1   : > { %16200 = vst [vmem:[#allocation59_spill] sm:$0xff] %v14606_v41  ;;  %v14618_v14 = vadd.f32 %v14403_v63, %v6415_v25  ;;  %v6511_v45 = vsel %vm984_vm1, %v14606_v41, 0.0 }
 0xff2   : > { %6512 = vadd.xlane.f32.xlu0 %v6511_v45  ;;  %16202 = vst [vmem:[#allocation67_spill] sm:$0xff] %v14623_v43  ;;  %v6520_v33 = vsel %vm984_vm1, %v14623_v43, 0.0  ;;  %v10529_v45 = vld [vmem:[%s15751_s20 + $0x98] sm:$0xff] }
 0xff3   : > { %16201 = vst [vmem:[#allocation65_spill] sm:$0xff] %v14618_v14  ;;  %v6514_v17 = vsel %vm984_vm1, %v14618_v14, 0.0 }
 0xff4   : > { %6515 = vadd.xlane.f32.xlu1 %v6514_v17 }
 0xff6   : > { %6518 = vadd.xlane.f32.xlu0 %v6517_v34  ;;  %v10530_v34 = vld [vmem:[%s15751_s20 + $0x88] sm:$0xff] }
 0xff8   : > { %6521 = vadd.xlane.f32.xlu1 %v6520_v33 }
 0xffb   : > { %v9722_v47 = vpop.permute.xlu1 %9721 }
 0xffc   : > { %v9724_v23 = vunpack.i.h.bf16 %v9722_v47  ;;  %v9723_v58 = vunpack.i.l.bf16 %v9722_v47  ;;  %v9717_v54 = vpop.permute.xlu0 %9716 }
 0xffd   : > { %v9719_v26 = vunpack.i.h.bf16 %v9717_v54  ;;  %v9718_v24 = vunpack.i.l.bf16 %v9717_v54 }
 0xffe   : > { %v6160_v42 = vsel %vm6128_vm6, %v6127_v30, %v9724_v23  ;;  %v6159_v6 = vsel %vm6128_vm6, %v6126_v52, %v9723_v58 }
 0xfff   : > { %v6176_v28 = vpack.c.bf16 %v6160_v42, %v6159_v6  ;;  %v6157_v40 = vsel %vm6128_vm6, %v6124_v4, %v9718_v24  ;;  %v6158_v8 = vsel %vm6128_vm6, %v6125_v0, %v9719_v26  ;;  %v10535_v0 = vld [vmem:[%s15751_s20 + $0xd0] sm:$0xff]  ;;  %v10536_v6 = vld [vmem:[%s15751_s20 + $0xc0] sm:$0xff] }
0x1000   : > { %v6175_v19 = vpack.c.bf16 %v6158_v8, %v6157_v40 }
0x1002   : > { %9298 = vmatprep.mubr.msk.bf16.mxu0 %vm984_vm1, %v6175_v19 }
0x1003   : > { %9299 = vmatmul.mubr.msk.bf16.gmra.mrb[188].mxu0 %vm984_vm1, %v6176_v28 }
0x10a0   : > { %v9288_v56 = vpop.f32.mrb[176].mxu0 }
0x10a1   : > { %v6339_v21 = vpop.f32.mrb[177].mxu0  ;;  %v6420_v59 = vadd.f32 %v10527_v50, %v9288_v56 }
0x10a2   : > { %v6418_v39 = vadd.f32 %v10528_v13, %v6339_v21  ;;  %v9289_v7 = vpop.f32.mrb[178].mxu0  ;;  %v10537_v21 = vld [vmem:[%s15751_s20 + $0xd8] sm:$0xff] }
0x10a3   : > { %v6342_v2 = vpop.f32.mrb[179].mxu0  ;;  %v6421_v17 = vadd.f32 %v10529_v45, %v9289_v7  ;;  %v14669_v46 = vadd.f32 %v14403_v63, %v6420_v59  ;;  %v10538_v59 = vld [vmem:[%s15751_s20 + $0xc8] sm:$0xff] }
0x10a4   : > { %v14660_v25 = vadd.f32 %v14403_v63, %v6418_v39  ;;  %v6419_v51 = vadd.f32 %v10530_v34, %v6342_v2 }
0x10a5   : > { %16208 = vst [vmem:[#allocation31_spill] sm:$0xff] %v14669_v46  ;;  %v14677_v33 = vadd.f32 %v14403_v63, %v6421_v17  ;;  %v6529_v16 = vsel %vm984_vm1, %v14669_v46, 0.0 }
0x10a6   : > { %16207 = vst [vmem:[#allocation61_spill] sm:$0xff] %v14660_v25  ;;  %v14672_v18 = vadd.f32 %v14403_v63, %v6419_v51  ;;  %v6523_v38 = vsel %vm984_vm1, %v14660_v25, 0.0 }
0x10a7   : > { %6524 = vadd.xlane.f32.xlu0 %v6523_v38  ;;  %16210 = vst [vmem:[#allocation40_spill] sm:$0xff] %v14677_v33  ;;  %v6532_v23 = vsel %vm984_vm1, %v14677_v33, 0.0 }
0x10a8   : > { %16209 = vst [vmem:[#allocation33_spill] sm:$0xff] %v14672_v18  ;;  %v9292_v5 = vpop.f32.mrb[180].mxu0  ;;  %v6526_v55 = vsel %vm984_vm1, %v14672_v18, 0.0 }
0x10a9   : > { %6527 = vadd.xlane.f32.xlu1 %v6526_v55  ;;  %v6355_v1 = vpop.f32.mrb[181].mxu0  ;;  %v6424_v53 = vadd.f32 %v10531_v9, %v9292_v5  ;;  %v6477_v5 = vpop.xlane.xlu0 %6476 }
0x10aa   : > { %v6422_v35 = vadd.f32 %v10532_v62, %v6355_v1  ;;  %v9293_v48 = vpop.f32.mrb[182].mxu0  ;;  %v6480_v9 = vpop.xlane.xlu1 %6479 }
0x10ab   : > { %6530 = vadd.xlane.f32.xlu0 %v6529_v16  ;;  %v6358_v44 = vpop.f32.mrb[183].mxu0  ;;  %v6425_v3 = vadd.f32 %v10533_v20, %v9293_v48  ;;  %v14701_v58 = vadd.f32 %v14403_v63, %v6424_v53  ;;  %v10539_v16 = vld [vmem:[%s15751_s20 + $0xf0] sm:$0xff]  ;;  %v10540_v20 = vld [vmem:[%s15751_s20 + $0xe0] sm:$0xff] }
0x10ac   : > { %v14690_v47 = vadd.f32 %v14403_v63, %v6422_v35  ;;  %v6423_v12 = vadd.f32 %v10534_v57, %v6358_v44  ;;  %v6571_v35 = vmul.f32 0.03125, %v6477_v5 }
0x10ad   : > { %6533 = vadd.xlane.f32.xlu1 %v6532_v23  ;;  %16212 = vst [vmem:[#allocation38_spill] sm:$0xff] %v14701_v58  ;;  %v14709_v52 = vadd.f32 %v14403_v63, %v6425_v3  ;;  %v6541_v8 = vsel %vm984_vm1, %v14701_v58, 0.0  ;;  %v6483_v55 = vpop.xlane.xlu0 %6482 }
0x10ae   : > { %16211 = vst [vmem:[#allocation37_spill] sm:$0xff] %v14690_v47  ;;  %v14704_v54 = vadd.f32 %v14403_v63, %v6423_v12  ;;  %v6535_v30 = vsel %vm984_vm1, %v14690_v47, 0.0  ;;  %v6492_v12 = vpop.xlane.xlu1 %6491 }
0x10af   : > { %6536 = vadd.xlane.f32.xlu0 %v6535_v30  ;;  %16214 = vst [vmem:[#allocation42_spill] sm:$0xff] %v14709_v52  ;;  %v6544_v39 = vsel %vm984_vm1, %v14709_v52, 0.0  ;;  %v6572_v30 = vmul.f32 0.03125, %v6480_v9 }
0x10b0   : > { %16213 = vst [vmem:[#allocation35_spill] sm:$0xff] %v14704_v54  ;;  %v9296_v26 = vpop.f32.mrb[184].mxu0  ;;  %v6538_v24 = vsel %vm984_vm1, %v14704_v54, 0.0 }
0x10b1   : > { %6539 = vadd.xlane.f32.xlu1 %v6538_v24  ;;  %v6371_v4 = vpop.f32.mrb[185].mxu0  ;;  %v6428_v42 = vadd.f32 %v10535_v0, %v9296_v26  ;;  %v6486_v1 = vpop.xlane.xlu0 %6485  ;;  %v10541_v24 = vld [vmem:[%s15751_s20 + $0xf8] sm:$0xff]  ;;  %v10542_v0 = vld [vmem:[%s15751_s20 + $0xe8] sm:$0xff] }
0x10b2   : > { %v6426_v28 = vadd.f32 %v10536_v6, %v6371_v4  ;;  %v9297_v40 = vpop.f32.mrb[186].mxu0  ;;  %v14765_v6 = vsub.f32 %v14412_v37, %v6571_v35 }
0x10b3   : > { %6542 = vadd.xlane.f32.xlu0 %v6541_v8  ;;  %v6374_v19 = vpop.f32.mrb[187].mxu0  ;;  %v6429_v50 = vadd.f32 %v10537_v21, %v9297_v40  ;;  %v14733_v7 = vadd.f32 %v14403_v63, %v6428_v42  ;;  %v6573_v40 = vmul.f32 0.03125, %v6483_v55 }
0x10b4   : > { %v14722_v56 = vadd.f32 %v14403_v63, %v6426_v28  ;;  %v6427_v13 = vadd.f32 %v10538_v59, %v6374_v19  ;;  %v6574_v59 = vmul.f32 0.03125, %v6486_v1  ;;  %v6635_v5 = vmul.f32 %v14765_v6, %v14765_v6 }
0x10b5   : > { %6545 = vadd.xlane.f32.xlu1 %v6544_v39  ;;  %16216 = vst [vmem:[#allocation45_spill] sm:$0xff] %v14733_v7  ;;  %v14741_v17 = vadd.f32 %v14403_v63, %v6429_v50  ;;  %v6553_v51 = vsel %vm984_vm1, %v14733_v7, 0.0  ;;  %v6489_v53 = vpop.xlane.xlu0 %6488  ;;  %v14776_v50 = vsub.f32 %v14424_v29, %v6572_v30  ;;  %v6576_v1 = vmul.f32 0.03125, %v6492_v12 }
0x10b6   : > { %16215 = vst [vmem:[#allocation44_spill] sm:$0xff] %v14722_v56  ;;  %v14736_v2 = vadd.f32 %v14403_v63, %v6427_v13  ;;  %v6547_v45 = vsel %vm984_vm1, %v14722_v56, 0.0 }
0x10b7   : > { %6548 = vadd.xlane.f32.xlu0 %v6547_v45  ;;  %16218 = vst [vmem:[#allocation47_spill] sm:$0xff] %v14741_v17  ;;  %v6556_v38 = vsel %vm984_vm1, %v14741_v17, 0.0  ;;  %v6498_v45 = vpop.xlane.xlu1 %6497 }
0x10b8   : > { %16217 = vst [vmem:[#allocation46_spill] sm:$0xff] %v14736_v2  ;;  %v6550_v34 = vsel %vm984_vm1, %v14736_v2, 0.0 }
0x10b9   : > { %6551 = vadd.xlane.f32.xlu1 %v6550_v34  ;;  %v6495_v28 = vpop.xlane.xlu0 %6494  ;;  %v14784_v34 = vsub.f32 %v14418_v31, %v6573_v40 }
0x10bb   : > { %6554 = vadd.xlane.f32.xlu0 %v6553_v51  ;;  %v6575_v51 = vmul.f32 0.03125, %v6489_v53  ;;  %v6504_v35 = vpop.xlane.xlu1 %6503 }
0x10bc   : > { %v6580_v40 = vmul.f32 0.03125, %v6504_v35 }
0x10bd   : > { %6557 = vadd.xlane.f32.xlu1 %v6556_v38  ;;  %v6501_v55 = vpop.xlane.xlu0 %6500  ;;  %v14798_v53 = vsub.f32 %v14456_v10, %v6575_v51 }
0x10d6   : > { %v9300_v62 = vpop.f32.mrb[188].mxu0 }
0x10d7   : > { %v6387_v48 = vpop.f32.mrb[189].mxu0  ;;  %v6432_v44 = vadd.f32 %v10539_v16, %v9300_v62  ;;  %v6636_v62 = vmul.f32 %v14776_v50, %v14776_v50  ;;  %v6667_v16 = vsel %vm984_vm1, %v6635_v5, 0.0 }
0x10d8   : > { %v6430_v3 = vadd.f32 %v10540_v20, %v6387_v48  ;;  %v9301_v57 = vpop.f32.mrb[190].mxu0  ;;  %v6577_v48 = vmul.f32 0.03125, %v6495_v28  ;;  %v14804_v20 = vsub.f32 %v14461_v61, %v6576_v1  ;;  %v14828_v1 = vsub.f32 %v14504_v22, %v6580_v40 }
0x10d9   : > { %v6390_v23 = vpop.f32.mrb[191].mxu0  ;;  %v6433_v4 = vadd.f32 %v10541_v24, %v9301_v57  ;;  %v14768_v8 = vadd.f32 %v14403_v63, %v6432_v44  ;;  %v6637_v44 = vmul.f32 %v14784_v34, %v14784_v34  ;;  %v6670_v57 = vsel %vm984_vm1, %v6636_v62, 0.0 }
0x10da   : > { %v14756_v26 = vadd.f32 %v14403_v63, %v6430_v3  ;;  %v6431_v42 = vadd.f32 %v10542_v0, %v6390_v23  ;;  %v6578_v3 = vmul.f32 0.03125, %v6498_v45  ;;  %v6507_v23 = vpop.xlane.xlu0 %6506  ;;  %v14810_v30 = vsub.f32 %v14469_v32, %v6577_v48 }
0x10db   : > { %16220 = vst [vmem:[#allocation62_spill] sm:$0xff] %v14768_v8  ;;  %v14779_v13 = vadd.f32 %v14403_v63, %v6433_v4  ;;  %v6565_v38 = vsel %vm984_vm1, %v14768_v8, 0.0  ;;  %v6579_v24 = vmul.f32 0.03125, %v6501_v55  ;;  %v6673_v4 = vsel %vm984_vm1, %v6637_v44, 0.0 }
0x10dc   : > { %16219 = vst [vmem:[#allocation48_spill] sm:$0xff] %v14756_v26  ;;  %v14771_v19 = vadd.f32 %v14403_v63, %v6431_v42  ;;  %v6559_v21 = vsel %vm984_vm1, %v14756_v26, 0.0  ;;  %v14791_v63 = vsub.f32 %v14433_v27, %v6574_v59  ;;  %v6639_v0 = vmul.f32 %v14798_v53, %v14798_v53  ;;  %v6510_v42 = vpop.xlane.xlu1 %6509 }
0x10dd   : > { %6560 = vadd.xlane.f32.xlu0 %v6559_v21  ;;  %16222 = vst [vmem:[#allocation68_spill] sm:$0xff] %v14779_v13  ;;  %v6568_v9 = vsel %vm984_vm1, %v14779_v13, 0.0  ;;  %v14816_v28 = vsub.f32 %v14464_v49, %v6578_v3  ;;  %v6640_v59 = vmul.f32 %v14804_v20, %v14804_v20  ;;  %v14822_v45 = vsub.f32 %v14490_v36, %v6579_v24 }
0x10de   : > { %16221 = vst [vmem:[#allocation66_spill] sm:$0xff] %v14771_v19  ;;  %v6562_v39 = vsel %vm984_vm1, %v14771_v19, 0.0  ;;  %v6638_v12 = vmul.f32 %v14791_v63, %v14791_v63  ;;  %v6581_v51 = vmul.f32 0.03125, %v6507_v23  ;;  %v6641_v5 = vmul.f32 %v14810_v30, %v14810_v30 }
0x10df   : > { %6563 = vadd.xlane.f32.xlu1 %v6562_v39  ;;  %v6513_v39 = vpop.xlane.xlu0 %6512  ;;  %v6682_v62 = vsel %vm984_vm1, %v6640_v59, 0.0  ;;  %v6642_v35 = vmul.f32 %v14816_v28, %v14816_v28  ;;  %v6643_v3 = vmul.f32 %v14822_v45, %v14822_v45 }
0x10e0   : > { %v6676_v21 = vsel %vm984_vm1, %v6638_v12, 0.0  ;;  %v6516_v55 = vpop.xlane.xlu1 %6515  ;;  %v14834_v48 = vsub.f32 %v14501_v11, %v6581_v51  ;;  %v6685_v44 = vsel %vm984_vm1, %v6641_v5, 0.0 }
0x10e1   : > { %6566 = vadd.xlane.f32.xlu0 %v6565_v38  ;;  %v6679_v38 = vsel %vm984_vm1, %v6639_v0, 0.0  ;;  %v6584_v23 = vmul.f32 0.03125, %v6516_v55  ;;  %v6688_v24 = vsel %vm984_vm1, %v6642_v35, 0.0 }
0x10e2   : > { %v6645_v59 = vmul.f32 %v14834_v48, %v14834_v48 }
0x10e3   : > { %6569 = vadd.xlane.f32.xlu1 %v6568_v9  ;;  %v6582_v9 = vmul.f32 0.03125, %v6510_v42 }
0x10e4   : > { %v6522_v0 = vpop.xlane.xlu1 %6521 }
0x10e5   : > { %6668 = vadd.xlane.f32.xlu0 %v6667_v16  ;;  %v6583_v16 = vmul.f32 0.03125, %v6513_v39  ;;  %v14840_v12 = vsub.f32 %v14509_v15, %v6582_v9  ;;  %v14852_v39 = vsub.f32 %v14618_v14, %v6584_v23  ;;  %v6586_v51 = vmul.f32 0.03125, %v6522_v0 }
0x10e6   : > { %v6697_v9 = vsel %vm984_vm1, %v6645_v59, 0.0 }
0x10e7   : > { %6671 = vadd.xlane.f32.xlu1 %v6670_v57  ;;  %v6519_v57 = vpop.xlane.xlu0 %6518  ;;  %v14846_v42 = vsub.f32 %v14606_v41, %v6583_v16  ;;  %v6646_v5 = vmul.f32 %v14840_v12, %v14840_v12  ;;  %v14864_v35 = vsub.f32 %v14623_v43, %v6586_v51 }
0x10e8   : > { %v6585_v40 = vmul.f32 0.03125, %v6519_v57 }
0x10e9   : > { %6674 = vadd.xlane.f32.xlu0 %v6673_v4  ;;  %v6644_v4 = vmul.f32 %v14828_v1, %v14828_v1  ;;  %v6700_v16 = vsel %vm984_vm1, %v6646_v5, 0.0 }
0x10ea   : > { %v14858_v55 = vsub.f32 %v14615_v60, %v6585_v40  ;;  %v9733_v40 = vld [vmem:[%s10744_s23] sm:$0xff]  }
0x10eb   : > { %6677 = vadd.xlane.f32.xlu1 %v6676_v21  ;;  %v6691_v21 = vsel %vm984_vm1, %v6643_v3, 0.0  ;;  %9302 = vmatprep.subr.bf16.mxu1 %v9733_v40 }
0x10ec   : > { %v6649_v57 = vmul.f32 %v14858_v55, %v14858_v55  ;;  %9303 = vmatpush3.bf16.msra.mxu1 %v9733_v40 }
0x10ed   : > { %6680 = vadd.xlane.f32.xlu0 %v6679_v38  ;;  %v6694_v38 = vsel %vm984_vm1, %v6644_v4, 0.0 }
0x10ee   : > { %v6709_v4 = vsel %vm984_vm1, %v6649_v57, 0.0 }
0x10ef   : > { %6683 = vadd.xlane.f32.xlu1 %v6682_v62  ;;  %v6647_v62 = vmul.f32 %v14846_v42, %v14846_v42 }
0x10f1   : > { %6686 = vadd.xlane.f32.xlu0 %v6685_v44  ;;  %v6648_v44 = vmul.f32 %v14852_v39, %v14852_v39  ;;  %v6703_v3 = vsel %vm984_vm1, %v6647_v62, 0.0 }
0x10f3   : > { %6689 = vadd.xlane.f32.xlu1 %v6688_v24  ;;  %v6706_v23 = vsel %vm984_vm1, %v6648_v44, 0.0  ;;  %v6650_v24 = vmul.f32 %v14864_v35, %v14864_v35 }
0x10f5   : > { %6692 = vadd.xlane.f32.xlu0 %v6691_v21  ;;  %v6712_v0 = vsel %vm984_vm1, %v6650_v24, 0.0  ;;  %v9734_v21 = vld [vmem:[%s10744_s23 + $0x8] sm:$0xff]  }
0x10f6   : > { %9304 = vmatprep.subr.bf16.mxu1 %v9734_v21 }
0x10f7   : > { %6695 = vadd.xlane.f32.xlu1 %v6694_v38  ;;  %9305 = vmatpush3.bf16.msra.mxu1 %v9734_v21 }
0x10f9   : > { %6698 = vadd.xlane.f32.xlu0 %v6697_v9 }
0x10fb   : > { %6701 = vadd.xlane.f32.xlu1 %v6700_v16 }
0x10fd   : > { %6704 = vadd.xlane.f32.xlu0 %v6703_v3 }
0x10ff   : > { %6707 = vadd.xlane.f32.xlu1 %v6706_v23 }
0x1101   : > { %6710 = vadd.xlane.f32.xlu0 %v6709_v4 }
0x1103   : > { %6713 = vadd.xlane.f32.xlu1 %v6712_v0 }
0x1134   : > { %v6525_v59 = vpop.xlane.xlu0 %6524 }
0x1135   : > { %v6587_v51 = vmul.f32 0.03125, %v6525_v59 }
0x1136   : > { %v6528_v38 = vpop.xlane.xlu1 %6527 }
0x1137   : > { %v14880_v5 = vsub.f32 %v14660_v25, %v6587_v51  ;;  %v6588_v9 = vmul.f32 0.03125, %v6528_v38 }
0x1138   : > { %v6531_v62 = vpop.xlane.xlu0 %6530 }
0x1139   : > { %v14883_v16 = vsub.f32 %v14672_v18, %v6588_v9  ;;  %v6589_v44 = vmul.f32 0.03125, %v6531_v62  ;;  %v6651_v3 = vmul.f32 %v14880_v5, %v14880_v5 }
0x113a   : > { %v6534_v57 = vpop.xlane.xlu1 %6533 }
0x113b   : > { %v14888_v23 = vsub.f32 %v14669_v46, %v6589_v44  ;;  %v6590_v24 = vmul.f32 0.03125, %v6534_v57  ;;  %v6715_v4 = vsel %vm984_vm1, %v6651_v3, 0.0  ;;  %v6652_v0 = vmul.f32 %v14883_v16, %v14883_v16 }
0x113c   : > { %v6537_v40 = vpop.xlane.xlu0 %6536  ;;  %6716 = vadd.xlane.f32.xlu0 %v6715_v4 }
0x113d   : > { %v14894_v21 = vsub.f32 %v14677_v33, %v6590_v24  ;;  %v6591_v59 = vmul.f32 0.03125, %v6537_v40  ;;  %v6718_v51 = vsel %vm984_vm1, %v6652_v0, 0.0  ;;  %v6653_v38 = vmul.f32 %v14888_v23, %v14888_v23 }
0x113e   : > { %v6540_v9 = vpop.xlane.xlu1 %6539  ;;  %6719 = vadd.xlane.f32.xlu1 %v6718_v51 }
0x113f   : > { %v14900_v62 = vsub.f32 %v14690_v47, %v6591_v59  ;;  %v6592_v44 = vmul.f32 0.03125, %v6540_v9  ;;  %v6721_v3 = vsel %vm984_vm1, %v6653_v38, 0.0  ;;  %v6654_v57 = vmul.f32 %v14894_v21, %v14894_v21 }
0x1140   : > { %v6543_v4 = vpop.xlane.xlu0 %6542  ;;  %6722 = vadd.xlane.f32.xlu0 %v6721_v3 }
0x1141   : > { %v14906_v24 = vsub.f32 %v14704_v54, %v6592_v44  ;;  %v6593_v0 = vmul.f32 0.03125, %v6543_v4  ;;  %v6724_v40 = vsel %vm984_vm1, %v6654_v57, 0.0  ;;  %v6655_v51 = vmul.f32 %v14900_v62, %v14900_v62 }
0x1142   : > { %v6546_v18 = vpop.xlane.xlu1 %6545  ;;  %6725 = vadd.xlane.f32.xlu1 %v6724_v40 }
0x1143   : > { %v14912_v59 = vsub.f32 %v14701_v58, %v6593_v0  ;;  %v6594_v38 = vmul.f32 0.03125, %v6546_v18  ;;  %v6727_v9 = vsel %vm984_vm1, %v6655_v51, 0.0  ;;  %v6656_v3 = vmul.f32 %v14906_v24, %v14906_v24 }
0x1144   : > { %v6549_v47 = vpop.xlane.xlu0 %6548  ;;  %6728 = vadd.xlane.f32.xlu0 %v6727_v9 }
0x1145   : > { %v14918_v44 = vsub.f32 %v14709_v52, %v6594_v38  ;;  %v6595_v57 = vmul.f32 0.03125, %v6549_v47  ;;  %v6730_v4 = vsel %vm984_vm1, %v6656_v3, 0.0  ;;  %v6657_v40 = vmul.f32 %v14912_v59, %v14912_v59 }
0x1146   : > { %v6552_v54 = vpop.xlane.xlu1 %6551  ;;  %6731 = vadd.xlane.f32.xlu1 %v6730_v4 }
0x1147   : > { %v14924_v18 = vsub.f32 %v14722_v56, %v6595_v57  ;;  %v6596_v0 = vmul.f32 0.03125, %v6552_v54  ;;  %v6733_v51 = vsel %vm984_vm1, %v6657_v40, 0.0  ;;  %v6658_v9 = vmul.f32 %v14918_v44, %v14918_v44 }
0x1148   : > { %v6555_v58 = vpop.xlane.xlu0 %6554  ;;  %6734 = vadd.xlane.f32.xlu0 %v6733_v51 }
0x1149   : > { %v14930_v47 = vsub.f32 %v14736_v2, %v6596_v0  ;;  %v6597_v38 = vmul.f32 0.03125, %v6555_v58  ;;  %v6736_v3 = vsel %vm984_vm1, %v6658_v9, 0.0  ;;  %v6659_v4 = vmul.f32 %v14924_v18, %v14924_v18 }
0x114a   : > { %v6558_v52 = vpop.xlane.xlu1 %6557  ;;  %6737 = vadd.xlane.f32.xlu1 %v6736_v3 }
0x114b   : > { %v14936_v54 = vsub.f32 %v14733_v7, %v6597_v38  ;;  %v6598_v57 = vmul.f32 0.03125, %v6558_v52  ;;  %v6739_v40 = vsel %vm984_vm1, %v6659_v4, 0.0  ;;  %v6660_v51 = vmul.f32 %v14930_v47, %v14930_v47 }
0x114c   : > { %6740 = vadd.xlane.f32.xlu0 %v6739_v40 }
0x114d   : > { %v14942_v0 = vsub.f32 %v14741_v17, %v6598_v57  ;;  %v6742_v58 = vsel %vm984_vm1, %v6660_v51, 0.0  ;;  %v6661_v9 = vmul.f32 %v14936_v54, %v14936_v54 }
0x114e   : > { %6743 = vadd.xlane.f32.xlu1 %v6742_v58 }
0x114f   : > { %v6745_v3 = vsel %vm984_vm1, %v6661_v9, 0.0  ;;  %v6662_v52 = vmul.f32 %v14942_v0, %v14942_v0 }
0x1150   : > { %6746 = vadd.xlane.f32.xlu0 %v6745_v3 }
0x1151   : > { %v6748_v38 = vsel %vm984_vm1, %v6662_v52, 0.0 }
0x1152   : > { %6749 = vadd.xlane.f32.xlu1 %v6748_v38 }
0x116a   : > { %v6561_v4 = vpop.xlane.xlu0 %6560 }
0x116b   : > { %v6599_v40 = vmul.f32 0.03125, %v6561_v4 }
0x116c   : > { %v6564_v2 = vpop.xlane.xlu1 %6563 }
0x116d   : > { %v14952_v57 = vsub.f32 %v14756_v26, %v6599_v40  ;;  %v6600_v51 = vmul.f32 0.03125, %v6564_v2 }
0x116e   : > { %v6567_v17 = vpop.xlane.xlu0 %6566 }
0x116f   : > { %v14955_v56 = vsub.f32 %v14771_v19, %v6600_v51  ;;  %v6601_v58 = vmul.f32 0.03125, %v6567_v17  ;;  %v6663_v9 = vmul.f32 %v14952_v57, %v14952_v57 }
0x1170   : > { %v6570_v7 = vpop.xlane.xlu1 %6569 }
0x1171   : > { %v14960_v3 = vsub.f32 %v14768_v8, %v6601_v58  ;;  %v6602_v52 = vmul.f32 0.03125, %v6570_v7  ;;  %v6751_v38 = vsel %vm984_vm1, %v6663_v9, 0.0  ;;  %v6664_v4 = vmul.f32 %v14955_v56, %v14955_v56 }
0x1172   : > { %6752 = vadd.xlane.f32.xlu0 %v6751_v38  ;;  %v6669_v2 = vpop.xlane.xlu0 %6668 }
0x1173   : > { %v14966_v40 = vsub.f32 %v14779_v13, %v6602_v52  ;;  %v6763_v51 = vmul.f32 0.03125, %v6669_v2  ;;  %v6754_v17 = vsel %vm984_vm1, %v6664_v4, 0.0  ;;  %v6665_v19 = vmul.f32 %v14960_v3, %v14960_v3 }
0x1174   : > { %6755 = vadd.xlane.f32.xlu1 %v6754_v17  ;;  %v6672_v58 = vpop.xlane.xlu1 %6671 }
0x1175   : > { %v6795_v26 = vadd.f32 1e-05, %v6763_v51  ;;  %v6764_v7 = vmul.f32 0.03125, %v6672_v58  ;;  %v6757_v9 = vsel %vm984_vm1, %v6665_v19, 0.0  ;;  %v6666_v8 = vmul.f32 %v14966_v40, %v14966_v40 }
0x1176   : > { %6758 = vadd.xlane.f32.xlu0 %v6757_v9  ;;  %v6675_v38 = vpop.xlane.xlu0 %6674 }
0x1177   : > { %10319 = vrsqrt.f32 %v6795_v26  ;;  %v6796_v52 = vadd.f32 1e-05, %v6764_v7  ;;  %v6765_v13 = vmul.f32 0.03125, %v6675_v38  ;;  %v6760_v2 = vsel %vm984_vm1, %v6666_v8, 0.0 }
0x1178   : > { %6761 = vadd.xlane.f32.xlu1 %v6760_v2  ;;  %v6678_v4 = vpop.xlane.xlu1 %6677 }
0x1179   : > { %10321 = vrsqrt.f32 %v6796_v52  ;;  %v6797_v33 = vadd.f32 1e-05, %v6765_v13  ;;  %v6766_v17 = vmul.f32 0.03125, %v6678_v4  ;;  %v14980_v13 = vld [vmem:[%s802_s19] ss:$0 sm:$0xff]  ;;  %s16223_s19 = scalar_lea.vmem %s15482_s14, %s10686_s28 }
0x117a   : > { %v6681_v51 = vpop.xlane.xlu0 %6680 }
0x117b   : > { %10323 = vrsqrt.f32 %v6797_v33  ;;  %v6798_v58 = vadd.f32 1e-05, %v6766_v17  ;;  %v6767_v19 = vmul.f32 0.03125, %v6681_v51 }
0x117c   : > { %v6684_v25 = vpop.xlane.xlu1 %6683 }
0x117d   : > { %10325 = vrsqrt.f32 %v6798_v58  ;;  %v6799_v46 = vadd.f32 1e-05, %v6767_v19  ;;  %v6768_v9 = vmul.f32 0.03125, %v6684_v25 }
0x117e   : > { %v6687_v14 = vpop.xlane.xlu0 %6686 }
0x117f   : > { %10327 = vrsqrt.f32 %v6799_v46  ;;  %v6800_v26 = vadd.f32 1e-05, %v6768_v9  ;;  %v6769_v7 = vmul.f32 0.03125, %v6687_v14  ;;  %v14990_v9 = vld [vmem:[%s805_s7] ss:$0 sm:$0xff] }
0x1180   : > { %v6690_v38 = vpop.xlane.xlu1 %6689 }
0x1181   : > { %v10320_v8 = vpop.eup %10319  ;;  %10329 = vrsqrt.f32 %v6800_v26  ;;  %v6801_v33 = vadd.f32 1e-05, %v6769_v7  ;;  %v6770_v52 = vmul.f32 0.03125, %v6690_v38 }
0x1182   : > { %v6859_v2 = vmul.f32 %v10320_v8, %v14765_v6  ;;  %v6693_v4 = vpop.xlane.xlu0 %6692 }
0x1183   : > { %v10322_v25 = vpop.eup %10321  ;;  %10331 = vrsqrt.f32 %v6801_v33  ;;  %v6802_v46 = vadd.f32 1e-05, %v6770_v52  ;;  %v6771_v17 = vmul.f32 0.03125, %v6693_v4 }
0x1184   : > { %v6860_v14 = vmul.f32 %v10322_v25, %v14776_v50  ;;  %v6696_v51 = vpop.xlane.xlu1 %6695  ;;  %v6897_v58 = vmul.f32 %v14980_v13, %v6859_v2 }
0x1185   : > { %v10324_v19 = vpop.eup %10323  ;;  %10333 = vrsqrt.f32 %v6802_v46  ;;  %v6803_v26 = vadd.f32 1e-05, %v6771_v17  ;;  %v6772_v6 = vmul.f32 0.03125, %v6696_v51 }
0x1186   : > { %v6861_v7 = vmul.f32 %v10324_v19, %v14784_v34  ;;  %v6699_v38 = vpop.xlane.xlu0 %6698  ;;  %v6898_v8 = vmul.f32 %v14980_v13, %v6860_v14  ;;  %v6935_v43 = vadd.f32 %v14990_v9, %v6897_v58 }
0x1187   : > { %v10326_v33 = vpop.eup %10325  ;;  %10335 = vrsqrt.f32 %v6803_v26  ;;  %v6804_v50 = vadd.f32 1e-05, %v6772_v6  ;;  %v6773_v52 = vmul.f32 0.03125, %v6699_v38 }
0x1188   : > { %v6899_v2 = vmul.f32 %v14980_v13, %v6861_v7  ;;  %v6862_v4 = vmul.f32 %v10326_v33, %v14791_v63  ;;  %v6702_v25 = vpop.xlane.xlu1 %6701  ;;  %v6936_v46 = vadd.f32 %v14990_v9, %v6898_v8 }
0x1189   : > { %v10328_v17 = vpop.eup %10327  ;;  %10337 = vrsqrt.f32 %v6804_v50  ;;  %v6805_v51 = vadd.f32 1e-05, %v6773_v52  ;;  %v6774_v34 = vmul.f32 0.03125, %v6702_v25 }
0x118a   : > { %v6900_v19 = vmul.f32 %v14980_v13, %v6862_v4  ;;  %v6863_v14 = vmul.f32 %v10328_v17, %v14798_v53  ;;  %v6705_v26 = vpop.xlane.xlu0 %6704  ;;  %v6967_v6 = vpack.c.bf16 %v6936_v46, %v6935_v43  ;;  %v6937_v63 = vadd.f32 %v14990_v9, %v6899_v2 }
0x118b   : > { %v10330_v38 = vpop.eup %10329  ;;  %10339 = vrsqrt.f32 %v6805_v51  ;;  %v6806_v7 = vadd.f32 1e-05, %v6774_v34  ;;  %v6775_v41 = vmul.f32 0.03125, %v6705_v26 }
0x118c   : > { %v6938_v58 = vadd.f32 %v14990_v9, %v6900_v19  ;;  %v6864_v8 = vmul.f32 %v10330_v38, %v14804_v20  ;;  %9306 = vmatprep.mubr.msk.bf16.mxu1 %vm984_vm1, %v6967_v6  ;;  %v6708_v33 = vpop.xlane.xlu1 %6707  ;;  %v6901_v50 = vmul.f32 %v14980_v13, %v6863_v14 }
0x118d   : > { %v10332_v52 = vpop.eup %10331  ;;  %10341 = vrsqrt.f32 %v6806_v7  ;;  %v6807_v53 = vadd.f32 1e-05, %v6775_v41  ;;  %v6776_v4 = vmul.f32 0.03125, %v6708_v33 }
0x118e   : > { %v6865_v43 = vmul.f32 %v10332_v52, %v14810_v30  ;;  %v6711_v25 = vpop.xlane.xlu0 %6710  ;;  %v6968_v46 = vpack.c.bf16 %v6938_v58, %v6937_v63  ;;  %v6902_v17 = vmul.f32 %v14980_v13, %v6864_v8  ;;  %v6939_v14 = vadd.f32 %v14990_v9, %v6901_v50 }
0x118f   : > { %v10334_v2 = vpop.eup %10333  ;;  %10343 = vrsqrt.f32 %v6807_v53  ;;  %v6808_v51 = vadd.f32 1e-05, %v6776_v4  ;;  %v6777_v34 = vmul.f32 0.03125, %v6711_v25 }
0x1190   : > { %v6866_v20 = vmul.f32 %v10334_v2, %v14816_v28  ;;  %9307 = vmatmul.mubr.msk.bf16.vlgmr.msra.gmra.mrb[192].mxu1 %vm984_vm1, %v6968_v46  ;;  %v6714_v19 = vpop.xlane.xlu1 %6713  ;;  %v6940_v41 = vadd.f32 %v14990_v9, %v6902_v17  ;;  %v6903_v26 = vmul.f32 %v14980_v13, %v6865_v43 }
0x1191   : > { %v10336_v30 = vpop.eup %10335  ;;  %10345 = vrsqrt.f32 %v6808_v51  ;;  %v6809_v6 = vadd.f32 1e-05, %v6777_v34  ;;  %v6778_v38 = vmul.f32 0.03125, %v6714_v19 }
0x1192   : > { %v6867_v7 = vmul.f32 %v10336_v30, %v14822_v45  ;;  %v6969_v63 = vpack.c.bf16 %v6940_v41, %v6939_v14  ;;  %v6904_v58 = vmul.f32 %v14980_v13, %v6866_v20  ;;  %v6941_v50 = vadd.f32 %v14990_v9, %v6903_v26 }
0x1193   : > { %v10338_v8 = vpop.eup %10337  ;;  %10347 = vrsqrt.f32 %v6809_v6  ;;  %v6810_v28 = vadd.f32 1e-05, %v6778_v38 }
0x1194   : > { %v6868_v33 = vmul.f32 %v10338_v8, %v14828_v1  ;;  %9310 = vmatprep.mubr.msk.bf16.mxu1 %vm984_vm1, %v6969_v63  ;;  %v6942_v52 = vadd.f32 %v14990_v9, %v6904_v58  ;;  %v6905_v53 = vmul.f32 %v14980_v13, %v6867_v7 }
0x1195   : > { %v10340_v4 = vpop.eup %10339  ;;  %10349 = vrsqrt.f32 %v6810_v28 }
0x1196   : > { %v6869_v45 = vmul.f32 %v10340_v4, %v14834_v48  ;;  %v6970_v43 = vpack.c.bf16 %v6942_v52, %v6941_v50  ;;  %v6906_v25 = vmul.f32 %v14980_v13, %v6868_v33  ;;  %v6943_v1 = vadd.f32 %v14990_v9, %v6905_v53 }
0x1197   : > { %v10342_v46 = vpop.eup %10341 }
0x1198   : > { %v6870_v17 = vmul.f32 %v10342_v46, %v14840_v12  ;;  %9311 = vmatmul.mubr.msk.bf16.gmra.mrb[196].mxu1 %vm984_vm1, %v6970_v43  ;;  %v6944_v2 = vadd.f32 %v14990_v9, %v6906_v25  ;;  %v6907_v51 = vmul.f32 %v14980_v13, %v6869_v45 }
0x1199   : > { %v10344_v34 = vpop.eup %10343 }
0x119a   : > { %v6871_v20 = vmul.f32 %v10344_v34, %v14846_v42  ;;  %v6971_v19 = vpack.c.bf16 %v6944_v2, %v6943_v1  ;;  %v6908_v48 = vmul.f32 %v14980_v13, %v6870_v17  ;;  %v6945_v12 = vadd.f32 %v14990_v9, %v6907_v51 }
0x119b   : > { %v10346_v14 = vpop.eup %10345 }
0x119c   : > { %v6872_v41 = vmul.f32 %v10346_v14, %v14852_v39  ;;  %9314 = vmatprep.mubr.msk.bf16.mxu1 %vm984_vm1, %v6971_v19  ;;  %v6946_v26 = vadd.f32 %v14990_v9, %v6908_v48  ;;  %v6909_v30 = vmul.f32 %v14980_v13, %v6871_v20 }
0x119d   : > { %v10348_v6 = vpop.eup %10347 }
0x119e   : > { %v6873_v38 = vmul.f32 %v10348_v6, %v14858_v55  ;;  %v6972_v7 = vpack.c.bf16 %v6946_v26, %v6945_v12  ;;  %v6910_v42 = vmul.f32 %v14980_v13, %v6872_v41  ;;  %v6947_v39 = vadd.f32 %v14990_v9, %v6909_v30 }
0x119f   : > { %v10350_v63 = vpop.eup %10349 }
0x11a0   : > { %v6874_v58 = vmul.f32 %v10350_v63, %v14864_v35  ;;  %9315 = vmatmul.mubr.msk.bf16.gmra.mrb[200].mxu1 %vm984_vm1, %v6972_v7  ;;  %v6948_v8 = vadd.f32 %v14990_v9, %v6910_v42  ;;  %v6911_v28 = vmul.f32 %v14980_v13, %v6873_v38 }
0x11a2   : > { %v6973_v33 = vpack.c.bf16 %v6948_v8, %v6947_v39  ;;  %v6912_v50 = vmul.f32 %v14980_v13, %v6874_v58  ;;  %v6949_v55 = vadd.f32 %v14990_v9, %v6911_v28 }
0x11a4   : > { %9318 = vmatprep.mubr.msk.bf16.mxu1 %vm984_vm1, %v6973_v33  ;;  %v6950_v52 = vadd.f32 %v14990_v9, %v6912_v50 }
0x11a6   : > { %v6974_v53 = vpack.c.bf16 %v6950_v52, %v6949_v55 }
0x11a8   : > { %9319 = vmatmul.mubr.msk.bf16.gmra.mrb[204].mxu1 %vm984_vm1, %v6974_v53 }
0x11c9   : > { %v6717_v35 = vpop.xlane.xlu0 %6716 }
0x11ca   : > { %v6779_v4 = vmul.f32 0.03125, %v6717_v35 }
0x11cb   : > { %v6720_v45 = vpop.xlane.xlu1 %6719 }
0x11cc   : > { %v6811_v43 = vadd.f32 1e-05, %v6779_v4  ;;  %v6780_v25 = vmul.f32 0.03125, %v6720_v45 }
0x11cd   : > { %v6723_v46 = vpop.xlane.xlu0 %6722 }
0x11ce   : > { %10351 = vrsqrt.f32 %v6811_v43  ;;  %v6812_v17 = vadd.f32 1e-05, %v6780_v25  ;;  %v6781_v1 = vmul.f32 0.03125, %v6723_v46 }
0x11cf   : > { %v6726_v2 = vpop.xlane.xlu1 %6725 }
0x11d0   : > { %10353 = vrsqrt.f32 %v6812_v17  ;;  %v6813_v51 = vadd.f32 1e-05, %v6781_v1  ;;  %v6782_v34 = vmul.f32 0.03125, %v6726_v2 }
0x11d1   : > { %v6729_v20 = vpop.xlane.xlu0 %6728 }
0x11d2   : > { %10355 = vrsqrt.f32 %v6813_v51  ;;  %v6814_v19 = vadd.f32 1e-05, %v6782_v34  ;;  %v6783_v48 = vmul.f32 0.03125, %v6729_v20 }
0x11d3   : > { %v6732_v14 = vpop.xlane.xlu1 %6731 }
0x11d4   : > { %10357 = vrsqrt.f32 %v6814_v19  ;;  %v6815_v41 = vadd.f32 1e-05, %v6783_v48  ;;  %v6784_v12 = vmul.f32 0.03125, %v6732_v14 }
0x11d5   : > { %v6735_v26 = vpop.xlane.xlu0 %6734 }
0x11d6   : > { %10359 = vrsqrt.f32 %v6815_v41  ;;  %v6816_v30 = vadd.f32 1e-05, %v6784_v12  ;;  %v6785_v6 = vmul.f32 0.03125, %v6735_v26 }
0x11d7   : > { %v6738_v38 = vpop.xlane.xlu1 %6737 }
0x11d8   : > { %v10352_v7 = vpop.eup %10351  ;;  %10361 = vrsqrt.f32 %v6816_v30  ;;  %v6817_v42 = vadd.f32 1e-05, %v6785_v6  ;;  %v6786_v63 = vmul.f32 0.03125, %v6738_v38 }
0x11d9   : > { %v6875_v58 = vmul.f32 %v10352_v7, %v14880_v5  ;;  %v6741_v39 = vpop.xlane.xlu0 %6740 }
0x11da   : > { %v10354_v8 = vpop.eup %10353  ;;  %10363 = vrsqrt.f32 %v6817_v42  ;;  %v6818_v28 = vadd.f32 1e-05, %v6786_v63  ;;  %v6787_v33 = vmul.f32 0.03125, %v6741_v39 }
0x11db   : > { %v6876_v50 = vmul.f32 %v10354_v8, %v14883_v16  ;;  %v6744_v55 = vpop.xlane.xlu1 %6743  ;;  %v6913_v52 = vmul.f32 %v14980_v13, %v6875_v58 }
0x11dc   : > { %v10356_v53 = vpop.eup %10355  ;;  %10365 = vrsqrt.f32 %v6818_v28  ;;  %v6819_v35 = vadd.f32 1e-05, %v6787_v33  ;;  %v6788_v4 = vmul.f32 0.03125, %v6744_v55 }
0x11dd   : > { %v6877_v45 = vmul.f32 %v10356_v53, %v14888_v23  ;;  %v6747_v43 = vpop.xlane.xlu0 %6746  ;;  %v6914_v25 = vmul.f32 %v14980_v13, %v6876_v50  ;;  %v6951_v16 = vadd.f32 %v14990_v9, %v6913_v52  ;;  %v9735_v53 = vld [vmem:[%s10754_s5] sm:$0xff]  }
0x11de   : > { %v10358_v5 = vpop.eup %10357  ;;  %10367 = vrsqrt.f32 %v6819_v35  ;;  %v6820_v46 = vadd.f32 1e-05, %v6788_v4  ;;  %v6789_v17 = vmul.f32 0.03125, %v6747_v43  ;;  %9338 = vmatprep.subr.bf16.mxu0 %v9735_v53 }
0x11df   : > { %v6878_v1 = vmul.f32 %v10358_v5, %v14894_v21  ;;  %v6750_v2 = vpop.xlane.xlu1 %6749  ;;  %v6952_v51 = vadd.f32 %v14990_v9, %v6914_v25  ;;  %v6915_v34 = vmul.f32 %v14980_v13, %v6877_v45  ;;  %9339 = vmatpush3.bf16.msra.mxu0 %v9735_v53 }
0x11e0   : > { %v10360_v20 = vpop.eup %10359  ;;  %10369 = vrsqrt.f32 %v6820_v46  ;;  %v6821_v19 = vadd.f32 1e-05, %v6789_v17  ;;  %v6790_v23 = vmul.f32 0.03125, %v6750_v2  ;;  %v9736_v17 = vld [vmem:[%s10754_s5 + $0x8] sm:$0xff]  }
0x11e1   : > { %v6879_v48 = vmul.f32 %v10360_v20, %v14900_v62  ;;  %v6975_v14 = vpack.c.bf16 %v6952_v51, %v6951_v16  ;;  %v6916_v41 = vmul.f32 %v14980_v13, %v6878_v1  ;;  %v6953_v30 = vadd.f32 %v14990_v9, %v6915_v34  ;;  %9340 = vmatprep.subr.bf16.mxu0 %v9736_v17  ;;  %v9737_v34 = vld [vmem:[%s10754_s5 + $0x10] sm:$0xff]  }
0x11e2   : > { %v10362_v12 = vpop.eup %10361  ;;  %10371 = vrsqrt.f32 %v6821_v19  ;;  %v6822_v26 = vadd.f32 1e-05, %v6790_v23  ;;  %v9738_v23 = vld [vmem:[%s10754_s5 + $0x18] sm:$0xff]  }
0x11e3   : > { %v6880_v21 = vmul.f32 %v10362_v12, %v14906_v24  ;;  %9322 = vmatprep.mubr.msk.bf16.mxu1 %vm984_vm1, %v6975_v14  ;;  %v6954_v6 = vadd.f32 %v14990_v9, %v6916_v41  ;;  %v6917_v38 = vmul.f32 %v14980_v13, %v6879_v48  ;;  %9341 = vmatpush3.bf16.msra.mxu0 %v9736_v17  ;;  %v9739_v48 = vld [vmem:[%s10754_s5 + $0x20] sm:$0xff]   ;;  %v9740_v14 = vld [vmem:[%s10754_s5 + $0x28] sm:$0xff]  }
0x11e4   : > { %v10364_v7 = vpop.eup %10363  ;;  %10373 = vrsqrt.f32 %v6822_v26  ;;  %9342 = vmatprep.subr.bf16.mxu0 %v9737_v34 }
0x11e5   : > { %v6881_v62 = vmul.f32 %v10364_v7, %v14912_v59  ;;  %v6976_v42 = vpack.c.bf16 %v6954_v6, %v6953_v30  ;;  %v6918_v63 = vmul.f32 %v14980_v13, %v6880_v21  ;;  %v6955_v24 = vadd.f32 %v14990_v9, %v6917_v38  ;;  %v9741_v6 = vld [vmem:[%s10754_s5 + $0x30] sm:$0xff]  }
0x11e6   : > { %v10366_v58 = vpop.eup %10365 }
0x11e7   : > { %v6882_v39 = vmul.f32 %v10366_v58, %v14918_v44  ;;  %9323 = vmatmul.mubr.msk.bf16.gmra.mrb[208].mxu1 %vm984_vm1, %v6976_v42  ;;  %v6956_v8 = vadd.f32 %v14990_v9, %v6918_v63  ;;  %v6919_v28 = vmul.f32 %v14980_v13, %v6881_v62  ;;  %9343 = vmatpush3.bf16.msra.mxu0 %v9737_v34 }
0x11e8   : > { %v10368_v33 = vpop.eup %10367  ;;  %9344 = vmatprep.subr.bf16.mxu0 %v9738_v23 }
0x11e9   : > { %v6883_v50 = vmul.f32 %v10368_v33, %v14924_v18  ;;  %v6977_v55 = vpack.c.bf16 %v6956_v8, %v6955_v24  ;;  %v6920_v59 = vmul.f32 %v14980_v13, %v6882_v39  ;;  %v6957_v44 = vadd.f32 %v14990_v9, %v6919_v28  ;;  %v9742_v39 = vld [vmem:[%s10754_s5 + $0x38] sm:$0xff]  }
0x11ea   : > { %v10370_v52 = vpop.eup %10369 }
0x11eb   : > { %v6884_v35 = vmul.f32 %v10370_v52, %v14930_v47  ;;  %9326 = vmatprep.mubr.msk.bf16.mxu1 %vm984_vm1, %v6977_v55  ;;  %v6958_v4 = vadd.f32 %v14990_v9, %v6920_v59  ;;  %v6921_v45 = vmul.f32 %v14980_v13, %v6883_v50  ;;  %9345 = vmatpush3.bf16.msra.mxu0 %v9738_v23 }
0x11ec   : > { %v10372_v43 = vpop.eup %10371  ;;  %9346 = vmatprep.subr.bf16.mxu0 %v9739_v48 }
0x11ed   : > { %v6885_v18 = vmul.f32 %v10372_v43, %v14936_v54  ;;  %v6978_v25 = vpack.c.bf16 %v6958_v4, %v6957_v44  ;;  %v6922_v5 = vmul.f32 %v14980_v13, %v6884_v35  ;;  %v6959_v1 = vadd.f32 %v14990_v9, %v6921_v45 }
0x11ee   : > { %v10374_v46 = vpop.eup %10373 }
0x11ef   : > { %v6886_v47 = vmul.f32 %v10374_v46, %v14942_v0  ;;  %9327 = vmatmul.mubr.msk.bf16.gmra.mrb[212].mxu1 %vm984_vm1, %v6978_v25  ;;  %v6960_v2 = vadd.f32 %v14990_v9, %v6922_v5  ;;  %v6923_v16 = vmul.f32 %v14980_v13, %v6885_v18  ;;  %9347 = vmatpush3.bf16.msra.mxu0 %v9739_v48 }
0x11f0   : > { %9348 = vmatprep.subr.bf16.mxu0 %v9740_v14 }
0x11f1   : > { %v6979_v54 = vpack.c.bf16 %v6960_v2, %v6959_v1  ;;  %v6924_v51 = vmul.f32 %v14980_v13, %v6886_v47  ;;  %v6961_v0 = vadd.f32 %v14990_v9, %v6923_v16 }
0x11f3   : > { %9330 = vmatprep.mubr.msk.bf16.mxu1 %vm984_vm1, %v6979_v54  ;;  %v6962_v20 = vadd.f32 %v14990_v9, %v6924_v51  ;;  %9349 = vmatpush3.bf16.msra.mxu0 %v9740_v14 }
0x11f4   : > { %9350 = vmatprep.subr.bf16.mxu0 %v9741_v6 }
0x11f5   : > { %v6980_v19 = vpack.c.bf16 %v6962_v20, %v6961_v0 }
0x11f7   : > { %9331 = vmatmul.mubr.msk.bf16.gmra.mrb[216].mxu1 %vm984_vm1, %v6980_v19  ;;  %9351 = vmatpush3.bf16.msra.mxu0 %v9741_v6 }
0x11f8   : > { %9352 = vmatprep.subr.bf16.mxu0 %v9742_v39 }
0x11fb   : > { %9353 = vmatpush3.bf16.msra.mxu0 %v9742_v39 }
0x11ff   : > { %v6753_v41 = vpop.xlane.xlu0 %6752 }
0x1200   : > { %v6791_v12 = vmul.f32 0.03125, %v6753_v41 }
0x1201   : > { %v6756_v26 = vpop.xlane.xlu1 %6755 }
0x1202   : > { %v6823_v21 = vadd.f32 1e-05, %v6791_v12  ;;  %v6792_v30 = vmul.f32 0.03125, %v6756_v26 }
0x1203   : > { %v6759_v38 = vpop.xlane.xlu0 %6758 }
0x1204   : > { %10375 = vrsqrt.f32 %v6823_v21  ;;  %v6824_v7 = vadd.f32 1e-05, %v6792_v30  ;;  %v6793_v62 = vmul.f32 0.03125, %v6759_v38 }
0x1205   : > { %v6762_v42 = vpop.xlane.xlu1 %6761 }
0x1206   : > { %10377 = vrsqrt.f32 %v6824_v7  ;;  %v6825_v63 = vadd.f32 1e-05, %v6793_v62  ;;  %v6794_v58 = vmul.f32 0.03125, %v6762_v42 }
0x1208   : > { %10379 = vrsqrt.f32 %v6825_v63  ;;  %v6826_v24 = vadd.f32 1e-05, %v6794_v58 }
0x120a   : > { %10381 = vrsqrt.f32 %v6826_v24 }
0x120e   : > { %v10376_v8 = vpop.eup %10375 }
0x120f   : > { %v6887_v28 = vmul.f32 %v10376_v8, %v14952_v57 }
0x1210   : > { %v10378_v33 = vpop.eup %10377 }
0x1211   : > { %v6888_v50 = vmul.f32 %v10378_v33, %v14955_v56  ;;  %v6925_v55 = vmul.f32 %v14980_v13, %v6887_v28 }
0x1212   : > { %v10380_v59 = vpop.eup %10379 }
0x1213   : > { %v6889_v52 = vmul.f32 %v10380_v59, %v14960_v3  ;;  %v6926_v53 = vmul.f32 %v14980_v13, %v6888_v50  ;;  %v6963_v4 = vadd.f32 %v14990_v9, %v6925_v55 }
0x1214   : > { %v10382_v35 = vpop.eup %10381 }
0x1215   : > { %v6890_v44 = vmul.f32 %v10382_v35, %v14966_v40  ;;  %v6964_v45 = vadd.f32 %v14990_v9, %v6926_v53  ;;  %v6927_v57 = vmul.f32 %v14980_v13, %v6889_v52  ;;  %v15114_v40 = vld [vmem:[%s16223_s19] ss:$0 sm:$0xff] }
0x1217   : > { %v6981_v43 = vpack.c.bf16 %v6964_v45, %v6963_v4  ;;  %v6928_v56 = vmul.f32 %v14980_v13, %v6890_v44  ;;  %v6965_v18 = vadd.f32 %v14990_v9, %v6927_v57 }
0x1219   : > { %9334 = vmatprep.mubr.msk.bf16.mxu1 %vm984_vm1, %v6981_v43  ;;  %v6966_v3 = vadd.f32 %v14990_v9, %v6928_v56 }
0x121b   : > { %v6982_v25 = vpack.c.bf16 %v6966_v3, %v6965_v18 }
0x121d   : > { %9335 = vmatmul.mubr.msk.bf16.gmra.mrb[220].mxu1 %vm984_vm1, %v6982_v25 }
0x1263   : > { %v9308_v5 = vpop.f32.mrb[192].mxu1 }
0x1264   : > { %v15117_v46 = vadd.f32 %v9308_v5, %v15114_v40  ;;  %v7088_v13 = vpop.f32.mrb[193].mxu1 }
0x1265   : > { %v15120_v17 = vadd.f32 %v15114_v40, %v7088_v13  ;;  %v9309_v47 = vpop.f32.mrb[194].mxu1 }
0x1266   : > { %v8227_v9 = vmul.f32 -1.702, %v15117_v46  ;;  %v15124_v1 = vadd.f32 %v9309_v47, %v15114_v40  ;;  %v7091_v2 = vpop.f32.mrb[195].mxu1 }
0x1267   : > { %v8225_v16 = vmul.f32 -1.702, %v15120_v17  ;;  %v15128_v54 = vadd.f32 %v15114_v40, %v7091_v2 }
0x1268   : > { %v7283_v51 = vmul.f32 1.442695, %v8227_v9  ;;  %v8228_v34 = vmul.f32 -1.702, %v15124_v1 }
0x1269   : > { %v7279_v0 = vmul.f32 1.442695, %v8225_v16  ;;  %v8226_v20 = vmul.f32 -1.702, %v15128_v54 }
0x126a   : > { %10383 = vpow2.f32 %v7283_v51  ;;  %v7285_v19 = vmul.f32 1.442695, %v8228_v34 }
0x126b   : > { %10385 = vpow2.f32 %v7279_v0  ;;  %v7281_v23 = vmul.f32 1.442695, %v8226_v20  ;;  %v9312_v48 = vpop.f32.mrb[196].mxu1 }
0x126c   : > { %10387 = vpow2.f32 %v7285_v19  ;;  %v15133_v14 = vadd.f32 %v9312_v48, %v15114_v40  ;;  %v7104_v41 = vpop.f32.mrb[197].mxu1 }
0x126d   : > { %10389 = vpow2.f32 %v7281_v23  ;;  %v15136_v12 = vadd.f32 %v15114_v40, %v7104_v41  ;;  %v9313_v26 = vpop.f32.mrb[198].mxu1 }
0x126e   : > { %v8231_v21 = vmul.f32 -1.702, %v15133_v14  ;;  %v15140_v30 = vadd.f32 %v9313_v26, %v15114_v40  ;;  %v7107_v6 = vpop.f32.mrb[199].mxu1 }
0x126f   : > { %v8229_v38 = vmul.f32 -1.702, %v15136_v12  ;;  %v15144_v7 = vadd.f32 %v15114_v40, %v7107_v6 }
0x1270   : > { %v7291_v62 = vmul.f32 1.442695, %v8231_v21  ;;  %v8232_v42 = vmul.f32 -1.702, %v15140_v30 }
0x1271   : > { %v7287_v63 = vmul.f32 1.442695, %v8229_v38  ;;  %v8230_v58 = vmul.f32 -1.702, %v15144_v7 }
0x1272   : > { %10391 = vpow2.f32 %v7291_v62  ;;  %v7293_v39 = vmul.f32 1.442695, %v8232_v42 }
0x1273   : > { %10393 = vpow2.f32 %v7287_v63  ;;  %v7289_v24 = vmul.f32 1.442695, %v8230_v58  ;;  %v9316_v8 = vpop.f32.mrb[200].mxu1 }
0x1274   : > { %v10384_v28 = vpop.eup %10383  ;;  %10395 = vpow2.f32 %v7293_v39  ;;  %v15149_v33 = vadd.f32 %v9316_v8, %v15114_v40  ;;  %v7120_v50 = vpop.f32.mrb[201].mxu1 }
0x1275   : > { %v10386_v55 = vpop.eup %10385  ;;  %v7345_v59 = vadd.f32 1.0, %v10384_v28  ;;  %10397 = vpow2.f32 %v7289_v24  ;;  %v15152_v52 = vadd.f32 %v15114_v40, %v7120_v50  ;;  %v9317_v53 = vpop.f32.mrb[202].mxu1 }
0x1276   : > { %v10388_v35 = vpop.eup %10387  ;;  %v7343_v44 = vadd.f32 1.0, %v10386_v55  ;;  %v8235_v4 = vmul.f32 -1.702, %v15149_v33  ;;  %v15156_v45 = vadd.f32 %v9317_v53, %v15114_v40  ;;  %v7123_v57 = vpop.f32.mrb[203].mxu1 }
0x1277   : > { %v10390_v43 = vpop.eup %10389  ;;  %10399 = vrcp.f32 %v7345_v59  ;;  %v7346_v56 = vadd.f32 1.0, %v10388_v35  ;;  %v8233_v18 = vmul.f32 -1.702, %v15152_v52  ;;  %v15160_v3 = vadd.f32 %v15114_v40, %v7123_v57 }
0x1278   : > { %10401 = vrcp.f32 %v7343_v44  ;;  %v7344_v25 = vadd.f32 1.0, %v10390_v43  ;;  %v7299_v5 = vmul.f32 1.442695, %v8235_v4  ;;  %v8236_v13 = vmul.f32 -1.702, %v15156_v45 }
0x1279   : > { %10403 = vrcp.f32 %v7346_v56  ;;  %v7295_v47 = vmul.f32 1.442695, %v8233_v18  ;;  %v8234_v9 = vmul.f32 -1.702, %v15160_v3 }
0x127a   : > { %10405 = vrcp.f32 %v7344_v25  ;;  %v7301_v2 = vmul.f32 1.442695, %v8236_v13 }
0x127b   : > { %10407 = vpow2.f32 %v7299_v5  ;;  %v7297_v16 = vmul.f32 1.442695, %v8234_v9  ;;  %v9320_v51 = vpop.f32.mrb[204].mxu1 }
0x127c   : > { %v10392_v34 = vpop.eup %10391  ;;  %10409 = vpow2.f32 %v7295_v47  ;;  %v15165_v0 = vadd.f32 %v9320_v51, %v15114_v40  ;;  %v7136_v20 = vpop.f32.mrb[205].mxu1 }
0x127d   : > { %v10394_v19 = vpop.eup %10393  ;;  %v7349_v23 = vadd.f32 1.0, %v10392_v34  ;;  %10411 = vpow2.f32 %v7301_v2  ;;  %v15168_v48 = vadd.f32 %v15114_v40, %v7136_v20  ;;  %v9321_v41 = vpop.f32.mrb[206].mxu1 }
0x127e   : > { %v10396_v26 = vpop.eup %10395  ;;  %v7347_v21 = vadd.f32 1.0, %v10394_v19  ;;  %10413 = vpow2.f32 %v7297_v16  ;;  %v8239_v6 = vmul.f32 -1.702, %v15165_v0  ;;  %v15172_v38 = vadd.f32 %v9321_v41, %v15114_v40  ;;  %v7139_v62 = vpop.f32.mrb[207].mxu1 }
0x127f   : > { %v10398_v42 = vpop.eup %10397  ;;  %10415 = vrcp.f32 %v7349_v23  ;;  %v7350_v63 = vadd.f32 1.0, %v10396_v26  ;;  %v8237_v58 = vmul.f32 -1.702, %v15168_v48  ;;  %v15176_v39 = vadd.f32 %v15114_v40, %v7139_v62 }
0x1280   : > { %10417 = vrcp.f32 %v7347_v21  ;;  %v7348_v24 = vadd.f32 1.0, %v10398_v42  ;;  %v7307_v8 = vmul.f32 1.442695, %v8239_v6  ;;  %v8240_v28 = vmul.f32 -1.702, %v15172_v38 }
0x1281   : > { %v10400_v50 = vpop.eup %10399  ;;  %10419 = vrcp.f32 %v7350_v63  ;;  %v7303_v55 = vmul.f32 1.442695, %v8237_v58  ;;  %v8238_v59 = vmul.f32 -1.702, %v15176_v39 }
0x1282   : > { %v10402_v53 = vpop.eup %10401  ;;  %10421 = vrcp.f32 %v7348_v24  ;;  %v7309_v35 = vmul.f32 1.442695, %v8240_v28  ;;  %v7441_v43 = vmul.f32 %v10400_v50, %v15117_v46 }
0x1283   : > { %v10404_v44 = vpop.eup %10403  ;;  %10423 = vpow2.f32 %v7307_v8  ;;  %v7305_v4 = vmul.f32 1.442695, %v8238_v59  ;;  %v7439_v25 = vmul.f32 %v10402_v53, %v15120_v17 }
0x1284   : > { %v10406_v57 = vpop.eup %10405  ;;  %v7442_v56 = vmul.f32 %v10404_v44, %v15124_v1  ;;  %10425 = vpow2.f32 %v7303_v55 }
0x1285   : > { %v10408_v18 = vpop.eup %10407  ;;  %v7440_v5 = vmul.f32 %v10406_v57, %v15128_v54  ;;  %10427 = vpow2.f32 %v7309_v35 }
0x1286   : > { %v10410_v13 = vpop.eup %10409  ;;  %v7472_v47 = vpack.c.bf16 %v7442_v56, %v7441_v43  ;;  %v7353_v9 = vadd.f32 1.0, %v10408_v18  ;;  %10429 = vpow2.f32 %v7305_v4 }
0x1287   : > { %v10412_v2 = vpop.eup %10411  ;;  %v7351_v16 = vadd.f32 1.0, %v10410_v13  ;;  %v7471_v51 = vpack.c.bf16 %v7440_v5, %v7439_v25 }
0x1288   : > { %v10414_v34 = vpop.eup %10413  ;;  %10431 = vrcp.f32 %v7353_v9  ;;  %v7354_v20 = vadd.f32 1.0, %v10412_v2 }
0x1289   : > { %v10416_v46 = vpop.eup %10415  ;;  %10433 = vrcp.f32 %v7351_v16  ;;  %v7352_v1 = vadd.f32 1.0, %v10414_v34  ;;  %9354 = vmatprep.mubr.bf16.mxu0 %v7471_v51 }
0x128a   : > { %v10418_v19 = vpop.eup %10417  ;;  %10435 = vrcp.f32 %v7354_v20  ;;  %9355 = vmatmul.mubr.bf16.vlgmr.msra.gmra.mrb[192].mxu0 %v7472_v47  ;;  %v7445_v23 = vmul.f32 %v10416_v46, %v15133_v14 }
0x128b   : > { %v10420_v17 = vpop.eup %10419  ;;  %10437 = vrcp.f32 %v7352_v1  ;;  %v7443_v21 = vmul.f32 %v10418_v19, %v15136_v12 }
0x128c   : > { %v10422_v54 = vpop.eup %10421  ;;  %v7446_v41 = vmul.f32 %v10420_v17, %v15140_v30 }
0x128d   : > { %v10424_v26 = vpop.eup %10423  ;;  %v7444_v6 = vmul.f32 %v10422_v54, %v15144_v7 }
0x128e   : > { %v10426_v62 = vpop.eup %10425  ;;  %v7357_v42 = vadd.f32 1.0, %v10424_v26  ;;  %v7474_v63 = vpack.c.bf16 %v7446_v41, %v7445_v23 }
0x128f   : > { %v10428_v58 = vpop.eup %10427  ;;  %v7355_v24 = vadd.f32 1.0, %v10426_v62  ;;  %v7473_v8 = vpack.c.bf16 %v7444_v6, %v7443_v21 }
0x1290   : > { %v10430_v28 = vpop.eup %10429  ;;  %10439 = vrcp.f32 %v7357_v42  ;;  %v7358_v50 = vadd.f32 1.0, %v10428_v58 }
0x1291   : > { %10441 = vrcp.f32 %v7355_v24  ;;  %v7356_v55 = vadd.f32 1.0, %v10430_v28  ;;  %9358 = vmatprep.mubr.bf16.mxu0 %v7473_v8 }
0x1292   : > { %v10432_v14 = vpop.eup %10431  ;;  %10443 = vrcp.f32 %v7358_v50  ;;  %9359 = vmatmul.mubr.bf16.gmra.mrb[196].mxu0 %v7474_v63 }
0x1293   : > { %v10434_v30 = vpop.eup %10433  ;;  %10445 = vrcp.f32 %v7356_v55  ;;  %v7449_v7 = vmul.f32 %v10432_v14, %v15149_v33 }
0x1294   : > { %v10436_v12 = vpop.eup %10435  ;;  %v7447_v35 = vmul.f32 %v10434_v30, %v15152_v52 }
0x1295   : > { %v10438_v59 = vpop.eup %10437  ;;  %v7450_v53 = vmul.f32 %v10436_v12, %v15156_v45 }
0x1296   : > { %v7448_v44 = vmul.f32 %v10438_v59, %v15160_v3 }
0x1297   : > { %v7476_v4 = vpack.c.bf16 %v7450_v53, %v7449_v7 }
0x1298   : > { %v7475_v57 = vpack.c.bf16 %v7448_v44, %v7447_v35 }
0x129a   : > { %v10440_v43 = vpop.eup %10439  ;;  %9362 = vmatprep.mubr.bf16.mxu0 %v7475_v57 }
0x129b   : > { %v10442_v56 = vpop.eup %10441  ;;  %9363 = vmatmul.mubr.bf16.gmra.mrb[200].mxu0 %v7476_v4  ;;  %v7453_v5 = vmul.f32 %v10440_v43, %v15165_v0 }
0x129c   : > { %v10444_v18 = vpop.eup %10443  ;;  %v7451_v33 = vmul.f32 %v10442_v56, %v15168_v48 }
0x129d   : > { %v10446_v25 = vpop.eup %10445  ;;  %v7454_v13 = vmul.f32 %v10444_v18, %v15172_v38 }
0x129e   : > { %v7452_v45 = vmul.f32 %v10446_v25, %v15176_v39 }
0x129f   : > { %v7478_v47 = vpack.c.bf16 %v7454_v13, %v7453_v5 }
0x12a0   : > { %v7477_v52 = vpack.c.bf16 %v7452_v45, %v7451_v33 }
0x12a2   : > { %9366 = vmatprep.mubr.bf16.mxu0 %v7477_v52 }
0x12a3   : > { %9367 = vmatmul.mubr.bf16.gmra.mrb[204].mxu0 %v7478_v47 }
0x12ba   : > { %v9324_v3 = vpop.f32.mrb[208].mxu1 }
0x12bb   : > { %v15197_v9 = vadd.f32 %v9324_v3, %v15114_v40  ;;  %v7152_v2 = vpop.f32.mrb[209].mxu1 }
0x12bc   : > { %v15200_v16 = vadd.f32 %v15114_v40, %v7152_v2  ;;  %v9325_v51 = vpop.f32.mrb[210].mxu1 }
0x12bd   : > { %v8243_v0 = vmul.f32 -1.702, %v15197_v9  ;;  %v15204_v38 = vadd.f32 %v9325_v51, %v15114_v40  ;;  %v7155_v48 = vpop.f32.mrb[211].mxu1 }
0x12be   : > { %v8241_v39 = vmul.f32 -1.702, %v15200_v16  ;;  %v15208_v34 = vadd.f32 %v15114_v40, %v7155_v48 }
0x12bf   : > { %v7315_v20 = vmul.f32 1.442695, %v8243_v0  ;;  %v8244_v46 = vmul.f32 -1.702, %v15204_v38 }
0x12c0   : > { %v7311_v1 = vmul.f32 1.442695, %v8241_v39  ;;  %v8242_v19 = vmul.f32 -1.702, %v15208_v34 }
0x12c1   : > { %10447 = vpow2.f32 %v7315_v20  ;;  %v7317_v17 = vmul.f32 1.442695, %v8244_v46 }
0x12c2   : > { %10449 = vpow2.f32 %v7311_v1  ;;  %v7313_v54 = vmul.f32 1.442695, %v8242_v19  ;;  %v9328_v23 = vpop.f32.mrb[212].mxu1 }
0x12c3   : > { %10451 = vpow2.f32 %v7317_v17  ;;  %v15213_v41 = vadd.f32 %v9328_v23, %v15114_v40  ;;  %v7168_v26 = vpop.f32.mrb[213].mxu1 }
0x12c4   : > { %10453 = vpow2.f32 %v7313_v54  ;;  %v15216_v21 = vadd.f32 %v15114_v40, %v7168_v26  ;;  %v9329_v6 = vpop.f32.mrb[214].mxu1 }
0x12c5   : > { %v8247_v62 = vmul.f32 -1.702, %v15213_v41  ;;  %v15220_v42 = vadd.f32 %v9329_v6, %v15114_v40  ;;  %v7171_v63 = vpop.f32.mrb[215].mxu1 }
0x12c6   : > { %v8245_v58 = vmul.f32 -1.702, %v15216_v21  ;;  %v15224_v24 = vadd.f32 %v15114_v40, %v7171_v63 }
0x12c7   : > { %v7323_v8 = vmul.f32 1.442695, %v8247_v62  ;;  %v8248_v28 = vmul.f32 -1.702, %v15220_v42 }
0x12c8   : > { %v7319_v50 = vmul.f32 1.442695, %v8245_v58  ;;  %v8246_v55 = vmul.f32 -1.702, %v15224_v24 }
0x12c9   : > { %10455 = vpow2.f32 %v7323_v8  ;;  %v7325_v14 = vmul.f32 1.442695, %v8248_v28 }
0x12ca   : > { %10457 = vpow2.f32 %v7319_v50  ;;  %v7321_v30 = vmul.f32 1.442695, %v8246_v55  ;;  %v9332_v12 = vpop.f32.mrb[216].mxu1 }
0x12cb   : > { %v10448_v59 = vpop.eup %10447  ;;  %10459 = vpow2.f32 %v7325_v14  ;;  %v15229_v7 = vadd.f32 %v9332_v12, %v15114_v40  ;;  %v7184_v53 = vpop.f32.mrb[217].mxu1 }
0x12cc   : > { %v10450_v35 = vpop.eup %10449  ;;  %v7361_v44 = vadd.f32 1.0, %v10448_v59  ;;  %10461 = vpow2.f32 %v7321_v30  ;;  %v15232_v4 = vadd.f32 %v15114_v40, %v7184_v53  ;;  %v9333_v57 = vpop.f32.mrb[218].mxu1 }
0x12cd   : > { %v10452_v43 = vpop.eup %10451  ;;  %v7359_v56 = vadd.f32 1.0, %v10450_v35  ;;  %v8251_v18 = vmul.f32 -1.702, %v15229_v7  ;;  %v15236_v25 = vadd.f32 %v9333_v57, %v15114_v40  ;;  %v7187_v5 = vpop.f32.mrb[219].mxu1 }
0x12ce   : > { %v10454_v13 = vpop.eup %10453  ;;  %10463 = vrcp.f32 %v7361_v44  ;;  %v7362_v33 = vadd.f32 1.0, %v10452_v43  ;;  %v8249_v45 = vmul.f32 -1.702, %v15232_v4  ;;  %v15240_v47 = vadd.f32 %v15114_v40, %v7187_v5 }
0x12cf   : > { %10465 = vrcp.f32 %v7359_v56  ;;  %v7360_v52 = vadd.f32 1.0, %v10454_v13  ;;  %v7331_v3 = vmul.f32 1.442695, %v8251_v18  ;;  %v8252_v2 = vmul.f32 -1.702, %v15236_v25 }
0x12d0   : > { %10467 = vrcp.f32 %v7362_v33  ;;  %v7327_v51 = vmul.f32 1.442695, %v8249_v45  ;;  %v8250_v0 = vmul.f32 -1.702, %v15240_v47 }
0x12d1   : > { %10469 = vrcp.f32 %v7360_v52  ;;  %v7333_v48 = vmul.f32 1.442695, %v8252_v2 }
0x12d2   : > { %10471 = vpow2.f32 %v7331_v3  ;;  %v7329_v39 = vmul.f32 1.442695, %v8250_v0 }
0x12d3   : > { %v10456_v20 = vpop.eup %10455  ;;  %10473 = vpow2.f32 %v7327_v51 }
0x12d4   : > { %v10458_v46 = vpop.eup %10457  ;;  %v7365_v1 = vadd.f32 1.0, %v10456_v20  ;;  %10475 = vpow2.f32 %v7333_v48 }
0x12d5   : > { %v10460_v19 = vpop.eup %10459  ;;  %v7363_v17 = vadd.f32 1.0, %v10458_v46  ;;  %10477 = vpow2.f32 %v7329_v39 }
0x12d6   : > { %v10462_v54 = vpop.eup %10461  ;;  %10479 = vrcp.f32 %v7365_v1  ;;  %v7366_v23 = vadd.f32 1.0, %v10460_v19 }
0x12d7   : > { %10481 = vrcp.f32 %v7363_v17  ;;  %v7364_v26 = vadd.f32 1.0, %v10462_v54 }
0x12d8   : > { %v10464_v6 = vpop.eup %10463  ;;  %10483 = vrcp.f32 %v7366_v23 }
0x12d9   : > { %v10466_v62 = vpop.eup %10465  ;;  %10485 = vrcp.f32 %v7364_v26  ;;  %v7457_v8 = vmul.f32 %v10464_v6, %v15197_v9 }
0x12da   : > { %v10468_v63 = vpop.eup %10467  ;;  %v7455_v55 = vmul.f32 %v10466_v62, %v15200_v16 }
0x12db   : > { %v10470_v58 = vpop.eup %10469  ;;  %v7458_v28 = vmul.f32 %v10468_v63, %v15204_v38 }
0x12dc   : > { %v10472_v50 = vpop.eup %10471  ;;  %v7456_v14 = vmul.f32 %v10470_v58, %v15208_v34 }
0x12dd   : > { %v10474_v30 = vpop.eup %10473  ;;  %v7369_v12 = vadd.f32 1.0, %v10472_v50  ;;  %v7480_v59 = vpack.c.bf16 %v7458_v28, %v7457_v8 }
0x12de   : > { %v10476_v53 = vpop.eup %10475  ;;  %v7367_v35 = vadd.f32 1.0, %v10474_v30  ;;  %v7479_v44 = vpack.c.bf16 %v7456_v14, %v7455_v55 }
0x12df   : > { %v10478_v57 = vpop.eup %10477  ;;  %10487 = vrcp.f32 %v7369_v12  ;;  %v7370_v43 = vadd.f32 1.0, %v10476_v53 }
0x12e0   : > { %v10480_v56 = vpop.eup %10479  ;;  %10489 = vrcp.f32 %v7367_v35  ;;  %v7368_v18 = vadd.f32 1.0, %v10478_v57  ;;  %9370 = vmatprep.mubr.bf16.mxu0 %v7479_v44 }
0x12e1   : > { %v10482_v9 = vpop.eup %10481  ;;  %10491 = vrcp.f32 %v7370_v43  ;;  %9371 = vmatmul.mubr.bf16.gmra.mrb[208].mxu0 %v7480_v59  ;;  %v7461_v34 = vmul.f32 %v10480_v56, %v15213_v41 }
0x12e2   : > { %v10484_v38 = vpop.eup %10483  ;;  %10493 = vrcp.f32 %v7368_v18  ;;  %v7459_v13 = vmul.f32 %v10482_v9, %v15216_v21 }
0x12e3   : > { %v10486_v16 = vpop.eup %10485  ;;  %v7462_v5 = vmul.f32 %v10484_v38, %v15220_v42 }
0x12e4   : > { %v7460_v33 = vmul.f32 %v10486_v16, %v15224_v24 }
0x12e5   : > { %v7482_v45 = vpack.c.bf16 %v7462_v5, %v7461_v34  ;;  %v15265_v34 = vld [vmem:[%s16224_s29] ss:$0 sm:$0xff] }
0x12e6   : > { %v7481_v52 = vpack.c.bf16 %v7460_v33, %v7459_v13 }
0x12e8   : > { %9374 = vmatprep.mubr.bf16.mxu0 %v7481_v52 }
0x12e9   : > { %v10488_v3 = vpop.eup %10487  ;;  %9375 = vmatmul.mubr.bf16.gmra.mrb[212].mxu0 %v7482_v45 }
0x12ea   : > { %v10490_v2 = vpop.eup %10489  ;;  %v7465_v48 = vmul.f32 %v10488_v3, %v15229_v7 }
0x12eb   : > { %v10492_v51 = vpop.eup %10491  ;;  %v7463_v41 = vmul.f32 %v10490_v2, %v15232_v4 }
0x12ec   : > { %v10494_v0 = vpop.eup %10493  ;;  %v7466_v39 = vmul.f32 %v10492_v51, %v15236_v25 }
0x12ed   : > { %v7464_v42 = vmul.f32 %v10494_v0, %v15240_v47 }
0x12ee   : > { %v7484_v20 = vpack.c.bf16 %v7466_v39, %v7465_v48 }
0x12ef   : > { %v7483_v21 = vpack.c.bf16 %v7464_v42, %v7463_v41 }
0x12f0   : > { %v9336_v46 = vpop.f32.mrb[220].mxu1 }
0x12f1   : > { %v7209_v24 = vadd.f32 %v9336_v46, %v15114_v40  ;;  %9378 = vmatprep.mubr.bf16.mxu0 %v7483_v21  ;;  %v7200_v1 = vpop.f32.mrb[221].mxu1 }
0x12f2   : > { %v7201_v19 = vadd.f32 %v15114_v40, %v7200_v1  ;;  %9379 = vmatmul.mubr.bf16.gmra.mrb[216].mxu0 %v7484_v20  ;;  %v9337_v17 = vpop.f32.mrb[222].mxu1 }
0x12f3   : > { %v8255_v54 = vmul.f32 -1.702, %v7209_v24  ;;  %v7212_v7 = vadd.f32 %v9337_v17, %v15114_v40  ;;  %v7203_v23 = vpop.f32.mrb[223].mxu1 }
0x12f4   : > { %v8253_v25 = vmul.f32 -1.702, %v7201_v19  ;;  %v7204_v4 = vadd.f32 %v15114_v40, %v7203_v23 }
0x12f5   : > { %v7339_v26 = vmul.f32 1.442695, %v8255_v54  ;;  %v8256_v47 = vmul.f32 -1.702, %v7212_v7 }
0x12f6   : > { %v7335_v6 = vmul.f32 1.442695, %v8253_v25  ;;  %v8254_v62 = vmul.f32 -1.702, %v7204_v4 }
0x12f7   : > { %10495 = vpow2.f32 %v7339_v26  ;;  %v7341_v63 = vmul.f32 1.442695, %v8256_v47  ;;  %v16225_v47 = vld [vmem:[#allocation59_spill] sm:$0xff] }
0x12f8   : > { %10497 = vpow2.f32 %v7335_v6  ;;  %v7337_v58 = vmul.f32 1.442695, %v8254_v62 }
0x12f9   : > { %10499 = vpow2.f32 %v7341_v63 }
0x12fa   : > { %10501 = vpow2.f32 %v7337_v58  ;;  %v16226_v58 = vld [vmem:[#allocation67_spill] sm:$0xff] }
0x1301   : > { %v10496_v8 = vpop.eup %10495 }
0x1302   : > { %v10498_v28 = vpop.eup %10497  ;;  %v7373_v50 = vadd.f32 1.0, %v10496_v8 }
0x1303   : > { %v10500_v55 = vpop.eup %10499  ;;  %v7371_v14 = vadd.f32 1.0, %v10498_v28 }
0x1304   : > { %v10502_v30 = vpop.eup %10501  ;;  %10503 = vrcp.f32 %v7373_v50  ;;  %v7374_v12 = vadd.f32 1.0, %v10500_v55  ;;  %v16227_v55 = vld [vmem:[#allocation65_spill] sm:$0xff] }
0x1305   : > { %10505 = vrcp.f32 %v7371_v14  ;;  %v7372_v40 = vadd.f32 1.0, %v10502_v30 }
0x1306   : > { %10507 = vrcp.f32 %v7374_v12 }
0x1307   : > { %10509 = vrcp.f32 %v7372_v40  ;;  %v16228_v40 = vld [vmem:[#allocation31_spill] sm:$0xff] }
0x130e   : > { %v10504_v59 = vpop.eup %10503 }
0x130f   : > { %v10506_v53 = vpop.eup %10505  ;;  %v7469_v57 = vmul.f32 %v10504_v59, %v7209_v24 }
0x1310   : > { %v10508_v35 = vpop.eup %10507  ;;  %v7467_v56 = vmul.f32 %v10506_v53, %v7201_v19 }
0x1311   : > { %v10510_v44 = vpop.eup %10509  ;;  %v7470_v43 = vmul.f32 %v10508_v35, %v7212_v7  ;;  %v16229_v35 = vld [vmem:[#allocation61_spill] sm:$0xff] }
0x1312   : > { %v7468_v18 = vmul.f32 %v10510_v44, %v7204_v4 }
0x1313   : > { %v7486_v9 = vpack.c.bf16 %v7470_v43, %v7469_v57 }
0x1314   : > { %v7485_v38 = vpack.c.bf16 %v7468_v18, %v7467_v56  ;;  %v16230_v56 = vld [vmem:[#allocation40_spill] sm:$0xff] }
0x1316   : > { %9382 = vmatprep.mubr.bf16.mxu0 %v7485_v38 }
0x1317   : > { %9383 = vmatmul.mubr.bf16.gmra.mrb[220].mxu0 %v7486_v9 }
0x135d   : > { %v9356_v16 = vpop.f32.mrb[192].mxu0 }
0x135e   : > { %v7714_v5 = vadd.f32 %v9356_v16, %v14418_v31  ;;  %v7585_v13 = vpop.f32.mrb[193].mxu0  ;;  %v16231_v16 = vld [vmem:[#allocation33_spill] sm:$0xff] }
0x135f   : > { %v7712_v33 = vadd.f32 %v7585_v13, %v14412_v37  ;;  %v9357_v45 = vpop.f32.mrb[194].mxu0 }
0x1360   : > { %v7753_v52 = vadd.f32 %v15265_v34, %v7714_v5  ;;  %v7715_v3 = vadd.f32 %v9357_v45, %v14433_v27  ;;  %v7588_v2 = vpop.f32.mrb[195].mxu0 }
0x1361   : > { %v7751_v51 = vadd.f32 %v15265_v34, %v7712_v33  ;;  %v7713_v0 = vadd.f32 %v7588_v2, %v14424_v29 }
0x1362   : > { %7785 = vst.msk [vmem:[%s15751_s20 + $0x10] sm:$0xff] %vm984_vm1, %v7753_v52  ;;  %v7754_v31 = vadd.f32 %v15265_v34, %v7715_v3  ;;  %v16232_v52 = vld [vmem:[#allocation38_spill] sm:$0xff] }
0x1363   : > { %7783 = vst.msk [vmem:[%s15751_s20] sm:$0xff] %vm984_vm1, %v7751_v51  ;;  %v7752_v37 = vadd.f32 %v15265_v34, %v7713_v0  ;;  %v16233_v51 = vld [vmem:[#allocation37_spill] sm:$0xff] }
0x1364   : > { %7786 = vst.msk [vmem:[%s15751_s20 + $0x18] sm:$0xff] %vm984_vm1, %v7754_v31 }
0x1365   : > { %7784 = vst.msk [vmem:[%s15751_s20 + $0x8] sm:$0xff] %vm984_vm1, %v7752_v37  ;;  %v9360_v29 = vpop.f32.mrb[196].mxu0 }
0x1366   : > { %v7718_v27 = vadd.f32 %v9360_v29, %v14469_v32  ;;  %v7601_v48 = vpop.f32.mrb[197].mxu0  ;;  %v16234_v29 = vld [vmem:[#allocation42_spill] sm:$0xff] }
0x1367   : > { %v7716_v39 = vadd.f32 %v7601_v48, %v14456_v10  ;;  %v9361_v41 = vpop.f32.mrb[198].mxu0 }
0x1368   : > { %v7757_v42 = vadd.f32 %v15265_v34, %v7718_v27  ;;  %v7719_v20 = vadd.f32 %v9361_v41, %v14464_v49  ;;  %v7604_v21 = vpop.f32.mrb[199].mxu0  ;;  %v16235_v41 = vld [vmem:[#allocation35_spill] sm:$0xff] }
0x1369   : > { %v7755_v46 = vadd.f32 %v15265_v34, %v7716_v39  ;;  %v7717_v24 = vadd.f32 %v7604_v21, %v14461_v61 }
0x136a   : > { %7789 = vst.msk [vmem:[%s15751_s20 + $0x30] sm:$0xff] %vm984_vm1, %v7757_v42  ;;  %v7758_v32 = vadd.f32 %v15265_v34, %v7719_v20 }
0x136b   : > { %7787 = vst.msk [vmem:[%s15751_s20 + $0x20] sm:$0xff] %vm984_vm1, %v7755_v46  ;;  %v7756_v10 = vadd.f32 %v15265_v34, %v7717_v24  ;;  %v16236_v24 = vld [vmem:[#allocation45_spill] sm:$0xff] }
0x136c   : > { %7790 = vst.msk [vmem:[%s15751_s20 + $0x38] sm:$0xff] %vm984_vm1, %v7758_v32 }
0x136d   : > { %7788 = vst.msk [vmem:[%s15751_s20 + $0x28] sm:$0xff] %vm984_vm1, %v7756_v10 }
0x136e   : > { %v9364_v61 = vpop.f32.mrb[200].mxu0 }
0x136f   : > { %v7722_v49 = vadd.f32 %v9364_v61, %v14501_v11  ;;  %v7617_v1 = vpop.f32.mrb[201].mxu0  ;;  %v16237_v61 = vld [vmem:[#allocation44_spill] sm:$0xff] }
0x1370   : > { %v7720_v19 = vadd.f32 %v7617_v1, %v14490_v36  ;;  %v9365_v17 = vpop.f32.mrb[202].mxu0 }
0x1371   : > { %v7761_v54 = vadd.f32 %v15265_v34, %v7722_v49  ;;  %v7723_v7 = vadd.f32 %v9365_v17, %v14509_v15  ;;  %v7620_v23 = vpop.f32.mrb[203].mxu0  ;;  %v16238_v17 = vld [vmem:[#allocation47_spill] sm:$0xff] }
0x1372   : > { %v7759_v25 = vadd.f32 %v15265_v34, %v7720_v19  ;;  %v7721_v4 = vadd.f32 %v7620_v23, %v14504_v22 }
0x1373   : > { %7793 = vst.msk [vmem:[%s15751_s20 + $0x50] sm:$0xff] %vm984_vm1, %v7761_v54  ;;  %v7762_v11 = vadd.f32 %v15265_v34, %v7723_v7 }
0x1374   : > { %7791 = vst.msk [vmem:[%s15751_s20 + $0x40] sm:$0xff] %vm984_vm1, %v7759_v25  ;;  %v7760_v36 = vadd.f32 %v15265_v34, %v7721_v4  ;;  %v16239_v25 = vld [vmem:[#allocation46_spill] sm:$0xff] }
0x1375   : > { %7794 = vst.msk [vmem:[%s15751_s20 + $0x58] sm:$0xff] %vm984_vm1, %v7762_v11 }
0x1376   : > { %7792 = vst.msk [vmem:[%s15751_s20 + $0x48] sm:$0xff] %vm984_vm1, %v7760_v36  ;;  %v9368_v22 = vpop.f32.mrb[204].mxu0 }
0x1377   : > { %v7726_v15 = vadd.f32 %v9368_v22, %v14615_v60  ;;  %v7633_v26 = vpop.f32.mrb[205].mxu0 }
0x1378   : > { %v7724_v6 = vadd.f32 %v7633_v26, %v16225_v47  ;;  %v9369_v62 = vpop.f32.mrb[206].mxu0 }
0x1379   : > { %v7765_v63 = vadd.f32 %v15265_v34, %v7726_v15  ;;  %v7727_v8 = vadd.f32 %v9369_v62, %v16226_v58  ;;  %v7636_v28 = vpop.f32.mrb[207].mxu0  ;;  %v16240_v15 = vld [vmem:[#allocation62_spill] sm:$0xff] }
0x137a   : > { %v7763_v50 = vadd.f32 %v15265_v34, %v7724_v6  ;;  %v7725_v14 = vadd.f32 %v7636_v28, %v16227_v55  ;;  %v16241_v6 = vld [vmem:[#allocation48_spill] sm:$0xff] }
0x137b   : > { %7797 = vst.msk [vmem:[%s15751_s20 + $0x70] sm:$0xff] %vm984_vm1, %v7765_v63  ;;  %v7766_v60 = vadd.f32 %v15265_v34, %v7727_v8  ;;  %v16242_v8 = vld [vmem:[#allocation68_spill] sm:$0xff] }
0x137c   : > { %7795 = vst.msk [vmem:[%s15751_s20 + $0x60] sm:$0xff] %vm984_vm1, %v7763_v50  ;;  %v7764_v30 = vadd.f32 %v15265_v34, %v7725_v14  ;;  %v16243_v14 = vld [vmem:[#allocation66_spill] sm:$0xff] }
0x137d   : > { %7798 = vst.msk [vmem:[%s15751_s20 + $0x78] sm:$0xff] %vm984_vm1, %v7766_v60 }
0x137e   : > { %7796 = vst.msk [vmem:[%s15751_s20 + $0x68] sm:$0xff] %vm984_vm1, %v7764_v30 }
0x13b4   : > { %v9372_v12 = vpop.f32.mrb[208].mxu0 }
0x13b5   : > { %v7730_v59 = vadd.f32 %v9372_v12, %v16228_v40  ;;  %v7649_v53 = vpop.f32.mrb[209].mxu0 }
0x13b6   : > { %v7728_v44 = vadd.f32 %v7649_v53, %v16229_v35  ;;  %v9373_v57 = vpop.f32.mrb[210].mxu0 }
0x13b7   : > { %v7769_v43 = vadd.f32 %v15265_v34, %v7730_v59  ;;  %v7731_v18 = vadd.f32 %v9373_v57, %v16230_v56  ;;  %v7652_v9 = vpop.f32.mrb[211].mxu0 }
0x13b8   : > { %v7767_v38 = vadd.f32 %v15265_v34, %v7728_v44  ;;  %v7729_v5 = vadd.f32 %v7652_v9, %v16231_v16 }
0x13b9   : > { %7801 = vst.msk [vmem:[%s15751_s20 + $0x90] sm:$0xff] %vm984_vm1, %v7769_v43  ;;  %v7770_v13 = vadd.f32 %v15265_v34, %v7731_v18 }
0x13ba   : > { %7799 = vst.msk [vmem:[%s15751_s20 + $0x80] sm:$0xff] %vm984_vm1, %v7767_v38  ;;  %v7768_v33 = vadd.f32 %v15265_v34, %v7729_v5 }
0x13bb   : > { %7802 = vst.msk [vmem:[%s15751_s20 + $0x98] sm:$0xff] %vm984_vm1, %v7770_v13 }
0x13bc   : > { %7800 = vst.msk [vmem:[%s15751_s20 + $0x88] sm:$0xff] %vm984_vm1, %v7768_v33  ;;  %v9376_v45 = vpop.f32.mrb[212].mxu0 }
0x13bd   : > { %v7734_v3 = vadd.f32 %v9376_v45, %v16232_v52  ;;  %v7665_v2 = vpop.f32.mrb[213].mxu0 }
0x13be   : > { %v7732_v0 = vadd.f32 %v7665_v2, %v16233_v51  ;;  %v9377_v31 = vpop.f32.mrb[214].mxu0 }
0x13bf   : > { %v7773_v37 = vadd.f32 %v15265_v34, %v7734_v3  ;;  %v7735_v27 = vadd.f32 %v9377_v31, %v16234_v29  ;;  %v7668_v48 = vpop.f32.mrb[215].mxu0 }
0x13c0   : > { %v7771_v39 = vadd.f32 %v15265_v34, %v7732_v0  ;;  %v7733_v42 = vadd.f32 %v7668_v48, %v16235_v41 }
0x13c1   : > { %7805 = vst.msk [vmem:[%s15751_s20 + $0xb0] sm:$0xff] %vm984_vm1, %v7773_v37  ;;  %v7774_v20 = vadd.f32 %v15265_v34, %v7735_v27 }
0x13c2   : > { %7803 = vst.msk [vmem:[%s15751_s20 + $0xa0] sm:$0xff] %vm984_vm1, %v7771_v39  ;;  %v7772_v21 = vadd.f32 %v15265_v34, %v7733_v42 }
0x13c3   : > { %7806 = vst.msk [vmem:[%s15751_s20 + $0xb8] sm:$0xff] %vm984_vm1, %v7774_v20 }
0x13c4   : > { %7804 = vst.msk [vmem:[%s15751_s20 + $0xa8] sm:$0xff] %vm984_vm1, %v7772_v21 }
0x13c5   : > { %v9380_v46 = vpop.f32.mrb[216].mxu0 }
0x13c6   : > { %v7738_v32 = vadd.f32 %v9380_v46, %v16236_v24  ;;  %v7681_v10 = vpop.f32.mrb[217].mxu0 }
0x13c7   : > { %v7736_v49 = vadd.f32 %v7681_v10, %v16237_v61  ;;  %v9381_v1 = vpop.f32.mrb[218].mxu0 }
0x13c8   : > { %v7777_v19 = vadd.f32 %v15265_v34, %v7738_v32  ;;  %v7739_v54 = vadd.f32 %v9381_v1, %v16238_v17  ;;  %v7684_v7 = vpop.f32.mrb[219].mxu0 }
0x13c9   : > { %v7775_v23 = vadd.f32 %v15265_v34, %v7736_v49  ;;  %v7737_v4 = vadd.f32 %v7684_v7, %v16239_v25 }
0x13ca   : > { %7809 = vst.msk [vmem:[%s15751_s20 + $0xd0] sm:$0xff] %vm984_vm1, %v7777_v19  ;;  %v7778_v11 = vadd.f32 %v15265_v34, %v7739_v54 }
0x13cb   : > { %7807 = vst.msk [vmem:[%s15751_s20 + $0xc0] sm:$0xff] %vm984_vm1, %v7775_v23  ;;  %v7776_v36 = vadd.f32 %v15265_v34, %v7737_v4 }
0x13cc   : > { %7810 = vst.msk [vmem:[%s15751_s20 + $0xd8] sm:$0xff] %vm984_vm1, %v7778_v11 }
0x13cd   : > { %7808 = vst.msk [vmem:[%s15751_s20 + $0xc8] sm:$0xff] %vm984_vm1, %v7776_v36 }
0x13ea   : > { %v9384_v22 = vpop.f32.mrb[220].mxu0 }
0x13eb   : > { %v7742_v26 = vadd.f32 %v9384_v22, %v16240_v15  ;;  %v7697_v47 = vpop.f32.mrb[221].mxu0 }
0x13ec   : > { %v7740_v62 = vadd.f32 %v7697_v47, %v16241_v6  ;;  %v9385_v63 = vpop.f32.mrb[222].mxu0 }
0x13ed   : > { %v7781_v58 = vadd.f32 %v15265_v34, %v7742_v26  ;;  %v7743_v28 = vadd.f32 %v9385_v63, %v16242_v8  ;;  %v7700_v50 = vpop.f32.mrb[223].mxu0 }
0x13ee   : > { %v7779_v55 = vadd.f32 %v15265_v34, %v7740_v62  ;;  %v7741_v60 = vadd.f32 %v7700_v50, %v16243_v14 }
0x13ef   : > { %7813 = vst.msk [vmem:[%s15751_s20 + $0xf0] sm:$0xff] %vm984_vm1, %v7781_v58  ;;  %v7782_v30 = vadd.f32 %v15265_v34, %v7743_v28 }
0x13f0   : > { %7811 = vst.msk [vmem:[%s15751_s20 + $0xe0] sm:$0xff] %vm984_vm1, %v7779_v55  ;;  %v7780_v12 = vadd.f32 %v15265_v34, %v7741_v60 }
0x13f1   : > { %7814 = vst.msk [vmem:[%s15751_s20 + $0xf8] sm:$0xff] %vm984_vm1, %v7782_v30 }
0x13f2   : > { %7812 = vst.msk [vmem:[%s15751_s20 + $0xe8] sm:$0xff] %vm984_vm1, %v7780_v12 }
0x13f3 PF: > { %s16244_s0 = sld [smem:[#allocation4_spill]]  ;;  %s16245_s24 = sld [smem:[#allocation3_spill]] }
0x13f4   : > { %s16246_s25 = sld [smem:[#allocation5_spill]] }
0x13f9   : > { %s27_s26 = sadd.s32 1, %s16244_s0  }
0x13fa   : > { %p24_p6 = scmp.ge.s32.totalorder %s27_s26, 4  }
0x13fc   :  { %26 = sbr.rel (!%p24_p6) target bundleno = 10 (0xa), region = 170 }

</bundles_post_ra>
